<compile_context>
chip_gen: v6e
topology: v6e:2x2x1
jax: 0.10.0
libtpu: 0.0.40
codegen_flags: <defaults>
</compile_context>

<pallas_src>
import numpy as np
import jax
import jax.numpy as jnp
from jax.experimental import pallas as pl
from jax.experimental.pallas import tpu as pltpu

N = 2
IN_C, H_IN, W_IN = 5, 15, 15
OUT_PAD = 128            # lane-dense padded logit width (sliced to 10 outside)


# ----------------------------- in-kernel helpers -----------------------------
def _maxpool_2x2_s1(a):
    """2x2 max pool, stride 1, over batch-stacked (n, h, w)."""
    h, w = a.shape[1], a.shape[2]
    return jnp.maximum(
        jnp.maximum(a[:, : h - 1, : w - 1], a[:, : h - 1, 1:]),
        jnp.maximum(a[:, 1:, : w - 1], a[:, 1:, 1:]),
    )


def _conv3x3_relu(chans, w, b, c_out, c_in, h_out, w_out):
    """Valid 3x3 conv + bias + ReLU over batch-stacked (n, h, w) channels.

    Only the kw shift crosses lanes: build 3 lane-shifted copies per input
    channel once; the kh windows are cheap sublane slices of those copies.
    `w` / `b` are already-loaded SMEM scalars, layout (co, ci, kh, kw).
    """
    lane_sh = [[ch[:, :, kw:kw + w_out] for kw in range(3)] for ch in chans]
    wins = [[lane_sh[ci][kw][:, kh:kh + h_out, :]
             for kh in range(3) for kw in range(3)]
            for ci in range(c_in)]
    outs = []
    for co in range(c_out):
        acc = None
        for ci in range(c_in):
            base = (co * c_in + ci) * 9
            for k in range(9):
                term = w[base + k] * wins[ci][k]
                acc = term if acc is None else acc + term
        outs.append(jnp.maximum(acc + b[co], 0.0))
    return outs


# ------------------------------ fused net kernel -----------------------------
def net_kernel(x_ref,                                              # (n,5,15,15)
               w1_ref, b1_ref, w2_ref, b2_ref, w3_ref, b3_ref,     # SMEM
               fw1_ref, fb1_ref, fw2_ref, fb2_ref, fw3_ref, fb3_ref,  # VMEM
               o_ref):                                             # (n,128)
    n = x_ref.shape[0]

    # --- conv weights/biases: SMEM scalars, loaded exactly once ---
    w1 = [w1_ref[i] for i in range(3 * 5 * 9)]
    b1 = [b1_ref[i] for i in range(3)]
    w2 = [w2_ref[i] for i in range(2 * 3 * 9)]
    b2 = [b2_ref[i] for i in range(2)]
    w3 = [w3_ref[i] for i in range(2 * 2 * 9)]
    b3 = [b3_ref[i] for i in range(2)]

    # --- conv1 padding=1 done in registers (zero concat, no scratch) ---
    x = x_ref[...]                                        # (n, 5, 15, 15)
    zr = jnp.zeros((n, 5, 1, W_IN), jnp.float32)
    xp = jnp.concatenate([zr, x, zr], axis=2)             # (n, 5, 17, 15)
    zc = jnp.zeros((n, 5, H_IN + 2, 1), jnp.float32)
    xp = jnp.concatenate([zc, xp, zc], axis=3)            # (n, 5, 17, 17)
    chans = [xp[:, ci] for ci in range(5)]                # 5 x (n, 17, 17)

    # --- conv stack, batch-vectorized (issued once for all batch elems) ---
    h1 = _conv3x3_relu(chans, w1, b1, 3, 5, 15, 15)       # 3 x (n, 15, 15)
    p1 = [_maxpool_2x2_s1(a) for a in h1]                 # 3 x (n, 14, 14)
    h2 = _conv3x3_relu(p1, w2, b2, 2, 3, 12, 12)          # 2 x (n, 12, 12)
    p2 = [_maxpool_2x2_s1(a) for a in h2]                 # 2 x (n, 11, 11)
    h3 = _conv3x3_relu(p2, w3, b3, 2, 2, 9, 9)            # 2 x (n, 9, 9)

    # --- register-resident flatten; feature order f = h*18 + co*9 + w ---
    # (fw1's rows are permuted offline in prepare_params to match this order)
    cat = jnp.concatenate([h3[0], h3[1]], axis=2)         # (n, 9, 18)
    flat = jnp.concatenate([cat[:, r, :] for r in range(9)], axis=1)  # (n,162)

    # --- MLP entirely in registers / MXU ---
    h = jnp.dot(flat, fw1_ref[...],
                preferred_element_type=jnp.float32) + fb1_ref[...]
    h = jnp.where(h > 0, h, 0.2 * h)                      # leaky_relu(0.2)
    h = jnp.dot(h, fw2_ref[...],
                preferred_element_type=jnp.float32) + fb2_ref[...]
    h = jnp.where(h > 0, h, 0.2 * h)
    logits = jnp.dot(h, fw3_ref[...],
                     preferred_element_type=jnp.float32) + fb3_ref[...]
    # softmax over 128 lanes; padded columns have bias -1e30 -> exp == 0
    m = jnp.max(logits, axis=1, keepdims=True)
    e = jnp.exp(logits - m)
    denom = jnp.sum(e, axis=1, keepdims=True)
    o_ref[...] = e * pl.reciprocal(denom, approx=True)    # full-width vst


# ---------------------------------- wrapper ----------------------------------
def prepare_params(params):
    """One-time layout prep (no per-call XLA glue):
      * conv weights flattened for SMEM scalar access,
      * fc1 weight transposed AND its 162 input rows permuted to the
        in-kernel flatten order f = h*18 + co*9 + w,
      * fc2/fc3 transposed; fc3 padded to 128 lane-dense output columns with
        a -1e30 bias on the padding so the in-kernel softmax ignores them.
    """
    (w1, b1, w2, b2, w3, b3, fw1, fb1, fw2, fb2, fw3, fb3) = params
    perm = np.array([co * 81 + h * 9 + w
                     for h in range(9) for co in range(2) for w in range(9)],
                    dtype=np.int32)
    fw1_t = jnp.asarray(fw1).T[perm]                       # (162, 120)
    fw3_pad = jnp.zeros((84, OUT_PAD), jnp.float32).at[:, :10].set(fw3.T)
    fb3_pad = jnp.full((1, OUT_PAD), -1e30,
                       jnp.float32).at[:, :10].set(fb3.reshape(1, -1))
    return (w1.reshape(-1), b1, w2.reshape(-1), b2, w3.reshape(-1), b3,
            fw1_t, fb1.reshape(1, -1),
            fw2.T, fb2.reshape(1, -1),
            fw3_pad, fb3_pad)


def net_forward(x, kparams):
    (w1f, b1, w2f, b2, w3f, b3,
     fw1t, fb1r, fw2t, fb2r, fw3p, fb3p) = kparams
    n = x.shape[0]

    smem = pl.BlockSpec(memory_space=pltpu.MemorySpace.SMEM)
    vmem = pl.BlockSpec(memory_space=pltpu.MemorySpace.VMEM)

    # TODO(synk): on v7x (2 TensorCores/chip) split the batch across cores via
    # grid=(n,) + dimension_semantics=("parallel",).  Kept collapsed here since
    # v5e/v6e have a single TC and a serial grid only adds per-step overhead.
    out = pl.pallas_call(
        net_kernel,
        out_shape=jax.ShapeDtypeStruct((n, OUT_PAD), jnp.float32),
        in_specs=[vmem,                                   # x
                  smem, smem, smem, smem, smem, smem,     # conv w/b scalars
                  vmem, vmem, vmem, vmem, vmem, vmem],    # fc w/b
        out_specs=vmem,
    )(x, w1f, b1, w2f, b2, w3f, b3, fw1t, fb1r, fw2t, fb2r, fw3p, fb3p)
    return out[:, :10]


# ------------------------ deterministic parameter init -----------------------
def init_params(key):
    ks = jax.random.split(key, 12)

    def u(k, shape, fan_in):
        b = 1.0 / float(np.sqrt(fan_in))
        return jax.random.uniform(k, shape, jnp.float32, -b, b)

    w1 = u(ks[0], (3, 5, 3, 3), 5 * 9); b1 = u(ks[1], (3,), 5 * 9)
    w2 = u(ks[2], (2, 3, 3, 3), 3 * 9); b2 = u(ks[3], (2,), 3 * 9)
    w3 = u(ks[4], (2, 2, 3, 3), 2 * 9); b3 = u(ks[5], (2,), 2 * 9)
    fw1 = u(ks[6], (120, 162), 162);    fb1 = u(ks[7], (120,), 162)
    fw2 = u(ks[8], (84, 120), 120);     fb2 = u(ks[9], (84,), 120)
    fw3 = u(ks[10], (10, 84), 84);      fb3 = u(ks[11], (10,), 84)
    return (w1, b1, w2, b2, w3, b3, fw1, fb1, fw2, fb2, fw3, fb3)


# ----------------------------- pure-JAX reference ----------------------------
def ref_forward(x, params):
    (w1, b1, w2, b2, w3, b3, fw1, fb1, fw2, fb2, fw3, fb3) = params

    def conv(h, w, b, pad):
        y = jax.lax.conv_general_dilated(
            h, w, (1, 1), [(pad, pad), (pad, pad)],
            dimension_numbers=("NCHW", "OIHW", "NCHW"))
        return y + b[None, :, None, None]

    def pool(h):
        return jax.lax.reduce_window(h, -jnp.inf, jax.lax.max,
                                     (1, 1, 2, 2), (1, 1, 1, 1), "VALID")

    h = jax.nn.relu(conv(x, w1, b1, 1))
    h = pool(h)
    h = jax.nn.relu(conv(h, w2, b2, 0))
    h = pool(h)
    h = jax.nn.relu(conv(h, w3, b3, 0))
    h = h.reshape(-1, 162)
    h = jax.nn.leaky_relu(h @ fw1.T + fb1, 0.2)
    h = jax.nn.leaky_relu(h @ fw2.T + fb2, 0.2)
    logits = h @ fw3.T + fb3
    return jax.nn.softmax(logits, axis=1)


if __name__ == "__main__":
    key = jax.random.PRNGKey(0)
    pkey, xkey = jax.random.split(key)
    params = init_params(pkey)
    kparams = prepare_params(params)          # one-time layout prep
    x = jax.random.normal(xkey, (N, IN_C, H_IN, W_IN), jnp.float32)

    out = jax.block_until_ready(net_forward(x, kparams))
    assert out.shape == (N, 10)

    ref = jax.block_until_ready(ref_forward(x, params))
    np.testing.assert_allclose(np.asarray(out), np.asarray(ref),
                               atol=2e-3, rtol=2e-2)
    print("KERNEL_OK")
</pallas_src>

<mosaic_0001>
module attributes {stable_mosaic.version = 11 : i64} {
  func.func @net_kernel(%arg0: memref<2x5x15x15xf32, #tpu.memory_space<vmem>>, %arg1: memref<135xf32, #tpu.memory_space<smem>>, %arg2: memref<3xf32, #tpu.memory_space<smem>>, %arg3: memref<54xf32, #tpu.memory_space<smem>>, %arg4: memref<2xf32, #tpu.memory_space<smem>>, %arg5: memref<36xf32, #tpu.memory_space<smem>>, %arg6: memref<2xf32, #tpu.memory_space<smem>>, %arg7: memref<162x120xf32, #tpu.memory_space<vmem>>, %arg8: memref<1x120xf32, #tpu.memory_space<vmem>>, %arg9: memref<120x84xf32, #tpu.memory_space<vmem>>, %arg10: memref<1x84xf32, #tpu.memory_space<vmem>>, %arg11: memref<84x128xf32, #tpu.memory_space<vmem>>, %arg12: memref<1x128xf32, #tpu.memory_space<vmem>>, %arg13: memref<2x128xf32, #tpu.memory_space<vmem>>) attributes {dimension_semantics = [], scalar_prefetch = 0 : i64, scratch_operands = 0 : i64, tpu.core_type = #tpu.core_type<tc>} {
    %c0 = arith.constant 0 : index
    %0 = memref.load %arg1[%c0] : memref<135xf32, #tpu.memory_space<smem>>
    %c1 = arith.constant 1 : index
    %1 = memref.load %arg1[%c1] : memref<135xf32, #tpu.memory_space<smem>>
    %c2 = arith.constant 2 : index
    %2 = memref.load %arg1[%c2] : memref<135xf32, #tpu.memory_space<smem>>
    %c3 = arith.constant 3 : index
    %3 = memref.load %arg1[%c3] : memref<135xf32, #tpu.memory_space<smem>>
    %c4 = arith.constant 4 : index
    %4 = memref.load %arg1[%c4] : memref<135xf32, #tpu.memory_space<smem>>
    %c5 = arith.constant 5 : index
    %5 = memref.load %arg1[%c5] : memref<135xf32, #tpu.memory_space<smem>>
    %c6 = arith.constant 6 : index
    %6 = memref.load %arg1[%c6] : memref<135xf32, #tpu.memory_space<smem>>
    %c7 = arith.constant 7 : index
    %7 = memref.load %arg1[%c7] : memref<135xf32, #tpu.memory_space<smem>>
    %c8 = arith.constant 8 : index
    %8 = memref.load %arg1[%c8] : memref<135xf32, #tpu.memory_space<smem>>
    %c9 = arith.constant 9 : index
    %9 = memref.load %arg1[%c9] : memref<135xf32, #tpu.memory_space<smem>>
    %c10 = arith.constant 10 : index
    %10 = memref.load %arg1[%c10] : memref<135xf32, #tpu.memory_space<smem>>
    %c11 = arith.constant 11 : index
    %11 = memref.load %arg1[%c11] : memref<135xf32, #tpu.memory_space<smem>>
    %c12 = arith.constant 12 : index
    %12 = memref.load %arg1[%c12] : memref<135xf32, #tpu.memory_space<smem>>
    %c13 = arith.constant 13 : index
    %13 = memref.load %arg1[%c13] : memref<135xf32, #tpu.memory_space<smem>>
    %c14 = arith.constant 14 : index
    %14 = memref.load %arg1[%c14] : memref<135xf32, #tpu.memory_space<smem>>
    %c15 = arith.constant 15 : index
    %15 = memref.load %arg1[%c15] : memref<135xf32, #tpu.memory_space<smem>>
    %c16 = arith.constant 16 : index
    %16 = memref.load %arg1[%c16] : memref<135xf32, #tpu.memory_space<smem>>
    %c17 = arith.constant 17 : index
    %17 = memref.load %arg1[%c17] : memref<135xf32, #tpu.memory_space<smem>>
    %c18 = arith.constant 18 : index
    %18 = memref.load %arg1[%c18] : memref<135xf32, #tpu.memory_space<smem>>
    %c19 = arith.constant 19 : index
    %19 = memref.load %arg1[%c19] : memref<135xf32, #tpu.memory_space<smem>>
    %c20 = arith.constant 20 : index
    %20 = memref.load %arg1[%c20] : memref<135xf32, #tpu.memory_space<smem>>
    %c21 = arith.constant 21 : index
    %21 = memref.load %arg1[%c21] : memref<135xf32, #tpu.memory_space<smem>>
    %c22 = arith.constant 22 : index
    %22 = memref.load %arg1[%c22] : memref<135xf32, #tpu.memory_space<smem>>
    %c23 = arith.constant 23 : index
    %23 = memref.load %arg1[%c23] : memref<135xf32, #tpu.memory_space<smem>>
    %c24 = arith.constant 24 : index
    %24 = memref.load %arg1[%c24] : memref<135xf32, #tpu.memory_space<smem>>
    %c25 = arith.constant 25 : index
    %25 = memref.load %arg1[%c25] : memref<135xf32, #tpu.memory_space<smem>>
    %c26 = arith.constant 26 : index
    %26 = memref.load %arg1[%c26] : memref<135xf32, #tpu.memory_space<smem>>
    %c27 = arith.constant 27 : index
    %27 = memref.load %arg1[%c27] : memref<135xf32, #tpu.memory_space<smem>>
    %c28 = arith.constant 28 : index
    %28 = memref.load %arg1[%c28] : memref<135xf32, #tpu.memory_space<smem>>
    %c29 = arith.constant 29 : index
    %29 = memref.load %arg1[%c29] : memref<135xf32, #tpu.memory_space<smem>>
    %c30 = arith.constant 30 : index
    %30 = memref.load %arg1[%c30] : memref<135xf32, #tpu.memory_space<smem>>
    %c31 = arith.constant 31 : index
    %31 = memref.load %arg1[%c31] : memref<135xf32, #tpu.memory_space<smem>>
    %c32 = arith.constant 32 : index
    %32 = memref.load %arg1[%c32] : memref<135xf32, #tpu.memory_space<smem>>
    %c33 = arith.constant 33 : index
    %33 = memref.load %arg1[%c33] : memref<135xf32, #tpu.memory_space<smem>>
    %c34 = arith.constant 34 : index
    %34 = memref.load %arg1[%c34] : memref<135xf32, #tpu.memory_space<smem>>
    %c35 = arith.constant 35 : index
    %35 = memref.load %arg1[%c35] : memref<135xf32, #tpu.memory_space<smem>>
    %c36 = arith.constant 36 : index
    %36 = memref.load %arg1[%c36] : memref<135xf32, #tpu.memory_space<smem>>
    %c37 = arith.constant 37 : index
    %37 = memref.load %arg1[%c37] : memref<135xf32, #tpu.memory_space<smem>>
    %c38 = arith.constant 38 : index
    %38 = memref.load %arg1[%c38] : memref<135xf32, #tpu.memory_space<smem>>
    %c39 = arith.constant 39 : index
    %39 = memref.load %arg1[%c39] : memref<135xf32, #tpu.memory_space<smem>>
    %c40 = arith.constant 40 : index
    %40 = memref.load %arg1[%c40] : memref<135xf32, #tpu.memory_space<smem>>
    %c41 = arith.constant 41 : index
    %41 = memref.load %arg1[%c41] : memref<135xf32, #tpu.memory_space<smem>>
    %c42 = arith.constant 42 : index
    %42 = memref.load %arg1[%c42] : memref<135xf32, #tpu.memory_space<smem>>
    %c43 = arith.constant 43 : index
    %43 = memref.load %arg1[%c43] : memref<135xf32, #tpu.memory_space<smem>>
    %c44 = arith.constant 44 : index
    %44 = memref.load %arg1[%c44] : memref<135xf32, #tpu.memory_space<smem>>
    %c45 = arith.constant 45 : index
    %45 = memref.load %arg1[%c45] : memref<135xf32, #tpu.memory_space<smem>>
    %c46 = arith.constant 46 : index
    %46 = memref.load %arg1[%c46] : memref<135xf32, #tpu.memory_space<smem>>
    %c47 = arith.constant 47 : index
    %47 = memref.load %arg1[%c47] : memref<135xf32, #tpu.memory_space<smem>>
    %c48 = arith.constant 48 : index
    %48 = memref.load %arg1[%c48] : memref<135xf32, #tpu.memory_space<smem>>
    %c49 = arith.constant 49 : index
    %49 = memref.load %arg1[%c49] : memref<135xf32, #tpu.memory_space<smem>>
    %c50 = arith.constant 50 : index
    %50 = memref.load %arg1[%c50] : memref<135xf32, #tpu.memory_space<smem>>
    %c51 = arith.constant 51 : index
    %51 = memref.load %arg1[%c51] : memref<135xf32, #tpu.memory_space<smem>>
    %c52 = arith.constant 52 : index
    %52 = memref.load %arg1[%c52] : memref<135xf32, #tpu.memory_space<smem>>
    %c53 = arith.constant 53 : index
    %53 = memref.load %arg1[%c53] : memref<135xf32, #tpu.memory_space<smem>>
    %c54 = arith.constant 54 : index
    %54 = memref.load %arg1[%c54] : memref<135xf32, #tpu.memory_space<smem>>
    %c55 = arith.constant 55 : index
    %55 = memref.load %arg1[%c55] : memref<135xf32, #tpu.memory_space<smem>>
    %c56 = arith.constant 56 : index
    %56 = memref.load %arg1[%c56] : memref<135xf32, #tpu.memory_space<smem>>
    %c57 = arith.constant 57 : index
    %57 = memref.load %arg1[%c57] : memref<135xf32, #tpu.memory_space<smem>>
    %c58 = arith.constant 58 : index
    %58 = memref.load %arg1[%c58] : memref<135xf32, #tpu.memory_space<smem>>
    %c59 = arith.constant 59 : index
    %59 = memref.load %arg1[%c59] : memref<135xf32, #tpu.memory_space<smem>>
    %c60 = arith.constant 60 : index
    %60 = memref.load %arg1[%c60] : memref<135xf32, #tpu.memory_space<smem>>
    %c61 = arith.constant 61 : index
    %61 = memref.load %arg1[%c61] : memref<135xf32, #tpu.memory_space<smem>>
    %c62 = arith.constant 62 : index
    %62 = memref.load %arg1[%c62] : memref<135xf32, #tpu.memory_space<smem>>
    %c63 = arith.constant 63 : index
    %63 = memref.load %arg1[%c63] : memref<135xf32, #tpu.memory_space<smem>>
    %c64 = arith.constant 64 : index
    %64 = memref.load %arg1[%c64] : memref<135xf32, #tpu.memory_space<smem>>
    %c65 = arith.constant 65 : index
    %65 = memref.load %arg1[%c65] : memref<135xf32, #tpu.memory_space<smem>>
    %c66 = arith.constant 66 : index
    %66 = memref.load %arg1[%c66] : memref<135xf32, #tpu.memory_space<smem>>
    %c67 = arith.constant 67 : index
    %67 = memref.load %arg1[%c67] : memref<135xf32, #tpu.memory_space<smem>>
    %c68 = arith.constant 68 : index
    %68 = memref.load %arg1[%c68] : memref<135xf32, #tpu.memory_space<smem>>
    %c69 = arith.constant 69 : index
    %69 = memref.load %arg1[%c69] : memref<135xf32, #tpu.memory_space<smem>>
    %c70 = arith.constant 70 : index
    %70 = memref.load %arg1[%c70] : memref<135xf32, #tpu.memory_space<smem>>
    %c71 = arith.constant 71 : index
    %71 = memref.load %arg1[%c71] : memref<135xf32, #tpu.memory_space<smem>>
    %c72 = arith.constant 72 : index
    %72 = memref.load %arg1[%c72] : memref<135xf32, #tpu.memory_space<smem>>
    %c73 = arith.constant 73 : index
    %73 = memref.load %arg1[%c73] : memref<135xf32, #tpu.memory_space<smem>>
    %c74 = arith.constant 74 : index
    %74 = memref.load %arg1[%c74] : memref<135xf32, #tpu.memory_space<smem>>
    %c75 = arith.constant 75 : index
    %75 = memref.load %arg1[%c75] : memref<135xf32, #tpu.memory_space<smem>>
    %c76 = arith.constant 76 : index
    %76 = memref.load %arg1[%c76] : memref<135xf32, #tpu.memory_space<smem>>
    %c77 = arith.constant 77 : index
    %77 = memref.load %arg1[%c77] : memref<135xf32, #tpu.memory_space<smem>>
    %c78 = arith.constant 78 : index
    %78 = memref.load %arg1[%c78] : memref<135xf32, #tpu.memory_space<smem>>
    %c79 = arith.constant 79 : index
    %79 = memref.load %arg1[%c79] : memref<135xf32, #tpu.memory_space<smem>>
    %c80 = arith.constant 80 : index
    %80 = memref.load %arg1[%c80] : memref<135xf32, #tpu.memory_space<smem>>
    %c81 = arith.constant 81 : index
    %81 = memref.load %arg1[%c81] : memref<135xf32, #tpu.memory_space<smem>>
    %c82 = arith.constant 82 : index
    %82 = memref.load %arg1[%c82] : memref<135xf32, #tpu.memory_space<smem>>
    %c83 = arith.constant 83 : index
    %83 = memref.load %arg1[%c83] : memref<135xf32, #tpu.memory_space<smem>>
    %c84 = arith.constant 84 : index
    %84 = memref.load %arg1[%c84] : memref<135xf32, #tpu.memory_space<smem>>
    %c85 = arith.constant 85 : index
    %85 = memref.load %arg1[%c85] : memref<135xf32, #tpu.memory_space<smem>>
    %c86 = arith.constant 86 : index
    %86 = memref.load %arg1[%c86] : memref<135xf32, #tpu.memory_space<smem>>
    %c87 = arith.constant 87 : index
    %87 = memref.load %arg1[%c87] : memref<135xf32, #tpu.memory_space<smem>>
    %c88 = arith.constant 88 : index
    %88 = memref.load %arg1[%c88] : memref<135xf32, #tpu.memory_space<smem>>
    %c89 = arith.constant 89 : index
    %89 = memref.load %arg1[%c89] : memref<135xf32, #tpu.memory_space<smem>>
    %c90 = arith.constant 90 : index
    %90 = memref.load %arg1[%c90] : memref<135xf32, #tpu.memory_space<smem>>
    %c91 = arith.constant 91 : index
    %91 = memref.load %arg1[%c91] : memref<135xf32, #tpu.memory_space<smem>>
    %c92 = arith.constant 92 : index
    %92 = memref.load %arg1[%c92] : memref<135xf32, #tpu.memory_space<smem>>
    %c93 = arith.constant 93 : index
    %93 = memref.load %arg1[%c93] : memref<135xf32, #tpu.memory_space<smem>>
    %c94 = arith.constant 94 : index
    %94 = memref.load %arg1[%c94] : memref<135xf32, #tpu.memory_space<smem>>
    %c95 = arith.constant 95 : index
    %95 = memref.load %arg1[%c95] : memref<135xf32, #tpu.memory_space<smem>>
    %c96 = arith.constant 96 : index
    %96 = memref.load %arg1[%c96] : memref<135xf32, #tpu.memory_space<smem>>
    %c97 = arith.constant 97 : index
    %97 = memref.load %arg1[%c97] : memref<135xf32, #tpu.memory_space<smem>>
    %c98 = arith.constant 98 : index
    %98 = memref.load %arg1[%c98] : memref<135xf32, #tpu.memory_space<smem>>
    %c99 = arith.constant 99 : index
    %99 = memref.load %arg1[%c99] : memref<135xf32, #tpu.memory_space<smem>>
    %c100 = arith.constant 100 : index
    %100 = memref.load %arg1[%c100] : memref<135xf32, #tpu.memory_space<smem>>
    %c101 = arith.constant 101 : index
    %101 = memref.load %arg1[%c101] : memref<135xf32, #tpu.memory_space<smem>>
    %c102 = arith.constant 102 : index
    %102 = memref.load %arg1[%c102] : memref<135xf32, #tpu.memory_space<smem>>
    %c103 = arith.constant 103 : index
    %103 = memref.load %arg1[%c103] : memref<135xf32, #tpu.memory_space<smem>>
    %c104 = arith.constant 104 : index
    %104 = memref.load %arg1[%c104] : memref<135xf32, #tpu.memory_space<smem>>
    %c105 = arith.constant 105 : index
    %105 = memref.load %arg1[%c105] : memref<135xf32, #tpu.memory_space<smem>>
    %c106 = arith.constant 106 : index
    %106 = memref.load %arg1[%c106] : memref<135xf32, #tpu.memory_space<smem>>
    %c107 = arith.constant 107 : index
    %107 = memref.load %arg1[%c107] : memref<135xf32, #tpu.memory_space<smem>>
    %c108 = arith.constant 108 : index
    %108 = memref.load %arg1[%c108] : memref<135xf32, #tpu.memory_space<smem>>
    %c109 = arith.constant 109 : index
    %109 = memref.load %arg1[%c109] : memref<135xf32, #tpu.memory_space<smem>>
    %c110 = arith.constant 110 : index
    %110 = memref.load %arg1[%c110] : memref<135xf32, #tpu.memory_space<smem>>
    %c111 = arith.constant 111 : index
    %111 = memref.load %arg1[%c111] : memref<135xf32, #tpu.memory_space<smem>>
    %c112 = arith.constant 112 : index
    %112 = memref.load %arg1[%c112] : memref<135xf32, #tpu.memory_space<smem>>
    %c113 = arith.constant 113 : index
    %113 = memref.load %arg1[%c113] : memref<135xf32, #tpu.memory_space<smem>>
    %c114 = arith.constant 114 : index
    %114 = memref.load %arg1[%c114] : memref<135xf32, #tpu.memory_space<smem>>
    %c115 = arith.constant 115 : index
    %115 = memref.load %arg1[%c115] : memref<135xf32, #tpu.memory_space<smem>>
    %c116 = arith.constant 116 : index
    %116 = memref.load %arg1[%c116] : memref<135xf32, #tpu.memory_space<smem>>
    %c117 = arith.constant 117 : index
    %117 = memref.load %arg1[%c117] : memref<135xf32, #tpu.memory_space<smem>>
    %c118 = arith.constant 118 : index
    %118 = memref.load %arg1[%c118] : memref<135xf32, #tpu.memory_space<smem>>
    %c119 = arith.constant 119 : index
    %119 = memref.load %arg1[%c119] : memref<135xf32, #tpu.memory_space<smem>>
    %c120 = arith.constant 120 : index
    %120 = memref.load %arg1[%c120] : memref<135xf32, #tpu.memory_space<smem>>
    %c121 = arith.constant 121 : index
    %121 = memref.load %arg1[%c121] : memref<135xf32, #tpu.memory_space<smem>>
    %c122 = arith.constant 122 : index
    %122 = memref.load %arg1[%c122] : memref<135xf32, #tpu.memory_space<smem>>
    %c123 = arith.constant 123 : index
    %123 = memref.load %arg1[%c123] : memref<135xf32, #tpu.memory_space<smem>>
    %c124 = arith.constant 124 : index
    %124 = memref.load %arg1[%c124] : memref<135xf32, #tpu.memory_space<smem>>
    %c125 = arith.constant 125 : index
    %125 = memref.load %arg1[%c125] : memref<135xf32, #tpu.memory_space<smem>>
    %c126 = arith.constant 126 : index
    %126 = memref.load %arg1[%c126] : memref<135xf32, #tpu.memory_space<smem>>
    %c127 = arith.constant 127 : index
    %127 = memref.load %arg1[%c127] : memref<135xf32, #tpu.memory_space<smem>>
    %c128 = arith.constant 128 : index
    %128 = memref.load %arg1[%c128] : memref<135xf32, #tpu.memory_space<smem>>
    %c129 = arith.constant 129 : index
    %129 = memref.load %arg1[%c129] : memref<135xf32, #tpu.memory_space<smem>>
    %c130 = arith.constant 130 : index
    %130 = memref.load %arg1[%c130] : memref<135xf32, #tpu.memory_space<smem>>
    %c131 = arith.constant 131 : index
    %131 = memref.load %arg1[%c131] : memref<135xf32, #tpu.memory_space<smem>>
    %c132 = arith.constant 132 : index
    %132 = memref.load %arg1[%c132] : memref<135xf32, #tpu.memory_space<smem>>
    %c133 = arith.constant 133 : index
    %133 = memref.load %arg1[%c133] : memref<135xf32, #tpu.memory_space<smem>>
    %c134 = arith.constant 134 : index
    %134 = memref.load %arg1[%c134] : memref<135xf32, #tpu.memory_space<smem>>
    %c0_0 = arith.constant 0 : index
    %135 = memref.load %arg2[%c0_0] : memref<3xf32, #tpu.memory_space<smem>>
    %c1_1 = arith.constant 1 : index
    %136 = memref.load %arg2[%c1_1] : memref<3xf32, #tpu.memory_space<smem>>
    %c2_2 = arith.constant 2 : index
    %137 = memref.load %arg2[%c2_2] : memref<3xf32, #tpu.memory_space<smem>>
    %c0_3 = arith.constant 0 : index
    %138 = memref.load %arg3[%c0_3] : memref<54xf32, #tpu.memory_space<smem>>
    %c1_4 = arith.constant 1 : index
    %139 = memref.load %arg3[%c1_4] : memref<54xf32, #tpu.memory_space<smem>>
    %c2_5 = arith.constant 2 : index
    %140 = memref.load %arg3[%c2_5] : memref<54xf32, #tpu.memory_space<smem>>
    %c3_6 = arith.constant 3 : index
    %141 = memref.load %arg3[%c3_6] : memref<54xf32, #tpu.memory_space<smem>>
    %c4_7 = arith.constant 4 : index
    %142 = memref.load %arg3[%c4_7] : memref<54xf32, #tpu.memory_space<smem>>
    %c5_8 = arith.constant 5 : index
    %143 = memref.load %arg3[%c5_8] : memref<54xf32, #tpu.memory_space<smem>>
    %c6_9 = arith.constant 6 : index
    %144 = memref.load %arg3[%c6_9] : memref<54xf32, #tpu.memory_space<smem>>
    %c7_10 = arith.constant 7 : index
    %145 = memref.load %arg3[%c7_10] : memref<54xf32, #tpu.memory_space<smem>>
    %c8_11 = arith.constant 8 : index
    %146 = memref.load %arg3[%c8_11] : memref<54xf32, #tpu.memory_space<smem>>
    %c9_12 = arith.constant 9 : index
    %147 = memref.load %arg3[%c9_12] : memref<54xf32, #tpu.memory_space<smem>>
    %c10_13 = arith.constant 10 : index
    %148 = memref.load %arg3[%c10_13] : memref<54xf32, #tpu.memory_space<smem>>
    %c11_14 = arith.constant 11 : index
    %149 = memref.load %arg3[%c11_14] : memref<54xf32, #tpu.memory_space<smem>>
    %c12_15 = arith.constant 12 : index
    %150 = memref.load %arg3[%c12_15] : memref<54xf32, #tpu.memory_space<smem>>
    %c13_16 = arith.constant 13 : index
    %151 = memref.load %arg3[%c13_16] : memref<54xf32, #tpu.memory_space<smem>>
    %c14_17 = arith.constant 14 : index
    %152 = memref.load %arg3[%c14_17] : memref<54xf32, #tpu.memory_space<smem>>
    %c15_18 = arith.constant 15 : index
    %153 = memref.load %arg3[%c15_18] : memref<54xf32, #tpu.memory_space<smem>>
    %c16_19 = arith.constant 16 : index
    %154 = memref.load %arg3[%c16_19] : memref<54xf32, #tpu.memory_space<smem>>
    %c17_20 = arith.constant 17 : index
    %155 = memref.load %arg3[%c17_20] : memref<54xf32, #tpu.memory_space<smem>>
    %c18_21 = arith.constant 18 : index
    %156 = memref.load %arg3[%c18_21] : memref<54xf32, #tpu.memory_space<smem>>
    %c19_22 = arith.constant 19 : index
    %157 = memref.load %arg3[%c19_22] : memref<54xf32, #tpu.memory_space<smem>>
    %c20_23 = arith.constant 20 : index
    %158 = memref.load %arg3[%c20_23] : memref<54xf32, #tpu.memory_space<smem>>
    %c21_24 = arith.constant 21 : index
    %159 = memref.load %arg3[%c21_24] : memref<54xf32, #tpu.memory_space<smem>>
    %c22_25 = arith.constant 22 : index
    %160 = memref.load %arg3[%c22_25] : memref<54xf32, #tpu.memory_space<smem>>
    %c23_26 = arith.constant 23 : index
    %161 = memref.load %arg3[%c23_26] : memref<54xf32, #tpu.memory_space<smem>>
    %c24_27 = arith.constant 24 : index
    %162 = memref.load %arg3[%c24_27] : memref<54xf32, #tpu.memory_space<smem>>
    %c25_28 = arith.constant 25 : index
    %163 = memref.load %arg3[%c25_28] : memref<54xf32, #tpu.memory_space<smem>>
    %c26_29 = arith.constant 26 : index
    %164 = memref.load %arg3[%c26_29] : memref<54xf32, #tpu.memory_space<smem>>
    %c27_30 = arith.constant 27 : index
    %165 = memref.load %arg3[%c27_30] : memref<54xf32, #tpu.memory_space<smem>>
    %c28_31 = arith.constant 28 : index
    %166 = memref.load %arg3[%c28_31] : memref<54xf32, #tpu.memory_space<smem>>
    %c29_32 = arith.constant 29 : index
    %167 = memref.load %arg3[%c29_32] : memref<54xf32, #tpu.memory_space<smem>>
    %c30_33 = arith.constant 30 : index
    %168 = memref.load %arg3[%c30_33] : memref<54xf32, #tpu.memory_space<smem>>
    %c31_34 = arith.constant 31 : index
    %169 = memref.load %arg3[%c31_34] : memref<54xf32, #tpu.memory_space<smem>>
    %c32_35 = arith.constant 32 : index
    %170 = memref.load %arg3[%c32_35] : memref<54xf32, #tpu.memory_space<smem>>
    %c33_36 = arith.constant 33 : index
    %171 = memref.load %arg3[%c33_36] : memref<54xf32, #tpu.memory_space<smem>>
    %c34_37 = arith.constant 34 : index
    %172 = memref.load %arg3[%c34_37] : memref<54xf32, #tpu.memory_space<smem>>
    %c35_38 = arith.constant 35 : index
    %173 = memref.load %arg3[%c35_38] : memref<54xf32, #tpu.memory_space<smem>>
    %c36_39 = arith.constant 36 : index
    %174 = memref.load %arg3[%c36_39] : memref<54xf32, #tpu.memory_space<smem>>
    %c37_40 = arith.constant 37 : index
    %175 = memref.load %arg3[%c37_40] : memref<54xf32, #tpu.memory_space<smem>>
    %c38_41 = arith.constant 38 : index
    %176 = memref.load %arg3[%c38_41] : memref<54xf32, #tpu.memory_space<smem>>
    %c39_42 = arith.constant 39 : index
    %177 = memref.load %arg3[%c39_42] : memref<54xf32, #tpu.memory_space<smem>>
    %c40_43 = arith.constant 40 : index
    %178 = memref.load %arg3[%c40_43] : memref<54xf32, #tpu.memory_space<smem>>
    %c41_44 = arith.constant 41 : index
    %179 = memref.load %arg3[%c41_44] : memref<54xf32, #tpu.memory_space<smem>>
    %c42_45 = arith.constant 42 : index
    %180 = memref.load %arg3[%c42_45] : memref<54xf32, #tpu.memory_space<smem>>
    %c43_46 = arith.constant 43 : index
    %181 = memref.load %arg3[%c43_46] : memref<54xf32, #tpu.memory_space<smem>>
    %c44_47 = arith.constant 44 : index
    %182 = memref.load %arg3[%c44_47] : memref<54xf32, #tpu.memory_space<smem>>
    %c45_48 = arith.constant 45 : index
    %183 = memref.load %arg3[%c45_48] : memref<54xf32, #tpu.memory_space<smem>>
    %c46_49 = arith.constant 46 : index
    %184 = memref.load %arg3[%c46_49] : memref<54xf32, #tpu.memory_space<smem>>
    %c47_50 = arith.constant 47 : index
    %185 = memref.load %arg3[%c47_50] : memref<54xf32, #tpu.memory_space<smem>>
    %c48_51 = arith.constant 48 : index
    %186 = memref.load %arg3[%c48_51] : memref<54xf32, #tpu.memory_space<smem>>
    %c49_52 = arith.constant 49 : index
    %187 = memref.load %arg3[%c49_52] : memref<54xf32, #tpu.memory_space<smem>>
    %c50_53 = arith.constant 50 : index
    %188 = memref.load %arg3[%c50_53] : memref<54xf32, #tpu.memory_space<smem>>
    %c51_54 = arith.constant 51 : index
    %189 = memref.load %arg3[%c51_54] : memref<54xf32, #tpu.memory_space<smem>>
    %c52_55 = arith.constant 52 : index
    %190 = memref.load %arg3[%c52_55] : memref<54xf32, #tpu.memory_space<smem>>
    %c53_56 = arith.constant 53 : index
    %191 = memref.load %arg3[%c53_56] : memref<54xf32, #tpu.memory_space<smem>>
    %c0_57 = arith.constant 0 : index
    %192 = memref.load %arg4[%c0_57] : memref<2xf32, #tpu.memory_space<smem>>
    %c1_58 = arith.constant 1 : index
    %193 = memref.load %arg4[%c1_58] : memref<2xf32, #tpu.memory_space<smem>>
    %c0_59 = arith.constant 0 : index
    %194 = memref.load %arg5[%c0_59] : memref<36xf32, #tpu.memory_space<smem>>
    %c1_60 = arith.constant 1 : index
    %195 = memref.load %arg5[%c1_60] : memref<36xf32, #tpu.memory_space<smem>>
    %c2_61 = arith.constant 2 : index
    %196 = memref.load %arg5[%c2_61] : memref<36xf32, #tpu.memory_space<smem>>
    %c3_62 = arith.constant 3 : index
    %197 = memref.load %arg5[%c3_62] : memref<36xf32, #tpu.memory_space<smem>>
    %c4_63 = arith.constant 4 : index
    %198 = memref.load %arg5[%c4_63] : memref<36xf32, #tpu.memory_space<smem>>
    %c5_64 = arith.constant 5 : index
    %199 = memref.load %arg5[%c5_64] : memref<36xf32, #tpu.memory_space<smem>>
    %c6_65 = arith.constant 6 : index
    %200 = memref.load %arg5[%c6_65] : memref<36xf32, #tpu.memory_space<smem>>
    %c7_66 = arith.constant 7 : index
    %201 = memref.load %arg5[%c7_66] : memref<36xf32, #tpu.memory_space<smem>>
    %c8_67 = arith.constant 8 : index
    %202 = memref.load %arg5[%c8_67] : memref<36xf32, #tpu.memory_space<smem>>
    %c9_68 = arith.constant 9 : index
    %203 = memref.load %arg5[%c9_68] : memref<36xf32, #tpu.memory_space<smem>>
    %c10_69 = arith.constant 10 : index
    %204 = memref.load %arg5[%c10_69] : memref<36xf32, #tpu.memory_space<smem>>
    %c11_70 = arith.constant 11 : index
    %205 = memref.load %arg5[%c11_70] : memref<36xf32, #tpu.memory_space<smem>>
    %c12_71 = arith.constant 12 : index
    %206 = memref.load %arg5[%c12_71] : memref<36xf32, #tpu.memory_space<smem>>
    %c13_72 = arith.constant 13 : index
    %207 = memref.load %arg5[%c13_72] : memref<36xf32, #tpu.memory_space<smem>>
    %c14_73 = arith.constant 14 : index
    %208 = memref.load %arg5[%c14_73] : memref<36xf32, #tpu.memory_space<smem>>
    %c15_74 = arith.constant 15 : index
    %209 = memref.load %arg5[%c15_74] : memref<36xf32, #tpu.memory_space<smem>>
    %c16_75 = arith.constant 16 : index
    %210 = memref.load %arg5[%c16_75] : memref<36xf32, #tpu.memory_space<smem>>
    %c17_76 = arith.constant 17 : index
    %211 = memref.load %arg5[%c17_76] : memref<36xf32, #tpu.memory_space<smem>>
    %c18_77 = arith.constant 18 : index
    %212 = memref.load %arg5[%c18_77] : memref<36xf32, #tpu.memory_space<smem>>
    %c19_78 = arith.constant 19 : index
    %213 = memref.load %arg5[%c19_78] : memref<36xf32, #tpu.memory_space<smem>>
    %c20_79 = arith.constant 20 : index
    %214 = memref.load %arg5[%c20_79] : memref<36xf32, #tpu.memory_space<smem>>
    %c21_80 = arith.constant 21 : index
    %215 = memref.load %arg5[%c21_80] : memref<36xf32, #tpu.memory_space<smem>>
    %c22_81 = arith.constant 22 : index
    %216 = memref.load %arg5[%c22_81] : memref<36xf32, #tpu.memory_space<smem>>
    %c23_82 = arith.constant 23 : index
    %217 = memref.load %arg5[%c23_82] : memref<36xf32, #tpu.memory_space<smem>>
    %c24_83 = arith.constant 24 : index
    %218 = memref.load %arg5[%c24_83] : memref<36xf32, #tpu.memory_space<smem>>
    %c25_84 = arith.constant 25 : index
    %219 = memref.load %arg5[%c25_84] : memref<36xf32, #tpu.memory_space<smem>>
    %c26_85 = arith.constant 26 : index
    %220 = memref.load %arg5[%c26_85] : memref<36xf32, #tpu.memory_space<smem>>
    %c27_86 = arith.constant 27 : index
    %221 = memref.load %arg5[%c27_86] : memref<36xf32, #tpu.memory_space<smem>>
    %c28_87 = arith.constant 28 : index
    %222 = memref.load %arg5[%c28_87] : memref<36xf32, #tpu.memory_space<smem>>
    %c29_88 = arith.constant 29 : index
    %223 = memref.load %arg5[%c29_88] : memref<36xf32, #tpu.memory_space<smem>>
    %c30_89 = arith.constant 30 : index
    %224 = memref.load %arg5[%c30_89] : memref<36xf32, #tpu.memory_space<smem>>
    %c31_90 = arith.constant 31 : index
    %225 = memref.load %arg5[%c31_90] : memref<36xf32, #tpu.memory_space<smem>>
    %c32_91 = arith.constant 32 : index
    %226 = memref.load %arg5[%c32_91] : memref<36xf32, #tpu.memory_space<smem>>
    %c33_92 = arith.constant 33 : index
    %227 = memref.load %arg5[%c33_92] : memref<36xf32, #tpu.memory_space<smem>>
    %c34_93 = arith.constant 34 : index
    %228 = memref.load %arg5[%c34_93] : memref<36xf32, #tpu.memory_space<smem>>
    %c35_94 = arith.constant 35 : index
    %229 = memref.load %arg5[%c35_94] : memref<36xf32, #tpu.memory_space<smem>>
    %c0_95 = arith.constant 0 : index
    %230 = memref.load %arg6[%c0_95] : memref<2xf32, #tpu.memory_space<smem>>
    %c1_96 = arith.constant 1 : index
    %231 = memref.load %arg6[%c1_96] : memref<2xf32, #tpu.memory_space<smem>>
    %c0_97 = arith.constant 0 : index
    %c0_98 = arith.constant 0 : index
    %c0_99 = arith.constant 0 : index
    %c0_100 = arith.constant 0 : index
    %232 = vector.load %arg0[%c0_97, %c0_98, %c0_99, %c0_100] : memref<2x5x15x15xf32, #tpu.memory_space<vmem>>, vector<2x5x15x15xf32>
    %cst = arith.constant 0.000000e+00 : f32
    %233 = vector.broadcast %cst : f32 to vector<2x5x1x15xf32>
    %234 = tpu.concatenate %233, %232, %233 in 2 : vector<2x5x1x15xf32>, vector<2x5x15x15xf32>, vector<2x5x1x15xf32> -> vector<2x5x17x15xf32>
    %cst_101 = arith.constant 0.000000e+00 : f32
    %235 = vector.broadcast %cst_101 : f32 to vector<2x5x17x1xf32>
    %236 = tpu.concatenate %235, %234, %235 in 3 : vector<2x5x17x1xf32>, vector<2x5x17x15xf32>, vector<2x5x17x1xf32> -> vector<2x5x17x17xf32>
    %237 = vector.extract_strided_slice %236 {offsets = [0, 0, 0, 0], sizes = [2, 1, 17, 17], strides = [1, 1, 1, 1]} : vector<2x5x17x17xf32> to vector<2x1x17x17xf32>
    %238 = vector.shape_cast %237 : vector<2x1x17x17xf32> to vector<2x17x17xf32>
    %239 = vector.extract_strided_slice %236 {offsets = [0, 1, 0, 0], sizes = [2, 1, 17, 17], strides = [1, 1, 1, 1]} : vector<2x5x17x17xf32> to vector<2x1x17x17xf32>
    %240 = vector.shape_cast %239 : vector<2x1x17x17xf32> to vector<2x17x17xf32>
    %241 = vector.extract_strided_slice %236 {offsets = [0, 2, 0, 0], sizes = [2, 1, 17, 17], strides = [1, 1, 1, 1]} : vector<2x5x17x17xf32> to vector<2x1x17x17xf32>
    %242 = vector.shape_cast %241 : vector<2x1x17x17xf32> to vector<2x17x17xf32>
    %243 = vector.extract_strided_slice %236 {offsets = [0, 3, 0, 0], sizes = [2, 1, 17, 17], strides = [1, 1, 1, 1]} : vector<2x5x17x17xf32> to vector<2x1x17x17xf32>
    %244 = vector.shape_cast %243 : vector<2x1x17x17xf32> to vector<2x17x17xf32>
    %245 = vector.extract_strided_slice %236 {offsets = [0, 4, 0, 0], sizes = [2, 1, 17, 17], strides = [1, 1, 1, 1]} : vector<2x5x17x17xf32> to vector<2x1x17x17xf32>
    %246 = vector.shape_cast %245 : vector<2x1x17x17xf32> to vector<2x17x17xf32>
    %247 = vector.extract_strided_slice %238 {offsets = [0, 0, 0], sizes = [2, 17, 15], strides = [1, 1, 1]} : vector<2x17x17xf32> to vector<2x17x15xf32>
    %248 = vector.extract_strided_slice %238 {offsets = [0, 0, 1], sizes = [2, 17, 15], strides = [1, 1, 1]} : vector<2x17x17xf32> to vector<2x17x15xf32>
    %249 = vector.extract_strided_slice %238 {offsets = [0, 0, 2], sizes = [2, 17, 15], strides = [1, 1, 1]} : vector<2x17x17xf32> to vector<2x17x15xf32>
    %250 = vector.extract_strided_slice %240 {offsets = [0, 0, 0], sizes = [2, 17, 15], strides = [1, 1, 1]} : vector<2x17x17xf32> to vector<2x17x15xf32>
    %251 = vector.extract_strided_slice %240 {offsets = [0, 0, 1], sizes = [2, 17, 15], strides = [1, 1, 1]} : vector<2x17x17xf32> to vector<2x17x15xf32>
    %252 = vector.extract_strided_slice %240 {offsets = [0, 0, 2], sizes = [2, 17, 15], strides = [1, 1, 1]} : vector<2x17x17xf32> to vector<2x17x15xf32>
    %253 = vector.extract_strided_slice %242 {offsets = [0, 0, 0], sizes = [2, 17, 15], strides = [1, 1, 1]} : vector<2x17x17xf32> to vector<2x17x15xf32>
    %254 = vector.extract_strided_slice %242 {offsets = [0, 0, 1], sizes = [2, 17, 15], strides = [1, 1, 1]} : vector<2x17x17xf32> to vector<2x17x15xf32>
    %255 = vector.extract_strided_slice %242 {offsets = [0, 0, 2], sizes = [2, 17, 15], strides = [1, 1, 1]} : vector<2x17x17xf32> to vector<2x17x15xf32>
    %256 = vector.extract_strided_slice %244 {offsets = [0, 0, 0], sizes = [2, 17, 15], strides = [1, 1, 1]} : vector<2x17x17xf32> to vector<2x17x15xf32>
    %257 = vector.extract_strided_slice %244 {offsets = [0, 0, 1], sizes = [2, 17, 15], strides = [1, 1, 1]} : vector<2x17x17xf32> to vector<2x17x15xf32>
    %258 = vector.extract_strided_slice %244 {offsets = [0, 0, 2], sizes = [2, 17, 15], strides = [1, 1, 1]} : vector<2x17x17xf32> to vector<2x17x15xf32>
    %259 = vector.extract_strided_slice %246 {offsets = [0, 0, 0], sizes = [2, 17, 15], strides = [1, 1, 1]} : vector<2x17x17xf32> to vector<2x17x15xf32>
    %260 = vector.extract_strided_slice %246 {offsets = [0, 0, 1], sizes = [2, 17, 15], strides = [1, 1, 1]} : vector<2x17x17xf32> to vector<2x17x15xf32>
    %261 = vector.extract_strided_slice %246 {offsets = [0, 0, 2], sizes = [2, 17, 15], strides = [1, 1, 1]} : vector<2x17x17xf32> to vector<2x17x15xf32>
    %262 = vector.extract_strided_slice %247 {offsets = [0, 0, 0], sizes = [2, 15, 15], strides = [1, 1, 1]} : vector<2x17x15xf32> to vector<2x15x15xf32>
    %263 = vector.extract_strided_slice %248 {offsets = [0, 0, 0], sizes = [2, 15, 15], strides = [1, 1, 1]} : vector<2x17x15xf32> to vector<2x15x15xf32>
    %264 = vector.extract_strided_slice %249 {offsets = [0, 0, 0], sizes = [2, 15, 15], strides = [1, 1, 1]} : vector<2x17x15xf32> to vector<2x15x15xf32>
    %265 = vector.extract_strided_slice %247 {offsets = [0, 1, 0], sizes = [2, 15, 15], strides = [1, 1, 1]} : vector<2x17x15xf32> to vector<2x15x15xf32>
    %266 = vector.extract_strided_slice %248 {offsets = [0, 1, 0], sizes = [2, 15, 15], strides = [1, 1, 1]} : vector<2x17x15xf32> to vector<2x15x15xf32>
    %267 = vector.extract_strided_slice %249 {offsets = [0, 1, 0], sizes = [2, 15, 15], strides = [1, 1, 1]} : vector<2x17x15xf32> to vector<2x15x15xf32>
    %268 = vector.extract_strided_slice %247 {offsets = [0, 2, 0], sizes = [2, 15, 15], strides = [1, 1, 1]} : vector<2x17x15xf32> to vector<2x15x15xf32>
    %269 = vector.extract_strided_slice %248 {offsets = [0, 2, 0], sizes = [2, 15, 15], strides = [1, 1, 1]} : vector<2x17x15xf32> to vector<2x15x15xf32>
    %270 = vector.extract_strided_slice %249 {offsets = [0, 2, 0], sizes = [2, 15, 15], strides = [1, 1, 1]} : vector<2x17x15xf32> to vector<2x15x15xf32>
    %271 = vector.extract_strided_slice %250 {offsets = [0, 0, 0], sizes = [2, 15, 15], strides = [1, 1, 1]} : vector<2x17x15xf32> to vector<2x15x15xf32>
    %272 = vector.extract_strided_slice %251 {offsets = [0, 0, 0], sizes = [2, 15, 15], strides = [1, 1, 1]} : vector<2x17x15xf32> to vector<2x15x15xf32>
    %273 = vector.extract_strided_slice %252 {offsets = [0, 0, 0], sizes = [2, 15, 15], strides = [1, 1, 1]} : vector<2x17x15xf32> to vector<2x15x15xf32>
    %274 = vector.extract_strided_slice %250 {offsets = [0, 1, 0], sizes = [2, 15, 15], strides = [1, 1, 1]} : vector<2x17x15xf32> to vector<2x15x15xf32>
    %275 = vector.extract_strided_slice %251 {offsets = [0, 1, 0], sizes = [2, 15, 15], strides = [1, 1, 1]} : vector<2x17x15xf32> to vector<2x15x15xf32>
    %276 = vector.extract_strided_slice %252 {offsets = [0, 1, 0], sizes = [2, 15, 15], strides = [1, 1, 1]} : vector<2x17x15xf32> to vector<2x15x15xf32>
    %277 = vector.extract_strided_slice %250 {offsets = [0, 2, 0], sizes = [2, 15, 15], strides = [1, 1, 1]} : vector<2x17x15xf32> to vector<2x15x15xf32>
    %278 = vector.extract_strided_slice %251 {offsets = [0, 2, 0], sizes = [2, 15, 15], strides = [1, 1, 1]} : vector<2x17x15xf32> to vector<2x15x15xf32>
    %279 = vector.extract_strided_slice %252 {offsets = [0, 2, 0], sizes = [2, 15, 15], strides = [1, 1, 1]} : vector<2x17x15xf32> to vector<2x15x15xf32>
    %280 = vector.extract_strided_slice %253 {offsets = [0, 0, 0], sizes = [2, 15, 15], strides = [1, 1, 1]} : vector<2x17x15xf32> to vector<2x15x15xf32>
    %281 = vector.extract_strided_slice %254 {offsets = [0, 0, 0], sizes = [2, 15, 15], strides = [1, 1, 1]} : vector<2x17x15xf32> to vector<2x15x15xf32>
    %282 = vector.extract_strided_slice %255 {offsets = [0, 0, 0], sizes = [2, 15, 15], strides = [1, 1, 1]} : vector<2x17x15xf32> to vector<2x15x15xf32>
    %283 = vector.extract_strided_slice %253 {offsets = [0, 1, 0], sizes = [2, 15, 15], strides = [1, 1, 1]} : vector<2x17x15xf32> to vector<2x15x15xf32>
    %284 = vector.extract_strided_slice %254 {offsets = [0, 1, 0], sizes = [2, 15, 15], strides = [1, 1, 1]} : vector<2x17x15xf32> to vector<2x15x15xf32>
    %285 = vector.extract_strided_slice %255 {offsets = [0, 1, 0], sizes = [2, 15, 15], strides = [1, 1, 1]} : vector<2x17x15xf32> to vector<2x15x15xf32>
    %286 = vector.extract_strided_slice %253 {offsets = [0, 2, 0], sizes = [2, 15, 15], strides = [1, 1, 1]} : vector<2x17x15xf32> to vector<2x15x15xf32>
    %287 = vector.extract_strided_slice %254 {offsets = [0, 2, 0], sizes = [2, 15, 15], strides = [1, 1, 1]} : vector<2x17x15xf32> to vector<2x15x15xf32>
    %288 = vector.extract_strided_slice %255 {offsets = [0, 2, 0], sizes = [2, 15, 15], strides = [1, 1, 1]} : vector<2x17x15xf32> to vector<2x15x15xf32>
    %289 = vector.extract_strided_slice %256 {offsets = [0, 0, 0], sizes = [2, 15, 15], strides = [1, 1, 1]} : vector<2x17x15xf32> to vector<2x15x15xf32>
    %290 = vector.extract_strided_slice %257 {offsets = [0, 0, 0], sizes = [2, 15, 15], strides = [1, 1, 1]} : vector<2x17x15xf32> to vector<2x15x15xf32>
    %291 = vector.extract_strided_slice %258 {offsets = [0, 0, 0], sizes = [2, 15, 15], strides = [1, 1, 1]} : vector<2x17x15xf32> to vector<2x15x15xf32>
    %292 = vector.extract_strided_slice %256 {offsets = [0, 1, 0], sizes = [2, 15, 15], strides = [1, 1, 1]} : vector<2x17x15xf32> to vector<2x15x15xf32>
    %293 = vector.extract_strided_slice %257 {offsets = [0, 1, 0], sizes = [2, 15, 15], strides = [1, 1, 1]} : vector<2x17x15xf32> to vector<2x15x15xf32>
    %294 = vector.extract_strided_slice %258 {offsets = [0, 1, 0], sizes = [2, 15, 15], strides = [1, 1, 1]} : vector<2x17x15xf32> to vector<2x15x15xf32>
    %295 = vector.extract_strided_slice %256 {offsets = [0, 2, 0], sizes = [2, 15, 15], strides = [1, 1, 1]} : vector<2x17x15xf32> to vector<2x15x15xf32>
    %296 = vector.extract_strided_slice %257 {offsets = [0, 2, 0], sizes = [2, 15, 15], strides = [1, 1, 1]} : vector<2x17x15xf32> to vector<2x15x15xf32>
    %297 = vector.extract_strided_slice %258 {offsets = [0, 2, 0], sizes = [2, 15, 15], strides = [1, 1, 1]} : vector<2x17x15xf32> to vector<2x15x15xf32>
    %298 = vector.extract_strided_slice %259 {offsets = [0, 0, 0], sizes = [2, 15, 15], strides = [1, 1, 1]} : vector<2x17x15xf32> to vector<2x15x15xf32>
    %299 = vector.extract_strided_slice %260 {offsets = [0, 0, 0], sizes = [2, 15, 15], strides = [1, 1, 1]} : vector<2x17x15xf32> to vector<2x15x15xf32>
    %300 = vector.extract_strided_slice %261 {offsets = [0, 0, 0], sizes = [2, 15, 15], strides = [1, 1, 1]} : vector<2x17x15xf32> to vector<2x15x15xf32>
    %301 = vector.extract_strided_slice %259 {offsets = [0, 1, 0], sizes = [2, 15, 15], strides = [1, 1, 1]} : vector<2x17x15xf32> to vector<2x15x15xf32>
    %302 = vector.extract_strided_slice %260 {offsets = [0, 1, 0], sizes = [2, 15, 15], strides = [1, 1, 1]} : vector<2x17x15xf32> to vector<2x15x15xf32>
    %303 = vector.extract_strided_slice %261 {offsets = [0, 1, 0], sizes = [2, 15, 15], strides = [1, 1, 1]} : vector<2x17x15xf32> to vector<2x15x15xf32>
    %304 = vector.extract_strided_slice %259 {offsets = [0, 2, 0], sizes = [2, 15, 15], strides = [1, 1, 1]} : vector<2x17x15xf32> to vector<2x15x15xf32>
    %305 = vector.extract_strided_slice %260 {offsets = [0, 2, 0], sizes = [2, 15, 15], strides = [1, 1, 1]} : vector<2x17x15xf32> to vector<2x15x15xf32>
    %306 = vector.extract_strided_slice %261 {offsets = [0, 2, 0], sizes = [2, 15, 15], strides = [1, 1, 1]} : vector<2x17x15xf32> to vector<2x15x15xf32>
    %307 = vector.broadcast %0 : f32 to vector<2x15x15xf32>
    %308 = arith.mulf %307, %262 : vector<2x15x15xf32>
    %309 = vector.broadcast %1 : f32 to vector<2x15x15xf32>
    %310 = arith.mulf %309, %263 : vector<2x15x15xf32>
    %311 = arith.addf %308, %310 : vector<2x15x15xf32>
    %312 = vector.broadcast %2 : f32 to vector<2x15x15xf32>
    %313 = arith.mulf %312, %264 : vector<2x15x15xf32>
    %314 = arith.addf %311, %313 : vector<2x15x15xf32>
    %315 = vector.broadcast %3 : f32 to vector<2x15x15xf32>
    %316 = arith.mulf %315, %265 : vector<2x15x15xf32>
    %317 = arith.addf %314, %316 : vector<2x15x15xf32>
    %318 = vector.broadcast %4 : f32 to vector<2x15x15xf32>
    %319 = arith.mulf %318, %266 : vector<2x15x15xf32>
    %320 = arith.addf %317, %319 : vector<2x15x15xf32>
    %321 = vector.broadcast %5 : f32 to vector<2x15x15xf32>
    %322 = arith.mulf %321, %267 : vector<2x15x15xf32>
    %323 = arith.addf %320, %322 : vector<2x15x15xf32>
    %324 = vector.broadcast %6 : f32 to vector<2x15x15xf32>
    %325 = arith.mulf %324, %268 : vector<2x15x15xf32>
    %326 = arith.addf %323, %325 : vector<2x15x15xf32>
    %327 = vector.broadcast %7 : f32 to vector<2x15x15xf32>
    %328 = arith.mulf %327, %269 : vector<2x15x15xf32>
    %329 = arith.addf %326, %328 : vector<2x15x15xf32>
    %330 = vector.broadcast %8 : f32 to vector<2x15x15xf32>
    %331 = arith.mulf %330, %270 : vector<2x15x15xf32>
    %332 = arith.addf %329, %331 : vector<2x15x15xf32>
    %333 = vector.broadcast %9 : f32 to vector<2x15x15xf32>
    %334 = arith.mulf %333, %271 : vector<2x15x15xf32>
    %335 = arith.addf %332, %334 : vector<2x15x15xf32>
    %336 = vector.broadcast %10 : f32 to vector<2x15x15xf32>
    %337 = arith.mulf %336, %272 : vector<2x15x15xf32>
    %338 = arith.addf %335, %337 : vector<2x15x15xf32>
    %339 = vector.broadcast %11 : f32 to vector<2x15x15xf32>
    %340 = arith.mulf %339, %273 : vector<2x15x15xf32>
    %341 = arith.addf %338, %340 : vector<2x15x15xf32>
    %342 = vector.broadcast %12 : f32 to vector<2x15x15xf32>
    %343 = arith.mulf %342, %274 : vector<2x15x15xf32>
    %344 = arith.addf %341, %343 : vector<2x15x15xf32>
    %345 = vector.broadcast %13 : f32 to vector<2x15x15xf32>
    %346 = arith.mulf %345, %275 : vector<2x15x15xf32>
    %347 = arith.addf %344, %346 : vector<2x15x15xf32>
    %348 = vector.broadcast %14 : f32 to vector<2x15x15xf32>
    %349 = arith.mulf %348, %276 : vector<2x15x15xf32>
    %350 = arith.addf %347, %349 : vector<2x15x15xf32>
    %351 = vector.broadcast %15 : f32 to vector<2x15x15xf32>
    %352 = arith.mulf %351, %277 : vector<2x15x15xf32>
    %353 = arith.addf %350, %352 : vector<2x15x15xf32>
    %354 = vector.broadcast %16 : f32 to vector<2x15x15xf32>
    %355 = arith.mulf %354, %278 : vector<2x15x15xf32>
    %356 = arith.addf %353, %355 : vector<2x15x15xf32>
    %357 = vector.broadcast %17 : f32 to vector<2x15x15xf32>
    %358 = arith.mulf %357, %279 : vector<2x15x15xf32>
    %359 = arith.addf %356, %358 : vector<2x15x15xf32>
    %360 = vector.broadcast %18 : f32 to vector<2x15x15xf32>
    %361 = arith.mulf %360, %280 : vector<2x15x15xf32>
    %362 = arith.addf %359, %361 : vector<2x15x15xf32>
    %363 = vector.broadcast %19 : f32 to vector<2x15x15xf32>
    %364 = arith.mulf %363, %281 : vector<2x15x15xf32>
    %365 = arith.addf %362, %364 : vector<2x15x15xf32>
    %366 = vector.broadcast %20 : f32 to vector<2x15x15xf32>
    %367 = arith.mulf %366, %282 : vector<2x15x15xf32>
    %368 = arith.addf %365, %367 : vector<2x15x15xf32>
    %369 = vector.broadcast %21 : f32 to vector<2x15x15xf32>
    %370 = arith.mulf %369, %283 : vector<2x15x15xf32>
    %371 = arith.addf %368, %370 : vector<2x15x15xf32>
    %372 = vector.broadcast %22 : f32 to vector<2x15x15xf32>
    %373 = arith.mulf %372, %284 : vector<2x15x15xf32>
    %374 = arith.addf %371, %373 : vector<2x15x15xf32>
    %375 = vector.broadcast %23 : f32 to vector<2x15x15xf32>
    %376 = arith.mulf %375, %285 : vector<2x15x15xf32>
    %377 = arith.addf %374, %376 : vector<2x15x15xf32>
    %378 = vector.broadcast %24 : f32 to vector<2x15x15xf32>
    %379 = arith.mulf %378, %286 : vector<2x15x15xf32>
    %380 = arith.addf %377, %379 : vector<2x15x15xf32>
    %381 = vector.broadcast %25 : f32 to vector<2x15x15xf32>
    %382 = arith.mulf %381, %287 : vector<2x15x15xf32>
    %383 = arith.addf %380, %382 : vector<2x15x15xf32>
    %384 = vector.broadcast %26 : f32 to vector<2x15x15xf32>
    %385 = arith.mulf %384, %288 : vector<2x15x15xf32>
    %386 = arith.addf %383, %385 : vector<2x15x15xf32>
    %387 = vector.broadcast %27 : f32 to vector<2x15x15xf32>
    %388 = arith.mulf %387, %289 : vector<2x15x15xf32>
    %389 = arith.addf %386, %388 : vector<2x15x15xf32>
    %390 = vector.broadcast %28 : f32 to vector<2x15x15xf32>
    %391 = arith.mulf %390, %290 : vector<2x15x15xf32>
    %392 = arith.addf %389, %391 : vector<2x15x15xf32>
    %393 = vector.broadcast %29 : f32 to vector<2x15x15xf32>
    %394 = arith.mulf %393, %291 : vector<2x15x15xf32>
    %395 = arith.addf %392, %394 : vector<2x15x15xf32>
    %396 = vector.broadcast %30 : f32 to vector<2x15x15xf32>
    %397 = arith.mulf %396, %292 : vector<2x15x15xf32>
    %398 = arith.addf %395, %397 : vector<2x15x15xf32>
    %399 = vector.broadcast %31 : f32 to vector<2x15x15xf32>
    %400 = arith.mulf %399, %293 : vector<2x15x15xf32>
    %401 = arith.addf %398, %400 : vector<2x15x15xf32>
    %402 = vector.broadcast %32 : f32 to vector<2x15x15xf32>
    %403 = arith.mulf %402, %294 : vector<2x15x15xf32>
    %404 = arith.addf %401, %403 : vector<2x15x15xf32>
    %405 = vector.broadcast %33 : f32 to vector<2x15x15xf32>
    %406 = arith.mulf %405, %295 : vector<2x15x15xf32>
    %407 = arith.addf %404, %406 : vector<2x15x15xf32>
    %408 = vector.broadcast %34 : f32 to vector<2x15x15xf32>
    %409 = arith.mulf %408, %296 : vector<2x15x15xf32>
    %410 = arith.addf %407, %409 : vector<2x15x15xf32>
    %411 = vector.broadcast %35 : f32 to vector<2x15x15xf32>
    %412 = arith.mulf %411, %297 : vector<2x15x15xf32>
    %413 = arith.addf %410, %412 : vector<2x15x15xf32>
    %414 = vector.broadcast %36 : f32 to vector<2x15x15xf32>
    %415 = arith.mulf %414, %298 : vector<2x15x15xf32>
    %416 = arith.addf %413, %415 : vector<2x15x15xf32>
    %417 = vector.broadcast %37 : f32 to vector<2x15x15xf32>
    %418 = arith.mulf %417, %299 : vector<2x15x15xf32>
    %419 = arith.addf %416, %418 : vector<2x15x15xf32>
    %420 = vector.broadcast %38 : f32 to vector<2x15x15xf32>
    %421 = arith.mulf %420, %300 : vector<2x15x15xf32>
    %422 = arith.addf %419, %421 : vector<2x15x15xf32>
    %423 = vector.broadcast %39 : f32 to vector<2x15x15xf32>
    %424 = arith.mulf %423, %301 : vector<2x15x15xf32>
    %425 = arith.addf %422, %424 : vector<2x15x15xf32>
    %426 = vector.broadcast %40 : f32 to vector<2x15x15xf32>
    %427 = arith.mulf %426, %302 : vector<2x15x15xf32>
    %428 = arith.addf %425, %427 : vector<2x15x15xf32>
    %429 = vector.broadcast %41 : f32 to vector<2x15x15xf32>
    %430 = arith.mulf %429, %303 : vector<2x15x15xf32>
    %431 = arith.addf %428, %430 : vector<2x15x15xf32>
    %432 = vector.broadcast %42 : f32 to vector<2x15x15xf32>
    %433 = arith.mulf %432, %304 : vector<2x15x15xf32>
    %434 = arith.addf %431, %433 : vector<2x15x15xf32>
    %435 = vector.broadcast %43 : f32 to vector<2x15x15xf32>
    %436 = arith.mulf %435, %305 : vector<2x15x15xf32>
    %437 = arith.addf %434, %436 : vector<2x15x15xf32>
    %438 = vector.broadcast %44 : f32 to vector<2x15x15xf32>
    %439 = arith.mulf %438, %306 : vector<2x15x15xf32>
    %440 = arith.addf %437, %439 : vector<2x15x15xf32>
    %441 = vector.broadcast %135 : f32 to vector<2x15x15xf32>
    %442 = arith.addf %440, %441 : vector<2x15x15xf32>
    %cst_102 = arith.constant 0.000000e+00 : f32
    %443 = vector.broadcast %cst_102 : f32 to vector<2x15x15xf32>
    %444 = arith.maximumf %442, %443 : vector<2x15x15xf32>
    %445 = vector.broadcast %45 : f32 to vector<2x15x15xf32>
    %446 = arith.mulf %445, %262 : vector<2x15x15xf32>
    %447 = vector.broadcast %46 : f32 to vector<2x15x15xf32>
    %448 = arith.mulf %447, %263 : vector<2x15x15xf32>
    %449 = arith.addf %446, %448 : vector<2x15x15xf32>
    %450 = vector.broadcast %47 : f32 to vector<2x15x15xf32>
    %451 = arith.mulf %450, %264 : vector<2x15x15xf32>
    %452 = arith.addf %449, %451 : vector<2x15x15xf32>
    %453 = vector.broadcast %48 : f32 to vector<2x15x15xf32>
    %454 = arith.mulf %453, %265 : vector<2x15x15xf32>
    %455 = arith.addf %452, %454 : vector<2x15x15xf32>
    %456 = vector.broadcast %49 : f32 to vector<2x15x15xf32>
    %457 = arith.mulf %456, %266 : vector<2x15x15xf32>
    %458 = arith.addf %455, %457 : vector<2x15x15xf32>
    %459 = vector.broadcast %50 : f32 to vector<2x15x15xf32>
    %460 = arith.mulf %459, %267 : vector<2x15x15xf32>
    %461 = arith.addf %458, %460 : vector<2x15x15xf32>
    %462 = vector.broadcast %51 : f32 to vector<2x15x15xf32>
    %463 = arith.mulf %462, %268 : vector<2x15x15xf32>
    %464 = arith.addf %461, %463 : vector<2x15x15xf32>
    %465 = vector.broadcast %52 : f32 to vector<2x15x15xf32>
    %466 = arith.mulf %465, %269 : vector<2x15x15xf32>
    %467 = arith.addf %464, %466 : vector<2x15x15xf32>
    %468 = vector.broadcast %53 : f32 to vector<2x15x15xf32>
    %469 = arith.mulf %468, %270 : vector<2x15x15xf32>
    %470 = arith.addf %467, %469 : vector<2x15x15xf32>
    %471 = vector.broadcast %54 : f32 to vector<2x15x15xf32>
    %472 = arith.mulf %471, %271 : vector<2x15x15xf32>
    %473 = arith.addf %470, %472 : vector<2x15x15xf32>
    %474 = vector.broadcast %55 : f32 to vector<2x15x15xf32>
    %475 = arith.mulf %474, %272 : vector<2x15x15xf32>
    %476 = arith.addf %473, %475 : vector<2x15x15xf32>
    %477 = vector.broadcast %56 : f32 to vector<2x15x15xf32>
    %478 = arith.mulf %477, %273 : vector<2x15x15xf32>
    %479 = arith.addf %476, %478 : vector<2x15x15xf32>
    %480 = vector.broadcast %57 : f32 to vector<2x15x15xf32>
    %481 = arith.mulf %480, %274 : vector<2x15x15xf32>
    %482 = arith.addf %479, %481 : vector<2x15x15xf32>
    %483 = vector.broadcast %58 : f32 to vector<2x15x15xf32>
    %484 = arith.mulf %483, %275 : vector<2x15x15xf32>
    %485 = arith.addf %482, %484 : vector<2x15x15xf32>
    %486 = vector.broadcast %59 : f32 to vector<2x15x15xf32>
    %487 = arith.mulf %486, %276 : vector<2x15x15xf32>
    %488 = arith.addf %485, %487 : vector<2x15x15xf32>
    %489 = vector.broadcast %60 : f32 to vector<2x15x15xf32>
    %490 = arith.mulf %489, %277 : vector<2x15x15xf32>
    %491 = arith.addf %488, %490 : vector<2x15x15xf32>
    %492 = vector.broadcast %61 : f32 to vector<2x15x15xf32>
    %493 = arith.mulf %492, %278 : vector<2x15x15xf32>
    %494 = arith.addf %491, %493 : vector<2x15x15xf32>
    %495 = vector.broadcast %62 : f32 to vector<2x15x15xf32>
    %496 = arith.mulf %495, %279 : vector<2x15x15xf32>
    %497 = arith.addf %494, %496 : vector<2x15x15xf32>
    %498 = vector.broadcast %63 : f32 to vector<2x15x15xf32>
    %499 = arith.mulf %498, %280 : vector<2x15x15xf32>
    %500 = arith.addf %497, %499 : vector<2x15x15xf32>
    %501 = vector.broadcast %64 : f32 to vector<2x15x15xf32>
    %502 = arith.mulf %501, %281 : vector<2x15x15xf32>
    %503 = arith.addf %500, %502 : vector<2x15x15xf32>
    %504 = vector.broadcast %65 : f32 to vector<2x15x15xf32>
    %505 = arith.mulf %504, %282 : vector<2x15x15xf32>
    %506 = arith.addf %503, %505 : vector<2x15x15xf32>
    %507 = vector.broadcast %66 : f32 to vector<2x15x15xf32>
    %508 = arith.mulf %507, %283 : vector<2x15x15xf32>
    %509 = arith.addf %506, %508 : vector<2x15x15xf32>
    %510 = vector.broadcast %67 : f32 to vector<2x15x15xf32>
    %511 = arith.mulf %510, %284 : vector<2x15x15xf32>
    %512 = arith.addf %509, %511 : vector<2x15x15xf32>
    %513 = vector.broadcast %68 : f32 to vector<2x15x15xf32>
    %514 = arith.mulf %513, %285 : vector<2x15x15xf32>
    %515 = arith.addf %512, %514 : vector<2x15x15xf32>
    %516 = vector.broadcast %69 : f32 to vector<2x15x15xf32>
    %517 = arith.mulf %516, %286 : vector<2x15x15xf32>
    %518 = arith.addf %515, %517 : vector<2x15x15xf32>
    %519 = vector.broadcast %70 : f32 to vector<2x15x15xf32>
    %520 = arith.mulf %519, %287 : vector<2x15x15xf32>
    %521 = arith.addf %518, %520 : vector<2x15x15xf32>
    %522 = vector.broadcast %71 : f32 to vector<2x15x15xf32>
    %523 = arith.mulf %522, %288 : vector<2x15x15xf32>
    %524 = arith.addf %521, %523 : vector<2x15x15xf32>
    %525 = vector.broadcast %72 : f32 to vector<2x15x15xf32>
    %526 = arith.mulf %525, %289 : vector<2x15x15xf32>
    %527 = arith.addf %524, %526 : vector<2x15x15xf32>
    %528 = vector.broadcast %73 : f32 to vector<2x15x15xf32>
    %529 = arith.mulf %528, %290 : vector<2x15x15xf32>
    %530 = arith.addf %527, %529 : vector<2x15x15xf32>
    %531 = vector.broadcast %74 : f32 to vector<2x15x15xf32>
    %532 = arith.mulf %531, %291 : vector<2x15x15xf32>
    %533 = arith.addf %530, %532 : vector<2x15x15xf32>
    %534 = vector.broadcast %75 : f32 to vector<2x15x15xf32>
    %535 = arith.mulf %534, %292 : vector<2x15x15xf32>
    %536 = arith.addf %533, %535 : vector<2x15x15xf32>
    %537 = vector.broadcast %76 : f32 to vector<2x15x15xf32>
    %538 = arith.mulf %537, %293 : vector<2x15x15xf32>
    %539 = arith.addf %536, %538 : vector<2x15x15xf32>
    %540 = vector.broadcast %77 : f32 to vector<2x15x15xf32>
    %541 = arith.mulf %540, %294 : vector<2x15x15xf32>
    %542 = arith.addf %539, %541 : vector<2x15x15xf32>
    %543 = vector.broadcast %78 : f32 to vector<2x15x15xf32>
    %544 = arith.mulf %543, %295 : vector<2x15x15xf32>
    %545 = arith.addf %542, %544 : vector<2x15x15xf32>
    %546 = vector.broadcast %79 : f32 to vector<2x15x15xf32>
    %547 = arith.mulf %546, %296 : vector<2x15x15xf32>
    %548 = arith.addf %545, %547 : vector<2x15x15xf32>
    %549 = vector.broadcast %80 : f32 to vector<2x15x15xf32>
    %550 = arith.mulf %549, %297 : vector<2x15x15xf32>
    %551 = arith.addf %548, %550 : vector<2x15x15xf32>
    %552 = vector.broadcast %81 : f32 to vector<2x15x15xf32>
    %553 = arith.mulf %552, %298 : vector<2x15x15xf32>
    %554 = arith.addf %551, %553 : vector<2x15x15xf32>
    %555 = vector.broadcast %82 : f32 to vector<2x15x15xf32>
    %556 = arith.mulf %555, %299 : vector<2x15x15xf32>
    %557 = arith.addf %554, %556 : vector<2x15x15xf32>
    %558 = vector.broadcast %83 : f32 to vector<2x15x15xf32>
    %559 = arith.mulf %558, %300 : vector<2x15x15xf32>
    %560 = arith.addf %557, %559 : vector<2x15x15xf32>
    %561 = vector.broadcast %84 : f32 to vector<2x15x15xf32>
    %562 = arith.mulf %561, %301 : vector<2x15x15xf32>
    %563 = arith.addf %560, %562 : vector<2x15x15xf32>
    %564 = vector.broadcast %85 : f32 to vector<2x15x15xf32>
    %565 = arith.mulf %564, %302 : vector<2x15x15xf32>
    %566 = arith.addf %563, %565 : vector<2x15x15xf32>
    %567 = vector.broadcast %86 : f32 to vector<2x15x15xf32>
    %568 = arith.mulf %567, %303 : vector<2x15x15xf32>
    %569 = arith.addf %566, %568 : vector<2x15x15xf32>
    %570 = vector.broadcast %87 : f32 to vector<2x15x15xf32>
    %571 = arith.mulf %570, %304 : vector<2x15x15xf32>
    %572 = arith.addf %569, %571 : vector<2x15x15xf32>
    %573 = vector.broadcast %88 : f32 to vector<2x15x15xf32>
    %574 = arith.mulf %573, %305 : vector<2x15x15xf32>
    %575 = arith.addf %572, %574 : vector<2x15x15xf32>
    %576 = vector.broadcast %89 : f32 to vector<2x15x15xf32>
    %577 = arith.mulf %576, %306 : vector<2x15x15xf32>
    %578 = arith.addf %575, %577 : vector<2x15x15xf32>
    %579 = vector.broadcast %136 : f32 to vector<2x15x15xf32>
    %580 = arith.addf %578, %579 : vector<2x15x15xf32>
    %cst_103 = arith.constant 0.000000e+00 : f32
    %581 = vector.broadcast %cst_103 : f32 to vector<2x15x15xf32>
    %582 = arith.maximumf %580, %581 : vector<2x15x15xf32>
    %583 = vector.broadcast %90 : f32 to vector<2x15x15xf32>
    %584 = arith.mulf %583, %262 : vector<2x15x15xf32>
    %585 = vector.broadcast %91 : f32 to vector<2x15x15xf32>
    %586 = arith.mulf %585, %263 : vector<2x15x15xf32>
    %587 = arith.addf %584, %586 : vector<2x15x15xf32>
    %588 = vector.broadcast %92 : f32 to vector<2x15x15xf32>
    %589 = arith.mulf %588, %264 : vector<2x15x15xf32>
    %590 = arith.addf %587, %589 : vector<2x15x15xf32>
    %591 = vector.broadcast %93 : f32 to vector<2x15x15xf32>
    %592 = arith.mulf %591, %265 : vector<2x15x15xf32>
    %593 = arith.addf %590, %592 : vector<2x15x15xf32>
    %594 = vector.broadcast %94 : f32 to vector<2x15x15xf32>
    %595 = arith.mulf %594, %266 : vector<2x15x15xf32>
    %596 = arith.addf %593, %595 : vector<2x15x15xf32>
    %597 = vector.broadcast %95 : f32 to vector<2x15x15xf32>
    %598 = arith.mulf %597, %267 : vector<2x15x15xf32>
    %599 = arith.addf %596, %598 : vector<2x15x15xf32>
    %600 = vector.broadcast %96 : f32 to vector<2x15x15xf32>
    %601 = arith.mulf %600, %268 : vector<2x15x15xf32>
    %602 = arith.addf %599, %601 : vector<2x15x15xf32>
    %603 = vector.broadcast %97 : f32 to vector<2x15x15xf32>
    %604 = arith.mulf %603, %269 : vector<2x15x15xf32>
    %605 = arith.addf %602, %604 : vector<2x15x15xf32>
    %606 = vector.broadcast %98 : f32 to vector<2x15x15xf32>
    %607 = arith.mulf %606, %270 : vector<2x15x15xf32>
    %608 = arith.addf %605, %607 : vector<2x15x15xf32>
    %609 = vector.broadcast %99 : f32 to vector<2x15x15xf32>
    %610 = arith.mulf %609, %271 : vector<2x15x15xf32>
    %611 = arith.addf %608, %610 : vector<2x15x15xf32>
    %612 = vector.broadcast %100 : f32 to vector<2x15x15xf32>
    %613 = arith.mulf %612, %272 : vector<2x15x15xf32>
    %614 = arith.addf %611, %613 : vector<2x15x15xf32>
    %615 = vector.broadcast %101 : f32 to vector<2x15x15xf32>
    %616 = arith.mulf %615, %273 : vector<2x15x15xf32>
    %617 = arith.addf %614, %616 : vector<2x15x15xf32>
    %618 = vector.broadcast %102 : f32 to vector<2x15x15xf32>
    %619 = arith.mulf %618, %274 : vector<2x15x15xf32>
    %620 = arith.addf %617, %619 : vector<2x15x15xf32>
    %621 = vector.broadcast %103 : f32 to vector<2x15x15xf32>
    %622 = arith.mulf %621, %275 : vector<2x15x15xf32>
    %623 = arith.addf %620, %622 : vector<2x15x15xf32>
    %624 = vector.broadcast %104 : f32 to vector<2x15x15xf32>
    %625 = arith.mulf %624, %276 : vector<2x15x15xf32>
    %626 = arith.addf %623, %625 : vector<2x15x15xf32>
    %627 = vector.broadcast %105 : f32 to vector<2x15x15xf32>
    %628 = arith.mulf %627, %277 : vector<2x15x15xf32>
    %629 = arith.addf %626, %628 : vector<2x15x15xf32>
    %630 = vector.broadcast %106 : f32 to vector<2x15x15xf32>
    %631 = arith.mulf %630, %278 : vector<2x15x15xf32>
    %632 = arith.addf %629, %631 : vector<2x15x15xf32>
    %633 = vector.broadcast %107 : f32 to vector<2x15x15xf32>
    %634 = arith.mulf %633, %279 : vector<2x15x15xf32>
    %635 = arith.addf %632, %634 : vector<2x15x15xf32>
    %636 = vector.broadcast %108 : f32 to vector<2x15x15xf32>
    %637 = arith.mulf %636, %280 : vector<2x15x15xf32>
    %638 = arith.addf %635, %637 : vector<2x15x15xf32>
    %639 = vector.broadcast %109 : f32 to vector<2x15x15xf32>
    %640 = arith.mulf %639, %281 : vector<2x15x15xf32>
    %641 = arith.addf %638, %640 : vector<2x15x15xf32>
    %642 = vector.broadcast %110 : f32 to vector<2x15x15xf32>
    %643 = arith.mulf %642, %282 : vector<2x15x15xf32>
    %644 = arith.addf %641, %643 : vector<2x15x15xf32>
    %645 = vector.broadcast %111 : f32 to vector<2x15x15xf32>
    %646 = arith.mulf %645, %283 : vector<2x15x15xf32>
    %647 = arith.addf %644, %646 : vector<2x15x15xf32>
    %648 = vector.broadcast %112 : f32 to vector<2x15x15xf32>
    %649 = arith.mulf %648, %284 : vector<2x15x15xf32>
    %650 = arith.addf %647, %649 : vector<2x15x15xf32>
    %651 = vector.broadcast %113 : f32 to vector<2x15x15xf32>
    %652 = arith.mulf %651, %285 : vector<2x15x15xf32>
    %653 = arith.addf %650, %652 : vector<2x15x15xf32>
    %654 = vector.broadcast %114 : f32 to vector<2x15x15xf32>
    %655 = arith.mulf %654, %286 : vector<2x15x15xf32>
    %656 = arith.addf %653, %655 : vector<2x15x15xf32>
    %657 = vector.broadcast %115 : f32 to vector<2x15x15xf32>
    %658 = arith.mulf %657, %287 : vector<2x15x15xf32>
    %659 = arith.addf %656, %658 : vector<2x15x15xf32>
    %660 = vector.broadcast %116 : f32 to vector<2x15x15xf32>
    %661 = arith.mulf %660, %288 : vector<2x15x15xf32>
    %662 = arith.addf %659, %661 : vector<2x15x15xf32>
    %663 = vector.broadcast %117 : f32 to vector<2x15x15xf32>
    %664 = arith.mulf %663, %289 : vector<2x15x15xf32>
    %665 = arith.addf %662, %664 : vector<2x15x15xf32>
    %666 = vector.broadcast %118 : f32 to vector<2x15x15xf32>
    %667 = arith.mulf %666, %290 : vector<2x15x15xf32>
    %668 = arith.addf %665, %667 : vector<2x15x15xf32>
    %669 = vector.broadcast %119 : f32 to vector<2x15x15xf32>
    %670 = arith.mulf %669, %291 : vector<2x15x15xf32>
    %671 = arith.addf %668, %670 : vector<2x15x15xf32>
    %672 = vector.broadcast %120 : f32 to vector<2x15x15xf32>
    %673 = arith.mulf %672, %292 : vector<2x15x15xf32>
    %674 = arith.addf %671, %673 : vector<2x15x15xf32>
    %675 = vector.broadcast %121 : f32 to vector<2x15x15xf32>
    %676 = arith.mulf %675, %293 : vector<2x15x15xf32>
    %677 = arith.addf %674, %676 : vector<2x15x15xf32>
    %678 = vector.broadcast %122 : f32 to vector<2x15x15xf32>
    %679 = arith.mulf %678, %294 : vector<2x15x15xf32>
    %680 = arith.addf %677, %679 : vector<2x15x15xf32>
    %681 = vector.broadcast %123 : f32 to vector<2x15x15xf32>
    %682 = arith.mulf %681, %295 : vector<2x15x15xf32>
    %683 = arith.addf %680, %682 : vector<2x15x15xf32>
    %684 = vector.broadcast %124 : f32 to vector<2x15x15xf32>
    %685 = arith.mulf %684, %296 : vector<2x15x15xf32>
    %686 = arith.addf %683, %685 : vector<2x15x15xf32>
    %687 = vector.broadcast %125 : f32 to vector<2x15x15xf32>
    %688 = arith.mulf %687, %297 : vector<2x15x15xf32>
    %689 = arith.addf %686, %688 : vector<2x15x15xf32>
    %690 = vector.broadcast %126 : f32 to vector<2x15x15xf32>
    %691 = arith.mulf %690, %298 : vector<2x15x15xf32>
    %692 = arith.addf %689, %691 : vector<2x15x15xf32>
    %693 = vector.broadcast %127 : f32 to vector<2x15x15xf32>
    %694 = arith.mulf %693, %299 : vector<2x15x15xf32>
    %695 = arith.addf %692, %694 : vector<2x15x15xf32>
    %696 = vector.broadcast %128 : f32 to vector<2x15x15xf32>
    %697 = arith.mulf %696, %300 : vector<2x15x15xf32>
    %698 = arith.addf %695, %697 : vector<2x15x15xf32>
    %699 = vector.broadcast %129 : f32 to vector<2x15x15xf32>
    %700 = arith.mulf %699, %301 : vector<2x15x15xf32>
    %701 = arith.addf %698, %700 : vector<2x15x15xf32>
    %702 = vector.broadcast %130 : f32 to vector<2x15x15xf32>
    %703 = arith.mulf %702, %302 : vector<2x15x15xf32>
    %704 = arith.addf %701, %703 : vector<2x15x15xf32>
    %705 = vector.broadcast %131 : f32 to vector<2x15x15xf32>
    %706 = arith.mulf %705, %303 : vector<2x15x15xf32>
    %707 = arith.addf %704, %706 : vector<2x15x15xf32>
    %708 = vector.broadcast %132 : f32 to vector<2x15x15xf32>
    %709 = arith.mulf %708, %304 : vector<2x15x15xf32>
    %710 = arith.addf %707, %709 : vector<2x15x15xf32>
    %711 = vector.broadcast %133 : f32 to vector<2x15x15xf32>
    %712 = arith.mulf %711, %305 : vector<2x15x15xf32>
    %713 = arith.addf %710, %712 : vector<2x15x15xf32>
    %714 = vector.broadcast %134 : f32 to vector<2x15x15xf32>
    %715 = arith.mulf %714, %306 : vector<2x15x15xf32>
    %716 = arith.addf %713, %715 : vector<2x15x15xf32>
    %717 = vector.broadcast %137 : f32 to vector<2x15x15xf32>
    %718 = arith.addf %716, %717 : vector<2x15x15xf32>
    %cst_104 = arith.constant 0.000000e+00 : f32
    %719 = vector.broadcast %cst_104 : f32 to vector<2x15x15xf32>
    %720 = arith.maximumf %718, %719 : vector<2x15x15xf32>
    %721 = vector.extract_strided_slice %444 {offsets = [0, 0, 0], sizes = [2, 14, 14], strides = [1, 1, 1]} : vector<2x15x15xf32> to vector<2x14x14xf32>
    %722 = vector.extract_strided_slice %444 {offsets = [0, 0, 1], sizes = [2, 14, 14], strides = [1, 1, 1]} : vector<2x15x15xf32> to vector<2x14x14xf32>
    %723 = arith.maximumf %721, %722 : vector<2x14x14xf32>
    %724 = vector.extract_strided_slice %444 {offsets = [0, 1, 0], sizes = [2, 14, 14], strides = [1, 1, 1]} : vector<2x15x15xf32> to vector<2x14x14xf32>
    %725 = vector.extract_strided_slice %444 {offsets = [0, 1, 1], sizes = [2, 14, 14], strides = [1, 1, 1]} : vector<2x15x15xf32> to vector<2x14x14xf32>
    %726 = arith.maximumf %724, %725 : vector<2x14x14xf32>
    %727 = arith.maximumf %723, %726 : vector<2x14x14xf32>
    %728 = vector.extract_strided_slice %582 {offsets = [0, 0, 0], sizes = [2, 14, 14], strides = [1, 1, 1]} : vector<2x15x15xf32> to vector<2x14x14xf32>
    %729 = vector.extract_strided_slice %582 {offsets = [0, 0, 1], sizes = [2, 14, 14], strides = [1, 1, 1]} : vector<2x15x15xf32> to vector<2x14x14xf32>
    %730 = arith.maximumf %728, %729 : vector<2x14x14xf32>
    %731 = vector.extract_strided_slice %582 {offsets = [0, 1, 0], sizes = [2, 14, 14], strides = [1, 1, 1]} : vector<2x15x15xf32> to vector<2x14x14xf32>
    %732 = vector.extract_strided_slice %582 {offsets = [0, 1, 1], sizes = [2, 14, 14], strides = [1, 1, 1]} : vector<2x15x15xf32> to vector<2x14x14xf32>
    %733 = arith.maximumf %731, %732 : vector<2x14x14xf32>
    %734 = arith.maximumf %730, %733 : vector<2x14x14xf32>
    %735 = vector.extract_strided_slice %720 {offsets = [0, 0, 0], sizes = [2, 14, 14], strides = [1, 1, 1]} : vector<2x15x15xf32> to vector<2x14x14xf32>
    %736 = vector.extract_strided_slice %720 {offsets = [0, 0, 1], sizes = [2, 14, 14], strides = [1, 1, 1]} : vector<2x15x15xf32> to vector<2x14x14xf32>
    %737 = arith.maximumf %735, %736 : vector<2x14x14xf32>
    %738 = vector.extract_strided_slice %720 {offsets = [0, 1, 0], sizes = [2, 14, 14], strides = [1, 1, 1]} : vector<2x15x15xf32> to vector<2x14x14xf32>
    %739 = vector.extract_strided_slice %720 {offsets = [0, 1, 1], sizes = [2, 14, 14], strides = [1, 1, 1]} : vector<2x15x15xf32> to vector<2x14x14xf32>
    %740 = arith.maximumf %738, %739 : vector<2x14x14xf32>
    %741 = arith.maximumf %737, %740 : vector<2x14x14xf32>
    %742 = vector.extract_strided_slice %727 {offsets = [0, 0, 0], sizes = [2, 14, 12], strides = [1, 1, 1]} : vector<2x14x14xf32> to vector<2x14x12xf32>
    %743 = vector.extract_strided_slice %727 {offsets = [0, 0, 1], sizes = [2, 14, 12], strides = [1, 1, 1]} : vector<2x14x14xf32> to vector<2x14x12xf32>
    %744 = vector.extract_strided_slice %727 {offsets = [0, 0, 2], sizes = [2, 14, 12], strides = [1, 1, 1]} : vector<2x14x14xf32> to vector<2x14x12xf32>
    %745 = vector.extract_strided_slice %734 {offsets = [0, 0, 0], sizes = [2, 14, 12], strides = [1, 1, 1]} : vector<2x14x14xf32> to vector<2x14x12xf32>
    %746 = vector.extract_strided_slice %734 {offsets = [0, 0, 1], sizes = [2, 14, 12], strides = [1, 1, 1]} : vector<2x14x14xf32> to vector<2x14x12xf32>
    %747 = vector.extract_strided_slice %734 {offsets = [0, 0, 2], sizes = [2, 14, 12], strides = [1, 1, 1]} : vector<2x14x14xf32> to vector<2x14x12xf32>
    %748 = vector.extract_strided_slice %741 {offsets = [0, 0, 0], sizes = [2, 14, 12], strides = [1, 1, 1]} : vector<2x14x14xf32> to vector<2x14x12xf32>
    %749 = vector.extract_strided_slice %741 {offsets = [0, 0, 1], sizes = [2, 14, 12], strides = [1, 1, 1]} : vector<2x14x14xf32> to vector<2x14x12xf32>
    %750 = vector.extract_strided_slice %741 {offsets = [0, 0, 2], sizes = [2, 14, 12], strides = [1, 1, 1]} : vector<2x14x14xf32> to vector<2x14x12xf32>
    %751 = vector.extract_strided_slice %742 {offsets = [0, 0, 0], sizes = [2, 12, 12], strides = [1, 1, 1]} : vector<2x14x12xf32> to vector<2x12x12xf32>
    %752 = vector.extract_strided_slice %743 {offsets = [0, 0, 0], sizes = [2, 12, 12], strides = [1, 1, 1]} : vector<2x14x12xf32> to vector<2x12x12xf32>
    %753 = vector.extract_strided_slice %744 {offsets = [0, 0, 0], sizes = [2, 12, 12], strides = [1, 1, 1]} : vector<2x14x12xf32> to vector<2x12x12xf32>
    %754 = vector.extract_strided_slice %742 {offsets = [0, 1, 0], sizes = [2, 12, 12], strides = [1, 1, 1]} : vector<2x14x12xf32> to vector<2x12x12xf32>
    %755 = vector.extract_strided_slice %743 {offsets = [0, 1, 0], sizes = [2, 12, 12], strides = [1, 1, 1]} : vector<2x14x12xf32> to vector<2x12x12xf32>
    %756 = vector.extract_strided_slice %744 {offsets = [0, 1, 0], sizes = [2, 12, 12], strides = [1, 1, 1]} : vector<2x14x12xf32> to vector<2x12x12xf32>
    %757 = vector.extract_strided_slice %742 {offsets = [0, 2, 0], sizes = [2, 12, 12], strides = [1, 1, 1]} : vector<2x14x12xf32> to vector<2x12x12xf32>
    %758 = vector.extract_strided_slice %743 {offsets = [0, 2, 0], sizes = [2, 12, 12], strides = [1, 1, 1]} : vector<2x14x12xf32> to vector<2x12x12xf32>
    %759 = vector.extract_strided_slice %744 {offsets = [0, 2, 0], sizes = [2, 12, 12], strides = [1, 1, 1]} : vector<2x14x12xf32> to vector<2x12x12xf32>
    %760 = vector.extract_strided_slice %745 {offsets = [0, 0, 0], sizes = [2, 12, 12], strides = [1, 1, 1]} : vector<2x14x12xf32> to vector<2x12x12xf32>
    %761 = vector.extract_strided_slice %746 {offsets = [0, 0, 0], sizes = [2, 12, 12], strides = [1, 1, 1]} : vector<2x14x12xf32> to vector<2x12x12xf32>
    %762 = vector.extract_strided_slice %747 {offsets = [0, 0, 0], sizes = [2, 12, 12], strides = [1, 1, 1]} : vector<2x14x12xf32> to vector<2x12x12xf32>
    %763 = vector.extract_strided_slice %745 {offsets = [0, 1, 0], sizes = [2, 12, 12], strides = [1, 1, 1]} : vector<2x14x12xf32> to vector<2x12x12xf32>
    %764 = vector.extract_strided_slice %746 {offsets = [0, 1, 0], sizes = [2, 12, 12], strides = [1, 1, 1]} : vector<2x14x12xf32> to vector<2x12x12xf32>
    %765 = vector.extract_strided_slice %747 {offsets = [0, 1, 0], sizes = [2, 12, 12], strides = [1, 1, 1]} : vector<2x14x12xf32> to vector<2x12x12xf32>
    %766 = vector.extract_strided_slice %745 {offsets = [0, 2, 0], sizes = [2, 12, 12], strides = [1, 1, 1]} : vector<2x14x12xf32> to vector<2x12x12xf32>
    %767 = vector.extract_strided_slice %746 {offsets = [0, 2, 0], sizes = [2, 12, 12], strides = [1, 1, 1]} : vector<2x14x12xf32> to vector<2x12x12xf32>
    %768 = vector.extract_strided_slice %747 {offsets = [0, 2, 0], sizes = [2, 12, 12], strides = [1, 1, 1]} : vector<2x14x12xf32> to vector<2x12x12xf32>
    %769 = vector.extract_strided_slice %748 {offsets = [0, 0, 0], sizes = [2, 12, 12], strides = [1, 1, 1]} : vector<2x14x12xf32> to vector<2x12x12xf32>
    %770 = vector.extract_strided_slice %749 {offsets = [0, 0, 0], sizes = [2, 12, 12], strides = [1, 1, 1]} : vector<2x14x12xf32> to vector<2x12x12xf32>
    %771 = vector.extract_strided_slice %750 {offsets = [0, 0, 0], sizes = [2, 12, 12], strides = [1, 1, 1]} : vector<2x14x12xf32> to vector<2x12x12xf32>
    %772 = vector.extract_strided_slice %748 {offsets = [0, 1, 0], sizes = [2, 12, 12], strides = [1, 1, 1]} : vector<2x14x12xf32> to vector<2x12x12xf32>
    %773 = vector.extract_strided_slice %749 {offsets = [0, 1, 0], sizes = [2, 12, 12], strides = [1, 1, 1]} : vector<2x14x12xf32> to vector<2x12x12xf32>
    %774 = vector.extract_strided_slice %750 {offsets = [0, 1, 0], sizes = [2, 12, 12], strides = [1, 1, 1]} : vector<2x14x12xf32> to vector<2x12x12xf32>
    %775 = vector.extract_strided_slice %748 {offsets = [0, 2, 0], sizes = [2, 12, 12], strides = [1, 1, 1]} : vector<2x14x12xf32> to vector<2x12x12xf32>
    %776 = vector.extract_strided_slice %749 {offsets = [0, 2, 0], sizes = [2, 12, 12], strides = [1, 1, 1]} : vector<2x14x12xf32> to vector<2x12x12xf32>
    %777 = vector.extract_strided_slice %750 {offsets = [0, 2, 0], sizes = [2, 12, 12], strides = [1, 1, 1]} : vector<2x14x12xf32> to vector<2x12x12xf32>
    %778 = vector.broadcast %138 : f32 to vector<2x12x12xf32>
    %779 = arith.mulf %778, %751 : vector<2x12x12xf32>
    %780 = vector.broadcast %139 : f32 to vector<2x12x12xf32>
    %781 = arith.mulf %780, %752 : vector<2x12x12xf32>
    %782 = arith.addf %779, %781 : vector<2x12x12xf32>
    %783 = vector.broadcast %140 : f32 to vector<2x12x12xf32>
    %784 = arith.mulf %783, %753 : vector<2x12x12xf32>
    %785 = arith.addf %782, %784 : vector<2x12x12xf32>
    %786 = vector.broadcast %141 : f32 to vector<2x12x12xf32>
    %787 = arith.mulf %786, %754 : vector<2x12x12xf32>
    %788 = arith.addf %785, %787 : vector<2x12x12xf32>
    %789 = vector.broadcast %142 : f32 to vector<2x12x12xf32>
    %790 = arith.mulf %789, %755 : vector<2x12x12xf32>
    %791 = arith.addf %788, %790 : vector<2x12x12xf32>
    %792 = vector.broadcast %143 : f32 to vector<2x12x12xf32>
    %793 = arith.mulf %792, %756 : vector<2x12x12xf32>
    %794 = arith.addf %791, %793 : vector<2x12x12xf32>
    %795 = vector.broadcast %144 : f32 to vector<2x12x12xf32>
    %796 = arith.mulf %795, %757 : vector<2x12x12xf32>
    %797 = arith.addf %794, %796 : vector<2x12x12xf32>
    %798 = vector.broadcast %145 : f32 to vector<2x12x12xf32>
    %799 = arith.mulf %798, %758 : vector<2x12x12xf32>
    %800 = arith.addf %797, %799 : vector<2x12x12xf32>
    %801 = vector.broadcast %146 : f32 to vector<2x12x12xf32>
    %802 = arith.mulf %801, %759 : vector<2x12x12xf32>
    %803 = arith.addf %800, %802 : vector<2x12x12xf32>
    %804 = vector.broadcast %147 : f32 to vector<2x12x12xf32>
    %805 = arith.mulf %804, %760 : vector<2x12x12xf32>
    %806 = arith.addf %803, %805 : vector<2x12x12xf32>
    %807 = vector.broadcast %148 : f32 to vector<2x12x12xf32>
    %808 = arith.mulf %807, %761 : vector<2x12x12xf32>
    %809 = arith.addf %806, %808 : vector<2x12x12xf32>
    %810 = vector.broadcast %149 : f32 to vector<2x12x12xf32>
    %811 = arith.mulf %810, %762 : vector<2x12x12xf32>
    %812 = arith.addf %809, %811 : vector<2x12x12xf32>
    %813 = vector.broadcast %150 : f32 to vector<2x12x12xf32>
    %814 = arith.mulf %813, %763 : vector<2x12x12xf32>
    %815 = arith.addf %812, %814 : vector<2x12x12xf32>
    %816 = vector.broadcast %151 : f32 to vector<2x12x12xf32>
    %817 = arith.mulf %816, %764 : vector<2x12x12xf32>
    %818 = arith.addf %815, %817 : vector<2x12x12xf32>
    %819 = vector.broadcast %152 : f32 to vector<2x12x12xf32>
    %820 = arith.mulf %819, %765 : vector<2x12x12xf32>
    %821 = arith.addf %818, %820 : vector<2x12x12xf32>
    %822 = vector.broadcast %153 : f32 to vector<2x12x12xf32>
    %823 = arith.mulf %822, %766 : vector<2x12x12xf32>
    %824 = arith.addf %821, %823 : vector<2x12x12xf32>
    %825 = vector.broadcast %154 : f32 to vector<2x12x12xf32>
    %826 = arith.mulf %825, %767 : vector<2x12x12xf32>
    %827 = arith.addf %824, %826 : vector<2x12x12xf32>
    %828 = vector.broadcast %155 : f32 to vector<2x12x12xf32>
    %829 = arith.mulf %828, %768 : vector<2x12x12xf32>
    %830 = arith.addf %827, %829 : vector<2x12x12xf32>
    %831 = vector.broadcast %156 : f32 to vector<2x12x12xf32>
    %832 = arith.mulf %831, %769 : vector<2x12x12xf32>
    %833 = arith.addf %830, %832 : vector<2x12x12xf32>
    %834 = vector.broadcast %157 : f32 to vector<2x12x12xf32>
    %835 = arith.mulf %834, %770 : vector<2x12x12xf32>
    %836 = arith.addf %833, %835 : vector<2x12x12xf32>
    %837 = vector.broadcast %158 : f32 to vector<2x12x12xf32>
    %838 = arith.mulf %837, %771 : vector<2x12x12xf32>
    %839 = arith.addf %836, %838 : vector<2x12x12xf32>
    %840 = vector.broadcast %159 : f32 to vector<2x12x12xf32>
    %841 = arith.mulf %840, %772 : vector<2x12x12xf32>
    %842 = arith.addf %839, %841 : vector<2x12x12xf32>
    %843 = vector.broadcast %160 : f32 to vector<2x12x12xf32>
    %844 = arith.mulf %843, %773 : vector<2x12x12xf32>
    %845 = arith.addf %842, %844 : vector<2x12x12xf32>
    %846 = vector.broadcast %161 : f32 to vector<2x12x12xf32>
    %847 = arith.mulf %846, %774 : vector<2x12x12xf32>
    %848 = arith.addf %845, %847 : vector<2x12x12xf32>
    %849 = vector.broadcast %162 : f32 to vector<2x12x12xf32>
    %850 = arith.mulf %849, %775 : vector<2x12x12xf32>
    %851 = arith.addf %848, %850 : vector<2x12x12xf32>
    %852 = vector.broadcast %163 : f32 to vector<2x12x12xf32>
    %853 = arith.mulf %852, %776 : vector<2x12x12xf32>
    %854 = arith.addf %851, %853 : vector<2x12x12xf32>
    %855 = vector.broadcast %164 : f32 to vector<2x12x12xf32>
    %856 = arith.mulf %855, %777 : vector<2x12x12xf32>
    %857 = arith.addf %854, %856 : vector<2x12x12xf32>
    %858 = vector.broadcast %192 : f32 to vector<2x12x12xf32>
    %859 = arith.addf %857, %858 : vector<2x12x12xf32>
    %cst_105 = arith.constant 0.000000e+00 : f32
    %860 = vector.broadcast %cst_105 : f32 to vector<2x12x12xf32>
    %861 = arith.maximumf %859, %860 : vector<2x12x12xf32>
    %862 = vector.broadcast %165 : f32 to vector<2x12x12xf32>
    %863 = arith.mulf %862, %751 : vector<2x12x12xf32>
    %864 = vector.broadcast %166 : f32 to vector<2x12x12xf32>
    %865 = arith.mulf %864, %752 : vector<2x12x12xf32>
    %866 = arith.addf %863, %865 : vector<2x12x12xf32>
    %867 = vector.broadcast %167 : f32 to vector<2x12x12xf32>
    %868 = arith.mulf %867, %753 : vector<2x12x12xf32>
    %869 = arith.addf %866, %868 : vector<2x12x12xf32>
    %870 = vector.broadcast %168 : f32 to vector<2x12x12xf32>
    %871 = arith.mulf %870, %754 : vector<2x12x12xf32>
    %872 = arith.addf %869, %871 : vector<2x12x12xf32>
    %873 = vector.broadcast %169 : f32 to vector<2x12x12xf32>
    %874 = arith.mulf %873, %755 : vector<2x12x12xf32>
    %875 = arith.addf %872, %874 : vector<2x12x12xf32>
    %876 = vector.broadcast %170 : f32 to vector<2x12x12xf32>
    %877 = arith.mulf %876, %756 : vector<2x12x12xf32>
    %878 = arith.addf %875, %877 : vector<2x12x12xf32>
    %879 = vector.broadcast %171 : f32 to vector<2x12x12xf32>
    %880 = arith.mulf %879, %757 : vector<2x12x12xf32>
    %881 = arith.addf %878, %880 : vector<2x12x12xf32>
    %882 = vector.broadcast %172 : f32 to vector<2x12x12xf32>
    %883 = arith.mulf %882, %758 : vector<2x12x12xf32>
    %884 = arith.addf %881, %883 : vector<2x12x12xf32>
    %885 = vector.broadcast %173 : f32 to vector<2x12x12xf32>
    %886 = arith.mulf %885, %759 : vector<2x12x12xf32>
    %887 = arith.addf %884, %886 : vector<2x12x12xf32>
    %888 = vector.broadcast %174 : f32 to vector<2x12x12xf32>
    %889 = arith.mulf %888, %760 : vector<2x12x12xf32>
    %890 = arith.addf %887, %889 : vector<2x12x12xf32>
    %891 = vector.broadcast %175 : f32 to vector<2x12x12xf32>
    %892 = arith.mulf %891, %761 : vector<2x12x12xf32>
    %893 = arith.addf %890, %892 : vector<2x12x12xf32>
    %894 = vector.broadcast %176 : f32 to vector<2x12x12xf32>
    %895 = arith.mulf %894, %762 : vector<2x12x12xf32>
    %896 = arith.addf %893, %895 : vector<2x12x12xf32>
    %897 = vector.broadcast %177 : f32 to vector<2x12x12xf32>
    %898 = arith.mulf %897, %763 : vector<2x12x12xf32>
    %899 = arith.addf %896, %898 : vector<2x12x12xf32>
    %900 = vector.broadcast %178 : f32 to vector<2x12x12xf32>
    %901 = arith.mulf %900, %764 : vector<2x12x12xf32>
    %902 = arith.addf %899, %901 : vector<2x12x12xf32>
    %903 = vector.broadcast %179 : f32 to vector<2x12x12xf32>
    %904 = arith.mulf %903, %765 : vector<2x12x12xf32>
    %905 = arith.addf %902, %904 : vector<2x12x12xf32>
    %906 = vector.broadcast %180 : f32 to vector<2x12x12xf32>
    %907 = arith.mulf %906, %766 : vector<2x12x12xf32>
    %908 = arith.addf %905, %907 : vector<2x12x12xf32>
    %909 = vector.broadcast %181 : f32 to vector<2x12x12xf32>
    %910 = arith.mulf %909, %767 : vector<2x12x12xf32>
    %911 = arith.addf %908, %910 : vector<2x12x12xf32>
    %912 = vector.broadcast %182 : f32 to vector<2x12x12xf32>
    %913 = arith.mulf %912, %768 : vector<2x12x12xf32>
    %914 = arith.addf %911, %913 : vector<2x12x12xf32>
    %915 = vector.broadcast %183 : f32 to vector<2x12x12xf32>
    %916 = arith.mulf %915, %769 : vector<2x12x12xf32>
    %917 = arith.addf %914, %916 : vector<2x12x12xf32>
    %918 = vector.broadcast %184 : f32 to vector<2x12x12xf32>
    %919 = arith.mulf %918, %770 : vector<2x12x12xf32>
    %920 = arith.addf %917, %919 : vector<2x12x12xf32>
    %921 = vector.broadcast %185 : f32 to vector<2x12x12xf32>
    %922 = arith.mulf %921, %771 : vector<2x12x12xf32>
    %923 = arith.addf %920, %922 : vector<2x12x12xf32>
    %924 = vector.broadcast %186 : f32 to vector<2x12x12xf32>
    %925 = arith.mulf %924, %772 : vector<2x12x12xf32>
    %926 = arith.addf %923, %925 : vector<2x12x12xf32>
    %927 = vector.broadcast %187 : f32 to vector<2x12x12xf32>
    %928 = arith.mulf %927, %773 : vector<2x12x12xf32>
    %929 = arith.addf %926, %928 : vector<2x12x12xf32>
    %930 = vector.broadcast %188 : f32 to vector<2x12x12xf32>
    %931 = arith.mulf %930, %774 : vector<2x12x12xf32>
    %932 = arith.addf %929, %931 : vector<2x12x12xf32>
    %933 = vector.broadcast %189 : f32 to vector<2x12x12xf32>
    %934 = arith.mulf %933, %775 : vector<2x12x12xf32>
    %935 = arith.addf %932, %934 : vector<2x12x12xf32>
    %936 = vector.broadcast %190 : f32 to vector<2x12x12xf32>
    %937 = arith.mulf %936, %776 : vector<2x12x12xf32>
    %938 = arith.addf %935, %937 : vector<2x12x12xf32>
    %939 = vector.broadcast %191 : f32 to vector<2x12x12xf32>
    %940 = arith.mulf %939, %777 : vector<2x12x12xf32>
    %941 = arith.addf %938, %940 : vector<2x12x12xf32>
    %942 = vector.broadcast %193 : f32 to vector<2x12x12xf32>
    %943 = arith.addf %941, %942 : vector<2x12x12xf32>
    %cst_106 = arith.constant 0.000000e+00 : f32
    %944 = vector.broadcast %cst_106 : f32 to vector<2x12x12xf32>
    %945 = arith.maximumf %943, %944 : vector<2x12x12xf32>
    %946 = vector.extract_strided_slice %861 {offsets = [0, 0, 0], sizes = [2, 11, 11], strides = [1, 1, 1]} : vector<2x12x12xf32> to vector<2x11x11xf32>
    %947 = vector.extract_strided_slice %861 {offsets = [0, 0, 1], sizes = [2, 11, 11], strides = [1, 1, 1]} : vector<2x12x12xf32> to vector<2x11x11xf32>
    %948 = arith.maximumf %946, %947 : vector<2x11x11xf32>
    %949 = vector.extract_strided_slice %861 {offsets = [0, 1, 0], sizes = [2, 11, 11], strides = [1, 1, 1]} : vector<2x12x12xf32> to vector<2x11x11xf32>
    %950 = vector.extract_strided_slice %861 {offsets = [0, 1, 1], sizes = [2, 11, 11], strides = [1, 1, 1]} : vector<2x12x12xf32> to vector<2x11x11xf32>
    %951 = arith.maximumf %949, %950 : vector<2x11x11xf32>
    %952 = arith.maximumf %948, %951 : vector<2x11x11xf32>
    %953 = vector.extract_strided_slice %945 {offsets = [0, 0, 0], sizes = [2, 11, 11], strides = [1, 1, 1]} : vector<2x12x12xf32> to vector<2x11x11xf32>
    %954 = vector.extract_strided_slice %945 {offsets = [0, 0, 1], sizes = [2, 11, 11], strides = [1, 1, 1]} : vector<2x12x12xf32> to vector<2x11x11xf32>
    %955 = arith.maximumf %953, %954 : vector<2x11x11xf32>
    %956 = vector.extract_strided_slice %945 {offsets = [0, 1, 0], sizes = [2, 11, 11], strides = [1, 1, 1]} : vector<2x12x12xf32> to vector<2x11x11xf32>
    %957 = vector.extract_strided_slice %945 {offsets = [0, 1, 1], sizes = [2, 11, 11], strides = [1, 1, 1]} : vector<2x12x12xf32> to vector<2x11x11xf32>
    %958 = arith.maximumf %956, %957 : vector<2x11x11xf32>
    %959 = arith.maximumf %955, %958 : vector<2x11x11xf32>
    %960 = vector.extract_strided_slice %952 {offsets = [0, 0, 0], sizes = [2, 11, 9], strides = [1, 1, 1]} : vector<2x11x11xf32> to vector<2x11x9xf32>
    %961 = vector.extract_strided_slice %952 {offsets = [0, 0, 1], sizes = [2, 11, 9], strides = [1, 1, 1]} : vector<2x11x11xf32> to vector<2x11x9xf32>
    %962 = vector.extract_strided_slice %952 {offsets = [0, 0, 2], sizes = [2, 11, 9], strides = [1, 1, 1]} : vector<2x11x11xf32> to vector<2x11x9xf32>
    %963 = vector.extract_strided_slice %959 {offsets = [0, 0, 0], sizes = [2, 11, 9], strides = [1, 1, 1]} : vector<2x11x11xf32> to vector<2x11x9xf32>
    %964 = vector.extract_strided_slice %959 {offsets = [0, 0, 1], sizes = [2, 11, 9], strides = [1, 1, 1]} : vector<2x11x11xf32> to vector<2x11x9xf32>
    %965 = vector.extract_strided_slice %959 {offsets = [0, 0, 2], sizes = [2, 11, 9], strides = [1, 1, 1]} : vector<2x11x11xf32> to vector<2x11x9xf32>
    %966 = vector.extract_strided_slice %960 {offsets = [0, 0, 0], sizes = [2, 9, 9], strides = [1, 1, 1]} : vector<2x11x9xf32> to vector<2x9x9xf32>
    %967 = vector.extract_strided_slice %961 {offsets = [0, 0, 0], sizes = [2, 9, 9], strides = [1, 1, 1]} : vector<2x11x9xf32> to vector<2x9x9xf32>
    %968 = vector.extract_strided_slice %962 {offsets = [0, 0, 0], sizes = [2, 9, 9], strides = [1, 1, 1]} : vector<2x11x9xf32> to vector<2x9x9xf32>
    %969 = vector.extract_strided_slice %960 {offsets = [0, 1, 0], sizes = [2, 9, 9], strides = [1, 1, 1]} : vector<2x11x9xf32> to vector<2x9x9xf32>
    %970 = vector.extract_strided_slice %961 {offsets = [0, 1, 0], sizes = [2, 9, 9], strides = [1, 1, 1]} : vector<2x11x9xf32> to vector<2x9x9xf32>
    %971 = vector.extract_strided_slice %962 {offsets = [0, 1, 0], sizes = [2, 9, 9], strides = [1, 1, 1]} : vector<2x11x9xf32> to vector<2x9x9xf32>
    %972 = vector.extract_strided_slice %960 {offsets = [0, 2, 0], sizes = [2, 9, 9], strides = [1, 1, 1]} : vector<2x11x9xf32> to vector<2x9x9xf32>
    %973 = vector.extract_strided_slice %961 {offsets = [0, 2, 0], sizes = [2, 9, 9], strides = [1, 1, 1]} : vector<2x11x9xf32> to vector<2x9x9xf32>
    %974 = vector.extract_strided_slice %962 {offsets = [0, 2, 0], sizes = [2, 9, 9], strides = [1, 1, 1]} : vector<2x11x9xf32> to vector<2x9x9xf32>
    %975 = vector.extract_strided_slice %963 {offsets = [0, 0, 0], sizes = [2, 9, 9], strides = [1, 1, 1]} : vector<2x11x9xf32> to vector<2x9x9xf32>
    %976 = vector.extract_strided_slice %964 {offsets = [0, 0, 0], sizes = [2, 9, 9], strides = [1, 1, 1]} : vector<2x11x9xf32> to vector<2x9x9xf32>
    %977 = vector.extract_strided_slice %965 {offsets = [0, 0, 0], sizes = [2, 9, 9], strides = [1, 1, 1]} : vector<2x11x9xf32> to vector<2x9x9xf32>
    %978 = vector.extract_strided_slice %963 {offsets = [0, 1, 0], sizes = [2, 9, 9], strides = [1, 1, 1]} : vector<2x11x9xf32> to vector<2x9x9xf32>
    %979 = vector.extract_strided_slice %964 {offsets = [0, 1, 0], sizes = [2, 9, 9], strides = [1, 1, 1]} : vector<2x11x9xf32> to vector<2x9x9xf32>
    %980 = vector.extract_strided_slice %965 {offsets = [0, 1, 0], sizes = [2, 9, 9], strides = [1, 1, 1]} : vector<2x11x9xf32> to vector<2x9x9xf32>
    %981 = vector.extract_strided_slice %963 {offsets = [0, 2, 0], sizes = [2, 9, 9], strides = [1, 1, 1]} : vector<2x11x9xf32> to vector<2x9x9xf32>
    %982 = vector.extract_strided_slice %964 {offsets = [0, 2, 0], sizes = [2, 9, 9], strides = [1, 1, 1]} : vector<2x11x9xf32> to vector<2x9x9xf32>
    %983 = vector.extract_strided_slice %965 {offsets = [0, 2, 0], sizes = [2, 9, 9], strides = [1, 1, 1]} : vector<2x11x9xf32> to vector<2x9x9xf32>
    %984 = vector.broadcast %194 : f32 to vector<2x9x9xf32>
    %985 = arith.mulf %984, %966 : vector<2x9x9xf32>
    %986 = vector.broadcast %195 : f32 to vector<2x9x9xf32>
    %987 = arith.mulf %986, %967 : vector<2x9x9xf32>
    %988 = arith.addf %985, %987 : vector<2x9x9xf32>
    %989 = vector.broadcast %196 : f32 to vector<2x9x9xf32>
    %990 = arith.mulf %989, %968 : vector<2x9x9xf32>
    %991 = arith.addf %988, %990 : vector<2x9x9xf32>
    %992 = vector.broadcast %197 : f32 to vector<2x9x9xf32>
    %993 = arith.mulf %992, %969 : vector<2x9x9xf32>
    %994 = arith.addf %991, %993 : vector<2x9x9xf32>
    %995 = vector.broadcast %198 : f32 to vector<2x9x9xf32>
    %996 = arith.mulf %995, %970 : vector<2x9x9xf32>
    %997 = arith.addf %994, %996 : vector<2x9x9xf32>
    %998 = vector.broadcast %199 : f32 to vector<2x9x9xf32>
    %999 = arith.mulf %998, %971 : vector<2x9x9xf32>
    %1000 = arith.addf %997, %999 : vector<2x9x9xf32>
    %1001 = vector.broadcast %200 : f32 to vector<2x9x9xf32>
    %1002 = arith.mulf %1001, %972 : vector<2x9x9xf32>
    %1003 = arith.addf %1000, %1002 : vector<2x9x9xf32>
    %1004 = vector.broadcast %201 : f32 to vector<2x9x9xf32>
    %1005 = arith.mulf %1004, %973 : vector<2x9x9xf32>
    %1006 = arith.addf %1003, %1005 : vector<2x9x9xf32>
    %1007 = vector.broadcast %202 : f32 to vector<2x9x9xf32>
    %1008 = arith.mulf %1007, %974 : vector<2x9x9xf32>
    %1009 = arith.addf %1006, %1008 : vector<2x9x9xf32>
    %1010 = vector.broadcast %203 : f32 to vector<2x9x9xf32>
    %1011 = arith.mulf %1010, %975 : vector<2x9x9xf32>
    %1012 = arith.addf %1009, %1011 : vector<2x9x9xf32>
    %1013 = vector.broadcast %204 : f32 to vector<2x9x9xf32>
    %1014 = arith.mulf %1013, %976 : vector<2x9x9xf32>
    %1015 = arith.addf %1012, %1014 : vector<2x9x9xf32>
    %1016 = vector.broadcast %205 : f32 to vector<2x9x9xf32>
    %1017 = arith.mulf %1016, %977 : vector<2x9x9xf32>
    %1018 = arith.addf %1015, %1017 : vector<2x9x9xf32>
    %1019 = vector.broadcast %206 : f32 to vector<2x9x9xf32>
    %1020 = arith.mulf %1019, %978 : vector<2x9x9xf32>
    %1021 = arith.addf %1018, %1020 : vector<2x9x9xf32>
    %1022 = vector.broadcast %207 : f32 to vector<2x9x9xf32>
    %1023 = arith.mulf %1022, %979 : vector<2x9x9xf32>
    %1024 = arith.addf %1021, %1023 : vector<2x9x9xf32>
    %1025 = vector.broadcast %208 : f32 to vector<2x9x9xf32>
    %1026 = arith.mulf %1025, %980 : vector<2x9x9xf32>
    %1027 = arith.addf %1024, %1026 : vector<2x9x9xf32>
    %1028 = vector.broadcast %209 : f32 to vector<2x9x9xf32>
    %1029 = arith.mulf %1028, %981 : vector<2x9x9xf32>
    %1030 = arith.addf %1027, %1029 : vector<2x9x9xf32>
    %1031 = vector.broadcast %210 : f32 to vector<2x9x9xf32>
    %1032 = arith.mulf %1031, %982 : vector<2x9x9xf32>
    %1033 = arith.addf %1030, %1032 : vector<2x9x9xf32>
    %1034 = vector.broadcast %211 : f32 to vector<2x9x9xf32>
    %1035 = arith.mulf %1034, %983 : vector<2x9x9xf32>
    %1036 = arith.addf %1033, %1035 : vector<2x9x9xf32>
    %1037 = vector.broadcast %230 : f32 to vector<2x9x9xf32>
    %1038 = arith.addf %1036, %1037 : vector<2x9x9xf32>
    %cst_107 = arith.constant 0.000000e+00 : f32
    %1039 = vector.broadcast %cst_107 : f32 to vector<2x9x9xf32>
    %1040 = arith.maximumf %1038, %1039 : vector<2x9x9xf32>
    %1041 = vector.broadcast %212 : f32 to vector<2x9x9xf32>
    %1042 = arith.mulf %1041, %966 : vector<2x9x9xf32>
    %1043 = vector.broadcast %213 : f32 to vector<2x9x9xf32>
    %1044 = arith.mulf %1043, %967 : vector<2x9x9xf32>
    %1045 = arith.addf %1042, %1044 : vector<2x9x9xf32>
    %1046 = vector.broadcast %214 : f32 to vector<2x9x9xf32>
    %1047 = arith.mulf %1046, %968 : vector<2x9x9xf32>
    %1048 = arith.addf %1045, %1047 : vector<2x9x9xf32>
    %1049 = vector.broadcast %215 : f32 to vector<2x9x9xf32>
    %1050 = arith.mulf %1049, %969 : vector<2x9x9xf32>
    %1051 = arith.addf %1048, %1050 : vector<2x9x9xf32>
    %1052 = vector.broadcast %216 : f32 to vector<2x9x9xf32>
    %1053 = arith.mulf %1052, %970 : vector<2x9x9xf32>
    %1054 = arith.addf %1051, %1053 : vector<2x9x9xf32>
    %1055 = vector.broadcast %217 : f32 to vector<2x9x9xf32>
    %1056 = arith.mulf %1055, %971 : vector<2x9x9xf32>
    %1057 = arith.addf %1054, %1056 : vector<2x9x9xf32>
    %1058 = vector.broadcast %218 : f32 to vector<2x9x9xf32>
    %1059 = arith.mulf %1058, %972 : vector<2x9x9xf32>
    %1060 = arith.addf %1057, %1059 : vector<2x9x9xf32>
    %1061 = vector.broadcast %219 : f32 to vector<2x9x9xf32>
    %1062 = arith.mulf %1061, %973 : vector<2x9x9xf32>
    %1063 = arith.addf %1060, %1062 : vector<2x9x9xf32>
    %1064 = vector.broadcast %220 : f32 to vector<2x9x9xf32>
    %1065 = arith.mulf %1064, %974 : vector<2x9x9xf32>
    %1066 = arith.addf %1063, %1065 : vector<2x9x9xf32>
    %1067 = vector.broadcast %221 : f32 to vector<2x9x9xf32>
    %1068 = arith.mulf %1067, %975 : vector<2x9x9xf32>
    %1069 = arith.addf %1066, %1068 : vector<2x9x9xf32>
    %1070 = vector.broadcast %222 : f32 to vector<2x9x9xf32>
    %1071 = arith.mulf %1070, %976 : vector<2x9x9xf32>
    %1072 = arith.addf %1069, %1071 : vector<2x9x9xf32>
    %1073 = vector.broadcast %223 : f32 to vector<2x9x9xf32>
    %1074 = arith.mulf %1073, %977 : vector<2x9x9xf32>
    %1075 = arith.addf %1072, %1074 : vector<2x9x9xf32>
    %1076 = vector.broadcast %224 : f32 to vector<2x9x9xf32>
    %1077 = arith.mulf %1076, %978 : vector<2x9x9xf32>
    %1078 = arith.addf %1075, %1077 : vector<2x9x9xf32>
    %1079 = vector.broadcast %225 : f32 to vector<2x9x9xf32>
    %1080 = arith.mulf %1079, %979 : vector<2x9x9xf32>
    %1081 = arith.addf %1078, %1080 : vector<2x9x9xf32>
    %1082 = vector.broadcast %226 : f32 to vector<2x9x9xf32>
    %1083 = arith.mulf %1082, %980 : vector<2x9x9xf32>
    %1084 = arith.addf %1081, %1083 : vector<2x9x9xf32>
    %1085 = vector.broadcast %227 : f32 to vector<2x9x9xf32>
    %1086 = arith.mulf %1085, %981 : vector<2x9x9xf32>
    %1087 = arith.addf %1084, %1086 : vector<2x9x9xf32>
    %1088 = vector.broadcast %228 : f32 to vector<2x9x9xf32>
    %1089 = arith.mulf %1088, %982 : vector<2x9x9xf32>
    %1090 = arith.addf %1087, %1089 : vector<2x9x9xf32>
    %1091 = vector.broadcast %229 : f32 to vector<2x9x9xf32>
    %1092 = arith.mulf %1091, %983 : vector<2x9x9xf32>
    %1093 = arith.addf %1090, %1092 : vector<2x9x9xf32>
    %1094 = vector.broadcast %231 : f32 to vector<2x9x9xf32>
    %1095 = arith.addf %1093, %1094 : vector<2x9x9xf32>
    %cst_108 = arith.constant 0.000000e+00 : f32
    %1096 = vector.broadcast %cst_108 : f32 to vector<2x9x9xf32>
    %1097 = arith.maximumf %1095, %1096 : vector<2x9x9xf32>
    %1098 = tpu.concatenate %1040, %1097 in 2 : vector<2x9x9xf32>, vector<2x9x9xf32> -> vector<2x9x18xf32>
    %1099 = vector.extract_strided_slice %1098 {offsets = [0, 0, 0], sizes = [2, 1, 18], strides = [1, 1, 1]} : vector<2x9x18xf32> to vector<2x1x18xf32>
    %1100 = vector.shape_cast %1099 : vector<2x1x18xf32> to vector<2x18xf32>
    %1101 = vector.extract_strided_slice %1098 {offsets = [0, 1, 0], sizes = [2, 1, 18], strides = [1, 1, 1]} : vector<2x9x18xf32> to vector<2x1x18xf32>
    %1102 = vector.shape_cast %1101 : vector<2x1x18xf32> to vector<2x18xf32>
    %1103 = vector.extract_strided_slice %1098 {offsets = [0, 2, 0], sizes = [2, 1, 18], strides = [1, 1, 1]} : vector<2x9x18xf32> to vector<2x1x18xf32>
    %1104 = vector.shape_cast %1103 : vector<2x1x18xf32> to vector<2x18xf32>
    %1105 = vector.extract_strided_slice %1098 {offsets = [0, 3, 0], sizes = [2, 1, 18], strides = [1, 1, 1]} : vector<2x9x18xf32> to vector<2x1x18xf32>
    %1106 = vector.shape_cast %1105 : vector<2x1x18xf32> to vector<2x18xf32>
    %1107 = vector.extract_strided_slice %1098 {offsets = [0, 4, 0], sizes = [2, 1, 18], strides = [1, 1, 1]} : vector<2x9x18xf32> to vector<2x1x18xf32>
    %1108 = vector.shape_cast %1107 : vector<2x1x18xf32> to vector<2x18xf32>
    %1109 = vector.extract_strided_slice %1098 {offsets = [0, 5, 0], sizes = [2, 1, 18], strides = [1, 1, 1]} : vector<2x9x18xf32> to vector<2x1x18xf32>
    %1110 = vector.shape_cast %1109 : vector<2x1x18xf32> to vector<2x18xf32>
    %1111 = vector.extract_strided_slice %1098 {offsets = [0, 6, 0], sizes = [2, 1, 18], strides = [1, 1, 1]} : vector<2x9x18xf32> to vector<2x1x18xf32>
    %1112 = vector.shape_cast %1111 : vector<2x1x18xf32> to vector<2x18xf32>
    %1113 = vector.extract_strided_slice %1098 {offsets = [0, 7, 0], sizes = [2, 1, 18], strides = [1, 1, 1]} : vector<2x9x18xf32> to vector<2x1x18xf32>
    %1114 = vector.shape_cast %1113 : vector<2x1x18xf32> to vector<2x18xf32>
    %1115 = vector.extract_strided_slice %1098 {offsets = [0, 8, 0], sizes = [2, 1, 18], strides = [1, 1, 1]} : vector<2x9x18xf32> to vector<2x1x18xf32>
    %1116 = vector.shape_cast %1115 : vector<2x1x18xf32> to vector<2x18xf32>
    %1117 = tpu.concatenate %1100, %1102, %1104, %1106, %1108, %1110, %1112, %1114, %1116 in 1 : vector<2x18xf32>, vector<2x18xf32>, vector<2x18xf32>, vector<2x18xf32>, vector<2x18xf32>, vector<2x18xf32>, vector<2x18xf32>, vector<2x18xf32>, vector<2x18xf32> -> vector<2x162xf32>
    %c0_109 = arith.constant 0 : index
    %c0_110 = arith.constant 0 : index
    %1118 = vector.load %arg7[%c0_109, %c0_110] : memref<162x120xf32, #tpu.memory_space<vmem>>, vector<162x120xf32>
    %cst_111 = arith.constant dense<0.000000e+00> : vector<2x120xf32>
    %1119 = tpu.matmul %1117, %1118, %cst_111 {dimension_numbers = #tpu.dot_dimension_numbers<[1], [0], [0], [1], [0, 0, 1, 1], [], []>} : vector<2x162xf32>, vector<162x120xf32>, vector<2x120xf32> -> vector<2x120xf32>
    %c0_112 = arith.constant 0 : index
    %c0_113 = arith.constant 0 : index
    %1120 = vector.load %arg8[%c0_112, %c0_113] : memref<1x120xf32, #tpu.memory_space<vmem>>, vector<1x120xf32>
    %1121 = vector.broadcast %1120 : vector<1x120xf32> to vector<2x120xf32>
    %1122 = arith.addf %1119, %1121 : vector<2x120xf32>
    %cst_114 = arith.constant 0.000000e+00 : f32
    %1123 = vector.broadcast %cst_114 : f32 to vector<2x120xf32>
    %1124 = arith.cmpf ogt, %1122, %1123 : vector<2x120xf32>
    %cst_115 = arith.constant 2.000000e-01 : f32
    %1125 = vector.broadcast %cst_115 : f32 to vector<2x120xf32>
    %1126 = arith.mulf %1125, %1122 : vector<2x120xf32>
    %1127 = arith.select %1124, %1122, %1126 : vector<2x120xi1>, vector<2x120xf32>
    %c0_116 = arith.constant 0 : index
    %c0_117 = arith.constant 0 : index
    %1128 = vector.load %arg9[%c0_116, %c0_117] : memref<120x84xf32, #tpu.memory_space<vmem>>, vector<120x84xf32>
    %cst_118 = arith.constant dense<0.000000e+00> : vector<2x84xf32>
    %1129 = tpu.matmul %1127, %1128, %cst_118 {dimension_numbers = #tpu.dot_dimension_numbers<[1], [0], [0], [1], [0, 0, 1, 1], [], []>} : vector<2x120xf32>, vector<120x84xf32>, vector<2x84xf32> -> vector<2x84xf32>
    %c0_119 = arith.constant 0 : index
    %c0_120 = arith.constant 0 : index
    %1130 = vector.load %arg10[%c0_119, %c0_120] : memref<1x84xf32, #tpu.memory_space<vmem>>, vector<1x84xf32>
    %1131 = vector.broadcast %1130 : vector<1x84xf32> to vector<2x84xf32>
    %1132 = arith.addf %1129, %1131 : vector<2x84xf32>
    %cst_121 = arith.constant 0.000000e+00 : f32
    %1133 = vector.broadcast %cst_121 : f32 to vector<2x84xf32>
    %1134 = arith.cmpf ogt, %1132, %1133 : vector<2x84xf32>
    %cst_122 = arith.constant 2.000000e-01 : f32
    %1135 = vector.broadcast %cst_122 : f32 to vector<2x84xf32>
    %1136 = arith.mulf %1135, %1132 : vector<2x84xf32>
    %1137 = arith.select %1134, %1132, %1136 : vector<2x84xi1>, vector<2x84xf32>
    %c0_123 = arith.constant 0 : index
    %c0_124 = arith.constant 0 : index
    %1138 = vector.load %arg11[%c0_123, %c0_124] : memref<84x128xf32, #tpu.memory_space<vmem>>, vector<84x128xf32>
    %cst_125 = arith.constant dense<0.000000e+00> : vector<2x128xf32>
    %1139 = tpu.matmul %1137, %1138, %cst_125 {dimension_numbers = #tpu.dot_dimension_numbers<[1], [0], [0], [1], [0, 0, 1, 1], [], []>} : vector<2x84xf32>, vector<84x128xf32>, vector<2x128xf32> -> vector<2x128xf32>
    %c0_126 = arith.constant 0 : index
    %c0_127 = arith.constant 0 : index
    %1140 = vector.load %arg12[%c0_126, %c0_127] : memref<1x128xf32, #tpu.memory_space<vmem>>, vector<1x128xf32>
    %1141 = vector.broadcast %1140 : vector<1x128xf32> to vector<2x128xf32>
    %1142 = arith.addf %1139, %1141 : vector<2x128xf32>
    %cst_128 = arith.constant dense<0xFF800000> : vector<2xf32>
    %1143 = vector.multi_reduction <maximumf>, %1142, %cst_128 [1] : vector<2x128xf32> to vector<2xf32>
    %1144 = vector.shape_cast %1143 : vector<2xf32> to vector<2x1xf32>
    %1145 = vector.broadcast %1144 : vector<2x1xf32> to vector<2x128xf32>
    %1146 = arith.subf %1142, %1145 : vector<2x128xf32>
    %1147 = math.exp %1146 : vector<2x128xf32>
    %cst_129 = arith.constant dense<0.000000e+00> : vector<2xf32>
    %1148 = vector.multi_reduction <add>, %1147, %cst_129 [1] : vector<2x128xf32> to vector<2xf32>
    %1149 = vector.shape_cast %1148 : vector<2xf32> to vector<2x1xf32>
    %1150 = tpu.reciprocal %1149 {approx = true} : vector<2x1xf32> -> vector<2x1xf32>
    %1151 = vector.broadcast %1150 : vector<2x1xf32> to vector<2x128xf32>
    %1152 = arith.mulf %1147, %1151 : vector<2x128xf32>
    %c0_130 = arith.constant 0 : index
    %c0_131 = arith.constant 0 : index
    %1153 = vector.load %arg13[%c0_130, %c0_131] : memref<2x128xf32, #tpu.memory_space<vmem>>, vector<2x128xf32>
    tpu.vector_store %arg13[%c0_130, %c0_131], %1152 {strides = array<i32>} : memref<2x128xf32, #tpu.memory_space<vmem>>, vector<2x128xf32>,
    return
  }
}

</mosaic_0001>

<bundles_post_ra>
// kernel: tpu_custom_call.1
= control target key start
LH: loop header
LB: loop body
LE: loop exit
PB: predicated region body
PF: predicated region fallthrough
CT: control target
= control target key end

     0   :  { %18 = vsyncpa [#allocation4], 0  ;;  %s13419_s0 = inlined_call_operand.vmem [shape: f32[2,5,15,15], index: 0, kind: input, shape index: {}]   ;;  %s13420_s1 = inlined_call_operand.vmem [shape: f32[135], index: 1, kind: input, shape index: {}]   ;;  %s13421_s2 = inlined_call_operand.vmem [shape: f32[3], index: 2, kind: input, shape index: {}]   ;;  %s13422_s3 = inlined_call_operand.vmem [shape: f32[54], index: 3, kind: input, shape index: {}]   ;;  %s13423_s4 = inlined_call_operand.vmem [shape: f32[2], index: 4, kind: input, shape index: {}]   ;;  %s13424_s5 = inlined_call_operand.vmem [shape: f32[36], index: 5, kind: input, shape index: {}]   ;;  %s13425_s6 = inlined_call_operand.vmem [shape: f32[2], index: 6, kind: input, shape index: {}]   ;;  %s13426_s7 = inlined_call_operand.vmem [shape: f32[162,120], index: 7, kind: input, shape index: {}]   ;;  %s13427_s8 = inlined_call_operand.vmem [shape: f32[1,120], index: 8, kind: input, shape index: {}]   ;;  %s13428_s9 = inlined_call_operand.vmem [shape: f32[120,84], index: 9, kind: input, shape index: {}]   ;;  %s13429_s10 = inlined_call_operand.vmem [shape: f32[1,84], index: 10, kind: input, shape index: {}]   ;;  %s13430_s11 = inlined_call_operand.vmem [shape: f32[84,128], index: 11, kind: input, shape index: {}]   ;;  %s13431_s12 = inlined_call_operand.vmem [shape: f32[1,128], index: 12, kind: input, shape index: {}]   ;;  %s13432_s13 = inlined_call_operand.hbm [shape: f32[2,128], index: 13, kind: output, shape index: {}]  }
   0x1   :  { %19 = vsyncpa [#allocation6], 0 }
   0x2   :  { %20 = vsyncpa [#allocation9], 0 }
   0x3   :  { %21 = vsyncpa [#allocation12], 0  ;;  %s41_s27 = sshll.u32 %s13421_s2, 4  ;;  %s42_s27 = int_to_ptr.vmem [resolvable:$true] %s41_s27 }
   0x4   :  { %22 = vsyncpa [#allocation3], 0  ;;  %s61_s30 = sshll.u32 %s13423_s4, 4  ;;  %s7502_s14 = scalar_lea.vmem %s42_s27, 16  ;;  %s62_s30 = int_to_ptr.vmem [resolvable:$true] %s61_s30 }
   0x5   :  { %p7503_p0 = scmp.ne.s32.totalorder %s42_s27, %s7502_s14  ;;  %p7507_p1 = scmp.lt.s32.totalorder %s42_s27, %s42_s27 }
   0x6   :  { %p7508_p2 = scmp.lt.s32.totalorder %s7502_s14, %s7502_s14 }
   0x8   :  { %p7509_p3 = por %p7508_p2, %p7507_p1 }
   0xa   :  { %p7510_p4 = pnand %p7509_p3, %p7503_p0 }
   0xc   :  { %7513 = shalt.err (!%p7510_p4)
}
   0xd   :  { %s7604_s15 = smov [#allocation5]   ;;  %s7514_s16 = scalar_lea.vmem %s62_s30, 16 }
   0xe   :  { %44 = dma.vmem_to_smem %s42_s27, 16, %s7604_s15, [#allocation6]  }
   0xf   :  { %p7515_p5 = scmp.ne.s32.totalorder %s62_s30, %s7514_s16  ;;  %p7519_p6 = scmp.lt.s32.totalorder %s62_s30, %s62_s30 }
  0x10   :  { %p7520_p7 = scmp.lt.s32.totalorder %s7514_s16, %s7514_s16 }
  0x12   :  { %p7521_p8 = por %p7520_p7, %p7519_p6 }
  0x14   :  { %p7522_p9 = pnand %p7521_p8, %p7515_p5 }
  0x16   :  { %7525 = shalt.err (!%p7522_p9)
}
  0x17   :  { %s7605_s2 = smov [#allocation8]   ;;  %s31_s18 = sshll.u32 %s13420_s1, 4  ;;  %s32_s18 = int_to_ptr.vmem [resolvable:$true] %s31_s18 }
  0x18   :  { %64 = dma.vmem_to_smem %s62_s30, 16, %s7605_s2, [#allocation9]  }
  0x19   :  { %s51_s21 = sshll.u32 %s13422_s3, 4  ;;  %s7526_s22 = scalar_lea.vmem %s32_s18, 32  ;;  %s52_s21 = int_to_ptr.vmem [resolvable:$true] %s51_s21 }
  0x1a   :  { %p7527_p10 = scmp.ne.s32.totalorder %s32_s18, %s7526_s22  ;;  %p7531_p11 = scmp.lt.s32.totalorder %s32_s18, %s32_s18 }
  0x1b   :  { %p7532_p12 = scmp.lt.s32.totalorder %s7526_s22, %s7526_s22 }
  0x1d   :  { %p7533_p13 = por %p7532_p12, %p7531_p11 }
  0x1f   :  { %p7534_p0 = pnand %p7533_p13, %p7527_p10 }
  0x21   :  { %7537 = shalt.err (!%p7534_p0)
}
  0x22   :  { %s7606_s23 = smov [#allocation2]   ;;  %s7538_s24 = scalar_lea.vmem %s52_s21, 16 }
  0x23   :  { %34 = dma.vmem_to_smem %s32_s18, 32, %s7606_s23, [#allocation4]  }
  0x24   :  { %p7539_p1 = scmp.ne.s32.totalorder %s52_s21, %s7538_s24  ;;  %p7543_p2 = scmp.lt.s32.totalorder %s52_s21, %s52_s21 }
  0x25   :  { %p7544_p3 = scmp.lt.s32.totalorder %s7538_s24, %s7538_s24 }
  0x27   :  { %p7545_p4 = por %p7544_p3, %p7543_p2 }
  0x29   :  { %p7546_p5 = pnand %p7545_p4, %p7539_p1 }
  0x2b   :  { %7549 = shalt.err (!%p7546_p5)
}
  0x2c   :  { %s7607_s1 = smov [#allocation7]   ;;  %s71_s26 = sshll.u32 %s13424_s5, 4  ;;  %s72_s26 = int_to_ptr.vmem [resolvable:$true] %s71_s26 }
  0x2d   :  { %54 = dma.vmem_to_smem %s52_s21, 16, %s7607_s1, [#allocation6]  }
  0x2e   :  { %s81_s29 = sshll.u32 %s13425_s6, 4  ;;  %s7550_s30 = scalar_lea.vmem %s72_s26, 16  ;;  %s82_s29 = int_to_ptr.vmem [resolvable:$true] %s81_s29 }
  0x2f   :  { %p7551_p6 = scmp.ne.s32.totalorder %s72_s26, %s7550_s30  ;;  %p7555_p7 = scmp.lt.s32.totalorder %s72_s26, %s72_s26 }
  0x30   :  { %p7556_p8 = scmp.lt.s32.totalorder %s7550_s30, %s7550_s30 }
  0x32   :  { %p7557_p9 = por %p7556_p8, %p7555_p7 }
  0x34   :  { %p7558_p10 = pnand %p7557_p9, %p7551_p6 }
  0x36   :  { %7561 = shalt.err (!%p7558_p10)
}
  0x37   :  { %s7608_s14 = smov [#allocation10]   ;;  %s7562_s15 = scalar_lea.vmem %s82_s29, 16 }
  0x38   :  { %74 = dma.vmem_to_smem %s72_s26, 16, %s7608_s14, [#allocation9]  }
  0x39   :  { %p7563_p11 = scmp.ne.s32.totalorder %s82_s29, %s7562_s15  ;;  %p7567_p12 = scmp.lt.s32.totalorder %s82_s29, %s82_s29 }
  0x3a   :  { %p7568_p13 = scmp.lt.s32.totalorder %s7562_s15, %s7562_s15 }
  0x3c   :  { %p7569_p0 = por %p7568_p13, %p7567_p12 }
  0x3e   :  { %p7570_p1 = pnand %p7569_p0, %p7563_p11 }
  0x40   :  { %7573 = shalt.err (!%p7570_p1)
}
  0x41   :  { %s7609_s5 = smov [#allocation11]  }
  0x42   :  { %84 = dma.vmem_to_smem %s82_s29, 16, %s7609_s5, [#allocation12]  }
  0x43   :  { %7594 = dma.done.wait [#allocation4], 32  }
  0x44   :  { %7595 = vsyncadd [#allocation4], 4294967264 }
  0x45   :  { %7596 = dma.done.wait [#allocation6], 32  }
  0x46   :  { %7597 = vsyncadd [#allocation6], 4294967264 }
  0x47   :  { %7598 = dma.done.wait [#allocation9], 32  }
  0x48   :  { %7599 = vsyncadd [#allocation9], 4294967264 }
  0x49   :  { %7600 = dma.done.wait [#allocation12], 16  }
  0x4a   :  { %7601 = vsyncadd [#allocation12], 4294967280 }
  0x4b   :  { %115 = sfence }
  0x4c   :  { %v358_v0 = vld [vmem:[%s13419_s0 + $0x50] sm:$0xff]  ;;  %vm388_vm0 = vcmask 1040384   ;;  %v348_v1 = vld [vmem:[%s13419_s0] sm:$0xff]  ;;  %v359_v2 = vld [vmem:[%s13419_s0 + $0x58] sm:$0x7f]  ;;  %v13433_v8 = vmov 0.0  }
  0x4d   :  { %v404_v3 = vrot.slane %v358_v0, 7  ;;  %v389_v4 = vrot.slane %v348_v1, 7  ;;  %v405_v5 = vrot.slane %v359_v2, 7  ;;  %v349_v6 = vld [vmem:[%s13419_s0 + $0x8] sm:$0x7f]  ;;  %6860 = vmatprep.subr.mxu0 %v13433_v8  ;;  %7420 = vmatprep.subr.mxu1 %v13433_v8  ;;  %s7611_s21 = smov 1  }
  0x4e   :  { %v390_v7 = vrot.slane %v349_v6, 7  ;;  %v350_v11 = vld [vmem:[%s13419_s0 + $0x10] sm:$0xff]  ;;  %v351_v14 = vld [vmem:[%s13419_s0 + $0x18] sm:$0x7f]  ;;  %v360_v16 = vld [vmem:[%s13419_s0 + $0x60] sm:$0xff]  ;;  %s7158_s30 = sld [smem:[#allocation2 + $0x1]] }
  0x4f   :  { %v434_v9 = vsel %vm388_vm0, 0.0, %v404_v3  ;;  %v429_v10 = vsel %vm388_vm0, 0.0, %v389_v4  ;;  %v406_v12 = vsel %vm388_vm0, %v404_v3, %v405_v5  ;;  %v392_v15 = vrot.slane %v350_v11, 7  ;;  %v361_v19 = vld [vmem:[%s13419_s0 + $0x68] sm:$0x7f]  ;;  %v352_v21 = vld [vmem:[%s13419_s0 + $0x20] sm:$0xff] }
  0x50   :  { %472 = vrot.lane.b32.xlu1 %v434_v9, %s7611_s21  ;;  %450 = vrot.lane.b32.xlu0 %v429_v10, %s7611_s21  ;;  %v391_v13 = vsel %vm388_vm0, %v389_v4, %v390_v7  ;;  %v393_v17 = vrot.slane %v351_v14, 7  ;;  %v407_v20 = vrot.slane %v360_v16, 7  ;;  %v408_v23 = vrot.slane %v361_v19, 7  ;;  %v353_v25 = vld [vmem:[%s13419_s0 + $0x28] sm:$0x7f]  ;;  %v362_v27 = vld [vmem:[%s13419_s0 + $0x70] sm:$0xff] }
  0x51   :  { %v430_v18 = vsel %vm388_vm0, 0.0, %v392_v15  ;;  %v395_v26 = vrot.slane %v352_v21, 7  ;;  %v396_v29 = vrot.slane %v353_v25, 7  ;;  %v363_v31 = vld [vmem:[%s13419_s0 + $0x78] sm:$0x7f]  ;;  %v410_v32 = vrot.slane %v362_v27, 7 }
  0x52   :  { %v394_v22 = vsel %vm388_vm0, %v392_v15, %v393_v17  ;;  %v435_v24 = vsel %vm388_vm0, 0.0, %v407_v20  ;;  %v409_v28 = vsel %vm388_vm0, %v407_v20, %v408_v23  ;;  %v354_v33 = vld [vmem:[%s13419_s0 + $0x30] sm:$0xff]  ;;  %v411_v35 = vrot.slane %v363_v31, 7  ;;  %v355_v37 = vld [vmem:[%s13419_s0 + $0x38] sm:$0x7f]  ;;  %v364_v39 = vld [vmem:[%s13419_s0 + $0x80] sm:$0xff] }
  0x53   :  { %v431_v30 = vsel %vm388_vm0, 0.0, %v395_v26  ;;  %v397_v34 = vsel %vm388_vm0, %v395_v26, %v396_v29  ;;  %v436_v36 = vsel %vm388_vm0, 0.0, %v410_v32  ;;  %v398_v38 = vrot.slane %v354_v33, 7  ;;  %v365_v43 = vld [vmem:[%s13419_s0 + $0x88] sm:$0x7f]  ;;  %v356_v45 = vld [vmem:[%s13419_s0 + $0x40] sm:$0xff] }
  0x54   :  { %474 = vrot.lane.b32.xlu1 %v406_v12, %s7611_s21  ;;  %452 = vrot.lane.b32.xlu0 %v391_v13, %s7611_s21  ;;  %v412_v40 = vsel %vm388_vm0, %v410_v32, %v411_v35  ;;  %v399_v41 = vrot.slane %v355_v37, 7  ;;  %v413_v44 = vrot.slane %v364_v39, 7  ;;  %v414_v47 = vrot.slane %v365_v43, 7  ;;  %v357_v49 = vld [vmem:[%s13419_s0 + $0x48] sm:$0x7f]  ;;  %v366_v51 = vld [vmem:[%s13419_s0 + $0x90] sm:$0xff] }
  0x55   :  { %v432_v42 = vsel %vm388_vm0, 0.0, %v398_v38  ;;  %v401_v50 = vrot.slane %v356_v45, 7  ;;  %v402_v53 = vrot.slane %v357_v49, 7  ;;  %v367_v55 = vld [vmem:[%s13419_s0 + $0x98] sm:$0x7f]  ;;  %v416_v56 = vrot.slane %v366_v51, 7 }
  0x56   :  { %v400_v46 = vsel %vm388_vm0, %v398_v38, %v399_v41  ;;  %v437_v48 = vsel %vm388_vm0, 0.0, %v413_v44  ;;  %v415_v52 = vsel %vm388_vm0, %v413_v44, %v414_v47  ;;  %v417_v58 = vrot.slane %v367_v55, 7  ;;  %s7159_s0 = sld [smem:[#allocation2 + $0x2]]  ;;  %s7613_s5 = smov 126  }
  0x57   :  { %v433_v54 = vsel %vm388_vm0, 0.0, %v401_v50  ;;  %v403_v57 = vsel %vm388_vm0, %v401_v50, %v402_v53  ;;  %v438_v59 = vsel %vm388_vm0, 0.0, %v416_v56  ;;  %vm513_vm1 = vcmask 7168   ;;  %s7167_s14 = sld [smem:[#allocation2 + $0xa]] }
  0x58   :  { %454 = vrot.lane.b32.xlu0 %v13433_v8, %s7611_s21  ;;  %456 = vrot.lane.b32.xlu1 %v430_v18, %s7611_s21  ;;  %v418_v60 = vsel %vm388_vm0, %v416_v56, %v417_v58  ;;  %vm535_vm2 = vcmask 130048   ;;  %v562_v63 = vstv %s7158_s30  ;;  %s7203_s15 = sld [smem:[#allocation2 + $0x2e]]  ;;  %vm621_vm3 = vcmask 1046528  }
  0x59   :  { %s7168_s6 = sld [smem:[#allocation2 + $0xb]]  ;;  %vm709_vm4 = vcmask 1045504   ;;  %vm6750_vm5 = vcmask 72704   ;;  %vm6856_vm6 = vcmask 1041408   ;;  %vm6758_vm7 = vcmask 1041409  }
  0x5a   :  { %s7204_s16 = sld [smem:[#allocation2 + $0x2f]]  ;;  %vm6809_vm8 = vcmask 146432   ;;  %vm6811_vm9 = vcmask 293888   ;;  %vm6813_vm10 = vcmask 441344   ;;  %vm6815_vm11 = vcmask 588800  }
  0x5b   :  { %s7161_s2 = sld [smem:[#allocation2 + $0x4]]  ;;  %vm6817_vm12 = vcmask 736256   ;;  %vm6819_vm13 = vcmask 883712   ;;  %vm6852_vm14 = vcmask 277504   ;;  %vm6821_vm15 = vcmask 1031168  }
  0x5c   :  { %458 = vrot.lane.b32.xlu0 %v394_v22, %s7611_s21  ;;  %476 = vrot.lane.b32.xlu1 %v435_v24, %s7611_s21  ;;  %v587_v14 = vstv %s7159_s0  ;;  %s7162_s4 = sld [smem:[#allocation2 + $0x5]]  ;;  %vm7622_vm0 = vmmov 0  }
  0x5d   :  { %v808_v21 = vstv %s7167_s14  ;;  %s7164_s17 = sld [smem:[#allocation2 + $0x7]] }
  0x5e   :  { %v1789_v31 = vstv %s7203_s15  ;;  %s7170_s18 = sld [smem:[#allocation2 + $0xd]] }
  0x5f   :  { %s7165_s19 = sld [smem:[#allocation2 + $0x8]] }
  0x60   :  { %478 = vrot.lane.b32.xlu0 %v409_v28, %s7611_s21  ;;  %460 = vrot.lane.b32.xlu1 %v431_v30, %s7611_s21  ;;  %v1814_v45 = vstv %s7204_s16  ;;  %s7206_s20 = sld [smem:[#allocation2 + $0x31]] }
  0x61   :  { %v636_v50 = vstv %s7161_s2  ;;  %s7171_s22 = sld [smem:[#allocation2 + $0xe]] }
  0x62   :  { %s7207_s23 = sld [smem:[#allocation2 + $0x32]] }
  0x63   :  { %s7173_s24 = sld [smem:[#allocation2 + $0x10]] }
  0x64   :  { %462 = vrot.lane.b32.xlu0 %v397_v34, %s7611_s21  ;;  %480 = vrot.lane.b32.xlu1 %v436_v36, %s7611_s21  ;;  %s7209_s1 = sld [smem:[#allocation2 + $0x34]] }
  0x65   :  { %s7174_s3 = sld [smem:[#allocation2 + $0x11]] }
  0x66   :  { %s7210_s25 = sld [smem:[#allocation2 + $0x35]] }
  0x67   :  { %s7176_s26 = sld [smem:[#allocation2 + $0x13]] }
  0x68   :  { %482 = vrot.lane.b32.xlu0 %v412_v40, %s7611_s21  ;;  %464 = vrot.lane.b32.xlu1 %v432_v42, %s7611_s21  ;;  %v833_v42 = vstv %s7168_s6  ;;  %s7212_s27 = sld [smem:[#allocation2 + $0x37]] }
  0x69   :  { %s7248_s28 = sld [smem:[#allocation2 + $0x5b]] }
  0x6a   :  { %s7177_s29 = sld [smem:[#allocation2 + $0x14]] }
  0x6b   :  { %s7213_s30 = sld [smem:[#allocation2 + $0x38]] }
  0x6c   :  { %466 = vrot.lane.b32.xlu0 %v400_v46, %s7611_s21  ;;  %484 = vrot.lane.b32.xlu1 %v437_v48, %s7611_s21  ;;  %s7249_s0 = sld [smem:[#allocation2 + $0x5c]] }
  0x6d   :  { %s7179_s14 = sld [smem:[#allocation2 + $0x16]] }
  0x6e   :  { %s7215_s15 = sld [smem:[#allocation2 + $0x3a]] }
  0x6f   :  { %s7251_s6 = sld [smem:[#allocation2 + $0x5e]] }
  0x70   :  { %486 = vrot.lane.b32.xlu0 %v415_v52, %s7611_s21  ;;  %468 = vrot.lane.b32.xlu1 %v433_v54, %s7611_s21  ;;  %s7180_s16 = sld [smem:[#allocation2 + $0x17]] }
  0x71   :  { %s7216_s2 = sld [smem:[#allocation2 + $0x3b]] }
  0x74   :  { %470 = vrot.lane.b32.xlu0 %v403_v57, %s7611_s21  ;;  %488 = vrot.lane.b32.xlu1 %v438_v59, %s7611_s21 }
  0x78   :  { %490 = vrot.lane.b32.xlu0 %v418_v60, %s7611_s21  ;;  %s7612_s21 = smov 127   ;;  %v667_v60 = vstv %s7162_s4  ;;  %s7252_s4 = sld [smem:[#allocation2 + $0x5f]] }
  0xc2   :  { %v473_v61 = vpop.permute.xlu1 %472  ;;  %v451_v62 = vpop.permute.xlu0 %450 }
  0xc3   :  { %v525_v0 = vsel %vm513_vm1, 0.0, %v473_v61  ;;  %v514_v1 = vsel %vm513_vm1, 0.0, %v451_v62 }
  0xc4   :  { %v7819_v2 = vsel %vm535_vm2, %v525_v0, 0.0  ;;  %v7822_v3 = vsel %vm535_vm2, %v514_v1, 0.0 }
  0xc5   :  { %v563_v4 = vmul.f32 %v562_v63, %v7822_v3  ;;  %v565_v10 = vmul.f32 %v562_v63, %v7819_v2  ;;  %v588_v18 = vmul.f32 %v587_v14, %v7822_v3  ;;  %v590_v23 = vmul.f32 %v587_v14, %v7819_v2 }
  0xc6   :  { %v475_v5 = vpop.permute.xlu1 %474  ;;  %v453_v6 = vpop.permute.xlu0 %452  ;;  %v1790_v35 = vmul.f32 %v1789_v31, %v7822_v3  ;;  %v1792_v41 = vmul.f32 %v1789_v31, %v7819_v2  ;;  %v1815_v47 = vmul.f32 %v1814_v45, %v7822_v3  ;;  %v637_v52 = vmul.f32 %v636_v50, %v7822_v3 }
  0xc7   :  { %v526_v7 = vsel %vm513_vm1, 0.0, %v475_v5  ;;  %v515_v9 = vsel %vm513_vm1, 0.0, %v453_v6  ;;  %571 = vrot.lane.b32.xlu1 %v563_v4, %s7612_s21  ;;  %v1817_v54 = vmul.f32 %v1814_v45, %v7819_v2  ;;  %v639_v56 = vmul.f32 %v636_v50, %v7819_v2 }
  0xc8   :  { %v7830_v11 = vsel %vm535_vm2, %v515_v9, 0.0  ;;  %v7834_v13 = vsel %vm535_vm2, %v526_v7, 0.0  ;;  %v645_v58 = vrot.slane %v637_v52, 1  ;;  %v668_v1 = vmul.f32 %v667_v60, %v7822_v3 }
  0xc9   :  { %v564_v12 = vmul.f32 %v562_v63, %v7830_v11  ;;  %v566_v16 = vmul.f32 %v562_v63, %v7834_v13  ;;  %v589_v22 = vmul.f32 %v587_v14, %v7830_v11  ;;  %v591_v28 = vmul.f32 %v587_v14, %v7834_v13 }
  0xca   :  { %v457_v15 = vpop.permute.xlu1 %456  ;;  %v7839_v17 = vpop.permute.xlu0 %454  ;;  %v1791_v38 = vmul.f32 %v1789_v31, %v7830_v11  ;;  %v1793_v43 = vmul.f32 %v1789_v31, %v7834_v13  ;;  %v1816_v48 = vmul.f32 %v1814_v45, %v7830_v11  ;;  %v638_v51 = vmul.f32 %v636_v50, %v7830_v11 }
  0xcb   :  { %573 = vrot.lane.b32.xlu0 %v564_v12, %s7612_s21  ;;  %575 = vrot.lane.b32.xlu1 %v565_v10, %s7612_s21  ;;  %v517_v19 = vsel %vm513_vm1, 0.0, %v457_v15  ;;  %v640_v57 = vmul.f32 %v636_v50, %v7834_v13  ;;  %v1818_v59 = vmul.f32 %v1814_v45, %v7834_v13  ;;  %v648_v62 = vrot.slane %v639_v56, 1 }
  0xcc   :  { %v7846_v20 = vsel %vm535_vm2, %v517_v19, 0.0  ;;  %v646_v55 = vrot.slane %v638_v51, 1  ;;  %v669_v0 = vmul.f32 %v667_v60, %v7830_v11  ;;  %v670_v6 = vmul.f32 %v667_v60, %v7819_v2 }
  0xcd   :  { %v809_v27 = vmul.f32 %v808_v21, %v7846_v20  ;;  %v834_v44 = vmul.f32 %v833_v42, %v7846_v20  ;;  %v649_v63 = vrot.slane %v640_v57, 1  ;;  %v671_v7 = vmul.f32 %v667_v60, %v7834_v13 }
  0xce   :  { %v459_v24 = vpop.permute.xlu0 %458  ;;  %v477_v25 = vpop.permute.xlu1 %476  ;;  %v647_v61 = vsel %vm621_vm3, %v645_v58, %v646_v55  ;;  %v677_v5 = vrot.slane %v669_v0, 1  ;;  %v676_v9 = vrot.slane %v668_v1, 1  ;;  %v516_v10 = vsel %vm513_vm1, 0.0, %v7839_v17 }
  0xcf   :  { %577 = vrot.lane.b32.xlu0 %v566_v16, %s7612_s21  ;;  %596 = vrot.lane.b32.xlu1 %v588_v18, %s7613_s5  ;;  %v518_v26 = vsel %vm513_vm1, 0.0, %v459_v24  ;;  %v527_v29 = vsel %vm513_vm1, 0.0, %v477_v25  ;;  %v650_v4 = vsel %vm621_vm3, %v648_v62, %v649_v63  ;;  %v727_v12 = vstv %s7164_s17  ;;  %s7182_s17 = sld [smem:[#allocation2 + $0x19]] }
  0xd0   :  { %v7857_v30 = vsel %vm535_vm2, %v518_v26, 0.0  ;;  %v7863_v34 = vsel %vm535_vm2, %v527_v29, 0.0  ;;  %v678_v14 = vsel %vm621_vm3, %v676_v9, %v677_v5  ;;  %v679_v15 = vrot.slane %v670_v6, 1 }
  0xd1   :  { %v810_v32 = vmul.f32 %v808_v21, %v7857_v30  ;;  %v811_v37 = vmul.f32 %v808_v21, %v7863_v34  ;;  %v835_v46 = vmul.f32 %v833_v42, %v7857_v30  ;;  %v836_v49 = vmul.f32 %v833_v42, %v7863_v34 }
  0xd2   :  { %v479_v33 = vpop.permute.xlu0 %478  ;;  %v680_v16 = vrot.slane %v671_v7, 1  ;;  %v729_v18 = vmul.f32 %v727_v12, %v7830_v11  ;;  %v728_v19 = vmul.f32 %v727_v12, %v7822_v3  ;;  %v731_v24 = vmul.f32 %v727_v12, %v7819_v2 }
  0xd3   :  { %598 = vrot.lane.b32.xlu0 %v589_v22, %s7613_s5  ;;  %600 = vrot.lane.b32.xlu1 %v590_v23, %s7613_s5  ;;  %v528_v36 = vsel %vm513_vm1, 0.0, %v479_v33  ;;  %v881_v22 = vstv %s7170_s18  ;;  %v732_v25 = vmul.f32 %v727_v12, %v7834_v13  ;;  %v763_v29 = vstv %s7165_s19  ;;  %s7218_s18 = sld [smem:[#allocation2 + $0x3d]] }
  0xd4   :  { %v7872_v39 = vsel %vm535_vm2, %v528_v36, 0.0  ;;  %v681_v17 = vsel %vm621_vm3, %v679_v15, %v680_v16  ;;  %v739_v23 = vrot.slane %v729_v18, 2  ;;  %v738_v26 = vrot.slane %v728_v19, 2  ;;  %s7254_s19 = sld [smem:[#allocation2 + $0x61]] }
  0xd5   :  { %v812_v40 = vmul.f32 %v808_v21, %v7872_v39  ;;  %v837_v53 = vmul.f32 %v833_v42, %v7872_v39  ;;  %v7919_v21 = vsel %vm535_vm2, %v516_v10, 0.0  ;;  %v744_v33 = vrot.slane %v732_v25, 2 }
  0xd6   :  { %13494 = vst [vmem:[#allocation19_spill] sm:$0xff] %v7919_v21  ;;  %v740_v31 = vsel %vm709_vm4, %v738_v26, %v739_v23  ;;  %v764_v36 = vmul.f32 %v763_v29, %v7822_v3  ;;  %v882_v50 = vmul.f32 %v881_v22, %v7846_v20  ;;  %v1862_v52 = vstv %s7206_s20  ;;  %s7183_s20 = sld [smem:[#allocation2 + $0x1a]] }
  0xd7   :  { %602 = vrot.lane.b32.xlu0 %v591_v28, %s7613_s5  ;;  %817 = vrot.lane.b32.xlu1 %v809_v27, %s7612_s21  ;;  %v883_v27 = vmul.f32 %v881_v22, %v7857_v30  ;;  %v730_v28 = vmul.f32 %v727_v12, %v7919_v21  ;;  %v1864_v56 = vmul.f32 %v1862_v52, %v7830_v11  ;;  %v7962_v12 = vpop.permute.xlu0 %462 }
  0xd8   :  { %v1863_v57 = vmul.f32 %v1862_v52, %v7822_v3  ;;  %v884_v58 = vmul.f32 %v881_v22, %v7863_v34  ;;  %v1865_v9 = vmul.f32 %v1862_v52, %v7819_v2  ;;  %v1866_v10 = vmul.f32 %v1862_v52, %v7834_v13 }
  0xd9   :  { %v1872_v62 = vrot.slane %v1864_v56, 1 }
  0xda   :  { %v1871_v0 = vrot.slane %v1863_v57, 1  ;;  %v1874_v18 = vrot.slane %v1865_v9, 1  ;;  %v1875_v19 = vrot.slane %v1866_v10, 1 }
  0xdb   :  { %819 = vrot.lane.b32.xlu0 %v810_v32, %s7612_s21  ;;  %1798 = vrot.lane.b32.xlu1 %v1790_v35, %s7612_s21  ;;  %v743_v32 = vrot.slane %v731_v24, 2  ;;  %v765_v35 = vmul.f32 %v763_v29, %v7830_v11  ;;  %v1893_v24 = vstv %s7207_s23  ;;  %s7255_s23 = sld [smem:[#allocation2 + $0x62]] }
  0xdc   :  { %v1873_v6 = vsel %vm621_vm3, %v1871_v0, %v1872_v62  ;;  %v1876_v25 = vsel %vm621_vm3, %v1874_v18, %v1875_v19 }
  0xdd   :  { %v775_v42 = vrot.slane %v765_v35, 2 }
  0xdf   :  { %1800 = vrot.lane.b32.xlu0 %v1791_v38, %s7612_s21  ;;  %821 = vrot.lane.b32.xlu1 %v811_v37, %s7612_s21  ;;  %v891_v37 = vrot.slane %v883_v27, 1  ;;  %v741_v38 = vrot.slane %v730_v28, 2  ;;  %v1895_v28 = vmul.f32 %v1893_v24, %v7830_v11 }
  0xe1   :  { %v742_v45 = vsel %vm709_vm4, %v739_v23, %v741_v38  ;;  %v746_v51 = vsel %vm709_vm4, %v744_v33, %v741_v38 }
  0xe3   :  { %823 = vrot.lane.b32.xlu0 %v812_v40, %s7612_s21  ;;  %1802 = vrot.lane.b32.xlu1 %v1792_v41, %s7612_s21  ;;  %v767_v40 = vmul.f32 %v763_v29, %v7819_v2  ;;  %v745_v41 = vsel %vm709_vm4, %v743_v32, %v744_v33  ;;  %v1903_v32 = vrot.slane %v1895_v28, 1 }
  0xe7   :  { %1804 = vrot.lane.b32.xlu0 %v1793_v43, %s7612_s21  ;;  %842 = vrot.lane.b32.xlu1 %v834_v44, %s7613_s5  ;;  %v768_v43 = vmul.f32 %v763_v29, %v7834_v13  ;;  %v774_v44 = vrot.slane %v764_v36, 2 }
  0xeb   :  { %844 = vrot.lane.b32.xlu0 %v835_v46, %s7613_s5  ;;  %1823 = vrot.lane.b32.xlu1 %v1815_v47, %s7613_s5  ;;  %v779_v46 = vrot.slane %v767_v40, 2  ;;  %v776_v47 = vsel %vm709_vm4, %v774_v44, %v775_v42  ;;  %v1896_v40 = vmul.f32 %v1893_v24, %v7819_v2  ;;  %v1897_v44 = vmul.f32 %v1893_v24, %v7834_v13 }
  0xef   :  { %1825 = vrot.lane.b32.xlu0 %v1816_v48, %s7613_s5  ;;  %846 = vrot.lane.b32.xlu1 %v836_v49, %s7613_s5  ;;  %v780_v48 = vrot.slane %v768_v43, 2  ;;  %v766_v49 = vmul.f32 %v763_v29, %v7919_v21  ;;  %v1894_v29 = vmul.f32 %v1893_v24, %v7822_v3 }
  0xf1   :  { %v1902_v38 = vrot.slane %v1894_v29, 1 }
  0xf3   :  { %848 = vrot.lane.b32.xlu0 %v837_v53, %s7613_s5  ;;  %1827 = vrot.lane.b32.xlu1 %v1817_v54, %s7613_s5  ;;  %v781_v53 = vsel %vm709_vm4, %v779_v46, %v780_v48  ;;  %v777_v54 = vrot.slane %v766_v49, 2  ;;  %v1905_v49 = vrot.slane %v1896_v40, 1 }
  0xf5   :  { %v778_v60 = vsel %vm709_vm4, %v775_v42, %v777_v54  ;;  %v782_v1 = vsel %vm709_vm4, %v780_v48, %v777_v54  ;;  %v1952_v54 = vstv %s7209_s1  ;;  %s7221_s1 = sld [smem:[#allocation2 + $0x40]] }
  0xf6   :  { %v1954_v57 = vmul.f32 %v1952_v54, %v7830_v11  ;;  %v1955_v0 = vmul.f32 %v1952_v54, %v7919_v21  ;;  %v1957_v24 = vmul.f32 %v1952_v54, %v7834_v13 }
  0xf7   :  { %1829 = vrot.lane.b32.xlu0 %v1818_v59, %s7613_s5  ;;  %651 = vrot.lane.b32.xlu1 %v647_v61, %s7612_s21  ;;  %v7951_v59 = vpop.permute.xlu1 %460 }
  0xfb   :  { %653 = vrot.lane.b32.xlu0 %v646_v55, %s7612_s21  ;;  %655 = vrot.lane.b32.xlu1 %v650_v4, %s7612_s21  ;;  %v890_v55 = vrot.slane %v882_v50, 1  ;;  %v893_v4 = vrot.slane %v884_v58, 1  ;;  %v1906_v50 = vrot.slane %v1897_v44, 1 }
  0xfd   :  { %v892_v61 = vsel %vm621_vm3, %v890_v55, %v891_v37  ;;  %v1907_v55 = vsel %vm621_vm3, %v1905_v49, %v1906_v50 }
  0xff   :  { %657 = vrot.lane.b32.xlu0 %v649_v63, %s7612_s21  ;;  %682 = vrot.lane.b32.xlu1 %v678_v14, %s7613_s5  ;;  %v885_v63 = vmul.f32 %v881_v22, %v7872_v39  ;;  %v7966_v14 = vpop.permute.xlu1 %480 }
 0x101   :  { %v894_v7 = vrot.slane %v885_v63, 1 }
 0x103   :  { %684 = vrot.lane.b32.xlu0 %v677_v5, %s7613_s5  ;;  %686 = vrot.lane.b32.xlu1 %v681_v17, %s7613_s5  ;;  %v912_v5 = vstv %s7171_s22  ;;  %v7973_v17 = vpop.permute.xlu0 %482  ;;  %v7975_v23 = vpop.permute.xlu1 %464  ;;  %s7219_s22 = sld [smem:[#allocation2 + $0x3e]] }
 0x104   :  { %v913_v15 = vmul.f32 %v912_v5, %v7846_v20  ;;  %v914_v22 = vmul.f32 %v912_v5, %v7857_v30  ;;  %v915_v33 = vmul.f32 %v912_v5, %v7863_v34  ;;  %v916_v35 = vmul.f32 %v912_v5, %v7872_v39 }
 0x106   :  { %v921_v26 = vrot.slane %v913_v15, 1  ;;  %v922_v27 = vrot.slane %v914_v22, 1  ;;  %v924_v42 = vrot.slane %v915_v33, 1  ;;  %v925_v43 = vrot.slane %v916_v35, 1 }
 0x107   :  { %688 = vrot.lane.b32.xlu0 %v680_v16, %s7613_s5  ;;  %747 = vrot.lane.b32.xlu1 %v740_v31, %s7612_s21  ;;  %v895_v16 = vsel %vm621_vm3, %v893_v4, %v894_v7  ;;  %v7985_v36 = vpop.permute.xlu0 %466  ;;  %v1964_v4 = vrot.slane %v1954_v57, 2  ;;  %v1956_v22 = vmul.f32 %v1952_v54, %v7819_v2  ;;  %v1969_v35 = vrot.slane %v1957_v24, 2 }
 0x108   :  { %v923_v31 = vsel %vm621_vm3, %v921_v26, %v922_v27  ;;  %v926_v48 = vsel %vm621_vm3, %v924_v42, %v925_v43  ;;  %v1007_v26 = vstv %s7174_s3  ;;  %s7257_s3 = sld [smem:[#allocation2 + $0x64]] }
 0x109   :  { %v1008_v29 = vmul.f32 %v1007_v26, %v7846_v20  ;;  %v1968_v33 = vrot.slane %v1956_v22, 2  ;;  %v1010_v42 = vmul.f32 %v1007_v26, %v7919_v21 }
 0x10b   :  { %898 = vrot.lane.b32.xlu0 %v891_v37, %s7612_s21  ;;  %751 = vrot.lane.b32.xlu1 %v745_v41, %s7612_s21  ;;  %v7989_v37 = vpop.permute.xlu1 %484  ;;  %v1904_v41 = vsel %vm621_vm3, %v1902_v38, %v1903_v32  ;;  %v1009_v38 = vmul.f32 %v1007_v26, %v7857_v30 }
 0x10f   :  { %749 = vrot.lane.b32.xlu0 %v742_v45, %s7612_s21  ;;  %783 = vrot.lane.b32.xlu1 %v776_v47, %s7613_s5  ;;  %v7996_v45 = vpop.permute.xlu0 %486  ;;  %v7998_v46 = vpop.permute.xlu1 %468  ;;  %v971_v47 = vstv %s7173_s24  ;;  %s7185_s24 = sld [smem:[#allocation2 + $0x1c]] }
 0x110   :  { %v973_v52 = vmul.f32 %v971_v47, %v7857_v30  ;;  %v975_v5 = vmul.f32 %v971_v47, %v7863_v34 }
 0x113   :  { %753 = vrot.lane.b32.xlu0 %v746_v51, %s7612_s21  ;;  %787 = vrot.lane.b32.xlu1 %v781_v53, %s7613_s5  ;;  %v972_v51 = vmul.f32 %v971_v47, %v7846_v20  ;;  %v974_v53 = vmul.f32 %v971_v47, %v7919_v21  ;;  %v8008_v58 = vpop.permute.xlu0 %470 }
 0x115   :  { %v982_v56 = vrot.slane %v972_v51, 2  ;;  %v985_v63 = vrot.slane %v974_v53, 2 }
 0x117   :  { %785 = vrot.lane.b32.xlu0 %v778_v60, %s7613_s5  ;;  %896 = vrot.lane.b32.xlu1 %v892_v61, %s7612_s21  ;;  %v8012_v60 = vpop.permute.xlu1 %488  ;;  %v983_v61 = vrot.slane %v973_v52, 2  ;;  %v8021_v9 = vpop.permute.xlu0 %490 }
 0x119   :  { %v986_v15 = vsel %vm709_vm4, %v983_v61, %v985_v63 }
 0x11b   :  { %789 = vrot.lane.b32.xlu0 %v782_v1, %s7613_s5  ;;  %1877 = vrot.lane.b32.xlu1 %v1873_v6, %s7612_s21  ;;  %v984_v1 = vsel %vm709_vm4, %v982_v56, %v983_v61 }
 0x11f   :  { %1879 = vrot.lane.b32.xlu0 %v1872_v62, %s7612_s21  ;;  %900 = vrot.lane.b32.xlu1 %v895_v16, %s7612_s21  ;;  %v1953_v62 = vmul.f32 %v1952_v54, %v7822_v3  ;;  %v1966_v16 = vrot.slane %v1955_v0, 2  ;;  %v1021_v54 = vrot.slane %v1010_v42, 2  ;;  %v1012_v0 = vmul.f32 %v1007_v26, %v7872_v39 }
 0x121   :  { %v1963_v6 = vrot.slane %v1953_v62, 2  ;;  %v1971_v56 = vsel %vm709_vm4, %v1969_v35, %v1966_v16  ;;  %v1011_v62 = vmul.f32 %v1007_v26, %v7863_v34 }
 0x123   :  { %902 = vrot.lane.b32.xlu0 %v894_v7, %s7612_s21  ;;  %1881 = vrot.lane.b32.xlu1 %v1876_v25, %s7612_s21  ;;  %v976_v7 = vmul.f32 %v971_v47, %v7872_v39  ;;  %v1965_v18 = vsel %vm709_vm4, %v1963_v6, %v1964_v4  ;;  %v1970_v47 = vsel %vm709_vm4, %v1968_v33, %v1969_v35 }
 0x125   :  { %v988_v25 = vrot.slane %v976_v7, 2 }
 0x127   :  { %1883 = vrot.lane.b32.xlu0 %v1875_v19, %s7612_s21  ;;  %927 = vrot.lane.b32.xlu1 %v923_v31, %s7613_s5  ;;  %v987_v19 = vrot.slane %v975_v5, 2  ;;  %v1967_v31 = vsel %vm709_vm4, %v1964_v4, %v1966_v16  ;;  %v990_v44 = vsel %vm709_vm4, %v988_v25, %v985_v63 }
 0x12b   :  { %929 = vrot.lane.b32.xlu0 %v922_v27, %s7613_s5  ;;  %1908 = vrot.lane.b32.xlu1 %v1904_v41, %s7613_s5 }
 0x12f   :  { %1910 = vrot.lane.b32.xlu0 %v1903_v32, %s7613_s5  ;;  %931 = vrot.lane.b32.xlu1 %v926_v48, %s7613_s5  ;;  %v989_v32 = vsel %vm709_vm4, %v987_v19, %v988_v25  ;;  %v1018_v48 = vrot.slane %v1008_v29, 2  ;;  %v1024_v19 = vrot.slane %v1012_v0, 2 }
 0x131   :  { %v1026_v42 = vsel %vm709_vm4, %v1024_v19, %v1021_v54 }
 0x133   :  { %933 = vrot.lane.b32.xlu0 %v925_v43, %s7613_s5  ;;  %1912 = vrot.lane.b32.xlu1 %v1907_v55, %s7613_s5  ;;  %v1988_v43 = vstv %s7210_s25  ;;  %s7186_s25 = sld [smem:[#allocation2 + $0x1d]] }
 0x134   :  { %v1990_v49 = vmul.f32 %v1988_v43, %v7830_v11  ;;  %v1989_v51 = vmul.f32 %v1988_v43, %v7822_v3  ;;  %v1991_v55 = vmul.f32 %v1988_v43, %v7919_v21  ;;  %v1992_v16 = vmul.f32 %v1988_v43, %v7819_v2 }
 0x136   :  { %v2000_v61 = vrot.slane %v1990_v49, 2  ;;  %v1999_v63 = vrot.slane %v1989_v51, 2  ;;  %v2002_v6 = vrot.slane %v1991_v55, 2  ;;  %v2004_v29 = vrot.slane %v1992_v16, 2 }
 0x137   :  { %1914 = vrot.lane.b32.xlu0 %v1906_v50, %s7613_s5  ;;  %991 = vrot.lane.b32.xlu1 %v984_v1, %s7612_s21  ;;  %v1019_v50 = vrot.slane %v1009_v38, 2  ;;  %v2033_v51 = vstv %s7212_s27  ;;  %s7258_s27 = sld [smem:[#allocation2 + $0x65]] }
 0x138   :  { %v2001_v7 = vsel %vm709_vm4, %v1999_v63, %v2000_v61  ;;  %v2003_v25 = vsel %vm709_vm4, %v2000_v61, %v2002_v6  ;;  %v3014_v61 = vstv %s7248_s28  ;;  %s7188_s28 = sld [smem:[#allocation2 + $0x1f]] }
 0x139   :  { %v8023_v10 = vpop.permute.xlu1 %571  ;;  %v1020_v57 = vsel %vm709_vm4, %v1018_v48, %v1019_v50  ;;  %v1022_v5 = vsel %vm709_vm4, %v1019_v50, %v1021_v54 }
 0x13b   :  { %993 = vrot.lane.b32.xlu0 %v986_v15, %s7612_s21  ;;  %1972 = vrot.lane.b32.xlu1 %v1965_v18, %s7612_s21  ;;  %v1023_v15 = vrot.slane %v1011_v62, 2  ;;  %v1993_v18 = vmul.f32 %v1988_v43, %v7834_v13  ;;  %v529_v62 = vsel %vm513_vm1, 0.0, %v7966_v14  ;;  %v530_v14 = vsel %vm513_vm1, 0.0, %v7973_v17 }
 0x13d   :  { %v8031_v27 = vpop.permute.xlu0 %573  ;;  %v8033_v28 = vpop.permute.xlu1 %575  ;;  %v1025_v26 = vsel %vm709_vm4, %v1023_v15, %v1024_v19 }
 0x13f   :  { %1974 = vrot.lane.b32.xlu0 %v1967_v31, %s7612_s21  ;;  %995 = vrot.lane.b32.xlu1 %v989_v32, %s7612_s21  ;;  %v2005_v31 = vrot.slane %v1993_v18, 2  ;;  %v519_v32 = vsel %vm513_vm1, 0.0, %v7951_v59  ;;  %v520_v59 = vsel %vm513_vm1, 0.0, %v7962_v12  ;;  %v3016_v18 = vmul.f32 %v3014_v61, %v7830_v11 }
 0x140   :  { %v8088_v38 = vsel %vm535_vm2, %v519_v32, 0.0  ;;  %v8105_v54 = vsel %vm535_vm2, %v520_v59, 0.0  ;;  %v3017_v59 = vmul.f32 %v3014_v61, %v7819_v2 }
 0x141   :  { %v8041_v40 = vpop.permute.xlu0 %577  ;;  %v8043_v41 = vpop.permute.xlu1 %596  ;;  %13502 = vst [vmem:[#allocation27_spill] sm:$0xff] %v8088_v38  ;;  %v2006_v43 = vsel %vm709_vm4, %v2004_v29, %v2005_v31  ;;  %v2007_v50 = vsel %vm709_vm4, %v2005_v31, %v2002_v6  ;;  %13505 = vst [vmem:[#allocation30_spill] sm:$0xff] %v8105_v54  ;;  %v3015_v6 = vmul.f32 %v3014_v61, %v7822_v3 }
 0x142   :  { %v2036_v31 = vmul.f32 %v2033_v51, %v7863_v34 }
 0x143   :  { %997 = vrot.lane.b32.xlu0 %v990_v44, %s7612_s21  ;;  %1976 = vrot.lane.b32.xlu1 %v1970_v47, %s7612_s21  ;;  %v1052_v44 = vstv %s7176_s26  ;;  %s7222_s26 = sld [smem:[#allocation2 + $0x41]] }
 0x144   :  { %v1053_v49 = vmul.f32 %v1052_v44, %v8088_v38  ;;  %v1054_v12 = vmul.f32 %v1052_v44, %v8105_v54 }
 0x145   :  { %v8052_v52 = vpop.permute.xlu0 %598  ;;  %v8054_v53 = vpop.permute.xlu1 %600 }
 0x146   :  { %13495 = vst [vmem:[#allocation20_spill] sm:$0xff] %v8054_v53 }
 0x147   :  { %1978 = vrot.lane.b32.xlu0 %v1971_v56, %s7612_s21  ;;  %1027 = vrot.lane.b32.xlu1 %v1020_v57, %s7613_s5  ;;  %v2034_v57 = vmul.f32 %v2033_v51, %v7846_v20 }
 0x149   :  { %v8063_v1 = vpop.permute.xlu0 %602  ;;  %v8065_v4 = vpop.permute.xlu1 %817 }
 0x14a   :  { %13496 = vst [vmem:[#allocation21_spill] sm:$0xff] %v8063_v1  ;;  %13497 = vst [vmem:[#allocation22_spill] sm:$0xff] %v8065_v4 }
 0x14b   :  { %1029 = vrot.lane.b32.xlu0 %v1022_v5, %s7613_s5  ;;  %2008 = vrot.lane.b32.xlu1 %v2001_v7, %s7613_s5  ;;  %v2035_v5 = vmul.f32 %v2033_v51, %v7857_v30  ;;  %v8124_v7 = vsel %vm535_vm2, %v529_v62, 0.0  ;;  %v2058_v62 = vstv %s7213_s30  ;;  %s7260_s30 = sld [smem:[#allocation2 + $0x67]] }
 0x14c   :  { %v1055_v19 = vmul.f32 %v1052_v44, %v8124_v7  ;;  %v2061_v8 = vmul.f32 %v2058_v62, %v7863_v34 }
 0x14d   :  { %v8073_v22 = vpop.permute.xlu0 %819  ;;  %v8075_v24 = vpop.permute.xlu1 %1798 }
 0x14e   :  { %13498 = vst [vmem:[#allocation23_spill] sm:$0xff] %v8073_v22  ;;  %13499 = vst [vmem:[#allocation24_spill] sm:$0xff] %v8075_v24 }
 0x14f   :  { %2010 = vrot.lane.b32.xlu0 %v2003_v25, %s7613_s5  ;;  %1031 = vrot.lane.b32.xlu1 %v1025_v26, %s7613_s5  ;;  %v8139_v25 = vsel %vm535_vm2, %v530_v14, 0.0  ;;  %v2059_v14 = vmul.f32 %v2058_v62, %v7846_v20 }
 0x150   :  { %v1056_v17 = vmul.f32 %v1052_v44, %v8139_v25 }
 0x151   :  { %v8083_v33 = vpop.permute.xlu0 %1800  ;;  %v8085_v35 = vpop.permute.xlu1 %821 }
 0x152   :  { %13500 = vst [vmem:[#allocation25_spill] sm:$0xff] %v8083_v33  ;;  %13501 = vst [vmem:[#allocation26_spill] sm:$0xff] %v8085_v35 }
 0x153   :  { %1033 = vrot.lane.b32.xlu0 %v1026_v42, %s7613_s5  ;;  %2012 = vrot.lane.b32.xlu1 %v2006_v43, %s7613_s5  ;;  %v2037_v43 = vmul.f32 %v2033_v51, %v7872_v39 }
 0x155   :  { %v8096_v47 = vpop.permute.xlu0 %823  ;;  %v8098_v48 = vpop.permute.xlu1 %1802 }
 0x156   :  { %13503 = vst [vmem:[#allocation28_spill] sm:$0xff] %v8096_v47  ;;  %13504 = vst [vmem:[#allocation29_spill] sm:$0xff] %v8098_v48 }
 0x157   :  { %2014 = vrot.lane.b32.xlu0 %v2007_v50, %s7613_s5  ;;  %1061 = vrot.lane.b32.xlu1 %v1053_v49, %s7612_s21  ;;  %v1077_v49 = vstv %s7177_s29  ;;  %s7224_s29 = sld [smem:[#allocation2 + $0x43]] }
 0x159   :  { %v8107_v55 = vpop.permute.xlu0 %1804  ;;  %v8109_v56 = vpop.permute.xlu1 %842 }
 0x15a   :  { %13506 = vst [vmem:[#allocation31_spill] sm:$0xff] %v8107_v55  ;;  %13507 = vst [vmem:[#allocation32_spill] sm:$0xff] %v8109_v56 }
 0x15b   :  { %1063 = vrot.lane.b32.xlu0 %v1054_v12, %s7612_s21  ;;  %2042 = vrot.lane.b32.xlu1 %v2034_v57, %s7612_s21  ;;  %v3018_v12 = vmul.f32 %v3014_v61, %v7834_v13  ;;  %v1078_v57 = vmul.f32 %v1077_v49, %v8088_v38 }
 0x15d   :  { %v8117_v63 = vpop.permute.xlu0 %844  ;;  %v8119_v0 = vpop.permute.xlu1 %1823 }
 0x15e   :  { %13508 = vst [vmem:[#allocation33_spill] sm:$0xff] %v8117_v63  ;;  %13509 = vst [vmem:[#allocation34_spill] sm:$0xff] %v8119_v0 }
 0x15f   :  { %2044 = vrot.lane.b32.xlu0 %v2035_v5, %s7612_s21  ;;  %3023 = vrot.lane.b32.xlu1 %v3015_v6, %s7612_s21  ;;  %v1079_v6 = vmul.f32 %v1077_v49, %v8105_v54 }
 0x161   :  { %v8130_v15 = vpop.permute.xlu0 %1825  ;;  %v8132_v16 = vpop.permute.xlu1 %846 }
 0x162   :  { %13510 = vst [vmem:[#allocation35_spill] sm:$0xff] %v8130_v15  ;;  %13511 = vst [vmem:[#allocation36_spill] sm:$0xff] %v8132_v16 }
 0x163   :  { %3025 = vrot.lane.b32.xlu0 %v3016_v18, %s7612_s21  ;;  %1065 = vrot.lane.b32.xlu1 %v1055_v19, %s7612_s21  ;;  %v3039_v18 = vstv %s7249_s0  ;;  %s7189_s0 = sld [smem:[#allocation2 + $0x20]] }
 0x164   :  { %v3042_v47 = vmul.f32 %v3039_v18, %v7819_v2  ;;  %v3043_v4 = vmul.f32 %v3039_v18, %v7834_v13 }
 0x165   :  { %v8141_v26 = vpop.permute.xlu0 %848  ;;  %v8143_v29 = vpop.permute.xlu1 %1827 }
 0x166   :  { %13512 = vst [vmem:[#allocation37_spill] sm:$0xff] %v8141_v26  ;;  %13513 = vst [vmem:[#allocation38_spill] sm:$0xff] %v8143_v29 }
 0x167   :  { %1067 = vrot.lane.b32.xlu0 %v1056_v17, %s7612_s21  ;;  %2046 = vrot.lane.b32.xlu1 %v2036_v31, %s7612_s21  ;;  %v2060_v17 = vmul.f32 %v2058_v62, %v7857_v30  ;;  %v3040_v31 = vmul.f32 %v3039_v18, %v7822_v3 }
 0x169   :  { %v8149_v32 = vpop.permute.xlu0 %1829  ;;  %v8151_v42 = vpop.permute.xlu1 %651 }
 0x16a   :  { %13514 = vst [vmem:[#allocation39_spill] sm:$0xff] %v8149_v32  ;;  %13515 = vst [vmem:[#allocation40_spill] sm:$0xff] %v8151_v42 }
 0x16b   :  { %2048 = vrot.lane.b32.xlu0 %v2037_v43, %s7612_s21  ;;  %3027 = vrot.lane.b32.xlu1 %v3017_v59, %s7612_s21 }
 0x16d   :  { %v8157_v44 = vpop.permute.xlu0 %653  ;;  %v8159_v50 = vpop.permute.xlu1 %655 }
 0x16e   :  { %13516 = vst [vmem:[#allocation41_spill] sm:$0xff] %v8157_v44  ;;  %13517 = vst [vmem:[#allocation42_spill] sm:$0xff] %v8159_v50 }
 0x16f   :  { %3029 = vrot.lane.b32.xlu0 %v3018_v12, %s7612_s21  ;;  %1086 = vrot.lane.b32.xlu1 %v1078_v57, %s7613_s5  ;;  %v3041_v12 = vmul.f32 %v3039_v18, %v7830_v11  ;;  %v1080_v57 = vmul.f32 %v1077_v49, %v8124_v7 }
 0x171   :  { %v8165_v51 = vpop.permute.xlu0 %657  ;;  %v8167_v5 = vpop.permute.xlu1 %682 }
 0x172   :  { %13518 = vst [vmem:[#allocation43_spill] sm:$0xff] %v8165_v51  ;;  %13519 = vst [vmem:[#allocation44_spill] sm:$0xff] %v8167_v5 }
 0x173   :  { %1088 = vrot.lane.b32.xlu0 %v1079_v6, %s7613_s5  ;;  %2067 = vrot.lane.b32.xlu1 %v2059_v14, %s7613_s5  ;;  %v1125_v6 = vstv %s7179_s14  ;;  %s7225_s14 = sld [smem:[#allocation2 + $0x44]] }
 0x174   :  { %v1126_v26 = vmul.f32 %v1125_v6, %v8088_v38  ;;  %v1127_v16 = vmul.f32 %v1125_v6, %v8105_v54 }
 0x175   :  { %v8173_v61 = vpop.permute.xlu0 %684  ;;  %v8175_v19 = vpop.permute.xlu1 %686 }
 0x176   :  { %13520 = vst [vmem:[#allocation45_spill] sm:$0xff] %v8173_v61  ;;  %13521 = vst [vmem:[#allocation46_spill] sm:$0xff] %v8175_v19  ;;  %v1135_v56 = vrot.slane %v1127_v16, 1 }
 0x177   :  { %2069 = vrot.lane.b32.xlu0 %v2060_v17, %s7613_s5  ;;  %3048 = vrot.lane.b32.xlu1 %v3040_v31, %s7613_s5  ;;  %v1081_v31 = vmul.f32 %v1077_v49, %v8139_v25  ;;  %v1134_v49 = vrot.slane %v1126_v26, 1 }
 0x179   :  { %v8181_v43 = vpop.permute.xlu0 %688  ;;  %v8183_v59 = vpop.permute.xlu1 %747  ;;  %v1136_v26 = vsel %vm621_vm3, %v1134_v49, %v1135_v56  ;;  %v1129_v49 = vmul.f32 %v1125_v6, %v8139_v25 }
 0x17a   :  { %13522 = vst [vmem:[#allocation47_spill] sm:$0xff] %v8181_v43  ;;  %13523 = vst [vmem:[#allocation48_spill] sm:$0xff] %v8183_v59 }
 0x17b   :  { %3050 = vrot.lane.b32.xlu0 %v3041_v12, %s7613_s5  ;;  %1090 = vrot.lane.b32.xlu1 %v1080_v57, %s7613_s5  ;;  %v2106_v12 = vstv %s7215_s15  ;;  %s7261_s15 = sld [smem:[#allocation2 + $0x68]] }
 0x17c   :  { %v2107_v35 = vmul.f32 %v2106_v12, %v7846_v20  ;;  %v2108_v22 = vmul.f32 %v2106_v12, %v7857_v30 }
 0x17d   :  { %v8189_v14 = vpop.permute.xlu0 %898  ;;  %v8191_v17 = vpop.permute.xlu1 %751 }
 0x17e   :  { %13524 = vst [vmem:[#allocation49_spill] sm:$0xff] %v8189_v14  ;;  %13525 = vst [vmem:[#allocation50_spill] sm:$0xff] %v8191_v17  ;;  %v2062_v14 = vmul.f32 %v2058_v62, %v7872_v39  ;;  %v2115_v16 = vrot.slane %v2107_v35, 1  ;;  %v2116_v29 = vrot.slane %v2108_v22, 1 }
 0x17f   :  { %1092 = vrot.lane.b32.xlu0 %v1081_v31, %s7613_s5  ;;  %2071 = vrot.lane.b32.xlu1 %v2061_v8, %s7613_s5  ;;  %v3087_v8 = vstv %s7251_s6  ;;  %s7191_s6 = sld [smem:[#allocation2 + $0x22]] }
 0x180   :  { %v3089_v62 = vmul.f32 %v3087_v8, %v7830_v11  ;;  %v2117_v18 = vsel %vm621_vm3, %v2115_v16, %v2116_v29  ;;  %v2110_v16 = vmul.f32 %v2106_v12, %v7872_v39 }
 0x181   :  { %v8199_v57 = vpop.permute.xlu0 %749  ;;  %v8201_v63 = vpop.permute.xlu1 %783 }
 0x182   :  { %13526 = vst [vmem:[#allocation51_spill] sm:$0xff] %v8199_v57  ;;  %13527 = vst [vmem:[#allocation52_spill] sm:$0xff] %v8201_v63 }
 0x183   :  { %2073 = vrot.lane.b32.xlu0 %v2062_v14, %s7613_s5  ;;  %3052 = vrot.lane.b32.xlu1 %v3042_v47, %s7613_s5  ;;  %v3088_v14 = vmul.f32 %v3087_v8, %v7822_v3 }
 0x185   :  { %v8209_v31 = vpop.permute.xlu0 %753  ;;  %v8211_v32 = vpop.permute.xlu1 %787 }
 0x186   :  { %13528 = vst [vmem:[#allocation53_spill] sm:$0xff] %v8209_v31  ;;  %13529 = vst [vmem:[#allocation54_spill] sm:$0xff] %v8211_v32  ;;  %v3097_v31 = vrot.slane %v3089_v62, 1  ;;  %v1128_v32 = vmul.f32 %v1125_v6, %v8124_v7  ;;  %v1138_v62 = vrot.slane %v1129_v49, 1  ;;  %v2119_v49 = vrot.slane %v2110_v16, 1 }
 0x187   :  { %3054 = vrot.lane.b32.xlu0 %v3043_v4, %s7613_s5  ;;  %1140 = vrot.lane.b32.xlu1 %v1136_v26, %s7612_s21  ;;  %v3096_v4 = vrot.slane %v3088_v14, 1  ;;  %v3090_v14 = vmul.f32 %v3087_v8, %v7819_v2 }
 0x189   :  { %v8219_v47 = vpop.permute.xlu0 %785  ;;  %v8221_v57 = vpop.permute.xlu1 %896  ;;  %v3098_v26 = vsel %vm621_vm3, %v3096_v4, %v3097_v31 }
 0x18a   :  { %13530 = vst [vmem:[#allocation55_spill] sm:$0xff] %v8219_v47  ;;  %13531 = vst [vmem:[#allocation56_spill] sm:$0xff] %v8221_v57  ;;  %v1137_v57 = vrot.slane %v1128_v32, 1  ;;  %v2109_v47 = vmul.f32 %v2106_v12, %v7863_v34 }
 0x18b   :  { %1142 = vrot.lane.b32.xlu0 %v1135_v56, %s7612_s21  ;;  %2121 = vrot.lane.b32.xlu1 %v2117_v18, %s7612_s21  ;;  %v1156_v18 = vstv %s7180_s16  ;;  %s7227_s16 = sld [smem:[#allocation2 + $0x46]] }
 0x18c   :  { %v1139_v4 = vsel %vm621_vm3, %v1137_v57, %v1138_v62  ;;  %v2118_v32 = vrot.slane %v2109_v47, 1  ;;  %v1158_v57 = vmul.f32 %v1156_v18, %v8105_v54 }
 0x18d   :  { %v8228_v22 = vpop.permute.xlu0 %789  ;;  %v8230_v35 = vpop.permute.xlu1 %1877 }
 0x18e   :  { %13532 = vst [vmem:[#allocation57_spill] sm:$0xff] %v8228_v22  ;;  %13533 = vst [vmem:[#allocation58_spill] sm:$0xff] %v8230_v35  ;;  %v3091_v35 = vmul.f32 %v3087_v8, %v7834_v13  ;;  %v2137_v8 = vstv %s7216_s2  ;;  %s7263_s2 = sld [smem:[#allocation2 + $0x6a]] }
 0x18f   :  { %2123 = vrot.lane.b32.xlu0 %v2116_v29, %s7612_s21  ;;  %3102 = vrot.lane.b32.xlu1 %v3098_v26, %s7612_s21  ;;  %v1157_v26 = vmul.f32 %v1156_v18, %v8088_v38  ;;  %v2140_v17 = vmul.f32 %v2137_v8, %v7863_v34 }
 0x190   :  { %v3100_v22 = vrot.slane %v3091_v35, 1 }
 0x191   :  { %v8237_v56 = vpop.permute.xlu0 %1879  ;;  %v8239_v6 = vpop.permute.xlu1 %900  ;;  %v1165_v16 = vrot.slane %v1157_v26, 1 }
 0x192   :  { %13534 = vst [vmem:[#allocation59_spill] sm:$0xff] %v8237_v56  ;;  %13535 = vst [vmem:[#allocation60_spill] sm:$0xff] %v8239_v6  ;;  %v2120_v6 = vsel %vm621_vm3, %v2118_v32, %v2119_v49  ;;  %v3099_v56 = vrot.slane %v3090_v14, 1  ;;  %v2139_v14 = vmul.f32 %v2137_v8, %v7857_v30 }
 0x193   :  { %3104 = vrot.lane.b32.xlu0 %v3097_v31, %s7612_s21  ;;  %1144 = vrot.lane.b32.xlu1 %v1139_v4, %s7612_s21 }
 0x194   :  { %v3101_v4 = vsel %vm621_vm3, %v3099_v56, %v3100_v22  ;;  %v2147_v26 = vrot.slane %v2139_v14, 1 }
 0x195   :  { %v8246_v29 = vpop.permute.xlu0 %902  ;;  %v8248_v12 = vpop.permute.xlu1 %1881 }
 0x196   :  { %13536 = vst [vmem:[#allocation61_spill] sm:$0xff] %v8246_v29  ;;  %13537 = vst [vmem:[#allocation62_spill] sm:$0xff] %v8248_v12  ;;  %v1166_v29 = vrot.slane %v1158_v57, 1  ;;  %v2138_v12 = vmul.f32 %v2137_v8, %v7846_v20 }
 0x197   :  { %1146 = vrot.lane.b32.xlu0 %v1138_v62, %s7612_s21  ;;  %2125 = vrot.lane.b32.xlu1 %v2120_v6, %s7612_s21  ;;  %v3118_v6 = vstv %s7252_s4  ;;  %s7192_s4 = sld [smem:[#allocation2 + $0x23]] }
 0x198   :  { %v1167_v32 = vsel %vm621_vm3, %v1165_v16, %v1166_v29  ;;  %v3120_v56 = vmul.f32 %v3118_v6, %v7830_v11  ;;  %v3119_v57 = vmul.f32 %v3118_v6, %v7822_v3 }
 0x199   :  { %v8255_v31 = vpop.permute.xlu0 %1883  ;;  %v8257_v47 = vpop.permute.xlu1 %927 }
 0x19a   :  { %13538 = vst [vmem:[#allocation63_spill] sm:$0xff] %v8255_v31  ;;  %13539 = vst [vmem:[#allocation64_spill] sm:$0xff] %v8257_v47  ;;  %v2146_v47 = vrot.slane %v2138_v12, 1  ;;  %v3128_v12 = vrot.slane %v3120_v56, 1 }
 0x19b   :  { %2127 = vrot.lane.b32.xlu0 %v2119_v49, %s7612_s21  ;;  %3106 = vrot.lane.b32.xlu1 %v3101_v4, %s7612_s21 }
 0x19c   :  { %v2148_v16 = vsel %vm621_vm3, %v2146_v47, %v2147_v26 }
 0x19d   :  { %v8264_v35 = vpop.permute.xlu0 %929  ;;  %v8266_v62 = vpop.permute.xlu1 %1908 }
 0x19e   :  { %13540 = vst [vmem:[#allocation65_spill] sm:$0xff] %v8264_v35  ;;  %13541 = vst [vmem:[#allocation66_spill] sm:$0xff] %v8266_v62  ;;  %v1159_v35 = vmul.f32 %v1156_v18, %v8124_v7  ;;  %v1160_v62 = vmul.f32 %v1156_v18, %v8139_v25  ;;  %v2141_v18 = vmul.f32 %v2137_v8, %v7872_v39 }
 0x19f   :  { %3108 = vrot.lane.b32.xlu0 %v3100_v22, %s7612_s21  ;;  %1171 = vrot.lane.b32.xlu1 %v1167_v32, %s7613_s5  ;;  %v3127_v22 = vrot.slane %v3119_v57, 1  ;;  %v3121_v57 = vmul.f32 %v3118_v6, %v7819_v2 }
 0x1a0   :  { %v1168_v31 = vrot.slane %v1159_v35, 1  ;;  %v2149_v35 = vrot.slane %v2140_v17, 1 }
 0x1a1   :  { %v8273_v49 = vpop.permute.xlu0 %1910  ;;  %v8275_v4 = vpop.permute.xlu1 %931 }
 0x1a2   :  { %13542 = vst [vmem:[#allocation67_spill] sm:$0xff] %v8273_v49  ;;  %13543 = vst [vmem:[#allocation68_spill] sm:$0xff] %v8275_v4  ;;  %v1169_v49 = vrot.slane %v1160_v62, 1  ;;  %v3129_v4 = vsel %vm621_vm3, %v3127_v22, %v3128_v12  ;;  %v2150_v62 = vrot.slane %v2141_v18, 1 }
 0x1a3   :  { %1173 = vrot.lane.b32.xlu0 %v1166_v29, %s7613_s5  ;;  %2152 = vrot.lane.b32.xlu1 %v2148_v16, %s7613_s5  ;;  %v3122_v16 = vmul.f32 %v3118_v6, %v7834_v13 }
 0x1a4   :  { %v1170_v56 = vsel %vm621_vm3, %v1168_v31, %v1169_v49  ;;  %v2151_v22 = vsel %vm621_vm3, %v2149_v35, %v2150_v62  ;;  %v3130_v31 = vrot.slane %v3121_v57, 1 }
 0x1a5   :  { %v8282_v14 = vpop.permute.xlu0 %933  ;;  %v8284_v32 = vpop.permute.xlu1 %1912 }
 0x1a6   :  { %13544 = vst [vmem:[#allocation69_spill] sm:$0xff] %v8282_v14  ;;  %13545 = vst [vmem:[#allocation70_spill] sm:$0xff] %v8284_v32 }
 0x1a7   :  { %2154 = vrot.lane.b32.xlu0 %v2147_v26, %s7613_s5  ;;  %3133 = vrot.lane.b32.xlu1 %v3129_v4, %s7613_s5  ;;  %v1215_v4 = vstv %s7182_s17  ;;  %s7228_s17 = sld [smem:[#allocation2 + $0x47]] }
 0x1a8   :  { %v1216_v17 = vmul.f32 %v1215_v4, %v8088_v38  ;;  %v1217_v6 = vmul.f32 %v1215_v4, %v8105_v54 }
 0x1a9   :  { %v8291_v29 = vpop.permute.xlu0 %1914  ;;  %v8293_v47 = vpop.permute.xlu1 %991 }
 0x1aa   :  { %13546 = vst [vmem:[#allocation71_spill] sm:$0xff] %v8291_v29  ;;  %13547 = vst [vmem:[#allocation72_spill] sm:$0xff] %v8293_v47  ;;  %v3131_v47 = vrot.slane %v3122_v16, 1  ;;  %v1227_v57 = vrot.slane %v1217_v6, 2  ;;  %v3177_v29 = vstv %s7254_s19  ;;  %s7194_s19 = sld [smem:[#allocation2 + $0x25]] }
 0x1ab   :  { %3135 = vrot.lane.b32.xlu0 %v3128_v12, %s7613_s5  ;;  %1175 = vrot.lane.b32.xlu1 %v1170_v56, %s7613_s5  ;;  %v2196_v56 = vstv %s7218_s18  ;;  %v3179_v32 = vmul.f32 %v3177_v29, %v7830_v11  ;;  %v3178_v6 = vmul.f32 %v3177_v29, %v7822_v3  ;;  %v3180_v59 = vmul.f32 %v3177_v29, %v7919_v21  ;;  %s7264_s18 = sld [smem:[#allocation2 + $0x6b]] }
 0x1ac   :  { %v2197_v35 = vmul.f32 %v2196_v56, %v7846_v20  ;;  %v2198_v16 = vmul.f32 %v2196_v56, %v7857_v30 }
 0x1ad   :  { %v8300_v8 = vpop.permute.xlu0 %993  ;;  %v8302_v26 = vpop.permute.xlu1 %1972 }
 0x1ae   :  { %13548 = vst [vmem:[#allocation73_spill] sm:$0xff] %v8300_v8  ;;  %13549 = vst [vmem:[#allocation74_spill] sm:$0xff] %v8302_v26  ;;  %v3132_v26 = vsel %vm621_vm3, %v3130_v31, %v3131_v47  ;;  %v1226_v8 = vrot.slane %v1216_v17, 2  ;;  %v2207_v17 = vrot.slane %v2197_v35, 2  ;;  %v3189_v35 = vrot.slane %v3179_v32, 2 }
 0x1af   :  { %1177 = vrot.lane.b32.xlu0 %v1169_v49, %s7613_s5  ;;  %2156 = vrot.lane.b32.xlu1 %v2151_v22, %s7613_s5  ;;  %v1218_v49 = vmul.f32 %v1215_v4, %v7919_v21 }
 0x1b0   :  { %v1228_v31 = vsel %vm709_vm4, %v1226_v8, %v1227_v57 }
 0x1b1   :  { %v8309_v12 = vpop.permute.xlu0 %1974  ;;  %v8311_v18 = vpop.permute.xlu1 %995 }
 0x1b2   :  { %13550 = vst [vmem:[#allocation75_spill] sm:$0xff] %v8309_v12  ;;  %13551 = vst [vmem:[#allocation76_spill] sm:$0xff] %v8311_v18  ;;  %v2199_v18 = vmul.f32 %v2196_v56, %v7919_v21 }
 0x1b3   :  { %2158 = vrot.lane.b32.xlu0 %v2150_v62, %s7613_s5  ;;  %3137 = vrot.lane.b32.xlu1 %v3132_v26, %s7613_s5  ;;  %v1229_v62 = vrot.slane %v1218_v49, 2  ;;  %v2208_v26 = vrot.slane %v2198_v16, 2  ;;  %v3188_v49 = vrot.slane %v3178_v6, 2  ;;  %v1220_v16 = vmul.f32 %v1215_v4, %v8139_v25 }
 0x1b4   :  { %v2210_v63 = vrot.slane %v2199_v18, 2 }
 0x1b5   :  { %v8319_v22 = vpop.permute.xlu0 %997  ;;  %v8321_v12 = vpop.permute.xlu1 %1976  ;;  %v2209_v8 = vsel %vm709_vm4, %v2207_v17, %v2208_v26  ;;  %v3190_v32 = vsel %vm709_vm4, %v3188_v49, %v3189_v35 }
 0x1b6   :  { %13552 = vst [vmem:[#allocation77_spill] sm:$0xff] %v8319_v22  ;;  %13553 = vst [vmem:[#allocation78_spill] sm:$0xff] %v8321_v12  ;;  %v1230_v12 = vsel %vm709_vm4, %v1227_v57, %v1229_v62  ;;  %v2211_v18 = vsel %vm709_vm4, %v2208_v26, %v2210_v63  ;;  %v3191_v57 = vrot.slane %v3180_v59, 2  ;;  %v3181_v26 = vmul.f32 %v3177_v29, %v7819_v2 }
 0x1b7   :  { %3139 = vrot.lane.b32.xlu0 %v3131_v47, %s7613_s5  ;;  %1235 = vrot.lane.b32.xlu1 %v1228_v31, %s7612_s21  ;;  %v1219_v47 = vmul.f32 %v1215_v4, %v8124_v7  ;;  %v2201_v4 = vmul.f32 %v2196_v56, %v7872_v39 }
 0x1b8   :  { %v3192_v49 = vsel %vm709_vm4, %v3189_v35, %v3191_v57 }
 0x1b9   :  { %v8329_v14 = vpop.permute.xlu0 %1978  ;;  %v8331_v22 = vpop.permute.xlu1 %1027  ;;  %v1231_v17 = vrot.slane %v1219_v47, 2 }
 0x1ba   :  { %13554 = vst [vmem:[#allocation79_spill] sm:$0xff] %v8329_v14  ;;  %13555 = vst [vmem:[#allocation80_spill] sm:$0xff] %v8331_v22  ;;  %v2200_v22 = vmul.f32 %v2196_v56, %v7863_v34 }
 0x1bb   :  { %1237 = vrot.lane.b32.xlu0 %v1230_v12, %s7612_s21  ;;  %2216 = vrot.lane.b32.xlu1 %v2209_v8, %s7612_s21  ;;  %v1232_v12 = vrot.slane %v1220_v16, 2  ;;  %v2213_v16 = vrot.slane %v2201_v4, 2 }
 0x1bc   :  { %v2212_v47 = vrot.slane %v2200_v22, 2 }
 0x1bd   :  { %v8340_v31 = vpop.permute.xlu0 %1029  ;;  %v8342_v14 = vpop.permute.xlu1 %2008  ;;  %v1233_v59 = vsel %vm709_vm4, %v1231_v17, %v1232_v12 }
 0x1be   :  { %13556 = vst [vmem:[#allocation81_spill] sm:$0xff] %v8340_v31  ;;  %13557 = vst [vmem:[#allocation82_spill] sm:$0xff] %v8342_v14  ;;  %v3182_v14 = vmul.f32 %v3177_v29, %v7834_v13  ;;  %v2214_v35 = vsel %vm709_vm4, %v2212_v47, %v2213_v16 }
 0x1bf   :  { %2218 = vrot.lane.b32.xlu0 %v2211_v18, %s7612_s21  ;;  %3197 = vrot.lane.b32.xlu1 %v3190_v32, %s7612_s21  ;;  %v1234_v32 = vsel %vm709_vm4, %v1232_v12, %v1229_v62  ;;  %v2215_v62 = vsel %vm709_vm4, %v2213_v16, %v2210_v63  ;;  %v3213_v16 = vstv %s7255_s23  ;;  %s7195_s23 = sld [smem:[#allocation2 + $0x26]] }
 0x1c0   :  { %v3194_v17 = vrot.slane %v3182_v14, 2 }
 0x1c1   :  { %v8350_v6 = vpop.permute.xlu0 %2010  ;;  %v8352_v8 = vpop.permute.xlu1 %1031 }
 0x1c2   :  { %13558 = vst [vmem:[#allocation83_spill] sm:$0xff] %v8350_v6  ;;  %13559 = vst [vmem:[#allocation84_spill] sm:$0xff] %v8352_v8  ;;  %v1251_v8 = vstv %s7183_s20  ;;  %v3193_v6 = vrot.slane %v3181_v26, 2  ;;  %s7230_s20 = sld [smem:[#allocation2 + $0x49]] }
 0x1c3   :  { %3199 = vrot.lane.b32.xlu0 %v3192_v49, %s7612_s21  ;;  %1239 = vrot.lane.b32.xlu1 %v1233_v59, %s7612_s21  ;;  %v1252_v22 = vmul.f32 %v1251_v8, %v8088_v38  ;;  %v1253_v29 = vmul.f32 %v1251_v8, %v8105_v54  ;;  %v2232_v59 = vstv %s7219_s22  ;;  %v1254_v26 = vmul.f32 %v1251_v8, %v7919_v21  ;;  %s7266_s22 = sld [smem:[#allocation2 + $0x6d]] }
 0x1c4   :  { %v3195_v12 = vsel %vm709_vm4, %v3193_v6, %v3194_v17  ;;  %v2233_v14 = vmul.f32 %v2232_v59, %v7846_v20  ;;  %v2235_v63 = vmul.f32 %v2232_v59, %v7919_v21  ;;  %v3196_v6 = vsel %vm709_vm4, %v3194_v17, %v3191_v57 }
 0x1c5   :  { %v8360_v56 = vpop.permute.xlu0 %1033  ;;  %v8362_v18 = vpop.permute.xlu1 %2012  ;;  %v1262_v47 = vrot.slane %v1252_v22, 2 }
 0x1c6   :  { %13560 = vst [vmem:[#allocation85_spill] sm:$0xff] %v8360_v56  ;;  %13561 = vst [vmem:[#allocation86_spill] sm:$0xff] %v8362_v18  ;;  %v2243_v18 = vrot.slane %v2233_v14, 2  ;;  %v2246_v57 = vrot.slane %v2235_v63, 2  ;;  %v3216_v14 = vmul.f32 %v3213_v16, %v7919_v21 }
 0x1c7   :  { %1241 = vrot.lane.b32.xlu0 %v1234_v32, %s7612_s21  ;;  %2220 = vrot.lane.b32.xlu1 %v2214_v35, %s7612_s21  ;;  %v1263_v32 = vrot.slane %v1253_v29, 2  ;;  %v2234_v35 = vmul.f32 %v2232_v59, %v7857_v30  ;;  %v1265_v29 = vrot.slane %v1254_v26, 2 }
 0x1c8   :  { %v3227_v63 = vrot.slane %v3216_v14, 2 }
 0x1c9   :  { %v8370_v4 = vpop.permute.xlu0 %2014  ;;  %v8372_v49 = vpop.permute.xlu1 %1061  ;;  %v1264_v22 = vsel %vm709_vm4, %v1262_v47, %v1263_v32  ;;  %v1266_v31 = vsel %vm709_vm4, %v1263_v32, %v1265_v29 }
 0x1ca   :  { %13562 = vst [vmem:[#allocation87_spill] sm:$0xff] %v8370_v4  ;;  %13563 = vst [vmem:[#allocation88_spill] sm:$0xff] %v8372_v49 }
 0x1cb   :  { %2222 = vrot.lane.b32.xlu0 %v2215_v62, %s7612_s21  ;;  %3201 = vrot.lane.b32.xlu1 %v3195_v12, %s7612_s21  ;;  %v3215_v62 = vmul.f32 %v3213_v16, %v7830_v11  ;;  %v2244_v12 = vrot.slane %v2234_v35, 2  ;;  %v1256_v35 = vmul.f32 %v1251_v8, %v8139_v25 }
 0x1cd   :  { %v8381_v4 = vpop.permute.xlu0 %1063  ;;  %v8383_v49 = vpop.permute.xlu1 %2042  ;;  %v2245_v17 = vsel %vm709_vm4, %v2243_v18, %v2244_v12  ;;  %v3225_v47 = vrot.slane %v3215_v62, 2  ;;  %v2247_v32 = vsel %vm709_vm4, %v2244_v12, %v2246_v57 }
 0x1ce   :  { %13564 = vst [vmem:[#allocation89_spill] sm:$0xff] %v8381_v4  ;;  %13565 = vst [vmem:[#allocation90_spill] sm:$0xff] %v8383_v49  ;;  %v3214_v4 = vmul.f32 %v3213_v16, %v7822_v3 }
 0x1cf   :  { %3203 = vrot.lane.b32.xlu0 %v3196_v6, %s7612_s21  ;;  %1271 = vrot.lane.b32.xlu1 %v1264_v22, %s7613_s5  ;;  %v1255_v6 = vmul.f32 %v1251_v8, %v8124_v7  ;;  %v3228_v12 = vsel %vm709_vm4, %v3225_v47, %v3227_v63 }
 0x1d0   :  { %v3224_v26 = vrot.slane %v3214_v4, 2  ;;  %v2237_v4 = vmul.f32 %v2232_v59, %v7872_v39 }
 0x1d1   :  { %v8392_v56 = vpop.permute.xlu0 %2044  ;;  %v8394_v49 = vpop.permute.xlu1 %3023  ;;  %v1267_v62 = vrot.slane %v1255_v6, 2 }
 0x1d2   :  { %13566 = vst [vmem:[#allocation91_spill] sm:$0xff] %v8392_v56  ;;  %13567 = vst [vmem:[#allocation92_spill] sm:$0xff] %v8394_v49  ;;  %v3226_v18 = vsel %vm709_vm4, %v3224_v26, %v3225_v47  ;;  %v2236_v56 = vmul.f32 %v2232_v59, %v7863_v34  ;;  %v3218_v26 = vmul.f32 %v3213_v16, %v7834_v13 }
 0x1d3   :  { %1273 = vrot.lane.b32.xlu0 %v1266_v31, %s7613_s5  ;;  %2252 = vrot.lane.b32.xlu1 %v2245_v17, %s7613_s5  ;;  %v1268_v31 = vrot.slane %v1256_v35, 2  ;;  %v2249_v35 = vrot.slane %v2237_v4, 2 }
 0x1d4   :  { %v2248_v6 = vrot.slane %v2236_v56, 2  ;;  %v521_v56 = vsel %vm513_vm1, 0.0, %v7975_v23  ;;  %v522_v23 = vsel %vm513_vm1, 0.0, %v7985_v36 }
 0x1d5   :  { %v8403_v22 = vpop.permute.xlu0 %3025  ;;  %v8405_v49 = vpop.permute.xlu1 %1065  ;;  %v1269_v14 = vsel %vm709_vm4, %v1267_v62, %v1268_v31  ;;  %v8438_v4 = vsel %vm535_vm2, %v521_v56, 0.0  ;;  %v3258_v56 = vstv %s7257_s3  ;;  %s8871_s3 = sld [smem:[#allocation2]] }
 0x1d6   :  { %13568 = vst [vmem:[#allocation93_spill] sm:$0xff] %v8403_v22  ;;  %13569 = vst [vmem:[#allocation94_spill] sm:$0xff] %v8405_v49  ;;  %v3217_v49 = vmul.f32 %v3213_v16, %v7819_v2 }
 0x1d7   :  { %2254 = vrot.lane.b32.xlu0 %v2247_v32, %s7613_s5  ;;  %3233 = vrot.lane.b32.xlu1 %v3226_v18, %s7613_s5  ;;  %v1270_v18 = vsel %vm709_vm4, %v1268_v31, %v1265_v29  ;;  %13576 = vst [vmem:[#allocation101_spill] sm:$0xff] %v8438_v4  ;;  %v2251_v29 = vsel %vm709_vm4, %v2249_v35, %v2246_v57  ;;  %v1296_v31 = vstv %s7185_s24  ;;  %v2277_v57 = vstv %s7221_s1  ;;  %s7231_s24 = sld [smem:[#allocation2 + $0x4a]] }
 0x1d8   :  { %v3229_v47 = vrot.slane %v3217_v49, 2  ;;  %s7267_s1 = sld [smem:[#allocation2 + $0x6e]] }
 0x1d9   :  { %v8413_v8 = vpop.permute.xlu0 %1067  ;;  %v8415_v17 = vpop.permute.xlu1 %2046 }
 0x1da   :  { %13570 = vst [vmem:[#allocation95_spill] sm:$0xff] %v8413_v8  ;;  %13571 = vst [vmem:[#allocation96_spill] sm:$0xff] %v8415_v17  ;;  %v2250_v17 = vsel %vm709_vm4, %v2248_v6, %v2249_v35  ;;  %v3230_v8 = vrot.slane %v3218_v26, 2  ;;  %v8455_v26 = vsel %vm535_vm2, %v522_v23, 0.0  ;;  %v3259_v23 = vmul.f32 %v3258_v56, %v7846_v20 }
 0x1db   :  { %3235 = vrot.lane.b32.xlu0 %v3228_v12, %s7613_s5  ;;  %1275 = vrot.lane.b32.xlu1 %v1269_v14, %s7613_s5  ;;  %v1297_v14 = vmul.f32 %v1296_v31, %v8438_v4  ;;  %13579 = vst [vmem:[#allocation104_spill] sm:$0xff] %v8455_v26  ;;  %v1298_v36 = vmul.f32 %v1296_v31, %v8455_v26 }
 0x1dc   :  { %v3231_v49 = vsel %vm709_vm4, %v3229_v47, %v3230_v8  ;;  %v3232_v6 = vsel %vm709_vm4, %v3230_v8, %v3227_v63  ;;  %v2278_v47 = vmul.f32 %v2277_v57, %v8088_v38  ;;  %v531_v63 = vsel %vm513_vm1, 0.0, %v7989_v37 }
 0x1dd   :  { %v8423_v59 = vpop.permute.xlu0 %2048  ;;  %v8425_v32 = vpop.permute.xlu1 %3027  ;;  %v532_v37 = vsel %vm513_vm1, 0.0, %v7996_v45 }
 0x1de   :  { %13572 = vst [vmem:[#allocation97_spill] sm:$0xff] %v8423_v59  ;;  %13573 = vst [vmem:[#allocation98_spill] sm:$0xff] %v8425_v32 }
 0x1df   :  { %1277 = vrot.lane.b32.xlu0 %v1270_v18, %s7613_s5  ;;  %2256 = vrot.lane.b32.xlu1 %v2250_v17, %s7613_s5 }
 0x1e1   :  { %v8433_v16 = vpop.permute.xlu0 %3029  ;;  %v8435_v62 = vpop.permute.xlu1 %1086 }
 0x1e2   :  { %13574 = vst [vmem:[#allocation99_spill] sm:$0xff] %v8433_v16  ;;  %13575 = vst [vmem:[#allocation100_spill] sm:$0xff] %v8435_v62 }
 0x1e3   :  { %2258 = vrot.lane.b32.xlu0 %v2251_v29, %s7613_s5  ;;  %3237 = vrot.lane.b32.xlu1 %v3231_v49, %s7613_s5  ;;  %v2279_v49 = vmul.f32 %v2277_v57, %v8105_v54 }
 0x1e5   :  { %v8446_v17 = vpop.permute.xlu0 %1088  ;;  %v8448_v12 = vpop.permute.xlu1 %2067 }
 0x1e6   :  { %13577 = vst [vmem:[#allocation102_spill] sm:$0xff] %v8446_v17  ;;  %13578 = vst [vmem:[#allocation103_spill] sm:$0xff] %v8448_v12  ;;  %v3331_v17 = vstv %s7260_s30  ;;  %s8889_s30 = sld [smem:[#allocation2 + $0x30]] }
 0x1e7   :  { %3239 = vrot.lane.b32.xlu0 %v3232_v6, %s7613_s5  ;;  %1305 = vrot.lane.b32.xlu1 %v1297_v14, %s7612_s21  ;;  %v8474_v14 = vsel %vm535_vm2, %v531_v63, 0.0  ;;  %v8489_v63 = vsel %vm535_vm2, %v532_v37, 0.0  ;;  %v3261_v37 = vmul.f32 %v3258_v56, %v7863_v34 }
 0x1e8   :  { %13586 = vst [vmem:[#allocation111_spill] sm:$0xff] %v8489_v63  ;;  %v1300_v45 = vmul.f32 %v1296_v31, %v8489_v63 }
 0x1e9   :  { %v8457_v35 = vpop.permute.xlu0 %2069  ;;  %v8459_v18 = vpop.permute.xlu1 %3048 }
 0x1ea   :  { %13580 = vst [vmem:[#allocation105_spill] sm:$0xff] %v8457_v35  ;;  %13581 = vst [vmem:[#allocation106_spill] sm:$0xff] %v8459_v18  ;;  %v2350_v18 = vstv %s7224_s29  ;;  %s7233_s29 = sld [smem:[#allocation2 + $0x4c]] }
 0x1eb   :  { %1307 = vrot.lane.b32.xlu0 %v1298_v36, %s7612_s21  ;;  %2286 = vrot.lane.b32.xlu1 %v2278_v47, %s7612_s21  ;;  %v3260_v47 = vmul.f32 %v3258_v56, %v7857_v30  ;;  %v2352_v12 = vmul.f32 %v2350_v18, %v8105_v54 }
 0x1ed   :  { %v8467_v8 = vpop.permute.xlu0 %3050  ;;  %v8469_v29 = vpop.permute.xlu1 %1090 }
 0x1ee   :  { %13582 = vst [vmem:[#allocation107_spill] sm:$0xff] %v8467_v8  ;;  %13583 = vst [vmem:[#allocation108_spill] sm:$0xff] %v8469_v29  ;;  %v1299_v29 = vmul.f32 %v1296_v31, %v8474_v14 }
 0x1ef   :  { %2288 = vrot.lane.b32.xlu0 %v2279_v49, %s7612_s21  ;;  %3267 = vrot.lane.b32.xlu1 %v3259_v23, %s7612_s21 }
 0x1f1   :  { %v8480_v6 = vpop.permute.xlu0 %1092  ;;  %v8482_v36 = vpop.permute.xlu1 %2071 }
 0x1f2   :  { %13584 = vst [vmem:[#allocation109_spill] sm:$0xff] %v8480_v6  ;;  %13585 = vst [vmem:[#allocation110_spill] sm:$0xff] %v8482_v36  ;;  %v2280_v36 = vmul.f32 %v2277_v57, %v8124_v7 }
 0x1f3   :  { %3269 = vrot.lane.b32.xlu0 %v3260_v47, %s7612_s21  ;;  %1309 = vrot.lane.b32.xlu1 %v1299_v29, %s7612_s21  ;;  %v2281_v29 = vmul.f32 %v2277_v57, %v8139_v25 }
 0x1f5   :  { %v8491_v49 = vpop.permute.xlu0 %2073  ;;  %v8493_v23 = vpop.permute.xlu1 %3052 }
 0x1f6   :  { %13587 = vst [vmem:[#allocation112_spill] sm:$0xff] %v8491_v49  ;;  %13588 = vst [vmem:[#allocation113_spill] sm:$0xff] %v8493_v23  ;;  %v1321_v49 = vstv %s7186_s25  ;;  %s7197_s25 = sld [smem:[#allocation2 + $0x28]] }
 0x1f7   :  { %1311 = vrot.lane.b32.xlu0 %v1300_v45, %s7612_s21  ;;  %2290 = vrot.lane.b32.xlu1 %v2280_v36, %s7612_s21  ;;  %v3262_v36 = vmul.f32 %v3258_v56, %v7872_v39  ;;  %v1322_v45 = vmul.f32 %v1321_v49, %v8438_v4 }
 0x1f9   :  { %v8499_v6 = vpop.permute.xlu0 %3054  ;;  %v8501_v47 = vpop.permute.xlu1 %1140 }
 0x1fa   :  { %13589 = vst [vmem:[#allocation114_spill] sm:$0xff] %v8499_v6  ;;  %13590 = vst [vmem:[#allocation115_spill] sm:$0xff] %v8501_v47  ;;  %v2302_v6 = vstv %s7222_s26  ;;  %s8875_s26 = sld [smem:[#allocation2 + $0x2d]] }
 0x1fb   :  { %2292 = vrot.lane.b32.xlu0 %v2281_v29, %s7612_s21  ;;  %3271 = vrot.lane.b32.xlu1 %v3261_v37, %s7612_s21  ;;  %v1323_v29 = vmul.f32 %v1321_v49, %v8455_v26  ;;  %v2303_v37 = vmul.f32 %v2302_v6, %v8088_v38 }
 0x1fd   :  { %v8507_v31 = vpop.permute.xlu0 %1142  ;;  %v8509_v23 = vpop.permute.xlu1 %2121 }
 0x1fe   :  { %13591 = vst [vmem:[#allocation116_spill] sm:$0xff] %v8507_v31  ;;  %13592 = vst [vmem:[#allocation117_spill] sm:$0xff] %v8509_v23  ;;  %v3283_v31 = vstv %s7258_s27  ;;  %s8877_s27 = sld [smem:[#allocation2 + $0x3]] }
 0x1ff   :  { %3273 = vrot.lane.b32.xlu0 %v3262_v36, %s7612_s21  ;;  %1330 = vrot.lane.b32.xlu1 %v1322_v45, %s7613_s5  ;;  %v2304_v36 = vmul.f32 %v2302_v6, %v8105_v54  ;;  %v3284_v45 = vmul.f32 %v3283_v31, %v7846_v20 }
 0x201   :  { %v8515_v57 = vpop.permute.xlu0 %2123  ;;  %v8517_v47 = vpop.permute.xlu1 %3102 }
 0x202   :  { %13593 = vst [vmem:[#allocation118_spill] sm:$0xff] %v8515_v57  ;;  %13594 = vst [vmem:[#allocation119_spill] sm:$0xff] %v8517_v47 }
 0x203   :  { %1332 = vrot.lane.b32.xlu0 %v1323_v29, %s7613_s5  ;;  %2311 = vrot.lane.b32.xlu1 %v2303_v37, %s7613_s5  ;;  %v3285_v29 = vmul.f32 %v3283_v31, %v7857_v30  ;;  %v1324_v37 = vmul.f32 %v1321_v49, %v8474_v14 }
 0x205   :  { %v8523_v56 = vpop.permute.xlu0 %3104  ;;  %v8525_v23 = vpop.permute.xlu1 %1144 }
 0x206   :  { %13595 = vst [vmem:[#allocation120_spill] sm:$0xff] %v8523_v56  ;;  %13596 = vst [vmem:[#allocation121_spill] sm:$0xff] %v8525_v23  ;;  %v1369_v56 = vstv %s7188_s28  ;;  %s8885_s28 = sld [smem:[#allocation2 + $0x6]] }
 0x207   :  { %2313 = vrot.lane.b32.xlu0 %v2304_v36, %s7613_s5  ;;  %3292 = vrot.lane.b32.xlu1 %v3284_v45, %s7613_s5  ;;  %v1325_v36 = vmul.f32 %v1321_v49, %v8489_v63  ;;  %v2305_v45 = vmul.f32 %v2302_v6, %v8124_v7  ;;  %v2351_v49 = vmul.f32 %v2350_v18, %v8088_v38 }
 0x209   :  { %v8531_v47 = vpop.permute.xlu0 %1146  ;;  %v8533_v57 = vpop.permute.xlu1 %2125  ;;  %v2359_v62 = vrot.slane %v2351_v49, 1 }
 0x20a   :  { %13597 = vst [vmem:[#allocation122_spill] sm:$0xff] %v8531_v47  ;;  %13598 = vst [vmem:[#allocation123_spill] sm:$0xff] %v8533_v57  ;;  %v1370_v57 = vmul.f32 %v1369_v56, %v8438_v4  ;;  %v1371_v47 = vmul.f32 %v1369_v56, %v8455_v26 }
 0x20b   :  { %3294 = vrot.lane.b32.xlu0 %v3285_v29, %s7613_s5  ;;  %1334 = vrot.lane.b32.xlu1 %v1324_v37, %s7613_s5 }
 0x20c   :  { %v1378_v35 = vrot.slane %v1370_v57, 1  ;;  %v1379_v16 = vrot.slane %v1371_v47, 1  ;;  %v2360_v57 = vrot.slane %v2352_v12, 1  ;;  %v3333_v47 = vmul.f32 %v3331_v17, %v7857_v30 }
 0x20d   :  { %v8539_v23 = vpop.permute.xlu0 %2127  ;;  %v8541_v8 = vpop.permute.xlu1 %3106 }
 0x20e   :  { %13599 = vst [vmem:[#allocation124_spill] sm:$0xff] %v8539_v23  ;;  %13600 = vst [vmem:[#allocation125_spill] sm:$0xff] %v8541_v8  ;;  %v2306_v23 = vmul.f32 %v2302_v6, %v8139_v25  ;;  %v3286_v8 = vmul.f32 %v3283_v31, %v7863_v34  ;;  %v3332_v6 = vmul.f32 %v3331_v17, %v7846_v20 }
 0x20f   :  { %1336 = vrot.lane.b32.xlu0 %v1325_v36, %s7613_s5  ;;  %2315 = vrot.lane.b32.xlu1 %v2305_v45, %s7613_s5 }
 0x210   :  { %v3340_v32 = vrot.slane %v3332_v6, 1 }
 0x211   :  { %v8549_v29 = vpop.permute.xlu0 %3108  ;;  %v8551_v37 = vpop.permute.xlu1 %1171 }
 0x212   :  { %13601 = vst [vmem:[#allocation126_spill] sm:$0xff] %v8549_v29  ;;  %13602 = vst [vmem:[#allocation127_spill] sm:$0xff] %v8551_v37  ;;  %v3287_v29 = vmul.f32 %v3283_v31, %v7872_v39  ;;  %v1380_v37 = vsel %vm621_vm3, %v1378_v35, %v1379_v16  ;;  %v1373_v31 = vmul.f32 %v1369_v56, %v8489_v63  ;;  %v3341_v35 = vrot.slane %v3333_v47, 1 }
 0x213   :  { %2317 = vrot.lane.b32.xlu0 %v2306_v23, %s7613_s5  ;;  %3296 = vrot.lane.b32.xlu1 %v3286_v8, %s7613_s5  ;;  %v3334_v47 = vmul.f32 %v3331_v17, %v7863_v34 }
 0x214   :  { %v1382_v49 = vrot.slane %v1373_v31, 1  ;;  %v3335_v31 = vmul.f32 %v3331_v17, %v7872_v39  ;;  %v2381_v17 = vstv %s7225_s14  ;;  %s8897_s14 = sld [smem:[#allocation2 + $0x9]] }
 0x215   :  { %v8559_v36 = vpop.permute.xlu0 %1173  ;;  %v8561_v45 = vpop.permute.xlu1 %2152 }
 0x216   :  { %13603 = vst [vmem:[#allocation128_spill] sm:$0xff] %v8559_v36  ;;  %13604 = vst [vmem:[#allocation129_spill] sm:$0xff] %v8561_v45  ;;  %v1372_v45 = vmul.f32 %v1369_v56, %v8474_v14  ;;  %v2361_v36 = vsel %vm621_vm3, %v2359_v62, %v2360_v57  ;;  %v2354_v56 = vmul.f32 %v2350_v18, %v8139_v25 }
 0x217   :  { %3298 = vrot.lane.b32.xlu0 %v3287_v29, %s7613_s5  ;;  %1384 = vrot.lane.b32.xlu1 %v1380_v37, %s7612_s21 }
 0x218   :  { %v1381_v37 = vrot.slane %v1372_v45, 1  ;;  %v2363_v45 = vrot.slane %v2354_v56, 1  ;;  %v3343_v56 = vrot.slane %v3334_v47, 1 }
 0x219   :  { %v8569_v23 = vpop.permute.xlu0 %2154  ;;  %v8571_v8 = vpop.permute.xlu1 %3133 }
 0x21a   :  { %13605 = vst [vmem:[#allocation130_spill] sm:$0xff] %v8569_v23  ;;  %13606 = vst [vmem:[#allocation131_spill] sm:$0xff] %v8571_v8  ;;  %v2353_v8 = vmul.f32 %v2350_v18, %v8124_v7  ;;  %v3342_v23 = vsel %vm621_vm3, %v3340_v32, %v3341_v35  ;;  %v1400_v32 = vstv %s7189_s0  ;;  %s7269_s0 = sld [smem:[#allocation2 + $0x70]] }
 0x21b   :  { %1386 = vrot.lane.b32.xlu0 %v1379_v16, %s7612_s21  ;;  %2365 = vrot.lane.b32.xlu1 %v2361_v36, %s7612_s21  ;;  %v1383_v36 = vsel %vm621_vm3, %v1381_v37, %v1382_v49  ;;  %v1402_v37 = vmul.f32 %v1400_v32, %v8455_v26 }
 0x21c   :  { %v2362_v6 = vrot.slane %v2353_v8, 1 }
 0x21d   :  { %v8578_v12 = vpop.permute.xlu0 %3135  ;;  %v8580_v29 = vpop.permute.xlu1 %1175 }
 0x21e   :  { %13607 = vst [vmem:[#allocation132_spill] sm:$0xff] %v8578_v12  ;;  %13608 = vst [vmem:[#allocation133_spill] sm:$0xff] %v8580_v29  ;;  %v2364_v8 = vsel %vm621_vm3, %v2362_v6, %v2363_v45  ;;  %v3344_v12 = vrot.slane %v3335_v31, 1  ;;  %v2383_v29 = vmul.f32 %v2381_v17, %v8105_v54 }
 0x21f   :  { %2367 = vrot.lane.b32.xlu0 %v2360_v57, %s7612_s21  ;;  %3346 = vrot.lane.b32.xlu1 %v3342_v23, %s7612_s21  ;;  %v1401_v23 = vmul.f32 %v1400_v32, %v8438_v4 }
 0x221   :  { %v8587_v16 = vpop.permute.xlu0 %1177  ;;  %v8589_v62 = vpop.permute.xlu1 %2156 }
 0x222   :  { %13609 = vst [vmem:[#allocation134_spill] sm:$0xff] %v8587_v16  ;;  %13610 = vst [vmem:[#allocation135_spill] sm:$0xff] %v8589_v62  ;;  %v1410_v62 = vrot.slane %v1402_v37, 1  ;;  %v2382_v16 = vmul.f32 %v2381_v17, %v8088_v38 }
 0x223   :  { %3348 = vrot.lane.b32.xlu0 %v3341_v35, %s7612_s21  ;;  %1388 = vrot.lane.b32.xlu1 %v1383_v36, %s7612_s21 }
 0x225   :  { %v8596_v18 = vpop.permute.xlu0 %2158  ;;  %v8598_v57 = vpop.permute.xlu1 %3137 }
 0x226   :  { %13611 = vst [vmem:[#allocation136_spill] sm:$0xff] %v8596_v18  ;;  %13612 = vst [vmem:[#allocation137_spill] sm:$0xff] %v8598_v57  ;;  %v1409_v18 = vrot.slane %v1401_v23, 1  ;;  %v3345_v57 = vsel %vm621_vm3, %v3343_v56, %v3344_v12  ;;  %v2391_v23 = vrot.slane %v2383_v29, 1 }
 0x227   :  { %1390 = vrot.lane.b32.xlu0 %v1382_v49, %s7612_s21  ;;  %2369 = vrot.lane.b32.xlu1 %v2364_v8, %s7612_s21  ;;  %v3362_v49 = vstv %s7261_s15  ;;  %v2390_v8 = vrot.slane %v2382_v16, 1  ;;  %s8899_s15 = sld [smem:[#allocation2 + $0xc]] }
 0x228   :  { %v1411_v31 = vsel %vm621_vm3, %v1409_v18, %v1410_v62  ;;  %v3363_v37 = vmul.f32 %v3362_v49, %v7846_v20  ;;  %v3364_v56 = vmul.f32 %v3362_v49, %v7857_v30 }
 0x229   :  { %v8605_v35 = vpop.permute.xlu0 %3139  ;;  %v8607_v36 = vpop.permute.xlu1 %1235  ;;  %v2392_v18 = vsel %vm621_vm3, %v2390_v8, %v2391_v23 }
 0x22a   :  { %13613 = vst [vmem:[#allocation138_spill] sm:$0xff] %v8605_v35  ;;  %13614 = vst [vmem:[#allocation139_spill] sm:$0xff] %v8607_v36  ;;  %v1403_v35 = vmul.f32 %v1400_v32, %v8474_v14  ;;  %v3371_v16 = vrot.slane %v3363_v37, 1  ;;  %v3372_v29 = vrot.slane %v3364_v56, 1  ;;  %v2384_v36 = vmul.f32 %v2381_v17, %v8124_v7 }
 0x22b   :  { %2371 = vrot.lane.b32.xlu0 %v2363_v45, %s7612_s21  ;;  %3350 = vrot.lane.b32.xlu1 %v3345_v57, %s7612_s21  ;;  %v3365_v56 = vmul.f32 %v3362_v49, %v7863_v34 }
 0x22d   :  { %v8614_v6 = vpop.permute.xlu0 %1237  ;;  %v8616_v47 = vpop.permute.xlu1 %2216 }
 0x22e   :  { %13615 = vst [vmem:[#allocation140_spill] sm:$0xff] %v8614_v6  ;;  %13616 = vst [vmem:[#allocation141_spill] sm:$0xff] %v8616_v47  ;;  %v1404_v47 = vmul.f32 %v1400_v32, %v8489_v63  ;;  %v2385_v32 = vmul.f32 %v2381_v17, %v8139_v25 }
 0x22f   :  { %3352 = vrot.lane.b32.xlu0 %v3344_v12, %s7612_s21  ;;  %1415 = vrot.lane.b32.xlu1 %v1411_v31, %s7613_s5  ;;  %v1412_v31 = vrot.slane %v1403_v35, 1  ;;  %v2393_v35 = vrot.slane %v2384_v36, 1 }
 0x231   :  { %v8623_v45 = vpop.permute.xlu0 %2218  ;;  %v8625_v57 = vpop.permute.xlu1 %3197 }
 0x232   :  { %13617 = vst [vmem:[#allocation142_spill] sm:$0xff] %v8623_v45  ;;  %13618 = vst [vmem:[#allocation143_spill] sm:$0xff] %v8625_v57  ;;  %v1413_v45 = vrot.slane %v1404_v47, 1  ;;  %v3373_v57 = vsel %vm621_vm3, %v3371_v16, %v3372_v29  ;;  %v2394_v47 = vrot.slane %v2385_v32, 1 }
 0x233   :  { %1417 = vrot.lane.b32.xlu0 %v1410_v62, %s7613_s5  ;;  %2396 = vrot.lane.b32.xlu1 %v2392_v18, %s7613_s5  ;;  %v3366_v18 = vmul.f32 %v3362_v49, %v7872_v39 }
 0x234   :  { %v1414_v37 = vsel %vm621_vm3, %v1412_v31, %v1413_v45  ;;  %v2395_v16 = vsel %vm621_vm3, %v2393_v35, %v2394_v47  ;;  %v3374_v31 = vrot.slane %v3365_v56, 1 }
 0x235   :  { %v8632_v6 = vpop.permute.xlu0 %3199  ;;  %v8634_v12 = vpop.permute.xlu1 %1239 }
 0x236   :  { %13619 = vst [vmem:[#allocation144_spill] sm:$0xff] %v8632_v6  ;;  %13620 = vst [vmem:[#allocation145_spill] sm:$0xff] %v8634_v12  ;;  %v3375_v6 = vrot.slane %v3366_v18, 1 }
 0x237   :  { %2398 = vrot.lane.b32.xlu0 %v2391_v23, %s7613_s5  ;;  %3377 = vrot.lane.b32.xlu1 %v3373_v57, %s7613_s5  ;;  %v1459_v57 = vstv %s7191_s6  ;;  %s8903_s6 = sld [smem:[#allocation2 + $0x33]] }
 0x238   :  { %v1460_v36 = vmul.f32 %v1459_v57, %v8438_v4  ;;  %v1461_v49 = vmul.f32 %v1459_v57, %v8455_v26 }
 0x239   :  { %v8641_v62 = vpop.permute.xlu0 %1241  ;;  %v8643_v8 = vpop.permute.xlu1 %2220 }
 0x23a   :  { %13621 = vst [vmem:[#allocation146_spill] sm:$0xff] %v8641_v62  ;;  %13622 = vst [vmem:[#allocation147_spill] sm:$0xff] %v8643_v8  ;;  %v1471_v56 = vrot.slane %v1461_v49, 2  ;;  %v3421_v8 = vstv %s7263_s2  ;;  %s8915_s2 = sld [smem:[#allocation2 + $0x5a]] }
 0x23b   :  { %3379 = vrot.lane.b32.xlu0 %v3372_v29, %s7613_s5  ;;  %1419 = vrot.lane.b32.xlu1 %v1414_v37, %s7613_s5  ;;  %v2440_v37 = vstv %s7227_s16  ;;  %v3423_v12 = vmul.f32 %v3421_v8, %v7857_v30  ;;  %s8911_s16 = sld [smem:[#allocation2 + $0xf]] }
 0x23c   :  { %v2441_v35 = vmul.f32 %v2440_v37, %v8088_v38  ;;  %v2442_v18 = vmul.f32 %v2440_v37, %v8105_v54  ;;  %v2443_v49 = vmul.f32 %v2440_v37, %v7919_v21  ;;  %v2444_v43 = vmul.f32 %v2440_v37, %v8124_v7 }
 0x23d   :  { %v8650_v17 = vpop.permute.xlu0 %2222  ;;  %v8652_v23 = vpop.permute.xlu1 %3201 }
 0x23e   :  { %13623 = vst [vmem:[#allocation148_spill] sm:$0xff] %v8650_v17  ;;  %13624 = vst [vmem:[#allocation149_spill] sm:$0xff] %v8652_v23  ;;  %v3376_v23 = vsel %vm621_vm3, %v3374_v31, %v3375_v6  ;;  %v1470_v17 = vrot.slane %v1460_v36, 2  ;;  %v2451_v31 = vrot.slane %v2441_v35, 2  ;;  %v3422_v36 = vmul.f32 %v3421_v8, %v7846_v20 }
 0x23f   :  { %1421 = vrot.lane.b32.xlu0 %v1413_v45, %s7613_s5  ;;  %2400 = vrot.lane.b32.xlu1 %v2395_v16, %s7613_s5  ;;  %v1462_v45 = vmul.f32 %v1459_v57, %v7919_v21 }
 0x240   :  { %v1472_v62 = vsel %vm709_vm4, %v1470_v17, %v1471_v56  ;;  %v3432_v59 = vrot.slane %v3422_v36, 2 }
 0x241   :  { %v8659_v29 = vpop.permute.xlu0 %3203  ;;  %v8661_v32 = vpop.permute.xlu1 %1271 }
 0x242   :  { %13625 = vst [vmem:[#allocation150_spill] sm:$0xff] %v8659_v29  ;;  %13626 = vst [vmem:[#allocation151_spill] sm:$0xff] %v8661_v32 }
 0x243   :  { %2402 = vrot.lane.b32.xlu0 %v2394_v47, %s7613_s5  ;;  %3381 = vrot.lane.b32.xlu1 %v3376_v23, %s7613_s5  ;;  %v1473_v47 = vrot.slane %v1462_v45, 2  ;;  %v2452_v23 = vrot.slane %v2442_v18, 2  ;;  %v3433_v45 = vrot.slane %v3423_v12, 2  ;;  %v1464_v18 = vmul.f32 %v1459_v57, %v8489_v63 }
 0x245   :  { %v8669_v16 = vpop.permute.xlu0 %1273  ;;  %v8671_v29 = vpop.permute.xlu1 %2252  ;;  %v1474_v17 = vsel %vm709_vm4, %v1471_v56, %v1473_v47  ;;  %v2453_v35 = vsel %vm709_vm4, %v2451_v31, %v2452_v23  ;;  %v3434_v31 = vsel %vm709_vm4, %v3432_v59, %v3433_v45  ;;  %v1476_v12 = vrot.slane %v1464_v18, 2 }
 0x246   :  { %13627 = vst [vmem:[#allocation152_spill] sm:$0xff] %v8669_v16  ;;  %13628 = vst [vmem:[#allocation153_spill] sm:$0xff] %v8671_v29  ;;  %v1463_v29 = vmul.f32 %v1459_v57, %v8474_v14  ;;  %v2445_v57 = vmul.f32 %v2440_v37, %v8139_v25  ;;  %v2456_v59 = vrot.slane %v2444_v43, 2  ;;  %v3426_v18 = vmul.f32 %v3421_v8, %v7872_v39 }
 0x247   :  { %3383 = vrot.lane.b32.xlu0 %v3375_v6, %s7613_s5  ;;  %1479 = vrot.lane.b32.xlu1 %v1472_v62, %s7612_s21  ;;  %v3424_v6 = vmul.f32 %v3421_v8, %v7919_v21  ;;  %v2454_v62 = vrot.slane %v2443_v49, 2 }
 0x248   :  { %v1475_v22 = vrot.slane %v1463_v29, 2 }
 0x249   :  { %v8679_v32 = vpop.permute.xlu0 %2254  ;;  %v8681_v16 = vpop.permute.xlu1 %3233  ;;  %v2455_v56 = vsel %vm709_vm4, %v2452_v23, %v2454_v62  ;;  %v3435_v36 = vrot.slane %v3424_v6, 2  ;;  %v2457_v6 = vrot.slane %v2445_v57, 2  ;;  %v3438_v57 = vrot.slane %v3426_v18, 2 }
 0x24a   :  { %13629 = vst [vmem:[#allocation154_spill] sm:$0xff] %v8679_v32  ;;  %13630 = vst [vmem:[#allocation155_spill] sm:$0xff] %v8681_v16  ;;  %v1477_v23 = vsel %vm709_vm4, %v1475_v22, %v1476_v12 }
 0x24b   :  { %1481 = vrot.lane.b32.xlu0 %v1474_v17, %s7612_s21  ;;  %2460 = vrot.lane.b32.xlu1 %v2453_v35, %s7612_s21  ;;  %v3436_v29 = vsel %vm709_vm4, %v3433_v45, %v3435_v36  ;;  %v3425_v35 = vmul.f32 %v3421_v8, %v7863_v34  ;;  %v1478_v45 = vsel %vm709_vm4, %v1476_v12, %v1473_v47 }
 0x24c   :  { %v2458_v22 = vsel %vm709_vm4, %v2456_v59, %v2457_v6 }
 0x24d   :  { %v8690_v32 = vpop.permute.xlu0 %3235  ;;  %v8692_v16 = vpop.permute.xlu1 %1275  ;;  %v3437_v43 = vrot.slane %v3425_v35, 2 }
 0x24e   :  { %13631 = vst [vmem:[#allocation156_spill] sm:$0xff] %v8690_v32  ;;  %13632 = vst [vmem:[#allocation157_spill] sm:$0xff] %v8692_v16 }
 0x24f   :  { %2462 = vrot.lane.b32.xlu0 %v2455_v56, %s7612_s21  ;;  %3441 = vrot.lane.b32.xlu1 %v3434_v31, %s7612_s21  ;;  %v1495_v31 = vstv %s7192_s4  ;;  %v3439_v47 = vsel %vm709_vm4, %v3437_v43, %v3438_v57  ;;  %s9007_s4 = sld [smem:[#allocation2 + $0x29]] }
 0x250   :  { %v1496_v32 = vmul.f32 %v1495_v31, %v8438_v4  ;;  %v1497_v8 = vmul.f32 %v1495_v31, %v8455_v26  ;;  %v1498_v35 = vmul.f32 %v1495_v31, %v7919_v21 }
 0x251   :  { %v8700_v49 = vpop.permute.xlu0 %1277  ;;  %v8702_v17 = vpop.permute.xlu1 %2256 }
 0x252   :  { %13633 = vst [vmem:[#allocation158_spill] sm:$0xff] %v8700_v49  ;;  %13634 = vst [vmem:[#allocation159_spill] sm:$0xff] %v8702_v17  ;;  %v1506_v12 = vrot.slane %v1496_v32, 2  ;;  %v1507_v18 = vrot.slane %v1497_v8, 2  ;;  %v3457_v17 = vstv %s7264_s18  ;;  %s9089_s18 = sld [smem:[#allocation2 + $0x71]] }
 0x253   :  { %3443 = vrot.lane.b32.xlu0 %v3436_v29, %s7612_s21  ;;  %1483 = vrot.lane.b32.xlu1 %v1477_v23, %s7612_s21  ;;  %v3458_v43 = vmul.f32 %v3457_v17, %v7846_v20 }
 0x254   :  { %v1508_v32 = vsel %vm709_vm4, %v1506_v12, %v1507_v18 }
 0x255   :  { %v8710_v37 = vpop.permute.xlu0 %2258  ;;  %v8712_v56 = vpop.permute.xlu1 %3237  ;;  %v3468_v12 = vrot.slane %v3458_v43, 2 }
 0x256   :  { %13635 = vst [vmem:[#allocation160_spill] sm:$0xff] %v8710_v37  ;;  %13636 = vst [vmem:[#allocation161_spill] sm:$0xff] %v8712_v56  ;;  %v2476_v56 = vstv %s7228_s17  ;;  %v2459_v37 = vsel %vm709_vm4, %v2457_v6, %v2454_v62  ;;  %v3440_v62 = vsel %vm709_vm4, %v3438_v57, %v3435_v36  ;;  %s9054_s17 = sld [smem:[#allocation2 + $0x4d]] }
 0x257   :  { %1485 = vrot.lane.b32.xlu0 %v1478_v45, %s7612_s21  ;;  %2464 = vrot.lane.b32.xlu1 %v2458_v22, %s7612_s21  ;;  %v2477_v59 = vmul.f32 %v2476_v56, %v8088_v38  ;;  %v2478_v45 = vmul.f32 %v2476_v56, %v8105_v54  ;;  %v2479_v8 = vmul.f32 %v2476_v56, %v7919_v21 }
 0x258   :  { %v2480_v16 = vmul.f32 %v2476_v56, %v8124_v7 }
 0x259   :  { %v8720_v29 = vpop.permute.xlu0 %3239  ;;  %v8722_v23 = vpop.permute.xlu1 %1305  ;;  %v2487_v6 = vrot.slane %v2477_v59, 2  ;;  %v3460_v59 = vmul.f32 %v3457_v17, %v7919_v21 }
 0x25a   :  { %13637 = vst [vmem:[#allocation162_spill] sm:$0xff] %v8720_v29  ;;  %13638 = vst [vmem:[#allocation163_spill] sm:$0xff] %v8722_v23 }
 0x25b   :  { %2466 = vrot.lane.b32.xlu0 %v2459_v37, %s7612_s21  ;;  %3445 = vrot.lane.b32.xlu1 %v3439_v47, %s7612_s21  ;;  %v1509_v37 = vrot.slane %v1498_v35, 2  ;;  %v2488_v47 = vrot.slane %v2478_v45, 2  ;;  %v2490_v35 = vrot.slane %v2479_v8, 2  ;;  %v3471_v43 = vrot.slane %v3460_v59, 2 }
 0x25c   :  { %v3461_v59 = vmul.f32 %v3457_v17, %v7863_v34 }
 0x25d   :  { %v8731_v22 = vpop.permute.xlu0 %1307  ;;  %v8733_v29 = vpop.permute.xlu1 %2286  ;;  %v1510_v36 = vsel %vm709_vm4, %v1507_v18, %v1509_v37  ;;  %v2489_v57 = vsel %vm709_vm4, %v2487_v6, %v2488_v47  ;;  %v2491_v18 = vsel %vm709_vm4, %v2488_v47, %v2490_v35 }
 0x25e   :  { %13639 = vst [vmem:[#allocation164_spill] sm:$0xff] %v8731_v22  ;;  %13640 = vst [vmem:[#allocation165_spill] sm:$0xff] %v8733_v29  ;;  %v3459_v22 = vmul.f32 %v3457_v17, %v7857_v30 }
 0x25f   :  { %3447 = vrot.lane.b32.xlu0 %v3440_v62, %s7612_s21  ;;  %1515 = vrot.lane.b32.xlu1 %v1508_v32, %s7613_s5  ;;  %v1499_v62 = vmul.f32 %v1495_v31, %v8474_v14  ;;  %v1500_v32 = vmul.f32 %v1495_v31, %v8489_v63 }
 0x260   :  { %v3469_v45 = vrot.slane %v3459_v22, 2  ;;  %v2481_v22 = vmul.f32 %v2476_v56, %v8139_v25 }
 0x261   :  { %v8742_v49 = vpop.permute.xlu0 %2288  ;;  %v8744_v29 = vpop.permute.xlu1 %3267  ;;  %v1511_v23 = vrot.slane %v1499_v62, 2  ;;  %v1512_v8 = vrot.slane %v1500_v32, 2  ;;  %v3462_v32 = vmul.f32 %v3457_v17, %v7872_v39 }
 0x262   :  { %13641 = vst [vmem:[#allocation166_spill] sm:$0xff] %v8742_v49  ;;  %13642 = vst [vmem:[#allocation167_spill] sm:$0xff] %v8744_v29  ;;  %v3470_v6 = vsel %vm709_vm4, %v3468_v12, %v3469_v45  ;;  %v2492_v12 = vrot.slane %v2480_v16, 2  ;;  %v2493_v62 = vrot.slane %v2481_v22, 2  ;;  %v523_v16 = vsel %vm513_vm1, 0.0, %v7998_v46 }
 0x263   :  { %1517 = vrot.lane.b32.xlu0 %v1510_v36, %s7613_s5  ;;  %2496 = vrot.lane.b32.xlu1 %v2489_v57, %s7613_s5  ;;  %v3472_v57 = vsel %vm709_vm4, %v3469_v45, %v3471_v43  ;;  %v1513_v47 = vsel %vm709_vm4, %v1511_v23, %v1512_v8  ;;  %v3473_v23 = vrot.slane %v3461_v59, 2  ;;  %v3474_v22 = vrot.slane %v3462_v32, 2 }
 0x264   :  { %v2494_v45 = vsel %vm709_vm4, %v2492_v12, %v2493_v62  ;;  %v1540_v12 = vstv %s7194_s19  ;;  %v524_v46 = vsel %vm513_vm1, 0.0, %v8008_v58  ;;  %s9186_s19 = sld [smem:[#allocation2 + $0x36]] }
 0x265   :  { %v8753_v49 = vpop.permute.xlu0 %3269  ;;  %v8755_v29 = vpop.permute.xlu1 %1309 }
 0x266   :  { %13643 = vst [vmem:[#allocation168_spill] sm:$0xff] %v8753_v49  ;;  %13644 = vst [vmem:[#allocation169_spill] sm:$0xff] %v8755_v29 }
 0x267   :  { %2498 = vrot.lane.b32.xlu0 %v2491_v18, %s7613_s5  ;;  %3477 = vrot.lane.b32.xlu1 %v3470_v6, %s7613_s5  ;;  %v1514_v6 = vsel %vm709_vm4, %v1512_v8, %v1509_v37  ;;  %v2495_v37 = vsel %vm709_vm4, %v2493_v62, %v2490_v35  ;;  %v3475_v8 = vsel %vm709_vm4, %v3473_v23, %v3474_v22  ;;  %v2521_v35 = vstv %s7230_s20  ;;  %s9198_s20 = sld [smem:[#allocation2 + $0x12]] }
 0x268   :  { %v8805_v62 = vsel %vm535_vm2, %v524_v46, 0.0 }
 0x269   :  { %v8763_v31 = vpop.permute.xlu0 %1311  ;;  %v8765_v36 = vpop.permute.xlu1 %2290  ;;  %v1542_v58 = vmul.f32 %v1540_v12, %v8805_v62 }
 0x26a   :  { %13645 = vst [vmem:[#allocation170_spill] sm:$0xff] %v8763_v31  ;;  %13646 = vst [vmem:[#allocation171_spill] sm:$0xff] %v8765_v36 }
 0x26b   :  { %3479 = vrot.lane.b32.xlu0 %v3472_v57, %s7613_s5  ;;  %1519 = vrot.lane.b32.xlu1 %v1513_v47, %s7613_s5  ;;  %v8788_v47 = vsel %vm535_vm2, %v523_v16, 0.0 }
 0x26d   :  { %v8773_v56 = vpop.permute.xlu0 %2292  ;;  %v8775_v18 = vpop.permute.xlu1 %3271 }
 0x26e   :  { %13647 = vst [vmem:[#allocation172_spill] sm:$0xff] %v8773_v56  ;;  %13648 = vst [vmem:[#allocation173_spill] sm:$0xff] %v8775_v18 }
 0x26f   :  { %1521 = vrot.lane.b32.xlu0 %v1514_v6, %s7613_s5  ;;  %2500 = vrot.lane.b32.xlu1 %v2494_v45, %s7613_s5  ;;  %v1541_v6 = vmul.f32 %v1540_v12, %v8788_v47  ;;  %v3476_v45 = vsel %vm709_vm4, %v3474_v22, %v3471_v43  ;;  %v533_v43 = vsel %vm513_vm1, 0.0, %v8012_v60  ;;  %v534_v60 = vsel %vm513_vm1, 0.0, %v8021_v9 }
 0x271   :  { %v8783_v57 = vpop.permute.xlu0 %3273  ;;  %v8785_v17 = vpop.permute.xlu1 %1330 }
 0x272   :  { %13649 = vst [vmem:[#allocation174_spill] sm:$0xff] %v8783_v57  ;;  %13650 = vst [vmem:[#allocation175_spill] sm:$0xff] %v8785_v17  ;;  %v8824_v57 = vsel %vm535_vm2, %v533_v43, 0.0  ;;  %v8839_v43 = vsel %vm535_vm2, %v534_v60, 0.0 }
 0x273   :  { %2502 = vrot.lane.b32.xlu0 %v2495_v37, %s7613_s5  ;;  %3481 = vrot.lane.b32.xlu1 %v3475_v8, %s7613_s5  ;;  %v2522_v37 = vmul.f32 %v2521_v35, %v8438_v4  ;;  %v3502_v8 = vstv %s7266_s22  ;;  %v1543_v18 = vmul.f32 %v1540_v12, %v8824_v57  ;;  %v1544_v9 = vmul.f32 %v1540_v12, %v8839_v43  ;;  %s9221_s22 = sld [smem:[#allocation2 + $0x15]] }
 0x274   :  { %v3505_v60 = vmul.f32 %v3502_v8, %v8124_v7 }
 0x275   :  { %v8796_v59 = vpop.permute.xlu0 %1332  ;;  %v8798_v32 = vpop.permute.xlu1 %2311 }
 0x276   :  { %13651 = vst [vmem:[#allocation176_spill] sm:$0xff] %v8796_v59  ;;  %13652 = vst [vmem:[#allocation177_spill] sm:$0xff] %v8798_v32 }
 0x277   :  { %3483 = vrot.lane.b32.xlu0 %v3476_v45, %s7613_s5  ;;  %1549 = vrot.lane.b32.xlu1 %v1541_v6, %s7612_s21  ;;  %v2523_v6 = vmul.f32 %v2521_v35, %v8455_v26  ;;  %v3503_v45 = vmul.f32 %v3502_v8, %v8088_v38 }
 0x279   :  { %v8807_v23 = vpop.permute.xlu0 %2313  ;;  %v8809_v16 = vpop.permute.xlu1 %3292 }
 0x27a   :  { %13653 = vst [vmem:[#allocation178_spill] sm:$0xff] %v8807_v23  ;;  %13654 = vst [vmem:[#allocation179_spill] sm:$0xff] %v8809_v16  ;;  %v2524_v16 = vmul.f32 %v2521_v35, %v8474_v14 }
 0x27b   :  { %1551 = vrot.lane.b32.xlu0 %v1542_v58, %s7612_s21  ;;  %2530 = vrot.lane.b32.xlu1 %v2522_v37, %s7612_s21 }
 0x27d   :  { %v8817_v22 = vpop.permute.xlu0 %3294  ;;  %v8819_v46 = vpop.permute.xlu1 %1334 }
 0x27e   :  { %13655 = vst [vmem:[#allocation180_spill] sm:$0xff] %v8817_v22  ;;  %13656 = vst [vmem:[#allocation181_spill] sm:$0xff] %v8819_v46  ;;  %v3504_v22 = vmul.f32 %v3502_v8, %v8105_v54  ;;  %v698_v46 = vstv %s8885_s28  ;;  %s9504_s28 = sld [smem:[#allocation2 + $0x60]] }
 0x27f   :  { %2532 = vrot.lane.b32.xlu0 %v2523_v6, %s7612_s21  ;;  %3511 = vrot.lane.b32.xlu1 %v3503_v45, %s7612_s21  ;;  %v699_v0 = vmul.f32 %v698_v46, %v7822_v3  ;;  %v9010_v42 = vmul.f32 %v698_v46, %v7830_v11  ;;  %v702_v15 = vmul.f32 %v698_v46, %v7819_v2 }
 0x281   :  { %v8830_v58 = vpop.permute.xlu0 %1336  ;;  %v8832_v37 = vpop.permute.xlu1 %2315 }
 0x282   :  { %13657 = vst [vmem:[#allocation182_spill] sm:$0xff] %v8830_v58  ;;  %13658 = vst [vmem:[#allocation183_spill] sm:$0xff] %v8832_v37  ;;  %v3527_v37 = vstv %s7267_s1  ;;  %s9277_s1 = sld [smem:[#allocation2 + $0x2b]] }
 0x283   :  { %3513 = vrot.lane.b32.xlu0 %v3504_v22, %s7612_s21  ;;  %1553 = vrot.lane.b32.xlu1 %v1543_v18, %s7612_s21  ;;  %v2525_v18 = vmul.f32 %v2521_v35, %v8489_v63 }
 0x285   :  { %v8841_v6 = vpop.permute.xlu0 %2317  ;;  %v8843_v45 = vpop.permute.xlu1 %3296 }
 0x286   :  { %13659 = vst [vmem:[#allocation184_spill] sm:$0xff] %v8841_v6  ;;  %13660 = vst [vmem:[#allocation185_spill] sm:$0xff] %v8843_v45  ;;  %v1565_v6 = vstv %s7195_s23  ;;  %s9223_s23 = sld [smem:[#allocation2 + $0x39]] }
 0x287   :  { %1555 = vrot.lane.b32.xlu0 %v1544_v9, %s7612_s21  ;;  %2534 = vrot.lane.b32.xlu1 %v2524_v16, %s7612_s21  ;;  %v3506_v16 = vmul.f32 %v3502_v8, %v8139_v25  ;;  %v1566_v9 = vmul.f32 %v1565_v6, %v8788_v47 }
 0x289   :  { %v8849_v49 = vpop.permute.xlu0 %3298  ;;  %v8851_v22 = vpop.permute.xlu1 %1384 }
 0x28a   :  { %13661 = vst [vmem:[#allocation186_spill] sm:$0xff] %v8849_v49  ;;  %13662 = vst [vmem:[#allocation187_spill] sm:$0xff] %v8851_v22  ;;  %v2546_v49 = vstv %s7231_s24  ;;  %s9249_s24 = sld [smem:[#allocation2 + $0x5d]] }
 0x28b   :  { %2536 = vrot.lane.b32.xlu0 %v2525_v18, %s7612_s21  ;;  %3515 = vrot.lane.b32.xlu1 %v3505_v60, %s7612_s21  ;;  %v1567_v18 = vmul.f32 %v1565_v6, %v8805_v62  ;;  %v2547_v60 = vmul.f32 %v2546_v49, %v8438_v4  ;;  %v2549_v36 = vmul.f32 %v2546_v49, %v8474_v14 }
 0x28d   :  { %v8857_v12 = vpop.permute.xlu0 %1386  ;;  %v8859_v45 = vpop.permute.xlu1 %2365 }
 0x28e   :  { %13663 = vst [vmem:[#allocation188_spill] sm:$0xff] %v8857_v12  ;;  %13664 = vst [vmem:[#allocation189_spill] sm:$0xff] %v8859_v45  ;;  %v1569_v45 = vmul.f32 %v1565_v6, %v8839_v43  ;;  %v3530_v12 = vmul.f32 %v3527_v37, %v8124_v7 }
 0x28f   :  { %3517 = vrot.lane.b32.xlu0 %v3506_v16, %s7612_s21  ;;  %1574 = vrot.lane.b32.xlu1 %v1566_v9, %s7613_s5  ;;  %v2548_v9 = vmul.f32 %v2546_v49, %v8455_v26 }
 0x291   :  { %v8865_v35 = vpop.permute.xlu0 %2367  ;;  %v8867_v56 = vpop.permute.xlu1 %3346 }
 0x292   :  { %13665 = vst [vmem:[#allocation190_spill] sm:$0xff] %v8865_v35  ;;  %13666 = vst [vmem:[#allocation191_spill] sm:$0xff] %v8867_v56  ;;  %v3528_v56 = vmul.f32 %v3527_v37, %v8088_v38  ;;  %v1568_v35 = vmul.f32 %v1565_v6, %v8824_v57  ;;  %v1784_v6 = vstv %s8875_s26  ;;  %s9421_s26 = sld [smem:[#allocation2 + $0x18]] }
 0x293   :  { %1576 = vrot.lane.b32.xlu0 %v1567_v18, %s7613_s5  ;;  %2555 = vrot.lane.b32.xlu1 %v2547_v60, %s7613_s5 }
 0x295   :  { %v8879_v8 = vpop.permute.xlu0 %3348  ;;  %v8881_v16 = vpop.permute.xlu1 %1388 }
 0x296   :  { %13667 = vst [vmem:[#allocation192_spill] sm:$0xff] %v8879_v8  ;;  %13668 = vst [vmem:[#allocation193_spill] sm:$0xff] %v8881_v16  ;;  %v3529_v8 = vmul.f32 %v3527_v37, %v8105_v54  ;;  %v2550_v16 = vmul.f32 %v2546_v49, %v8489_v63 }
 0x297   :  { %2557 = vrot.lane.b32.xlu0 %v2548_v9, %s7613_s5  ;;  %3536 = vrot.lane.b32.xlu1 %v3528_v56, %s7613_s5  ;;  %v1613_v56 = vstv %s7197_s25  ;;  %s9375_s25 = sld [smem:[#allocation2 + $0x73]] }
 0x298   :  { %v1614_v23 = vmul.f32 %v1613_v56, %v8788_v47 }
 0x299   :  { %v8891_v18 = vpop.permute.xlu0 %1390  ;;  %v8893_v60 = vpop.permute.xlu1 %2369 }
 0x29a   :  { %13669 = vst [vmem:[#allocation194_spill] sm:$0xff] %v8891_v18  ;;  %13670 = vst [vmem:[#allocation195_spill] sm:$0xff] %v8893_v60  ;;  %v1622_v58 = vrot.slane %v1614_v23, 1  ;;  %v8948_v23 = vstv %s8897_s14  ;;  %s9776_s14 = sld [smem:[#allocation2 + $0x1b]] }
 0x29b   :  { %3538 = vrot.lane.b32.xlu0 %v3529_v8, %s7613_s5  ;;  %1578 = vrot.lane.b32.xlu1 %v1568_v35, %s7613_s5  ;;  %v1615_v8 = vmul.f32 %v1613_v56, %v8805_v62  ;;  %v8919_v35 = vstv %s7233_s29  ;;  %s9525_s29 = sld [smem:[#allocation2 + $0x2c]] }
 0x29c   :  { %v2595_v22 = vmul.f32 %v8919_v35, %v8438_v4  ;;  %v8936_v31 = vmul.f32 %v8919_v35, %v8455_v26 }
 0x29d   :  { %v8905_v9 = vpop.permute.xlu0 %2371  ;;  %v8907_v60 = vpop.permute.xlu1 %3350 }
 0x29e   :  { %13671 = vst [vmem:[#allocation196_spill] sm:$0xff] %v8905_v9  ;;  %13672 = vst [vmem:[#allocation197_spill] sm:$0xff] %v8907_v60  ;;  %v557_v60 = vstv %s8871_s3  ;;  %v612_v9 = vstv %s8877_s27  ;;  %v2603_v51 = vrot.slane %v2595_v22, 1  ;;  %v2604_v44 = vrot.slane %v8936_v31, 1  ;;  %s9326_s3 = sld [smem:[#allocation2 + $0x4f]] }
 0x29f   :  { %1580 = vrot.lane.b32.xlu0 %v1569_v45, %s7613_s5  ;;  %2559 = vrot.lane.b32.xlu1 %v2549_v36, %s7613_s5  ;;  %v8930_v45 = vstv %s7269_s0  ;;  %v1623_v36 = vrot.slane %v1615_v8, 1  ;;  %v8945_v49 = vmul.f32 %v612_v9, %v7830_v11  ;;  %v8951_v8 = vstv %s8899_s15  ;;  %s9466_s27 = sld [smem:[#allocation2 + $0x3c]] }
 0x2a0   :  { %v615_v59 = vmul.f32 %v612_v9, %v7819_v2  ;;  %v8958_v29 = vmul.f32 %v612_v9, %v7834_v13  ;;  %v3576_v61 = vmul.f32 %v8930_v45, %v8088_v38  ;;  %v8971_v5 = vmul.f32 %v8930_v45, %v8105_v54  ;;  %s9607_s0 = sld [smem:[#allocation2 + $0x74]] }
 0x2a1   :  { %v8924_v32 = vpop.permute.xlu0 %3352  ;;  %v8926_v18 = vpop.permute.xlu1 %1415  ;;  %13675 = vst [vmem:[#allocation200_spill] sm:$0xff] %v8945_v49  ;;  %v1624_v19 = vsel %vm621_vm3, %v1622_v58, %v1623_v36  ;;  %v8974_v50 = vmul.f32 %v557_v60, %v7822_v3  ;;  %v8986_v58 = vmul.f32 %v557_v60, %v7830_v11  ;;  %v8989_v31 = vmul.f32 %v557_v60, %v7819_v2  ;;  %s9788_s15 = sld [smem:[#allocation2 + $0x52]] }
 0x2a2   :  { %13673 = vst [vmem:[#allocation198_spill] sm:$0xff] %v8924_v32  ;;  %13674 = vst [vmem:[#allocation199_spill] sm:$0xff] %v8926_v18  ;;  %v8940_v32 = vstv %s8889_s30  ;;  %v8954_v18 = vstv %s8903_s6  ;;  %v8992_v22 = vmul.f32 %v557_v60, %v7834_v13  ;;  %v2605_v48 = vsel %vm621_vm3, %v2603_v51, %v2604_v44  ;;  %s9567_s30 = sld [smem:[#allocation2 + $0x50]] }
 0x2a3   :  { %2561 = vrot.lane.b32.xlu0 %v2550_v16, %s7613_s5  ;;  %3540 = vrot.lane.b32.xlu1 %v3530_v12, %s7613_s5  ;;  %13676 = vst [vmem:[#allocation201_spill] sm:$0xff] %v8958_v29  ;;  %v3531_v12 = vmul.f32 %v3527_v37, %v8139_v25  ;;  %v8981_v37 = vstv %s8915_s2  ;;  %v3584_v33 = vrot.slane %v3576_v61, 1  ;;  %v3585_v24 = vrot.slane %v8971_v5, 1  ;;  %s9795_s6 = sld [smem:[#allocation2 + $0x3f]] }
 0x2a4   :  { %v9005_v60 = vmul.f32 %v1613_v56, %v8839_v43  ;;  %v9017_v51 = vmul.f32 %v1784_v6, %v7822_v3  ;;  %v9020_v5 = vmul.f32 %v1784_v6, %v7830_v11  ;;  %v9023_v61 = vmul.f32 %v1784_v6, %v7819_v2  ;;  %s9824_s2 = sld [smem:[#allocation2 + $0x76]] }
 0x2a5   :  { %v8960_v17 = vpop.permute.xlu0 %1417  ;;  %v8962_v16 = vpop.permute.xlu1 %2396 }
 0x2a6   :  { %13677 = vst [vmem:[#allocation202_spill] sm:$0xff] %v8960_v17  ;;  %13678 = vst [vmem:[#allocation203_spill] sm:$0xff] %v8962_v16  ;;  %v613_v17 = vmul.f32 %v612_v9, %v7822_v3  ;;  %v8978_v16 = vstv %s8911_s16  ;;  %v625_v9 = vrot.slane %v615_v59, 1  ;;  %s9801_s16 = sld [smem:[#allocation2 + $0x63]] }
 0x2a7   :  { %3542 = vrot.lane.b32.xlu0 %v3531_v12, %s7613_s5  ;;  %1628 = vrot.lane.b32.xlu1 %v1624_v19, %s7612_s21  ;;  %v1616_v19 = vmul.f32 %v1613_v56, %v8824_v57  ;;  %13681 = vst [vmem:[#allocation206_spill] sm:$0xff] %v9017_v51  ;;  %13682 = vst [vmem:[#allocation207_spill] sm:$0xff] %v9020_v5  ;;  %v13685_v56 = vrot.slane %v8945_v49, 1  ;;  %v710_v51 = vrot.slane %v699_v0, 2 }
 0x2a8   :  { %v622_v59 = vrot.slane %v613_v17, 1  ;;  %13683 = vst [vmem:[#allocation208_spill] sm:$0xff] %v9023_v61  ;;  %v9026_v17 = vmul.f32 %v1784_v6, %v7834_v13  ;;  %v3586_v61 = vsel %vm621_vm3, %v3584_v33, %v3585_v24  ;;  %v1626_v6 = vrot.slane %v9005_v60, 1 }
 0x2a9   :  { %v8997_v55 = vpop.permute.xlu0 %2398  ;;  %v8999_v12 = vpop.permute.xlu1 %3377  ;;  %v1625_v53 = vrot.slane %v1616_v19, 1  ;;  %v859_v33 = vmul.f32 %v8951_v8, %v7846_v20  ;;  %v3578_v60 = vmul.f32 %v8930_v45, %v8124_v7 }
 0x2aa   :  { %13679 = vst [vmem:[#allocation204_spill] sm:$0xff] %v8997_v55  ;;  %13680 = vst [vmem:[#allocation205_spill] sm:$0xff] %v8999_v12  ;;  %v703_v12 = vmul.f32 %v698_v46, %v7834_v13  ;;  %v9031_v55 = vsel %vm621_vm3, %v622_v59, %v13685_v56  ;;  %v9048_v59 = vmul.f32 %v8919_v35, %v8489_v63  ;;  %v715_v56 = vrot.slane %v702_v15, 2 }
 0x2ab   :  { %1630 = vrot.lane.b32.xlu0 %v1623_v36, %s7612_s21  ;;  %2609 = vrot.lane.b32.xlu1 %v2605_v48, %s7612_s21  ;;  %13684 = vst [vmem:[#allocation209_spill] sm:$0xff] %v9026_v17  ;;  %v13686_v36 = vrot.slane %v8958_v29, 1  ;;  %v2597_v17 = vmul.f32 %v8919_v35, %v8474_v14  ;;  %v9060_v35 = vmul.f32 %v8951_v8, %v7857_v30  ;;  %v3587_v49 = vrot.slane %v3578_v60, 1 }
 0x2ac   :  { %v716_v0 = vrot.slane %v703_v12, 2  ;;  %v9064_v15 = vmul.f32 %v8940_v32, %v7830_v11  ;;  %v2607_v29 = vrot.slane %v9048_v59, 1 }
 0x2ad   :  { %v9036_v48 = vsel %vm621_vm3, %v625_v9, %v13686_v36  ;;  %v9038_v1 = vpop.permute.xlu0 %3379  ;;  %v9040_v5 = vpop.permute.xlu1 %1419  ;;  %v711_v9 = vrot.slane %v9010_v42, 2  ;;  %v701_v36 = vmul.f32 %v698_v46, %v7919_v21  ;;  %13690 = vst [vmem:[#allocation213_spill] sm:$0xff] %v9060_v35  ;;  %v861_v42 = vmul.f32 %v8951_v8, %v7863_v34 }
 0x2ae   :  { %13687 = vst [vmem:[#allocation210_spill] sm:$0xff] %v9036_v48  ;;  %13688 = vst [vmem:[#allocation211_spill] sm:$0xff] %v9038_v1  ;;  %v9072_v46 = vmul.f32 %v8951_v8, %v7872_v39  ;;  %v1627_v1 = vsel %vm621_vm3, %v1625_v53, %v1626_v6  ;;  %v9087_v48 = vstv %s9007_s4  ;;  %v867_v53 = vrot.slane %v859_v33, 1  ;;  %s9832_s4 = sld [smem:[#allocation2 + $0x1e]] }
 0x2af   :  { %13689 = vst [vmem:[#allocation212_spill] sm:$0xff] %v9040_v5  ;;  %2611 = vrot.lane.b32.xlu0 %v2604_v44, %s7612_s21  ;;  %3590 = vrot.lane.b32.xlu1 %v3586_v61, %s7612_s21  ;;  %13691 = vst [vmem:[#allocation214_spill] sm:$0xff] %v9064_v15  ;;  %v1840_v44 = vmul.f32 %v8940_v32, %v7822_v3  ;;  %v9082_v61 = vmul.f32 %v8930_v45, %v8139_v25  ;;  %v2606_v5 = vrot.slane %v2597_v17, 1 }
 0x2b0   :  { %13692 = vst [vmem:[#allocation215_spill] sm:$0xff] %v9072_v46  ;;  %v9092_v8 = vsel %vm709_vm4, %v710_v51, %v711_v9  ;;  %v9100_v45 = vmul.f32 %v8948_v23, %v7863_v34  ;;  %v13437_v17 = vrot.slane %v9060_v35, 1  ;;  %v870_v51 = vrot.slane %v861_v42, 1 }
 0x2b1   :  { %v9074_v12 = vpop.permute.xlu0 %1421  ;;  %v9076_v19 = vpop.permute.xlu1 %2400  ;;  %13695 = vst [vmem:[#allocation218_spill] sm:$0xff] %v9092_v8  ;;  %v1848_v33 = vrot.slane %v1840_v44, 1  ;;  %v2608_v59 = vsel %vm621_vm3, %v2606_v5, %v2607_v29  ;;  %v9120_v42 = vmul.f32 %v9087_v48, %v8805_v62  ;;  %v9135_v5 = vstv %s9054_s17  ;;  %s9852_s17 = sld [smem:[#allocation2 + $0x42]] }
 0x2b2   :  { %13693 = vst [vmem:[#allocation216_spill] sm:$0xff] %v9074_v12  ;;  %13694 = vst [vmem:[#allocation217_spill] sm:$0xff] %v9076_v19  ;;  %v713_v19 = vrot.slane %v701_v36, 2  ;;  %v9096_v12 = vmul.f32 %v8948_v23, %v7846_v20 }
 0x2b3   :  { %13697 = vst [vmem:[#allocation220_spill] sm:$0xff] %v9100_v45  ;;  %3592 = vrot.lane.b32.xlu0 %v3585_v24, %s7612_s21  ;;  %1632 = vrot.lane.b32.xlu1 %v1627_v1, %s7612_s21  ;;  %v3588_v45 = vrot.slane %v9082_v61, 1  ;;  %v1645_v24 = vmul.f32 %v9087_v48, %v8788_v47  ;;  %v9115_v1 = vsel %vm709_vm4, %v715_v56, %v716_v0  ;;  %v1654_v35 = vrot.slane %v9120_v42, 1 }
 0x2b4   :  { %13696 = vst [vmem:[#allocation219_spill] sm:$0xff] %v9096_v12  ;;  %13700 = vst [vmem:[#allocation223_spill] sm:$0xff] %v9115_v1  ;;  %v9123_v36 = vsel %vm709_vm4, %v711_v9, %v713_v19  ;;  %v9126_v60 = vsel %vm709_vm4, %v716_v0, %v713_v19  ;;  %v9130_v61 = vmul.f32 %v8940_v32, %v7819_v2  ;;  %v13708_v19 = vrot.slane %v9072_v46, 1 }
 0x2b5   :  { %v9107_v8 = vpop.permute.xlu0 %2402  ;;  %v9109_v12 = vpop.permute.xlu1 %3381  ;;  %13701 = vst [vmem:[#allocation224_spill] sm:$0xff] %v9123_v36  ;;  %13702 = vst [vmem:[#allocation225_spill] sm:$0xff] %v9126_v60  ;;  %v9139_v56 = vmul.f32 %v8948_v23, %v7857_v30  ;;  %v9144_v9 = vsel %vm621_vm3, %v867_v53, %v13437_v17  ;;  %v9148_v0 = vmul.f32 %v8948_v23, %v7872_v39 }
 0x2b6   :  { %13698 = vst [vmem:[#allocation221_spill] sm:$0xff] %v9107_v8  ;;  %13699 = vst [vmem:[#allocation222_spill] sm:$0xff] %v9109_v12  ;;  %v9162_v12 = vmul.f32 %v8940_v32, %v7834_v13  ;;  %v3589_v23 = vsel %vm621_vm3, %v3587_v49, %v3588_v45  ;;  %v1653_v8 = vrot.slane %v1645_v24, 1  ;;  %v1851_v32 = vrot.slane %v9130_v61, 1 }
 0x2b7   :  { %1634 = vrot.lane.b32.xlu0 %v1626_v6, %s7612_s21  ;;  %2613 = vrot.lane.b32.xlu1 %v2608_v59, %s7612_s21  ;;  %13703 = vst [vmem:[#allocation226_spill] sm:$0xff] %v9139_v56  ;;  %13704 = vst [vmem:[#allocation227_spill] sm:$0xff] %v9144_v9  ;;  %v13706_v6 = vrot.slane %v9064_v15, 1  ;;  %v9158_v59 = vsel %vm621_vm3, %v870_v51, %v13708_v19  ;;  %v9174_v51 = vmul.f32 %v9135_v5, %v8455_v26 }
 0x2b8   :  { %13705 = vst [vmem:[#allocation228_spill] sm:$0xff] %v9148_v0  ;;  %13709 = vst [vmem:[#allocation230_spill] sm:$0xff] %v9158_v59  ;;  %v944_v19 = vmul.f32 %v8978_v16, %v7846_v20  ;;  %v945_v49 = vmul.f32 %v8978_v16, %v7857_v30  ;;  %v946_v24 = vmul.f32 %v8978_v16, %v7919_v21  ;;  %v13447_v36 = vrot.slane %v9162_v12, 1 }
 0x2b9   :  { %v9153_v44 = vsel %vm621_vm3, %v1848_v33, %v13706_v6  ;;  %v9164_v53 = vpop.permute.xlu0 %3383  ;;  %v9166_v17 = vpop.permute.xlu1 %1479  ;;  %v2626_v33 = vmul.f32 %v9135_v5, %v8438_v4  ;;  %v9177_v6 = vstv %s9089_s18  ;;  %v1926_v42 = vmul.f32 %v8954_v18, %v7830_v11  ;;  %s9892_s18 = sld [smem:[#allocation2 + $0x66]] }
 0x2ba   :  { %13707 = vst [vmem:[#allocation229_spill] sm:$0xff] %v9153_v44  ;;  %13710 = vst [vmem:[#allocation231_spill] sm:$0xff] %v9164_v53  ;;  %v1927_v61 = vmul.f32 %v8954_v18, %v7919_v21  ;;  %v947_v53 = vmul.f32 %v8978_v16, %v7863_v34  ;;  %v1928_v46 = vmul.f32 %v8954_v18, %v7819_v2  ;;  %v2635_v60 = vrot.slane %v9174_v51, 1 }
 0x2bb   :  { %13711 = vst [vmem:[#allocation232_spill] sm:$0xff] %v9166_v17  ;;  %2615 = vrot.lane.b32.xlu0 %v2607_v29, %s7612_s21  ;;  %3594 = vrot.lane.b32.xlu1 %v3589_v23, %s7612_s21  ;;  %v948_v17 = vmul.f32 %v8978_v16, %v7872_v39  ;;  %v1929_v29 = vmul.f32 %v8954_v18, %v7834_v13  ;;  %v2634_v15 = vrot.slane %v2626_v33, 1  ;;  %v955_v1 = vrot.slane %v945_v49, 2 }
 0x2bc   :  { %v3607_v9 = vmul.f32 %v9177_v6, %v8088_v38  ;;  %v9212_v0 = vmul.f32 %v9177_v6, %v8105_v54  ;;  %v1925_v16 = vmul.f32 %v8954_v18, %v7822_v3  ;;  %v1655_v56 = vsel %vm621_vm3, %v1653_v8, %v1654_v35 }
 0x2bd   :  { %v9204_v23 = vpop.permute.xlu0 %1481  ;;  %v9206_v59 = vpop.permute.xlu1 %2460  ;;  %v1936_v44 = vrot.slane %v1926_v42, 2  ;;  %v1938_v26 = vrot.slane %v1927_v61, 2  ;;  %v959_v21 = vrot.slane %v947_v53, 2  ;;  %v960_v4 = vrot.slane %v948_v17, 2 }
 0x2be   :  { %13712 = vst [vmem:[#allocation233_spill] sm:$0xff] %v9204_v23  ;;  %13713 = vst [vmem:[#allocation234_spill] sm:$0xff] %v9206_v59  ;;  %v954_v23 = vrot.slane %v944_v19, 2  ;;  %v957_v59 = vrot.slane %v946_v24, 2  ;;  %v1940_v18 = vrot.slane %v1928_v46, 2  ;;  %v1941_v8 = vrot.slane %v1929_v29, 2 }
 0x2bf   :  { %3596 = vrot.lane.b32.xlu0 %v3588_v45, %s7612_s21  ;;  %1659 = vrot.lane.b32.xlu1 %v1655_v56, %s7613_s5  ;;  %v3615_v19 = vrot.slane %v3607_v9, 1  ;;  %v3616_v45 = vrot.slane %v9212_v0, 1  ;;  %v1935_v56 = vrot.slane %v1925_v16, 2  ;;  %v2636_v49 = vsel %vm621_vm3, %v2634_v15, %v2635_v60 }
 0x2c0   :  { %v1647_v17 = vmul.f32 %v9087_v48, %v8824_v57  ;;  %v9235_v46 = vmul.f32 %v9087_v48, %v8839_v43  ;;  %v9240_v53 = vsel %vm621_vm3, %v1851_v32, %v13447_v36  ;;  %v9243_v9 = vsel %vm709_vm4, %v954_v23, %v955_v1 }
 0x2c1   :  { %v9225_v33 = vpop.permute.xlu0 %2462  ;;  %v9227_v51 = vpop.permute.xlu1 %3441  ;;  %v9246_v0 = vsel %vm709_vm4, %v955_v1, %v957_v59  ;;  %v2024_v24 = vstv %s9186_s19  ;;  %v9254_v48 = vsel %vm709_vm4, %v1935_v56, %v1936_v44  ;;  %v9257_v15 = vsel %vm709_vm4, %v1936_v44, %v1938_v26  ;;  %s9950_s19 = sld [smem:[#allocation2 + $0x53]] }
 0x2c2   :  { %13714 = vst [vmem:[#allocation235_spill] sm:$0xff] %v9225_v33  ;;  %13715 = vst [vmem:[#allocation236_spill] sm:$0xff] %v9227_v51  ;;  %v9260_v32 = vsel %vm709_vm4, %v959_v21, %v960_v4  ;;  %v1043_v42 = vstv %s9198_s20  ;;  %v9264_v1 = vsel %vm709_vm4, %v960_v4, %v957_v59  ;;  %v9267_v61 = vsel %vm709_vm4, %v1940_v18, %v1941_v8  ;;  %s9984_s20 = sld [smem:[#allocation2 + $0x77]] }
 0x2c3   :  { %1661 = vrot.lane.b32.xlu0 %v1654_v35, %s7613_s5  ;;  %2640 = vrot.lane.b32.xlu1 %v2636_v49, %s7613_s5  ;;  %13716 = vst [vmem:[#allocation237_spill] sm:$0xff] %v9257_v15  ;;  %13717 = vst [vmem:[#allocation238_spill] sm:$0xff] %v9260_v32  ;;  %v9270_v35 = vsel %vm709_vm4, %v1941_v8, %v1938_v26  ;;  %v3617_v44 = vsel %vm621_vm3, %v3615_v19, %v3616_v45  ;;  %v1656_v21 = vrot.slane %v1647_v17, 1 }
 0x2c4   :  { %13718 = vst [vmem:[#allocation239_spill] sm:$0xff] %v9264_v1  ;;  %13719 = vst [vmem:[#allocation240_spill] sm:$0xff] %v9267_v61  ;;  %v1657_v4 = vrot.slane %v9235_v46, 1  ;;  %v2628_v59 = vmul.f32 %v9135_v5, %v8474_v14  ;;  %v9284_v26 = vmul.f32 %v9135_v5, %v8489_v63  ;;  %v9287_v16 = vmul.f32 %v1043_v42, %v8088_v38  ;;  %v13804_v1 = vld [vmem:[#allocation44_spill] sm:$0xff] }
 0x2c5   :  { %13720 = vst [vmem:[#allocation241_spill] sm:$0xff] %v9270_v35  ;;  %v9272_v29 = vpop.permute.xlu0 %3443  ;;  %v9274_v23 = vpop.permute.xlu1 %1483  ;;  %v9290_v18 = vmul.f32 %v1043_v42, %v8105_v54  ;;  %v9293_v8 = vmul.f32 %v2024_v24, %v7846_v20  ;;  %v9298_v19 = vmul.f32 %v2024_v24, %v7857_v30  ;;  %v9302_v5 = vmul.f32 %v8981_v37, %v7822_v3 }
 0x2c6   :  { %13721 = vst [vmem:[#allocation242_spill] sm:$0xff] %v9272_v29  ;;  %13722 = vst [vmem:[#allocation243_spill] sm:$0xff] %v9274_v23  ;;  %v9306_v56 = vmul.f32 %v8981_v37, %v7830_v11  ;;  %v9309_v49 = vstv %s9221_s22  ;;  %v9312_v17 = vmul.f32 %v1043_v42, %v8124_v7  ;;  %v9318_v46 = vstv %s9223_s23  ;;  %s10017_s22 = sld [smem:[#allocation2 + $0x21]] }
 0x2c7   :  { %13723 = vst [vmem:[#allocation244_spill] sm:$0xff] %v9287_v16  ;;  %13724 = vst [vmem:[#allocation245_spill] sm:$0xff] %v9290_v18  ;;  %2642 = vrot.lane.b32.xlu0 %v2635_v60, %s7613_s5  ;;  %3621 = vrot.lane.b32.xlu1 %v3617_v44, %s7613_s5  ;;  %v9315_v60 = vmul.f32 %v1043_v42, %v8139_v25  ;;  %v3609_v29 = vmul.f32 %v9177_v6, %v8124_v7  ;;  %v2637_v33 = vrot.slane %v2628_v59, 1  ;;  %s10029_s23 = sld [smem:[#allocation2 + $0x55]] }
 0x2c8   :  { %13725 = vst [vmem:[#allocation246_spill] sm:$0xff] %v9293_v8  ;;  %13726 = vst [vmem:[#allocation247_spill] sm:$0xff] %v9298_v19  ;;  %v1658_v51 = vsel %vm621_vm3, %v1656_v21, %v1657_v4  ;;  %v2638_v23 = vrot.slane %v9284_v26, 1  ;;  %v9332_v42 = vmul.f32 %v9177_v6, %v8139_v25  ;;  %v9348_v6 = vmul.f32 %v2024_v24, %v7863_v34 }
 0x2c9   :  { %13727 = vst [vmem:[#allocation248_spill] sm:$0xff] %v9302_v5  ;;  %13728 = vst [vmem:[#allocation249_spill] sm:$0xff] %v9306_v56  ;;  %v9320_v44 = vpop.permute.xlu0 %1485  ;;  %v9322_v36 = vpop.permute.xlu1 %2464  ;;  %v9340_v56 = vmul.f32 %v9309_v49, %v8105_v54  ;;  %v9343_v5 = vstv %s9249_s24  ;;  %v9351_v21 = vmul.f32 %v2024_v24, %v7872_v39  ;;  %v9500_v18 = vstv %s9421_s26  ;;  %s10041_s24 = sld [smem:[#allocation2 + $0x45]] }
 0x2ca   :  { %13729 = vst [vmem:[#allocation250_spill] sm:$0xff] %v9312_v17  ;;  %13730 = vst [vmem:[#allocation251_spill] sm:$0xff] %v9315_v60  ;;  %v3618_v60 = vrot.slane %v3609_v29, 1  ;;  %s10215_s26 = sld [smem:[#allocation2 + $0x7a]] }
 0x2cb   :  { %13731 = vst [vmem:[#allocation252_spill] sm:$0xff] %v9320_v44  ;;  %13732 = vst [vmem:[#allocation253_spill] sm:$0xff] %v9322_v36  ;;  %v583_v44 = vadd.f32 %v8023_v10, %v8974_v50  ;;  %v1103_v36 = vmul.f32 %v9309_v49, %v8088_v38  ;;  %3623 = vrot.lane.b32.xlu0 %v3616_v45, %s7613_s5  ;;  %1663 = vrot.lane.b32.xlu1 %v1658_v51, %s7613_s5 }
 0x2cc   :  { %13733 = vst [vmem:[#allocation254_spill] sm:$0xff] %v9340_v56  ;;  %13734 = vst [vmem:[#allocation255_spill] sm:$0xff] %v9348_v6  ;;  %v2084_v10 = vmul.f32 %v9318_v46, %v7846_v20  ;;  %v9357_v50 = vmul.f32 %v9318_v46, %v7857_v30  ;;  %v9362_v45 = vmul.f32 %v8981_v37, %v7819_v2 }
 0x2cd   :  { %13735 = vst [vmem:[#allocation256_spill] sm:$0xff] %v9351_v21  ;;  %v608_v59 = vadd.f32 %v8043_v41, %v583_v44  ;;  %v9366_v51 = vmul.f32 %v8981_v37, %v7834_v13  ;;  %v9368_v26 = vpop.permute.xlu0 %2466  ;;  %v9370_v24 = vpop.permute.xlu1 %3445  ;;  %v9373_v21 = vstv %s9277_s1  ;;  %v2639_v6 = vsel %vm621_vm3, %v2637_v33, %v2638_v23  ;;  %s10057_s1 = sld [smem:[#allocation2 + $0x79]] }
 0x2ce   :  { %13736 = vst [vmem:[#allocation257_spill] sm:$0xff] %v9357_v50  ;;  %13737 = vst [vmem:[#allocation258_spill] sm:$0xff] %v9362_v45  ;;  %v3619_v41 = vrot.slane %v9332_v42, 1  ;;  %v1704_v44 = vmul.f32 %v9373_v21, %v8788_v47  ;;  %v584_v37 = vadd.f32 %v8031_v27, %v8986_v58  ;;  %v586_v33 = vadd.f32 %v8041_v40, %v8992_v22 }
 0x2cf   :  { %13738 = vst [vmem:[#allocation259_spill] sm:$0xff] %v9366_v51  ;;  %13739 = vst [vmem:[#allocation260_spill] sm:$0xff] %v9368_v26  ;;  %v585_v26 = vadd.f32 %v8033_v28, %v8989_v31  ;;  %v13448_v51 = vrot.slane %v9340_v56, 1  ;;  %1665 = vrot.lane.b32.xlu0 %v1657_v4, %s7613_s5  ;;  %2644 = vrot.lane.b32.xlu1 %v2639_v6, %s7613_s5  ;;  %v2092_v29 = vrot.slane %v2084_v10, 1  ;;  %v9407_v40 = vstv %s9326_s3  ;;  %s10071_s3 = sld [smem:[#allocation2 + $0x69]] }
 0x2d0   :  { %13740 = vst [vmem:[#allocation261_spill] sm:$0xff] %v9370_v24  ;;  %v1111_v24 = vrot.slane %v1103_v36, 1  ;;  %v1705_v45 = vmul.f32 %v9373_v21, %v8805_v62  ;;  %v9394_v27 = vadd.f32 %v9031_v55, %v608_v59  ;;  %v3065_v28 = vmul.f32 %v9343_v5, %v7822_v3  ;;  %v13744_v55 = vld [vmem:[#allocation101_spill] sm:$0xff]  ;;  %v13745_v59 = vld [vmem:[#allocation20_spill] sm:$0xff] }
 0x2d1   :  { %v9400_v58 = vmul.f32 %v9343_v5, %v7830_v11  ;;  %v9402_v31 = vpop.permute.xlu0 %3447  ;;  %v9404_v36 = vpop.permute.xlu1 %1515  ;;  %v609_v22 = vadd.f32 %v8052_v52, %v584_v37  ;;  %v3620_v4 = vsel %vm621_vm3, %v3618_v60, %v3619_v41  ;;  %v1714_v6 = vrot.slane %v1704_v44, 2  ;;  %v13749_v44 = vld [vmem:[#allocation19_spill] sm:$0xff] }
 0x2d2   :  { %13742 = vst [vmem:[#allocation263_spill] sm:$0xff] %v9402_v31  ;;  %13743 = vst [vmem:[#allocation264_spill] sm:$0xff] %v9404_v36  ;;  %v2685_v10 = vmul.f32 %v9407_v40, %v13744_v55  ;;  %v610_v42 = vadd.f32 %v13745_v59, %v585_v26  ;;  %v9417_v17 = vsel %vm621_vm3, %v1111_v24, %v13448_v51  ;;  %v13747_v52 = vrot.slane %v9357_v50, 1  ;;  %v13750_v24 = vld [vmem:[#allocation104_spill] sm:$0xff]  ;;  %v13756_v36 = vld [vmem:[#allocation210_spill] sm:$0xff] }
 0x2d3   :  { %13741 = vst [vmem:[#allocation262_spill] sm:$0xff] %v9400_v58  ;;  %13746 = vst [vmem:[#allocation20_spill] sm:$0xff] %v9417_v17  ;;  %v1105_v31 = vmul.f32 %v9309_v49, %v8124_v7  ;;  %2646 = vrot.lane.b32.xlu0 %v2638_v23, %s7613_s5  ;;  %3625 = vrot.lane.b32.xlu1 %v3620_v4, %s7613_s5  ;;  %v1715_v26 = vrot.slane %v1705_v45, 2  ;;  %v9432_v37 = vmul.f32 %v9373_v21, %v13749_v44  ;;  %v13754_v45 = vld [vmem:[#allocation200_spill] sm:$0xff] }
 0x2d4   :  { %v9428_v60 = vsel %vm621_vm3, %v2092_v29, %v13747_v52  ;;  %v2686_v59 = vmul.f32 %v9407_v40, %v13750_v24  ;;  %v3073_v51 = vrot.slane %v3065_v28, 1  ;;  %v9439_v23 = vmul.f32 %v9309_v49, %v8139_v25 }
 0x2d5   :  { %13748 = vst [vmem:[#allocation265_spill] sm:$0xff] %v9428_v60  ;;  %v9441_v4 = vpop.permute.xlu0 %1517  ;;  %v9443_v50 = vpop.permute.xlu1 %2496  ;;  %v9446_v29 = vstv %s9375_s25  ;;  %v13755_v52 = vrot.slane %v13754_v45, 1  ;;  %v1716_v56 = vsel %vm709_vm4, %v1714_v6, %v1715_v26  ;;  %v2695_v17 = vrot.slane %v2685_v10, 2  ;;  %s10167_s25 = sld [smem:[#allocation2 + $0x56]] }
 0x2d6   :  { %13751 = vst [vmem:[#allocation19_spill] sm:$0xff] %v9439_v23  ;;  %13752 = vst [vmem:[#allocation266_spill] sm:$0xff] %v9441_v4  ;;  %v3666_v28 = vmul.f32 %v9446_v29, %v8088_v38  ;;  %v9456_v19 = vadd.f32 %v13756_v36, %v610_v42  ;;  %v1114_v49 = vrot.slane %v1105_v31, 1  ;;  %v2086_v4 = vmul.f32 %v9318_v46, %v7863_v34 }
 0x2d7   :  { %13753 = vst [vmem:[#allocation267_spill] sm:$0xff] %v9443_v50  ;;  %v9450_v60 = vadd.f32 %v13755_v52, %v609_v22  ;;  %v9462_v50 = vmul.f32 %v9318_v46, %v7872_v39  ;;  %3627 = vrot.lane.b32.xlu0 %v3619_v41, %s7613_s5  ;;  %1723 = vrot.lane.b32.xlu1 %v1716_v56, %s7612_s21  ;;  %v13452_v22 = vrot.slane %v9432_v37, 2  ;;  %v2696_v6 = vrot.slane %v2686_v59, 2 }
 0x2d8   :  { %v9471_v42 = vmul.f32 %v9407_v40, %v13749_v44  ;;  %v3667_v31 = vmul.f32 %v9446_v29, %v8105_v54  ;;  %v13758_v46 = vrot.slane %v9400_v58, 1  ;;  %v3067_v41 = vmul.f32 %v9343_v5, %v7819_v2  ;;  %v13763_v58 = vld [vmem:[#allocation21_spill] sm:$0xff] }
 0x2d9   :  { %13757 = vst [vmem:[#allocation200_spill] sm:$0xff] %v9462_v50  ;;  %v9485_v10 = vmul.f32 %v9343_v5, %v7834_v13  ;;  %v9487_v59 = vpop.permute.xlu0 %2498  ;;  %v9489_v45 = vpop.permute.xlu1 %3477  ;;  %v1718_v52 = vsel %vm709_vm4, %v1715_v26, %v13452_v22  ;;  %v1707_v56 = vmul.f32 %v9373_v21, %v8824_v57  ;;  %v2095_v8 = vrot.slane %v2086_v4, 1 }
 0x2da   :  { %v9478_v36 = vsel %vm621_vm3, %v3073_v51, %v13758_v46  ;;  %13761 = vst [vmem:[#allocation269_spill] sm:$0xff] %v9487_v59  ;;  %13762 = vst [vmem:[#allocation270_spill] sm:$0xff] %v9489_v45  ;;  %v2697_v51 = vsel %vm709_vm4, %v2695_v17, %v2696_v6  ;;  %v3676_v46 = vrot.slane %v3666_v28, 2  ;;  %v13454_v26 = vrot.slane %v9471_v42, 2 }
 0x2db   :  { %13759 = vst [vmem:[#allocation210_spill] sm:$0xff] %v9478_v36  ;;  %13760 = vst [vmem:[#allocation268_spill] sm:$0xff] %v9485_v10  ;;  %v611_v36 = vadd.f32 %v13763_v58, %v586_v33  ;;  %1725 = vrot.lane.b32.xlu0 %v1718_v52, %s7612_s21  ;;  %2704 = vrot.lane.b32.xlu1 %v2697_v51, %s7612_s21  ;;  %v3677_v17 = vrot.slane %v3667_v31, 2  ;;  %v9509_v28 = vmul.f32 %v9446_v29, %v13749_v44  ;;  %v13768_v51 = vld [vmem:[#allocation201_spill] sm:$0xff] }
 0x2dc   :  { %v1708_v33 = vmul.f32 %v9373_v21, %v8839_v43  ;;  %v13764_v58 = vrot.slane %v9439_v23, 1  ;;  %v3076_v52 = vrot.slane %v3067_v41, 1  ;;  %v1188_v22 = vmul.f32 %v9500_v18, %v8088_v38 }
 0x2dd   :  { %v9521_v31 = vpop.permute.xlu0 %3479  ;;  %v9523_v5 = vpop.permute.xlu1 %1519  ;;  %v2699_v21 = vsel %vm709_vm4, %v2696_v6, %v13454_v26  ;;  %v2688_v41 = vmul.f32 %v9407_v40, %v8474_v14  ;;  %v13769_v45 = vrot.slane %v13768_v51, 1  ;;  %v1189_v23 = vmul.f32 %v9500_v18, %v8105_v54  ;;  %v13773_v51 = vld [vmem:[#allocation24_spill] sm:$0xff] }
 0x2de   :  { %v9516_v4 = vsel %vm621_vm3, %v1114_v49, %v13764_v58  ;;  %13766 = vst [vmem:[#allocation271_spill] sm:$0xff] %v9521_v31  ;;  %13767 = vst [vmem:[#allocation272_spill] sm:$0xff] %v9523_v5  ;;  %v3678_v49 = vsel %vm709_vm4, %v3676_v46, %v3677_v17  ;;  %v1719_v58 = vrot.slane %v1707_v56, 2  ;;  %v13770_v31 = vrot.slane %v9462_v50, 1 }
 0x2df   :  { %13765 = vst [vmem:[#allocation21_spill] sm:$0xff] %v9516_v4  ;;  %v9535_v59 = vadd.f32 %v13769_v45, %v611_v36  ;;  %2706 = vrot.lane.b32.xlu0 %v2699_v21, %s7612_s21  ;;  %3685 = vrot.lane.b32.xlu1 %v3678_v49, %s7612_s21  ;;  %v9547_v6 = vstv %s9466_s27  ;;  %v13457_v56 = vrot.slane %v9509_v28, 2  ;;  %v1720_v46 = vrot.slane %v1708_v33, 2  ;;  %v13772_v45 = vld [vmem:[#allocation206_spill] sm:$0xff]  ;;  %s10280_s27 = sld [smem:[#allocation2 + $0x48]] }
 0x2e0   :  { %v9540_v5 = vsel %vm621_vm3, %v2095_v8, %v13770_v31  ;;  %v2689_v36 = vmul.f32 %v9407_v40, %v8489_v63  ;;  %v1810_v26 = vadd.f32 %v13773_v51, %v13772_v45  ;;  %v13774_v8 = vrot.slane %v9485_v10, 1 }
 0x2e1   :  { %13771 = vst [vmem:[#allocation201_spill] sm:$0xff] %v9540_v5  ;;  %v1198_v50 = vrot.slane %v1188_v22, 2  ;;  %v9561_v21 = vmul.f32 %v9500_v18, %v13749_v44  ;;  %v9563_v49 = vpop.permute.xlu0 %1521  ;;  %v9565_v33 = vpop.permute.xlu1 %2500  ;;  %v3680_v40 = vsel %vm709_vm4, %v3677_v17, %v13457_v56  ;;  %v1721_v45 = vsel %vm709_vm4, %v1719_v58, %v1720_v46  ;;  %v13778_v17 = vld [vmem:[#allocation207_spill] sm:$0xff]  ;;  %v13779_v58 = vld [vmem:[#allocation25_spill] sm:$0xff] }
 0x2e2   :  { %v9557_v31 = vsel %vm621_vm3, %v3076_v52, %v13774_v8  ;;  %13776 = vst [vmem:[#allocation24_spill] sm:$0xff] %v9563_v49  ;;  %13777 = vst [vmem:[#allocation273_spill] sm:$0xff] %v9565_v33  ;;  %v2700_v52 = vrot.slane %v2688_v41, 2  ;;  %v3669_v22 = vmul.f32 %v9446_v29, %v8124_v7  ;;  %v1199_v51 = vrot.slane %v1189_v23, 2  ;;  %v13781_v5 = vld [vmem:[#allocation29_spill] sm:$0xff] }
 0x2e3   :  { %13775 = vst [vmem:[#allocation206_spill] sm:$0xff] %v9557_v31  ;;  %v2169_v8 = vmul.f32 %v9547_v6, %v7846_v20  ;;  %v2170_v33 = vmul.f32 %v9547_v6, %v7857_v30  ;;  %v9581_v10 = vmul.f32 %v9547_v6, %v13749_v44  ;;  %3687 = vrot.lane.b32.xlu0 %v3680_v40, %s7612_s21  ;;  %v9588_v56 = vstv %s9504_s28  ;;  %v13780_v31 = vld [vmem:[#allocation208_spill] sm:$0xff]  ;;  %s10292_s28 = sld [smem:[#allocation2 + $0x24]] }
 0x2e4   :  { %1727 = vrot.lane.b32.xlu1 %v1721_v45, %s7612_s21  ;;  %v1811_v41 = vadd.f32 %v13779_v58, %v13778_v17  ;;  %v2701_v23 = vrot.slane %v2689_v36, 2  ;;  %v3670_v49 = vmul.f32 %v9446_v29, %v8139_v25  ;;  %v9594_v4 = vadd.f32 %v13781_v5, %v13780_v31 }
 0x2e5   :  { %v9597_v16 = vsel %vm709_vm4, %v1198_v50, %v1199_v51  ;;  %v9600_v35 = vpop.permute.xlu0 %2502  ;;  %v9602_v45 = vpop.permute.xlu1 %3481  ;;  %v9605_v17 = vstv %s9525_s29  ;;  %v13785_v36 = vrot.slane %v9432_v37, 2  ;;  %v3681_v31 = vrot.slane %v3669_v22, 2  ;;  %v13786_v37 = vld [vmem:[#allocation209_spill] sm:$0xff]  ;;  %s10297_s29 = sld [smem:[#allocation2 + $0x6c]] }
 0x2e6   :  { %13782 = vst [vmem:[#allocation207_spill] sm:$0xff] %v9597_v16  ;;  %13783 = vst [vmem:[#allocation25_spill] sm:$0xff] %v9600_v35  ;;  %v2702_v5 = vsel %vm709_vm4, %v2700_v52, %v2701_v23  ;;  %v1740_v50 = vmul.f32 %v9605_v17, %v8788_v47  ;;  %v2179_v58 = vrot.slane %v2169_v8, 2  ;;  %v2180_v40 = vrot.slane %v2170_v33, 2  ;;  %v13788_v52 = vld [vmem:[#allocation34_spill] sm:$0xff] }
 0x2e7   :  { %13784 = vst [vmem:[#allocation208_spill] sm:$0xff] %v9602_v45  ;;  %v1722_v29 = vsel %vm709_vm4, %v1720_v46, %v13785_v36  ;;  %v3150_v45 = vmul.f32 %v9588_v56, %v7822_v3  ;;  %v13787_v46 = vld [vmem:[#allocation31_spill] sm:$0xff]  ;;  %v1835_v22 = vadd.f32 %v13788_v52, %v1810_v26  ;;  %v3682_v16 = vrot.slane %v3670_v49, 2 }
 0x2e8   :  { %1729 = vrot.lane.b32.xlu0 %v1722_v29, %s7612_s21  ;;  %2708 = vrot.lane.b32.xlu1 %v2702_v5, %s7612_s21  ;;  %v9622_v36 = vadd.f32 %v13787_v46, %v13786_v37  ;;  %v1741_v8 = vmul.f32 %v9605_v17, %v8805_v62  ;;  %v13789_v33 = vrot.slane %v9561_v21, 2  ;;  %v3151_v3 = vmul.f32 %v9588_v56, %v7830_v11 }
 0x2e9   :  { %v9636_v29 = vmul.f32 %v9500_v18, %v8124_v7  ;;  %v9638_v5 = vpop.permute.xlu0 %3483  ;;  %v9640_v37 = vpop.permute.xlu1 %1549  ;;  %v9643_v26 = vstv %s9567_s30  ;;  %v13793_v49 = vrot.slane %v9471_v42, 2  ;;  %v1750_v52 = vrot.slane %v1740_v50, 2  ;;  %s10335_s30 = sld [smem:[#allocation2 + $0x58]] }
 0x2ea   :  { %v9630_v35 = vsel %vm709_vm4, %v1199_v51, %v13789_v33  ;;  %13791 = vst [vmem:[#allocation209_spill] sm:$0xff] %v9638_v5  ;;  %13792 = vst [vmem:[#allocation31_spill] sm:$0xff] %v9640_v37  ;;  %v3683_v51 = vsel %vm709_vm4, %v3681_v31, %v3682_v16  ;;  %v2721_v11 = vmul.f32 %v9643_v26, %v13744_v55  ;;  %v13795_v5 = vrot.slane %v9581_v10, 2 }
 0x2eb   :  { %13790 = vst [vmem:[#allocation29_spill] sm:$0xff] %v9630_v35  ;;  %v2703_v46 = vsel %vm709_vm4, %v2701_v23, %v13793_v49  ;;  %v9652_v33 = vsel %vm709_vm4, %v2179_v58, %v2180_v40  ;;  %v3160_v35 = vrot.slane %v3150_v45, 2  ;;  %v9661_v42 = vmul.f32 %v9588_v56, %v13749_v44  ;;  %v13797_v23 = vld [vmem:[#allocation229_spill] sm:$0xff]  ;;  %v13798_v45 = vld [vmem:[#allocation40_spill] sm:$0xff] }
 0x2ec   :  { %13794 = vst [vmem:[#allocation34_spill] sm:$0xff] %v9652_v33  ;;  %v9657_v37 = vsel %vm709_vm4, %v2180_v40, %v13795_v5  ;;  %2710 = vrot.lane.b32.xlu0 %v2703_v46, %s7612_s21  ;;  %3689 = vrot.lane.b32.xlu1 %v3683_v51, %s7612_s21  ;;  %v9666_v31 = vadd.f32 %v13797_v23, %v1835_v22  ;;  %v1751_v50 = vrot.slane %v1741_v8, 2  ;;  %v3161_v49 = vrot.slane %v3151_v3, 2  ;;  %v13802_v3 = vld [vmem:[#allocation35_spill] sm:$0xff] }
 0x2ed   :  { %13796 = vst [vmem:[#allocation274_spill] sm:$0xff] %v9657_v37  ;;  %v9670_v58 = vmul.f32 %v9605_v17, %v13749_v44  ;;  %v2722_v40 = vmul.f32 %v9643_v26, %v13750_v24  ;;  %v663_v5 = vadd.f32 %v13798_v45, %v9394_v27  ;;  %v9678_v46 = vmul.f32 %v9500_v18, %v8139_v25  ;;  %v9680_v51 = vpop.permute.xlu0 %1551  ;;  %v9682_v22 = vpop.permute.xlu1 %2530  ;;  %v13803_v18 = vld [vmem:[#allocation42_spill] sm:$0xff] }
 0x2ee   :  { %13799 = vst [vmem:[#allocation229_spill] sm:$0xff] %v9680_v51  ;;  %13800 = vst [vmem:[#allocation40_spill] sm:$0xff] %v9682_v22  ;;  %v9685_v8 = vstv %s9607_s0  ;;  %v13801_v23 = vrot.slane %v9509_v28, 2  ;;  %v1752_v33 = vsel %vm709_vm4, %v1750_v52, %v1751_v50  ;;  %v2731_v61 = vrot.slane %v2721_v11, 2  ;;  %s10366_s0 = sld [smem:[#allocation2 + $0x7c]] }
 0x2ef   :  { %v3702_v27 = vmul.f32 %v9685_v8, %v8088_v38  ;;  %v9694_v45 = vadd.f32 %v13802_v3, %v1811_v41  ;;  %v665_v51 = vadd.f32 %v13803_v18, %v9456_v19  ;;  %v694_v22 = vadd.f32 %v13804_v1, %v663_v5  ;;  %v13805_v19 = vld [vmem:[#allocation41_spill] sm:$0xff]  ;;  %v13806_v1 = vld [vmem:[#allocation43_spill] sm:$0xff] }
 0x2f0   :  { %v3684_v37 = vsel %vm709_vm4, %v3682_v16, %v13801_v23  ;;  %1759 = vrot.lane.b32.xlu1 %v1752_v33, %s7613_s5  ;;  %v13458_v16 = vrot.slane %v9670_v58, 2  ;;  %v2732_v28 = vrot.slane %v2722_v40, 2  ;;  %v9705_v52 = vmul.f32 %v9643_v26, %v13749_v44  ;;  %v13807_v23 = vld [vmem:[#allocation46_spill] sm:$0xff] }
 0x2f1   :  { %3691 = vrot.lane.b32.xlu0 %v3684_v37, %s7612_s21  ;;  %v3703_v41 = vmul.f32 %v9685_v8, %v8105_v54  ;;  %v664_v11 = vadd.f32 %v13805_v19, %v9450_v60  ;;  %v666_v5 = vadd.f32 %v13806_v1, %v9535_v59  ;;  %v696_v37 = vadd.f32 %v13807_v23, %v665_v51  ;;  %v9717_v3 = vpop.permute.xlu0 %2532  ;;  %v9719_v40 = vpop.permute.xlu1 %3511  ;;  %v13811_v59 = vld [vmem:[#allocation45_spill] sm:$0xff]  ;;  %v13812_v51 = vld [vmem:[#allocation47_spill] sm:$0xff] }
 0x2f2   :  { %v9715_v33 = vsel %vm709_vm4, %v3160_v35, %v3161_v49  ;;  %13809 = vst [vmem:[#allocation42_spill] sm:$0xff] %v9717_v3  ;;  %13810 = vst [vmem:[#allocation44_spill] sm:$0xff] %v9719_v40  ;;  %v1754_v18 = vsel %vm709_vm4, %v1751_v50, %v13458_v16  ;;  %v2733_v32 = vsel %vm709_vm4, %v2731_v61, %v2732_v28  ;;  %v3712_v15 = vrot.slane %v3702_v27, 2  ;;  %v13813_v35 = vld [vmem:[#allocation218_spill] sm:$0xff]  ;;  %v13814_v27 = vld [vmem:[#allocation48_spill] sm:$0xff] }
 0x2f3   :  { %13808 = vst [vmem:[#allocation35_spill] sm:$0xff] %v9715_v33  ;;  %v1743_v60 = vmul.f32 %v9605_v17, %v8824_v57  ;;  %v695_v19 = vadd.f32 %v13811_v59, %v664_v11  ;;  %v697_v1 = vadd.f32 %v13812_v51, %v666_v5  ;;  %v723_v23 = vadd.f32 %v13813_v35, %v694_v22  ;;  %v13815_v59 = vld [vmem:[#allocation223_spill] sm:$0xff]  ;;  %v13822_v16 = vld [vmem:[#allocation225_spill] sm:$0xff] }
 0x2f4   :  { %2740 = vrot.lane.b32.xlu1 %v2733_v32, %s7613_s5  ;;  %v13459_v40 = vrot.slane %v9705_v52, 2  ;;  %v3713_v3 = vrot.slane %v3703_v41, 2  ;;  %v9735_v61 = vmul.f32 %v9685_v8, %v13749_v44  ;;  %v1744_v50 = vmul.f32 %v9605_v17, %v8839_v43 }
 0x2f5   :  { %1761 = vrot.lane.b32.xlu0 %v1754_v18, %s7613_s5  ;;  %v759_v11 = vadd.f32 %v13814_v27, %v723_v23  ;;  %v725_v5 = vadd.f32 %v13815_v59, %v696_v37  ;;  %v13816_v22 = vrot.slane %v9661_v42, 2  ;;  %v9748_v32 = vmul.f32 %v9547_v6, %v7863_v34  ;;  %v9750_v41 = vpop.permute.xlu0 %3513  ;;  %v9752_v51 = vpop.permute.xlu1 %1553  ;;  %v13821_v59 = vld [vmem:[#allocation52_spill] sm:$0xff] }
 0x2f6   :  { %13818 = vst [vmem:[#allocation43_spill] sm:$0xff] %v9750_v41  ;;  %13819 = vst [vmem:[#allocation46_spill] sm:$0xff] %v9752_v51  ;;  %v2735_v17 = vsel %vm709_vm4, %v2732_v28, %v13459_v40  ;;  %v3714_v35 = vsel %vm709_vm4, %v3712_v15, %v3713_v3  ;;  %v1755_v37 = vrot.slane %v1743_v60, 2  ;;  %v2724_v23 = vmul.f32 %v9643_v26, %v8474_v14 }
 0x2f7   :  { %v9744_v18 = vsel %vm709_vm4, %v3161_v49, %v13816_v22  ;;  %v13820_v49 = vld [vmem:[#allocation224_spill] sm:$0xff]  ;;  %v795_v22 = vadd.f32 %v13821_v59, %v759_v11  ;;  %v1203_v41 = vrot.slane %v9636_v29, 2  ;;  %v2173_v28 = vmul.f32 %v9547_v6, %v7872_v39  ;;  %v13824_v11 = vld [vmem:[#allocation51_spill] sm:$0xff] }
 0x2f8   :  { %13817 = vst [vmem:[#allocation41_spill] sm:$0xff] %v9744_v18  ;;  %v724_v27 = vadd.f32 %v13820_v49, %v695_v19  ;;  %v726_v18 = vadd.f32 %v13822_v16, %v697_v1  ;;  %3721 = vrot.lane.b32.xlu1 %v3714_v35, %s7613_s5  ;;  %v13460_v15 = vrot.slane %v9735_v61, 2  ;;  %v1756_v60 = vrot.slane %v1744_v50, 2  ;;  %v13823_v19 = vld [vmem:[#allocation50_spill] sm:$0xff]  ;;  %v13825_v16 = vld [vmem:[#allocation53_spill] sm:$0xff] }
 0x2f9   :  { %2742 = vrot.lane.b32.xlu0 %v2735_v17, %s7613_s5  ;;  %v2725_v40 = vmul.f32 %v9643_v26, %v8489_v63  ;;  %v761_v49 = vadd.f32 %v13823_v19, %v725_v5  ;;  %v3153_v29 = vmul.f32 %v9588_v56, %v7819_v2  ;;  %v9778_v17 = vpop.permute.xlu0 %1555  ;;  %v9780_v6 = vpop.permute.xlu1 %2534  ;;  %v2736_v5 = vrot.slane %v2724_v23, 2  ;;  %v13831_v23 = vld [vmem:[#allocation57_spill] sm:$0xff] }
 0x2fa   :  { %v760_v59 = vadd.f32 %v13824_v11, %v724_v27  ;;  %v762_v1 = vadd.f32 %v13825_v16, %v726_v18  ;;  %13826 = vst [vmem:[#allocation45_spill] sm:$0xff] %v9778_v17  ;;  %13827 = vst [vmem:[#allocation47_spill] sm:$0xff] %v9780_v6  ;;  %v3716_v50 = vsel %vm709_vm4, %v3713_v3, %v13460_v15  ;;  %v13828_v18 = vld [vmem:[#allocation219_spill] sm:$0xff]  ;;  %v1204_v11 = vrot.slane %v9678_v46, 2  ;;  %v13830_v3 = vld [vmem:[#allocation54_spill] sm:$0xff] }
 0x2fb   :  { %v1757_v26 = vsel %vm709_vm4, %v1755_v37, %v1756_v60  ;;  %v3705_v35 = vmul.f32 %v9685_v8, %v8124_v7  ;;  %v804_v2 = vadd.f32 %v13828_v18, %v795_v22  ;;  %v13829_v27 = vld [vmem:[#allocation55_spill] sm:$0xff]  ;;  %v3154_v16 = vmul.f32 %v9588_v56, %v7834_v13  ;;  %v13832_v46 = vld [vmem:[#allocation38_spill] sm:$0xff] }
 0x2fc   :  { %v796_v19 = vadd.f32 %v13829_v27, %v760_v59  ;;  %1763 = vrot.lane.b32.xlu1 %v1757_v26, %s7613_s5  ;;  %v797_v37 = vadd.f32 %v13830_v3, %v761_v49  ;;  %v798_v15 = vadd.f32 %v13831_v23, %v762_v1  ;;  %v2737_v22 = vrot.slane %v2725_v40, 2  ;;  %v13833_v13 = vld [vmem:[#allocation214_spill] sm:$0xff] }
 0x2fd   :  { %3723 = vrot.lane.b32.xlu0 %v3716_v50, %s7613_s5  ;;  %v3706_v59 = vmul.f32 %v9685_v8, %v8139_v25  ;;  %v1837_v18 = vadd.f32 %v13832_v46, %v9594_v4  ;;  %v13834_v56 = vrot.slane %v13833_v13, 1  ;;  %v2184_v50 = vrot.slane %v9748_v32, 2  ;;  %v9813_v49 = vpop.permute.xlu0 %2536  ;;  %v9815_v1 = vpop.permute.xlu1 %3515  ;;  %v13902_v17 = vld [vmem:[#allocation66_spill] sm:$0xff] }
 0x2fe   :  { %v2185_v26 = vrot.slane %v2173_v28, 2  ;;  %13835 = vst [vmem:[#allocation218_spill] sm:$0xff] %v9813_v49  ;;  %13836 = vst [vmem:[#allocation48_spill] sm:$0xff] %v9815_v1  ;;  %v9818_v40 = vsel %vm709_vm4, %v1203_v41, %v1204_v11  ;;  %v13837_v8 = vrot.slane %v9670_v58, 2  ;;  %v2738_v4 = vsel %vm709_vm4, %v2736_v5, %v2737_v22  ;;  %v13840_v58 = vld [vmem:[#allocation22_spill] sm:$0xff]  ;;  %v13841_v5 = vld [vmem:[#allocation220_spill] sm:$0xff] }
 0x2ff   :  { %v9810_v27 = vadd.f32 %v13834_v56, %v9694_v45  ;;  %v3717_v23 = vrot.slane %v3705_v35, 2  ;;  %v13838_v45 = vld [vmem:[#allocation226_spill] sm:$0xff]  ;;  %v13839_v32 = vrot.slane %v9561_v21, 2  ;;  %v3165_v13 = vrot.slane %v3153_v29, 2 }
 0x300   :  { %v1758_v3 = vsel %vm709_vm4, %v1756_v60, %v13837_v8  ;;  %v805_v46 = vadd.f32 %v13838_v45, %v796_v19  ;;  %v3166_v41 = vrot.slane %v3154_v16, 2  ;;  %2744 = vrot.lane.b32.xlu1 %v2738_v4, %s7613_s5  ;;  %v829_v60 = vadd.f32 %v13840_v58, %v804_v2  ;;  %v13842_v19 = vld [vmem:[#allocation228_spill] sm:$0xff] }
 0x301   :  { %v9830_v28 = vsel %vm709_vm4, %v1204_v11, %v13839_v32  ;;  %1765 = vrot.lane.b32.xlu0 %v1758_v3, %s7613_s5  ;;  %v806_v35 = vadd.f32 %v13841_v5, %v797_v37  ;;  %v807_v56 = vadd.f32 %v13842_v19, %v798_v15  ;;  %v3718_v21 = vrot.slane %v3706_v59, 2  ;;  %v13843_v11 = vld [vmem:[#allocation39_spill] sm:$0xff]  ;;  %v9854_v15 = vpop.permute.xlu0 %3517  ;;  %v9856_v2 = vpop.permute.xlu1 %1574  ;;  %v13856_v19 = vld [vmem:[#allocation28_spill] sm:$0xff] }
 0x302   :  { %v1838_v29 = vadd.f32 %v13843_v11, %v9622_v36  ;;  %v9842_v16 = vadd.f32 %v9240_v53, %v1837_v18  ;;  %v9845_v8 = vsel %vm709_vm4, %v2184_v50, %v2185_v26  ;;  %v13845_v3 = vrot.slane %v9581_v10, 2  ;;  %13847 = vst [vmem:[#allocation52_spill] sm:$0xff] %v9854_v15  ;;  %13848 = vst [vmem:[#allocation225_spill] sm:$0xff] %v9856_v2  ;;  %v13850_v10 = vld [vmem:[#allocation23_spill] sm:$0xff] }
 0x303   :  { %13844 = vst [vmem:[#allocation223_spill] sm:$0xff] %v9845_v8  ;;  %v1287_v37 = vstv %s9776_s14  ;;  %v13849_v36 = vrot.slane %v9705_v52, 2  ;;  %v3719_v59 = vsel %vm709_vm4, %v3717_v23, %v3718_v21  ;;  %v9864_v18 = vstv %s9788_s15  ;;  %v13854_v52 = vld [vmem:[#allocation26_spill] sm:$0xff]  ;;  %v13855_v23 = vld [vmem:[#allocation32_spill] sm:$0xff]  ;;  %s10381_s14 = sld [smem:[#allocation2 + $0x27]] }
 0x304   :  { %v9850_v4 = vsel %vm709_vm4, %v2185_v26, %v13845_v3  ;;  %v830_v50 = vadd.f32 %v13850_v10, %v805_v46  ;;  %v9868_v26 = vsel %vm709_vm4, %v3165_v13, %v3166_v41  ;;  %v13852_v45 = vrot.slane %v9661_v42, 2  ;;  %3725 = vrot.lane.b32.xlu1 %v3719_v59, %s7613_s5  ;;  %v13862_v10 = vld [vmem:[#allocation33_spill] sm:$0xff]  ;;  %s10398_s15 = sld [smem:[#allocation2 + $0x4b]] }
 0x305   :  { %13846 = vst [vmem:[#allocation224_spill] sm:$0xff] %v9850_v4  ;;  %v2739_v53 = vsel %vm709_vm4, %v2737_v22, %v13849_v36  ;;  %13851 = vst [vmem:[#allocation50_spill] sm:$0xff] %v9868_v26  ;;  %v2268_v58 = vstv %s9795_s6  ;;  %v831_v22 = vadd.f32 %v13854_v52, %v806_v35  ;;  %v854_v5 = vadd.f32 %v13855_v23, %v829_v60  ;;  %v9894_v36 = vpop.permute.xlu0 %1576  ;;  %v9896_v35 = vpop.permute.xlu1 %2555  ;;  %v13879_v26 = vld [vmem:[#allocation215_spill] sm:$0xff]  ;;  %s10446_s6 = sld [smem:[#allocation2 + $0x6f]] }
 0x306   :  { %v9873_v32 = vsel %vm709_vm4, %v3166_v41, %v13852_v45  ;;  %2746 = vrot.lane.b32.xlu0 %v2739_v53, %s7613_s5  ;;  %v832_v46 = vadd.f32 %v13856_v19, %v807_v56  ;;  %v3249_v13 = vstv %s9801_s16  ;;  %v13857_v11 = vrot.slane %v9162_v12, 1  ;;  %13858 = vst [vmem:[#allocation53_spill] sm:$0xff] %v9894_v36  ;;  %13859 = vst [vmem:[#allocation219_spill] sm:$0xff] %v9896_v35  ;;  %s10495_s16 = sld [smem:[#allocation2 + $0x59]] }
 0x307   :  { %13853 = vst [vmem:[#allocation51_spill] sm:$0xff] %v9873_v32  ;;  %v9887_v41 = vmul.f32 %v1287_v37, %v13744_v55  ;;  %v9890_v3 = vmul.f32 %v1287_v37, %v13750_v24  ;;  %v2766_v60 = vmul.f32 %v9864_v18, %v8788_v47  ;;  %v9901_v12 = vmul.f32 %v2268_v58, %v8088_v38  ;;  %v13878_v32 = vld [vmem:[#allocation230_spill] sm:$0xff] }
 0x308   :  { %v9884_v42 = vadd.f32 %v13857_v11, %v1838_v29  ;;  %v9904_v56 = vmul.f32 %v1287_v37, %v8474_v14  ;;  %v13861_v29 = vrot.slane %v9735_v61, 2  ;;  %v9910_v59 = vstv %s9824_s2  ;;  %v13865_v11 = vld [vmem:[#allocation227_spill] sm:$0xff]  ;;  %v13866_v61 = vld [vmem:[#allocation36_spill] sm:$0xff]  ;;  %s10534_s2 = sld [smem:[#allocation2 + $0x7d]] }
 0x309   :  { %13860 = vst [vmem:[#allocation55_spill] sm:$0xff] %v9901_v12  ;;  %v855_v45 = vadd.f32 %v13862_v10, %v830_v50  ;;  %v9914_v52 = vmul.f32 %v2268_v58, %v8105_v54  ;;  %v9917_v23 = vmul.f32 %v3249_v13, %v7846_v20  ;;  %v1346_v19 = vstv %s9832_s4  ;;  %2774 = vrot.lane.b32.xlu1 %v2766_v60, %s7612_s21  ;;  %v9932_v6 = vpop.permute.xlu0 %2557  ;;  %s10634_s4 = sld [smem:[#allocation2 + $0x2a]] }
 0x30a   :  { %v3720_v53 = vsel %vm709_vm4, %v3718_v21, %v13861_v29  ;;  %v877_v15 = vadd.f32 %v13865_v11, %v854_v5  ;;  %v856_v1 = vadd.f32 %v13866_v61, %v831_v22  ;;  %v13867_v21 = vld [vmem:[#allocation37_spill] sm:$0xff]  ;;  %v9926_v49 = vmul.f32 %v3249_v13, %v7857_v30  ;;  %13869 = vst [vmem:[#allocation214_spill] sm:$0xff] %v9932_v6 }
 0x30b   :  { %13863 = vst [vmem:[#allocation54_spill] sm:$0xff] %v9914_v52  ;;  %13864 = vst [vmem:[#allocation57_spill] sm:$0xff] %v9917_v23  ;;  %3727 = vrot.lane.b32.xlu0 %v3720_v53, %s7613_s5  ;;  %v857_v29 = vadd.f32 %v13867_v21, %v832_v46  ;;  %v9929_v50 = vmul.f32 %v1287_v37, %v8489_v63  ;;  %v2327_v10 = vstv %s9852_s17  ;;  %v9934_v23 = vpop.permute.xlu1 %3536  ;;  %v13873_v11 = vld [vmem:[#allocation213_spill] sm:$0xff]  ;;  %v13880_v33 = vrot.slane %v13879_v26, 1  ;;  %s10643_s17 = sld [smem:[#allocation2 + $0x7f]] }
 0x30c   :  { %13868 = vst [vmem:[#allocation38_spill] sm:$0xff] %v9926_v49  ;;  %13870 = vst [vmem:[#allocation226_spill] sm:$0xff] %v9934_v23  ;;  %v2767_v60 = vmul.f32 %v9864_v18, %v8805_v62  ;;  %v3747_v5 = vmul.f32 %v9910_v59, %v13744_v55  ;;  %v9941_v22 = vmul.f32 %v2268_v58, %v8124_v7  ;;  %v13874_v61 = vrot.slane %v13873_v11, 1  ;;  %v13888_v52 = vld [vmem:[#allocation49_spill] sm:$0xff] }
 0x30d   :  { %v9944_v46 = vmul.f32 %v2268_v58, %v8139_v25  ;;  %v1347_v37 = vmul.f32 %v1346_v19, %v13744_v55  ;;  %v9948_v53 = vmul.f32 %v1346_v19, %v13750_v24  ;;  %v9955_v23 = vmul.f32 %v3249_v13, %v7863_v34  ;;  %v13877_v58 = vld [vmem:[#allocation56_spill] sm:$0xff] }
 0x30e   :  { %13871 = vst [vmem:[#allocation22_spill] sm:$0xff] %v9941_v22  ;;  %v878_v21 = vadd.f32 %v13874_v61, %v855_v45  ;;  %v9958_v49 = vmul.f32 %v3249_v13, %v7872_v39  ;;  %3755 = vrot.lane.b32.xlu1 %v3747_v5, %s7612_s21  ;;  %v908_v6 = vadd.f32 %v13877_v58, %v877_v15  ;;  %v3308_v61 = vstv %s9892_s18  ;;  %v13886_v58 = vld [vmem:[#allocation60_spill] sm:$0xff]  ;;  %s10697_s18 = sld [smem:[#allocation2 + $0x80]] }
 0x30f   :  { %13872 = vst [vmem:[#allocation220_spill] sm:$0xff] %v9944_v46  ;;  %13875 = vst [vmem:[#allocation228_spill] sm:$0xff] %v9955_v23  ;;  %2776 = vrot.lane.b32.xlu0 %v2767_v60, %s7612_s21  ;;  %v879_v35 = vadd.f32 %v13878_v32, %v856_v1  ;;  %v880_v46 = vadd.f32 %v13880_v33, %v857_v29  ;;  %v2328_v11 = vmul.f32 %v2327_v10, %v8088_v38  ;;  %v9971_v23 = vpop.permute.xlu0 %3538  ;;  %v9973_v13 = vpop.permute.xlu1 %1578  ;;  %v13884_v1 = vld [vmem:[#allocation58_spill] sm:$0xff]  ;;  %v13885_v33 = vld [vmem:[#allocation59_spill] sm:$0xff] }
 0x310   :  { %13876 = vst [vmem:[#allocation39_spill] sm:$0xff] %v9958_v49  ;;  %v9968_v45 = vmul.f32 %v2327_v10, %v8105_v54  ;;  %13882 = vst [vmem:[#allocation26_spill] sm:$0xff] %v9971_v23  ;;  %v3748_v60 = vmul.f32 %v9910_v59, %v13750_v24  ;;  %v2768_v15 = vmul.f32 %v9864_v18, %v8824_v57  ;;  %v1355_v29 = vrot.slane %v1347_v37, 1  ;;  %v13887_v49 = vld [vmem:[#allocation62_spill] sm:$0xff] }
 0x311   :  { %13883 = vst [vmem:[#allocation32_spill] sm:$0xff] %v9973_v13  ;;  %v1889_v26 = vadd.f32 %v13884_v1, %v9666_v31  ;;  %v1890_v32 = vadd.f32 %v13885_v33, %v9810_v27  ;;  %v13461_v5 = vrot.slane %v9948_v53, 1  ;;  %v910_v23 = vadd.f32 %v13886_v58, %v879_v35  ;;  %v13889_v31 = vld [vmem:[#allocation61_spill] sm:$0xff]  ;;  %v13894_v35 = vld [vmem:[#allocation64_spill] sm:$0xff] }
 0x312   :  { %13881 = vst [vmem:[#allocation23_spill] sm:$0xff] %v9968_v45  ;;  %v1891_v22 = vadd.f32 %v13887_v49, %v9842_v16  ;;  %v909_v12 = vadd.f32 %v13888_v52, %v878_v21  ;;  %2778 = vrot.lane.b32.xlu1 %v2768_v15, %s7612_s21  ;;  %v911_v1 = vadd.f32 %v13889_v31, %v880_v46  ;;  %v2336_v27 = vrot.slane %v2328_v11, 1  ;;  %v13893_v21 = vld [vmem:[#allocation63_spill] sm:$0xff] }
 0x313   :  { %3757 = vrot.lane.b32.xlu0 %v3748_v60, %s7612_s21  ;;  %v3309_v37 = vmul.f32 %v3308_v61, %v7846_v20  ;;  %v9995_v33 = vmul.f32 %v3308_v61, %v7857_v30  ;;  %v1349_v58 = vmul.f32 %v1346_v19, %v8474_v14  ;;  %v9999_v49 = vpop.permute.xlu0 %1580  ;;  %v10001_v16 = vpop.permute.xlu1 %2559  ;;  %v2769_v52 = vmul.f32 %v9864_v18, %v8839_v43 }
 0x314   :  { %13891 = vst [vmem:[#allocation33_spill] sm:$0xff] %v9999_v49  ;;  %13892 = vst [vmem:[#allocation227_spill] sm:$0xff] %v10001_v16  ;;  %v3749_v46 = vmul.f32 %v9910_v59, %v8474_v14  ;;  %v1892_v11 = vadd.f32 %v13893_v21, %v9884_v42  ;;  %v10012_v60 = vsel %vm621_vm3, %v1355_v29, %v13461_v5  ;;  %v10020_v31 = vstv %s9950_s19  ;;  %s10721_s19 = sld [smem:[#allocation2 + $0x82]] }
 0x315   :  { %13890 = vst [vmem:[#allocation28_spill] sm:$0xff] %v9995_v33  ;;  %v10015_v15 = vmul.f32 %v1346_v19, %v8489_v63  ;;  %v939_v18 = vadd.f32 %v13894_v35, %v908_v6  ;;  %v2330_v16 = vmul.f32 %v2327_v10, %v8124_v7  ;;  %v10025_v49 = vmul.f32 %v2327_v10, %v8139_v25 }
 0x316   :  { %3759 = vrot.lane.b32.xlu1 %v3749_v46, %s7612_s21  ;;  %v3317_v42 = vrot.slane %v3309_v37, 1  ;;  %v3311_v29 = vmul.f32 %v3308_v61, %v7863_v34  ;;  %v10034_v21 = vmul.f32 %v3308_v61, %v7872_v39  ;;  %v13897_v6 = vrot.slane %v9968_v45, 1  ;;  %v13901_v61 = vld [vmem:[#allocation65_spill] sm:$0xff] }
 0x317   :  { %13895 = vst [vmem:[#allocation36_spill] sm:$0xff] %v10025_v49  ;;  %2780 = vrot.lane.b32.xlu0 %v2769_v52, %s7612_s21  ;;  %v1358_v35 = vrot.slane %v1349_v58, 1  ;;  %v10043_v52 = vpop.permute.xlu0 %2561  ;;  %v10045_v46 = vpop.permute.xlu1 %3540  ;;  %v3750_v37 = vmul.f32 %v9910_v59, %v8489_v63  ;;  %v2791_v5 = vmul.f32 %v10020_v31, %v8788_v47  ;;  %v940_v19 = vadd.f32 %v13901_v61, %v909_v12  ;;  %v13903_v58 = vld [vmem:[#allocation67_spill] sm:$0xff]  ;;  %v13904_v12 = vld [vmem:[#allocation68_spill] sm:$0xff] }
 0x318   :  { %13896 = vst [vmem:[#allocation37_spill] sm:$0xff] %v10034_v21  ;;  %v10039_v10 = vsel %vm621_vm3, %v2336_v27, %v13897_v6  ;;  %13899 = vst [vmem:[#allocation56_spill] sm:$0xff] %v10043_v52  ;;  %v1920_v45 = vadd.f32 %v13902_v17, %v1889_v26  ;;  %v10055_v6 = vstv %s9984_s20  ;;  %v1921_v52 = vadd.f32 %v13903_v58, %v1890_v32  ;;  %s10785_s20 = sld [smem:[#allocation2 + $0x83]] }
 0x319   :  { %13898 = vst [vmem:[#allocation213_spill] sm:$0xff] %v10039_v10  ;;  %13900 = vst [vmem:[#allocation230_spill] sm:$0xff] %v10045_v46  ;;  %v967_v46 = vadd.f32 %v9243_v9, %v939_v18  ;;  %v2339_v10 = vrot.slane %v2330_v16, 1  ;;  %v13463_v59 = vrot.slane %v10025_v49, 1  ;;  %v941_v17 = vadd.f32 %v13904_v12, %v910_v23  ;;  %v13907_v9 = vld [vmem:[#allocation69_spill] sm:$0xff]  ;;  %v13908_v18 = vld [vmem:[#allocation70_spill] sm:$0xff] }
 0x31a   :  { %2799 = vrot.lane.b32.xlu1 %v2791_v5, %s7613_s5  ;;  %v13905_v26 = vrot.slane %v9995_v33, 1  ;;  %v3320_v27 = vrot.slane %v3311_v29, 1  ;;  %v942_v16 = vadd.f32 %v13907_v9, %v911_v1  ;;  %v2792_v23 = vmul.f32 %v10020_v31, %v8805_v62  ;;  %v13912_v9 = vld [vmem:[#allocation237_spill] sm:$0xff]  ;;  %v13919_v33 = vld [vmem:[#allocation240_spill] sm:$0xff] }
 0x31b   :  { %3761 = vrot.lane.b32.xlu0 %v3750_v37, %s7612_s21  ;;  %v1922_v37 = vadd.f32 %v13908_v18, %v1891_v22  ;;  %v10075_v58 = vpop.permute.xlu0 %3542  ;;  %v10077_v5 = vpop.permute.xlu1 %1628  ;;  %v968_v29 = vadd.f32 %v9246_v0, %v940_v19  ;;  %v1948_v12 = vadd.f32 %v9254_v48, %v1920_v45  ;;  %v10091_v22 = vstv %s10017_s22  ;;  %v13914_v45 = vld [vmem:[#allocation71_spill] sm:$0xff]  ;;  %s10825_s22 = sld [smem:[#allocation2 + $0x85]] }
 0x31c   :  { %v10068_v61 = vsel %vm621_vm3, %v3317_v42, %v13905_v26  ;;  %13909 = vst [vmem:[#allocation58_spill] sm:$0xff] %v10075_v58  ;;  %13910 = vst [vmem:[#allocation59_spill] sm:$0xff] %v10077_v5  ;;  %v3772_v42 = vmul.f32 %v10055_v6, %v13744_v55  ;;  %v13911_v26 = vrot.slane %v10015_v15, 1  ;;  %v1949_v18 = vadd.f32 %v13912_v9, %v1921_v52  ;;  %v13927_v5 = vld [vmem:[#allocation74_spill] sm:$0xff] }
 0x31d   :  { %13906 = vst [vmem:[#allocation215_spill] sm:$0xff] %v10068_v61  ;;  %v10097_v32 = vsel %vm621_vm3, %v2339_v10, %v13463_v59  ;;  %v1432_v0 = vmul.f32 %v10091_v22, %v13744_v55  ;;  %v2838_v48 = vstv %s10029_s23  ;;  %v1923_v19 = vadd.f32 %v13914_v45, %v1892_v11  ;;  %v13918_v59 = vld [vmem:[#allocation239_spill] sm:$0xff]  ;;  %s10871_s23 = sld [smem:[#allocation2 + $0x86]] }
 0x31e   :  { %v10088_v1 = vsel %vm621_vm3, %v1358_v35, %v13911_v26  ;;  %13913 = vst [vmem:[#allocation60_spill] sm:$0xff] %v10097_v32  ;;  %3780 = vrot.lane.b32.xlu1 %v3772_v42, %s7613_s5  ;;  %v13915_v35 = vld [vmem:[#allocation238_spill] sm:$0xff]  ;;  %v13916_v52 = vrot.slane %v10034_v21, 1  ;;  %v1433_v10 = vmul.f32 %v10091_v22, %v13750_v24  ;;  %v970_v58 = vadd.f32 %v13918_v59, %v942_v16  ;;  %v13922_v16 = vld [vmem:[#allocation72_spill] sm:$0xff] }
 0x31f   :  { %2801 = vrot.lane.b32.xlu0 %v2792_v23, %s7613_s5  ;;  %v969_v26 = vadd.f32 %v13915_v35, %v941_v17  ;;  %v10115_v23 = vadd.f32 %v13919_v33, %v1922_v37  ;;  %v10117_v61 = vpop.permute.xlu0 %1630  ;;  %v10119_v42 = vpop.permute.xlu1 %2609  ;;  %v3773_v11 = vmul.f32 %v10055_v6, %v13750_v24  ;;  %v10126_v17 = vstv %s10041_s24  ;;  %s10955_s24 = sld [smem:[#allocation5]] }
 0x320   :  { %v10109_v9 = vsel %vm621_vm3, %v3320_v27, %v13916_v52  ;;  %13920 = vst [vmem:[#allocation49_spill] sm:$0xff] %v10117_v61  ;;  %13921 = vst [vmem:[#allocation61_spill] sm:$0xff] %v10119_v42  ;;  %v2793_v27 = vmul.f32 %v10020_v31, %v8824_v57  ;;  %v2839_v45 = vmul.f32 %v2838_v48, %v8788_v47  ;;  %v3819_v33 = vstv %s10057_s1  ;;  %s10962_s1 = sld [smem:[#allocation2 + $0x4e]] }
 0x321   :  { %13917 = vst [vmem:[#allocation62_spill] sm:$0xff] %v10109_v9  ;;  %v10130_v59 = vmul.f32 %v2838_v48, %v8805_v62  ;;  %v1003_v37 = vadd.f32 %v13922_v16, %v967_v46  ;;  %v1442_v35 = vrot.slane %v1432_v0, 2  ;;  %v10136_v52 = vmul.f32 %v10091_v22, %v13749_v44  ;;  %v13923_v9 = vld [vmem:[#allocation241_spill] sm:$0xff] }
 0x322   :  { %v2413_v21 = vmul.f32 %v10126_v17, %v8088_v38  ;;  %2803 = vrot.lane.b32.xlu1 %v2793_v27, %s7613_s5  ;;  %v1951_v42 = vadd.f32 %v13923_v9, %v1923_v19  ;;  %v1443_v49 = vrot.slane %v1433_v10, 2  ;;  %v2414_v32 = vmul.f32 %v10126_v17, %v8105_v54  ;;  %v13926_v9 = vld [vmem:[#allocation73_spill] sm:$0xff] }
 0x323   :  { %3782 = vrot.lane.b32.xlu0 %v3773_v11, %s7613_s5  ;;  %v10146_v61 = vstv %s10071_s3  ;;  %v10148_v46 = vpop.permute.xlu0 %2611  ;;  %v10150_v0 = vpop.permute.xlu1 %3590  ;;  %v2794_v16 = vmul.f32 %v10020_v31, %v8839_v43  ;;  %v3774_v11 = vmul.f32 %v10055_v6, %v8474_v14  ;;  %v3820_v27 = vmul.f32 %v3819_v33, %v13744_v55  ;;  %s11044_s3 = sld [smem:[#allocation2 + $0x72]] }
 0x324   :  { %13924 = vst [vmem:[#allocation63_spill] sm:$0xff] %v10148_v46  ;;  %13925 = vst [vmem:[#allocation64_spill] sm:$0xff] %v10150_v0  ;;  %v10158_v19 = vmul.f32 %v3819_v33, %v13750_v24  ;;  %v10161_v10 = vadd.f32 %v13926_v9, %v968_v29  ;;  %v10164_v13 = vadd.f32 %v13927_v5, %v1948_v12  ;;  %v2847_v46 = vrot.slane %v2839_v45, 1  ;;  %v13928_v5 = vld [vmem:[#allocation75_spill] sm:$0xff] }
 0x325   :  { %v2848_v0 = vrot.slane %v10130_v59, 1  ;;  %v10170_v31 = vsel %vm709_vm4, %v1442_v35, %v1443_v49  ;;  %v2423_v51 = vrot.slane %v2413_v21, 2  ;;  %v3394_v2 = vmul.f32 %v10146_v61, %v7846_v20 }
 0x326   :  { %3784 = vrot.lane.b32.xlu1 %v3774_v11, %s7613_s5  ;;  %v10178_v29 = vadd.f32 %v13928_v5, %v1949_v18  ;;  %v2424_v12 = vrot.slane %v2414_v32, 2  ;;  %v10182_v45 = vmul.f32 %v10126_v17, %v13749_v44  ;;  %v3395_v59 = vmul.f32 %v10146_v61, %v7857_v30  ;;  %v13931_v11 = vld [vmem:[#allocation76_spill] sm:$0xff] }
 0x327   :  { %2805 = vrot.lane.b32.xlu0 %v2794_v16, %s7613_s5  ;;  %v10188_v21 = vmul.f32 %v10146_v61, %v13749_v44  ;;  %v10190_v20 = vpop.permute.xlu0 %3592  ;;  %v10192_v35 = vpop.permute.xlu1 %1632  ;;  %v3775_v18 = vmul.f32 %v10055_v6, %v8489_v63  ;;  %v3828_v16 = vrot.slane %v3820_v27, 1  ;;  %v3829_v32 = vrot.slane %v10158_v19, 1 }
 0x328   :  { %13929 = vst [vmem:[#allocation65_spill] sm:$0xff] %v10190_v20  ;;  %13930 = vst [vmem:[#allocation66_spill] sm:$0xff] %v10192_v35  ;;  %v1005_v9 = vadd.f32 %v13931_v11, %v969_v26  ;;  %v2849_v5 = vsel %vm621_vm3, %v2847_v46, %v2848_v0  ;;  %v2841_v30 = vmul.f32 %v2838_v48, %v8824_v57  ;;  %v13932_v4 = vrot.slane %v10136_v52, 2 }
 0x329   :  { %v10201_v36 = vmul.f32 %v2838_v48, %v8839_v43  ;;  %v10209_v35 = vsel %vm709_vm4, %v2423_v51, %v2424_v12  ;;  %v3404_v6 = vrot.slane %v3394_v2, 2  ;;  %v1435_v27 = vmul.f32 %v10091_v22, %v8474_v14  ;;  %v13934_v48 = vld [vmem:[#allocation77_spill] sm:$0xff] }
 0x32a   :  { %v10206_v20 = vsel %vm709_vm4, %v1443_v49, %v13932_v4  ;;  %13933 = vst [vmem:[#allocation67_spill] sm:$0xff] %v10209_v35  ;;  %2853 = vrot.lane.b32.xlu1 %v2849_v5, %s7612_s21  ;;  %v1006_v26 = vadd.f32 %v13934_v48, %v970_v58  ;;  %v13467_v46 = vrot.slane %v10182_v45, 2  ;;  %v3405_v4 = vrot.slane %v3395_v59, 2  ;;  %v13935_v49 = vld [vmem:[#allocation80_spill] sm:$0xff] }
 0x32b   :  { %3786 = vrot.lane.b32.xlu0 %v3775_v18, %s7613_s5  ;;  %v1436_v51 = vmul.f32 %v10091_v22, %v8489_v63  ;;  %v1039_v2 = vadd.f32 %v13935_v49, %v1003_v37  ;;  %v10223_v11 = vpop.permute.xlu0 %1634  ;;  %v10225_v18 = vpop.permute.xlu1 %2613  ;;  %v3830_v5 = vsel %vm621_vm3, %v3828_v16, %v3829_v32  ;;  %v3822_v35 = vmul.f32 %v3819_v33, %v8474_v14  ;;  %v13938_v22 = vld [vmem:[#allocation78_spill] sm:$0xff] }
 0x32c   :  { %13936 = vst [vmem:[#allocation68_spill] sm:$0xff] %v10223_v11  ;;  %13937 = vst [vmem:[#allocation69_spill] sm:$0xff] %v10225_v18  ;;  %v2850_v8 = vrot.slane %v2841_v30, 1  ;;  %v2851_v58 = vrot.slane %v10201_v36, 1  ;;  %v10231_v59 = vmul.f32 %v3819_v33, %v8489_v63  ;;  %v10234_v48 = vstv %s10167_s25  ;;  %v13941_v36 = vld [vmem:[#allocation79_spill] sm:$0xff]  ;;  %s11176_s25 = sld [smem:[#allocation2 + $0x51]] }
 0x32d   :  { %v1986_v37 = vadd.f32 %v13938_v22, %v10115_v23  ;;  %v10241_v49 = vsel %vm709_vm4, %v2424_v12, %v13467_v46  ;;  %v10244_v16 = vsel %vm709_vm4, %v3404_v6, %v3405_v4  ;;  %v1447_v19 = vrot.slane %v1435_v27, 2  ;;  %v13942_v22 = vld [vmem:[#allocation244_spill] sm:$0xff] }
 0x32e   :  { %13939 = vst [vmem:[#allocation70_spill] sm:$0xff] %v10241_v49  ;;  %13940 = vst [vmem:[#allocation237_spill] sm:$0xff] %v10244_v16  ;;  %3834 = vrot.lane.b32.xlu1 %v3830_v5, %s7612_s21  ;;  %v1987_v33 = vadd.f32 %v13941_v36, %v1951_v42  ;;  %v1448_v30 = vrot.slane %v1436_v51, 2  ;;  %v2416_v18 = vmul.f32 %v10126_v17, %v8124_v7  ;;  %v13943_v46 = vrot.slane %v10188_v21, 2 }
 0x32f   :  { %2855 = vrot.lane.b32.xlu0 %v2848_v0, %s7612_s21  ;;  %v2417_v23 = vmul.f32 %v10126_v17, %v8139_v25  ;;  %v1048_v12 = vadd.f32 %v13942_v22, %v1039_v2  ;;  %v3397_v0 = vmul.f32 %v10146_v61, %v7863_v34  ;;  %v10261_v27 = vpop.permute.xlu0 %2615  ;;  %v10263_v42 = vpop.permute.xlu1 %3594  ;;  %v2870_v51 = vmul.f32 %v10234_v48, %v8788_v47 }
 0x330   :  { %v10257_v6 = vsel %vm709_vm4, %v3405_v4, %v13943_v46  ;;  %13945 = vst [vmem:[#allocation238_spill] sm:$0xff] %v10261_v27  ;;  %13946 = vst [vmem:[#allocation239_spill] sm:$0xff] %v10263_v42  ;;  %v2852_v17 = vsel %vm621_vm3, %v2850_v8, %v2851_v58  ;;  %v3831_v5 = vrot.slane %v3822_v35, 1  ;;  %v3832_v2 = vrot.slane %v10231_v59, 1  ;;  %v13947_v46 = vld [vmem:[#allocation81_spill] sm:$0xff]  ;;  %v13949_v35 = vld [vmem:[#allocation82_spill] sm:$0xff] }
 0x331   :  { %13944 = vst [vmem:[#allocation71_spill] sm:$0xff] %v10257_v6  ;;  %v10271_v36 = vmul.f32 %v10234_v48, %v8805_v62  ;;  %v1040_v4 = vadd.f32 %v13947_v46, %v10161_v10  ;;  %v10276_v34 = vsel %vm709_vm4, %v1447_v19, %v1448_v30  ;;  %v3398_v22 = vmul.f32 %v10146_v61, %v7872_v39  ;;  %v13952_v39 = vld [vmem:[#allocation83_spill] sm:$0xff]  ;;  %v13953_v6 = vld [vmem:[#allocation84_spill] sm:$0xff] }
 0x332   :  { %13948 = vst [vmem:[#allocation240_spill] sm:$0xff] %v10276_v34  ;;  %2857 = vrot.lane.b32.xlu1 %v2852_v17, %s7612_s21  ;;  %v3850_v8 = vstv %s10215_s26  ;;  %v2020_v59 = vadd.f32 %v13949_v35, %v10164_v13  ;;  %v13950_v42 = vrot.slane %v10136_v52, 2  ;;  %v2428_v19 = vrot.slane %v2416_v18, 2  ;;  %v14030_v34 = vld [vmem:[#allocation262_spill] sm:$0xff]  ;;  %s11181_s26 = sld [smem:[#allocation2 + $0x54]] }
 0x333   :  { %3836 = vrot.lane.b32.xlu0 %v3829_v32, %s7612_s21  ;;  %v2429_v46 = vrot.slane %v2417_v23, 2  ;;  %v2021_v61 = vadd.f32 %v13952_v39, %v10178_v29  ;;  %v1041_v32 = vadd.f32 %v13953_v6, %v1005_v9  ;;  %v3409_v16 = vrot.slane %v3397_v0, 2  ;;  %v10299_v17 = vpop.permute.xlu0 %3596  ;;  %v10301_v13 = vpop.permute.xlu1 %1659  ;;  %v13956_v29 = vld [vmem:[#allocation85_spill] sm:$0xff]  ;;  %v13957_v9 = vld [vmem:[#allocation86_spill] sm:$0xff] }
 0x334   :  { %v10290_v10 = vsel %vm709_vm4, %v1448_v30, %v13950_v42  ;;  %13954 = vst [vmem:[#allocation241_spill] sm:$0xff] %v10299_v17  ;;  %13955 = vst [vmem:[#allocation73_spill] sm:$0xff] %v10301_v13  ;;  %v2878_v52 = vrot.slane %v2870_v51, 1  ;;  %v3833_v30 = vsel %vm621_vm3, %v3831_v5, %v3832_v2  ;;  %v2879_v18 = vrot.slane %v10271_v36, 1  ;;  %v13958_v0 = vld [vmem:[#allocation245_spill] sm:$0xff]  ;;  %v13959_v51 = vld [vmem:[#allocation87_spill] sm:$0xff] }
 0x335   :  { %13951 = vst [vmem:[#allocation72_spill] sm:$0xff] %v10290_v10  ;;  %v3851_v23 = vmul.f32 %v3850_v8, %v13744_v55  ;;  %v10307_v42 = vmul.f32 %v3850_v8, %v13750_v24  ;;  %v1042_v35 = vadd.f32 %v13956_v29, %v1006_v26  ;;  %v2022_v6 = vadd.f32 %v13957_v9, %v1986_v37  ;;  %v13960_v17 = vld [vmem:[#allocation246_spill] sm:$0xff]  ;;  %v13964_v37 = vld [vmem:[#allocation247_spill] sm:$0xff] }
 0x336   :  { %v1049_v39 = vadd.f32 %v13958_v0, %v1040_v4  ;;  %v3410_v27 = vrot.slane %v3398_v22, 2  ;;  %3838 = vrot.lane.b32.xlu1 %v3833_v30, %s7612_s21  ;;  %v2023_v5 = vadd.f32 %v13959_v51, %v1987_v33  ;;  %v2029_v36 = vadd.f32 %v13960_v17, %v2020_v59  ;;  %v13965_v4 = vld [vmem:[#allocation250_spill] sm:$0xff]  ;;  %v14007_v13 = vld [vmem:[#allocation99_spill] sm:$0xff] }
 0x337   :  { %2859 = vrot.lane.b32.xlu0 %v2851_v58, %s7612_s21  ;;  %v10317_v49 = vsel %vm709_vm4, %v2428_v19, %v2429_v46  ;;  %v13962_v11 = vrot.slane %v10182_v45, 2  ;;  %v2030_v29 = vadd.f32 %v13964_v37, %v2021_v61  ;;  %v1050_v22 = vadd.f32 %v13965_v4, %v1041_v32  ;;  %v10329_v30 = vpop.permute.xlu0 %1661  ;;  %v10331_v33 = vpop.permute.xlu1 %2640  ;;  %v13970_v32 = vld [vmem:[#allocation255_spill] sm:$0xff]  ;;  %v13975_v37 = vld [vmem:[#allocation256_spill] sm:$0xff] }
 0x338   :  { %13961 = vst [vmem:[#allocation74_spill] sm:$0xff] %v10317_v49  ;;  %v10327_v58 = vsel %vm709_vm4, %v3409_v16, %v3410_v27  ;;  %13967 = vst [vmem:[#allocation77_spill] sm:$0xff] %v10329_v30  ;;  %v2872_v59 = vmul.f32 %v10234_v48, %v8824_v57  ;;  %v2880_v45 = vsel %vm621_vm3, %v2878_v52, %v2879_v18  ;;  %v3860_v19 = vrot.slane %v10307_v42, 1  ;;  %v13973_v52 = vld [vmem:[#allocation88_spill] sm:$0xff]  ;;  %v13974_v42 = vld [vmem:[#allocation89_spill] sm:$0xff] }
 0x339   :  { %v10322_v26 = vsel %vm709_vm4, %v2429_v46, %v13962_v11  ;;  %13966 = vst [vmem:[#allocation76_spill] sm:$0xff] %v10327_v58  ;;  %13968 = vst [vmem:[#allocation80_spill] sm:$0xff] %v10331_v33  ;;  %v3859_v11 = vrot.slane %v3851_v23, 1  ;;  %v10341_v16 = vmul.f32 %v10234_v48, %v8839_v43  ;;  %v13969_v46 = vld [vmem:[#allocation251_spill] sm:$0xff]  ;;  %v2031_v17 = vadd.f32 %v13970_v32, %v2022_v6  ;;  %v13976_v58 = vld [vmem:[#allocation90_spill] sm:$0xff] }
 0x33a   :  { %13963 = vst [vmem:[#allocation75_spill] sm:$0xff] %v10322_v26  ;;  %v1051_v61 = vadd.f32 %v13969_v46, %v1042_v35  ;;  %v13971_v9 = vrot.slane %v10188_v21, 2  ;;  %2884 = vrot.lane.b32.xlu1 %v2880_v45, %s7613_s5  ;;  %v1073_v23 = vadd.f32 %v13973_v52, %v1048_v12  ;;  %v1074_v51 = vadd.f32 %v13974_v42, %v1049_v39  ;;  %v13980_v32 = vld [vmem:[#allocation248_spill] sm:$0xff] }
 0x33b   :  { %3840 = vrot.lane.b32.xlu0 %v3832_v2, %s7612_s21  ;;  %v2032_v48 = vadd.f32 %v13975_v37, %v2023_v5  ;;  %v1531_v4 = vstv %s10292_s28  ;;  %v2054_v35 = vadd.f32 %v13976_v58, %v2029_v36  ;;  %v2512_v46 = vstv %s10280_s27  ;;  %v10361_v21 = vpop.permute.xlu0 %2642  ;;  %v13979_v36 = vld [vmem:[#allocation91_spill] sm:$0xff]  ;;  %v14001_v26 = vld [vmem:[#allocation100_spill] sm:$0xff]  ;;  %s11276_s27 = sld [smem:[#allocation2 + $0x57]] }
 0x33c   :  { %v10348_v0 = vsel %vm709_vm4, %v3410_v27, %v13971_v9  ;;  %v10359_v6 = vstv %s10297_s29  ;;  %13977 = vst [vmem:[#allocation79_spill] sm:$0xff] %v10361_v21  ;;  %v10363_v27 = vpop.permute.xlu1 %3621  ;;  %v3853_v2 = vmul.f32 %v3850_v8, %v8474_v14  ;;  %v3861_v12 = vsel %vm621_vm3, %v3859_v11, %v3860_v19  ;;  %v13981_v9 = vld [vmem:[#allocation92_spill] sm:$0xff]  ;;  %v13984_v11 = vld [vmem:[#allocation93_spill] sm:$0xff]  ;;  %s11352_s28 = sld [smem:[#allocation5 + $0x1]] }
 0x33d   :  { %13972 = vst [vmem:[#allocation78_spill] sm:$0xff] %v10348_v0  ;;  %13978 = vst [vmem:[#allocation244_spill] sm:$0xff] %v10363_v27  ;;  %v2881_v45 = vrot.slane %v2872_v59, 1  ;;  %v2882_v39 = vrot.slane %v10341_v16, 1  ;;  %v10371_v5 = vmul.f32 %v3850_v8, %v8489_v63  ;;  %v2055_v58 = vadd.f32 %v13979_v36, %v2030_v29  ;;  %v13983_v59 = vld [vmem:[#allocation249_spill] sm:$0xff]  ;;  %v13988_v36 = vld [vmem:[#allocation94_spill] sm:$0xff] }
 0x33e   :  { %v10376_v52 = vadd.f32 %v13981_v9, %v13980_v32  ;;  %v10379_v42 = vmul.f32 %v1531_v4, %v8788_v47  ;;  %3865 = vrot.lane.b32.xlu1 %v3861_v12, %s7613_s5  ;;  %v10387_v8 = vadd.f32 %v13984_v11, %v13983_v59  ;;  %v10390_v29 = vmul.f32 %v1531_v4, %v8805_v62  ;;  %s11379_s29 = sld [smem:[#allocation2 + $0x75]] }
 0x33f   :  { %2886 = vrot.lane.b32.xlu0 %v2879_v18, %s7613_s5  ;;  %v10393_v16 = vmul.f32 %v2512_v46, %v13744_v55  ;;  %v10396_v37 = vmul.f32 %v2512_v46, %v13750_v24  ;;  %v10401_v32 = vadd.f32 %v13988_v36, %v1050_v22  ;;  %v10405_v18 = vmul.f32 %v10359_v6, %v8088_v38  ;;  %v10411_v9 = vpop.permute.xlu0 %3623  ;;  %v13993_v36 = vld [vmem:[#allocation95_spill] sm:$0xff] }
 0x340   :  { %13982 = vst [vmem:[#allocation81_spill] sm:$0xff] %v10379_v42  ;;  %13985 = vst [vmem:[#allocation82_spill] sm:$0xff] %v10390_v29  ;;  %v10409_v12 = vmul.f32 %v10359_v6, %v8105_v54  ;;  %v10413_v59 = vpop.permute.xlu1 %1663  ;;  %v2928_v11 = vstv %s10335_s30  ;;  %v2883_v27 = vsel %vm621_vm3, %v2881_v45, %v2882_v39  ;;  %v3862_v0 = vrot.slane %v3853_v2, 1  ;;  %v13996_v45 = vld [vmem:[#allocation97_spill] sm:$0xff]  ;;  %v14025_v29 = vld [vmem:[#allocation108_spill] sm:$0xff]  ;;  %s11386_s30 = sld [smem:[#allocation2 + $0x78]] }
 0x341   :  { %13986 = vst [vmem:[#allocation83_spill] sm:$0xff] %v10393_v16  ;;  %13987 = vst [vmem:[#allocation84_spill] sm:$0xff] %v10396_v37  ;;  %v3863_v21 = vrot.slane %v10371_v5, 1  ;;  %v2929_v22 = vmul.f32 %v2928_v11, %v8788_v47  ;;  %v10420_v33 = vadd.f32 %v13993_v36, %v1051_v61  ;;  %v10431_v2 = vadd.f32 %v13996_v45, %v2032_v48  ;;  %v14002_v16 = vld [vmem:[#allocation102_spill] sm:$0xff] }
 0x342   :  { %13989 = vst [vmem:[#allocation85_spill] sm:$0xff] %v10405_v18  ;;  %13990 = vst [vmem:[#allocation86_spill] sm:$0xff] %v10409_v12  ;;  %v13994_v18 = vld [vmem:[#allocation96_spill] sm:$0xff]  ;;  %v10426_v12 = vmul.f32 %v1531_v4, %v8824_v57  ;;  %2888 = vrot.lane.b32.xlu1 %v2883_v27, %s7613_s5  ;;  %v10434_v5 = vmul.f32 %v1531_v4, %v8839_v43  ;;  %v2930_v61 = vmul.f32 %v2928_v11, %v8805_v62 }
 0x343   :  { %13991 = vst [vmem:[#allocation245_spill] sm:$0xff] %v10411_v9  ;;  %13992 = vst [vmem:[#allocation87_spill] sm:$0xff] %v10413_v59  ;;  %v10423_v37 = vadd.f32 %v13994_v18, %v2031_v17  ;;  %3867 = vrot.lane.b32.xlu0 %v3860_v19, %s7613_s5  ;;  %v10437_v9 = vmul.f32 %v2512_v46, %v8474_v14  ;;  %v13999_v17 = vld [vmem:[#allocation258_spill] sm:$0xff]  ;;  %v1098_v19 = vadd.f32 %v14001_v26, %v1073_v23  ;;  %v10448_v48 = vpop.permute.xlu0 %1665 }
 0x344   :  { %13995 = vst [vmem:[#allocation246_spill] sm:$0xff] %v10426_v12  ;;  %13997 = vst [vmem:[#allocation247_spill] sm:$0xff] %v10434_v5  ;;  %v14000_v18 = vld [vmem:[#allocation98_spill] sm:$0xff]  ;;  %v1099_v27 = vadd.f32 %v14002_v16, %v1074_v51  ;;  %v10450_v4 = vpop.permute.xlu1 %2644  ;;  %v3909_v45 = vstv %s10366_s0  ;;  %v3864_v59 = vsel %vm621_vm3, %v3862_v0, %v3863_v21  ;;  %v2939_v30 = vrot.slane %v2929_v22, 2  ;;  %v14017_v5 = vld [vmem:[#allocation265_spill] sm:$0xff]  ;;  %s11452_s0 = sld [smem:[#allocation2 + $0x7b]] }
 0x345   :  { %13998 = vst [vmem:[#allocation250_spill] sm:$0xff] %v10437_v9  ;;  %v10442_v36 = vadd.f32 %v14000_v18, %v13999_v17  ;;  %14003 = vst [vmem:[#allocation251_spill] sm:$0xff] %v10448_v48  ;;  %v14005_v9 = vld [vmem:[#allocation103_spill] sm:$0xff]  ;;  %v3910_v17 = vmul.f32 %v3909_v45, %v13744_v55  ;;  %v10461_v23 = vmul.f32 %v2512_v46, %v8489_v63  ;;  %v10468_v16 = vstv %s10381_s14  ;;  %v14010_v46 = vld [vmem:[#allocation105_spill] sm:$0xff]  ;;  %s7283_s14 = sld [smem:[#allocation2 + $0x7e]] }
 0x346   :  { %14004 = vst [vmem:[#allocation255_spill] sm:$0xff] %v10450_v4  ;;  %v2079_v49 = vadd.f32 %v14005_v9, %v2054_v35  ;;  %v14006_v18 = vld [vmem:[#allocation259_spill] sm:$0xff]  ;;  %v10465_v51 = vmul.f32 %v10359_v6, %v8124_v7  ;;  %3869 = vrot.lane.b32.xlu1 %v3864_v59, %s7613_s5  ;;  %v10473_v0 = vstv %s10398_s15  ;;  %v2940_v35 = vrot.slane %v2930_v61, 2  ;;  %s7286_s15 = sld [smem:[#allocation2 + $0x81]] }
 0x347   :  { %v10458_v26 = vadd.f32 %v14007_v13, %v14006_v18  ;;  %14008 = vst [vmem:[#allocation88_spill] sm:$0xff] %v10461_v23  ;;  %2890 = vrot.lane.b32.xlu0 %v2882_v39, %s7613_s5  ;;  %v10476_v9 = vmul.f32 %v2928_v11, %v13749_v44  ;;  %v3911_v13 = vmul.f32 %v3909_v45, %v13750_v24  ;;  %v14011_v18 = vld [vmem:[#allocation20_spill] sm:$0xff]  ;;  %v10491_v59 = vpop.permute.xlu0 %2646 }
 0x348   :  { %14009 = vst [vmem:[#allocation89_spill] sm:$0xff] %v10465_v51  ;;  %v2080_v22 = vadd.f32 %v14010_v46, %v2055_v58  ;;  %v10481_v4 = vadd.f32 %v14011_v18, %v1098_v19  ;;  %v14012_v51 = vld [vmem:[#allocation254_spill] sm:$0xff]  ;;  %v10489_v39 = vmul.f32 %v10359_v6, %v8139_v25  ;;  %14015 = vst [vmem:[#allocation90_spill] sm:$0xff] %v10491_v59  ;;  %v10493_v61 = vpop.permute.xlu1 %3625  ;;  %v3920_v19 = vrot.slane %v3910_v17, 2 }
 0x349   :  { %v14013_v23 = vrot.slane %v14012_v51, 1  ;;  %14016 = vst [vmem:[#allocation91_spill] sm:$0xff] %v10493_v61  ;;  %v10498_v12 = vadd.f32 %v14017_v5, %v2079_v49  ;;  %v2941_v58 = vsel %vm709_vm4, %v2939_v30, %v2940_v35  ;;  %v10506_v6 = vmul.f32 %v10468_v16, %v8805_v62  ;;  %v14018_v46 = vld [vmem:[#allocation106_spill] sm:$0xff]  ;;  %v14019_v61 = vld [vmem:[#allocation257_spill] sm:$0xff] }
 0x34a   :  { %14014 = vst [vmem:[#allocation256_spill] sm:$0xff] %v10489_v39  ;;  %v2572_v51 = vmul.f32 %v10473_v0, %v13744_v55  ;;  %2948 = vrot.lane.b32.xlu1 %v2941_v58, %s7612_s21  ;;  %v2942_v49 = vrot.slane %v10476_v9, 2  ;;  %v3921_v30 = vrot.slane %v3911_v13, 2  ;;  %v10514_v5 = vmul.f32 %v3909_v45, %v13749_v44 }
 0x34b   :  { %v10485_v48 = vadd.f32 %v14013_v23, %v1099_v27  ;;  %v2932_v27 = vmul.f32 %v2928_v11, %v8824_v57  ;;  %v1591_v23 = vmul.f32 %v10468_v16, %v8788_v47  ;;  %3871 = vrot.lane.b32.xlu0 %v3863_v21, %s7613_s5  ;;  %v2933_v17 = vmul.f32 %v2928_v11, %v8839_v43  ;;  %v10530_v9 = vpop.permute.xlu0 %3627 }
 0x34c   :  { %v3060_v18 = vadd.f32 %v14018_v46, %v10376_v52  ;;  %v14020_v39 = vrot.slane %v14019_v61, 1  ;;  %v10525_v21 = vmul.f32 %v10473_v0, %v13750_v24  ;;  %v10528_v58 = vstv %s10446_s6  ;;  %14022 = vst [vmem:[#allocation92_spill] sm:$0xff] %v10530_v9  ;;  %v10532_v13 = vpop.permute.xlu1 %1723  ;;  %s7289_s6 = sld [smem:[#allocation2 + $0x84]] }
 0x34d   :  { %14023 = vst [vmem:[#allocation249_spill] sm:$0xff] %v10532_v13  ;;  %v2943_v11 = vsel %vm709_vm4, %v2940_v35, %v2942_v49  ;;  %v3922_v52 = vsel %vm709_vm4, %v3920_v19, %v3921_v30  ;;  %v2944_v46 = vrot.slane %v2932_v27, 2  ;;  %v1100_v42 = vadd.f32 %v14025_v29, %v10401_v32 }
 0x34e   :  { %v10521_v59 = vadd.f32 %v14020_v39, %v2080_v22  ;;  %14021 = vst [vmem:[#allocation248_spill] sm:$0xff] %v10525_v21  ;;  %v3913_v22 = vmul.f32 %v3909_v45, %v8474_v14  ;;  %v14024_v39 = vld [vmem:[#allocation107_spill] sm:$0xff]  ;;  %v1599_v10 = vrot.slane %v1591_v23, 1  ;;  %3929 = vrot.lane.b32.xlu1 %v3922_v52, %s7612_s21  ;;  %v2580_v35 = vrot.slane %v2572_v51, 1  ;;  %v14028_v52 = vld [vmem:[#allocation210_spill] sm:$0xff] }
 0x34f   :  { %v3061_v61 = vadd.f32 %v14024_v39, %v10387_v8  ;;  %2950 = vrot.lane.b32.xlu0 %v2943_v11, %s7612_s21  ;;  %v3923_v19 = vrot.slane %v10514_v5, 2  ;;  %v2945_v27 = vrot.slane %v2933_v17, 2  ;;  %v3914_v13 = vmul.f32 %v3909_v45, %v8489_v63  ;;  %v10555_v32 = vpop.permute.xlu0 %1725 }
 0x350   :  { %v3553_v8 = vmul.f32 %v10528_v58, %v8088_v38  ;;  %v10553_v29 = vmul.f32 %v10528_v58, %v8105_v54  ;;  %v10557_v23 = vpop.permute.xlu1 %2704  ;;  %v2964_v11 = vstv %s10495_s16  ;;  %v3925_v17 = vrot.slane %v3913_v22, 2  ;;  %s7293_s16 = sld [smem:[#allocation5 + $0x2]] }
 0x351   :  { %14027 = vst [vmem:[#allocation94_spill] sm:$0xff] %v10557_v23  ;;  %v3924_v51 = vsel %vm709_vm4, %v3921_v30, %v3923_v19  ;;  %v2946_v5 = vsel %vm709_vm4, %v2944_v46, %v2945_v27  ;;  %v2965_v45 = vmul.f32 %v2964_v11, %v8788_v47  ;;  %v10564_v39 = vadd.f32 %v14028_v52, %v3060_v18  ;;  %v14034_v30 = vld [vmem:[#allocation21_spill] sm:$0xff] }
 0x352   :  { %14026 = vst [vmem:[#allocation93_spill] sm:$0xff] %v10553_v29  ;;  %v14031_v9 = vrot.slane %v14030_v34, 1  ;;  %v14033_v38 = vrot.slane %v10506_v6, 1  ;;  %2952 = vrot.lane.b32.xlu1 %v2946_v5, %s7612_s21  ;;  %v1123_v46 = vadd.f32 %v14034_v30, %v1100_v42  ;;  %v1593_v22 = vmul.f32 %v10468_v16, %v8824_v57 }
 0x353   :  { %14029 = vst [vmem:[#allocation95_spill] sm:$0xff] %v10564_v39  ;;  %3931 = vrot.lane.b32.xlu0 %v3924_v51, %s7612_s21  ;;  %v3926_v18 = vrot.slane %v3914_v13, 2  ;;  %v2966_v52 = vmul.f32 %v2964_v11, %v8805_v62  ;;  %v14035_v34 = vrot.slane %v10525_v21, 1  ;;  %v3945_v5 = vstv %s10534_s2  ;;  %v14039_v21 = vld [vmem:[#allocation109_spill] sm:$0xff]  ;;  %s7294_s2 = sld [smem:[#allocation7 + $0x1]] }
 0x354   :  { %v10568_v54 = vadd.f32 %v14031_v9, %v3061_v61  ;;  %v10573_v23 = vsel %vm621_vm3, %v1599_v10, %v14033_v38  ;;  %v3561_v61 = vrot.slane %v3553_v8, 1  ;;  %v10587_v10 = vpop.permute.xlu0 %2706  ;;  %v10589_v51 = vpop.permute.xlu1 %3685  ;;  %v2947_v42 = vsel %vm709_vm4, %v2945_v27, %v2942_v49  ;;  %v14041_v49 = vld [vmem:[#allocation110_spill] sm:$0xff] }
 0x355   :  { %v10584_v9 = vsel %vm621_vm3, %v2580_v35, %v14035_v34  ;;  %14037 = vst [vmem:[#allocation258_spill] sm:$0xff] %v10587_v10  ;;  %14038 = vst [vmem:[#allocation98_spill] sm:$0xff] %v10589_v51  ;;  %v3927_v30 = vsel %vm709_vm4, %v3925_v17, %v3926_v18  ;;  %v2975_v13 = vrot.slane %v2965_v45, 2  ;;  %v1101_v39 = vadd.f32 %v14039_v21, %v10420_v33  ;;  %v14040_v35 = vld [vmem:[#allocation115_spill] sm:$0xff] }
 0x356   :  { %14032 = vst [vmem:[#allocation96_spill] sm:$0xff] %v10568_v54  ;;  %14036 = vst [vmem:[#allocation97_spill] sm:$0xff] %v10584_v9  ;;  %v3946_v54 = vmul.f32 %v3945_v5, %v13744_v55  ;;  %v1152_v8 = vadd.f32 %v14040_v35, %v10481_v4  ;;  %v10601_v34 = vmul.f32 %v10468_v16, %v8839_v43  ;;  %3933 = vrot.lane.b32.xlu1 %v3927_v30, %s7612_s21  ;;  %v14042_v21 = vld [vmem:[#allocation127_spill] sm:$0xff] }
 0x357   :  { %2954 = vrot.lane.b32.xlu0 %v2947_v42, %s7612_s21  ;;  %v2081_v27 = vadd.f32 %v14041_v49, %v10423_v37  ;;  %v2976_v17 = vrot.slane %v2966_v52, 2  ;;  %v10608_v45 = vmul.f32 %v2964_v11, %v13749_v44  ;;  %v3947_v33 = vmul.f32 %v3945_v5, %v13750_v24  ;;  %v14055_v24 = vld [vmem:[#allocation122_spill] sm:$0xff] }
 0x358   :  { %v1183_v38 = vadd.f32 %v14042_v21, %v1152_v8  ;;  %v14043_v4 = vrot.slane %v10553_v29, 1  ;;  %v1602_v35 = vrot.slane %v1593_v22, 1  ;;  %v10619_v42 = vmul.f32 %v10473_v0, %v8474_v14  ;;  %v10621_v30 = vpop.permute.xlu0 %3687  ;;  %v10623_v37 = vpop.permute.xlu1 %1727  ;;  %v14046_v21 = vld [vmem:[#allocation116_spill] sm:$0xff]  ;;  %v14048_v29 = vld [vmem:[#allocation19_spill] sm:$0xff] }
 0x359   :  { %14045 = vst [vmem:[#allocation102_spill] sm:$0xff] %v10621_v30  ;;  %v3928_v52 = vsel %vm709_vm4, %v3926_v18, %v3923_v19  ;;  %v2977_v49 = vsel %vm709_vm4, %v2975_v13, %v2976_v17  ;;  %v3956_v51 = vrot.slane %v3946_v54, 2  ;;  %v2968_v8 = vmul.f32 %v2964_v11, %v8824_v57 }
 0x35a   :  { %v10615_v16 = vsel %vm621_vm3, %v3561_v61, %v14043_v4  ;;  %v1153_v61 = vadd.f32 %v14046_v21, %v10485_v48  ;;  %v14047_v4 = vld [vmem:[#allocation121_spill] sm:$0xff]  ;;  %2984 = vrot.lane.b32.xlu1 %v2977_v49, %s7613_s5  ;;  %v2978_v54 = vrot.slane %v10608_v45, 2  ;;  %v3957_v19 = vrot.slane %v3947_v33, 2 }
 0x35b   :  { %14044 = vst [vmem:[#allocation100_spill] sm:$0xff] %v10615_v16  ;;  %v1154_v22 = vadd.f32 %v14047_v4, %v1123_v46  ;;  %v14049_v16 = vrot.slane %v14048_v29, 1  ;;  %3935 = vrot.lane.b32.xlu0 %v3928_v52, %s7612_s21  ;;  %v10640_v18 = vmul.f32 %v3945_v5, %v13749_v44  ;;  %v2969_v48 = vmul.f32 %v2964_v11, %v8839_v43  ;;  %v14050_v29 = vld [vmem:[#allocation201_spill] sm:$0xff]  ;;  %v14051_v46 = vld [vmem:[#allocation128_spill] sm:$0xff]  ;;  %v14053_v52 = vld [vmem:[#allocation207_spill] sm:$0xff] }
 0x35c   :  { %v1184_v13 = vadd.f32 %v14051_v46, %v1153_v61  ;;  %v1211_v4 = vadd.f32 %v14053_v52, %v1183_v38  ;;  %v10651_v49 = vpop.permute.xlu0 %1729  ;;  %v10653_v45 = vpop.permute.xlu1 %2708  ;;  %v2979_v33 = vsel %vm709_vm4, %v2976_v17, %v2978_v54  ;;  %v3958_v9 = vsel %vm709_vm4, %v3956_v51, %v3957_v19  ;;  %v14059_v46 = vld [vmem:[#allocation29_spill] sm:$0xff]  ;;  %v14060_v52 = vld [vmem:[#allocation151_spill] sm:$0xff] }
 0x35d   :  { %v1124_v10 = vadd.f32 %v14049_v16, %v1101_v39  ;;  %v10646_v39 = vadd.f32 %v14050_v29, %v2081_v27  ;;  %v14052_v16 = vld [vmem:[#allocation133_spill] sm:$0xff]  ;;  %14054 = vst [vmem:[#allocation103_spill] sm:$0xff] %v10653_v45  ;;  %v2980_v11 = vrot.slane %v2968_v8, 2  ;;  %v3949_v30 = vmul.f32 %v3945_v5, %v8474_v14  ;;  %v14056_v29 = vld [vmem:[#allocation139_spill] sm:$0xff] }
 0x35e   :  { %v1185_v21 = vadd.f32 %v14052_v16, %v1154_v22  ;;  %v1247_v55 = vadd.f32 %v14056_v29, %v1211_v4  ;;  %v14057_v61 = vrot.slane %v10601_v34, 1  ;;  %3965 = vrot.lane.b32.xlu1 %v3958_v9, %s7613_s5  ;;  %v10669_v38 = vmul.f32 %v10473_v0, %v8489_v63  ;;  %v14063_v0 = vld [vmem:[#allocation112_spill] sm:$0xff] }
 0x35f   :  { %v1155_v27 = vadd.f32 %v14055_v24, %v1124_v10  ;;  %2986 = vrot.lane.b32.xlu0 %v2979_v33, %s7613_s5  ;;  %v3959_v51 = vrot.slane %v10640_v18, 2  ;;  %v2981_v17 = vrot.slane %v2969_v48, 2  ;;  %v3950_v24 = vmul.f32 %v3945_v5, %v8489_v63  ;;  %v14058_v10 = vld [vmem:[#allocation134_spill] sm:$0xff] }
 0x360   :  { %v10663_v22 = vsel %vm621_vm3, %v1602_v35, %v14057_v61  ;;  %v1212_v16 = vadd.f32 %v14059_v46, %v1184_v13  ;;  %v1213_v35 = vadd.f32 %v9818_v40, %v1185_v21  ;;  %v1283_v4 = vadd.f32 %v14060_v52, %v1247_v55  ;;  %v10677_v9 = vpop.permute.xlu0 %2710  ;;  %v10679_v33 = vpop.permute.xlu1 %3689  ;;  %v14064_v13 = vld [vmem:[#allocation113_spill] sm:$0xff]  ;;  %v14065_v61 = vld [vmem:[#allocation140_spill] sm:$0xff] }
 0x361   :  { %v1186_v8 = vadd.f32 %v14058_v10, %v1155_v27  ;;  %14061 = vst [vmem:[#allocation259_spill] sm:$0xff] %v10677_v9  ;;  %14062 = vst [vmem:[#allocation99_spill] sm:$0xff] %v10679_v33  ;;  %v2082_v18 = vadd.f32 %v14063_v0, %v10431_v2  ;;  %v3960_v48 = vsel %vm709_vm4, %v3957_v19, %v3959_v51  ;;  %v3961_v27 = vrot.slane %v3949_v30, 2  ;;  %v14066_v21 = vld [vmem:[#allocation145_spill] sm:$0xff]  ;;  %v14067_v30 = vld [vmem:[#allocation152_spill] sm:$0xff] }
 0x362   :  { %v2982_v5 = vsel %vm709_vm4, %v2980_v11, %v2981_v17  ;;  %v3062_v29 = vadd.f32 %v14064_v13, %v10442_v36  ;;  %v1248_v40 = vadd.f32 %v14065_v61, %v1212_v16  ;;  %v1249_v55 = vadd.f32 %v14066_v21, %v1213_v35  ;;  %v14068_v52 = vld [vmem:[#allocation157_spill] sm:$0xff]  ;;  %v14072_v21 = vld [vmem:[#allocation146_spill] sm:$0xff] }
 0x363   :  { %v2583_v10 = vrot.slane %v10619_v42, 1  ;;  %3967 = vrot.lane.b32.xlu0 %v3960_v48, %s7613_s5  ;;  %2988 = vrot.lane.b32.xlu1 %v2982_v5, %s7613_s5  ;;  %v13474_v2 = vrot.slane %v10669_v38, 1  ;;  %v10694_v46 = vstv %s10634_s4  ;;  %v3962_v19 = vrot.slane %v3950_v24, 2  ;;  %s7295_s4 = sld [smem:[#allocation7 + $0x2]] }
 0x364   :  { %v3990_v11 = vstv %s10643_s17  ;;  %v1214_v36 = vadd.f32 %v9830_v28, %v1186_v8  ;;  %v1284_v16 = vadd.f32 %v14067_v30, %v1248_v40  ;;  %v1285_v35 = vadd.f32 %v14068_v52, %v1249_v55  ;;  %v10703_v0 = vpop.permute.xlu0 %3691  ;;  %v10705_v48 = vpop.permute.xlu1 %1759  ;;  %v14070_v8 = vld [vmem:[#allocation200_spill] sm:$0xff]  ;;  %v14074_v30 = vld [vmem:[#allocation206_spill] sm:$0xff]  ;;  %s7297_s17 = sld [smem:[#allocation7 + $0x4]] }
 0x365   :  { %v1292_v42 = vadd.f32 %v9887_v41, %v1283_v4  ;;  %14069 = vst [vmem:[#allocation105_spill] sm:$0xff] %v10703_v0  ;;  %v10709_v5 = vmul.f32 %v10528_v58, %v8124_v7  ;;  %v1676_v24 = vmul.f32 %v10694_v46, %v8788_v47  ;;  %v2983_v13 = vsel %vm709_vm4, %v2981_v17, %v2978_v54  ;;  %v14073_v4 = vld [vmem:[#allocation163_spill] sm:$0xff] }
 0x366   :  { %v3963_v28 = vsel %vm709_vm4, %v3961_v27, %v3962_v19  ;;  %v14071_v61 = vrot.slane %v14070_v8, 1  ;;  %v1250_v41 = vadd.f32 %v14072_v21, %v1214_v36  ;;  %v10724_v52 = vadd.f32 %v14074_v30, %v3062_v29  ;;  %v14075_v27 = vld [vmem:[#allocation158_spill] sm:$0xff] }
 0x367   :  { %v1317_v55 = vadd.f32 %v14073_v4, %v1292_v42  ;;  %2990 = vrot.lane.b32.xlu0 %v2983_v13, %s7613_s5  ;;  %3969 = vrot.lane.b32.xlu1 %v3963_v28, %s7613_s5  ;;  %v10728_v54 = vmul.f32 %v10528_v58, %v8139_v25  ;;  %v1677_v17 = vmul.f32 %v10694_v46, %v8805_v62  ;;  %v14076_v28 = vld [vmem:[#allocation175_spill] sm:$0xff]  ;;  %v1686_v21 = vrot.slane %v1676_v24, 2 }
 0x368   :  { %v2105_v40 = vadd.f32 %v14071_v61, %v2082_v18  ;;  %v3991_v18 = vmul.f32 %v3990_v11, %v8788_v47  ;;  %v1286_v36 = vadd.f32 %v14075_v27, %v1250_v41  ;;  %v1293_v42 = vadd.f32 %v9890_v3, %v1284_v16  ;;  %v10737_v29 = vpop.permute.xlu0 %1761  ;;  %v10739_v61 = vpop.permute.xlu1 %2740 }
 0x369   :  { %v1294_v13 = vadd.f32 %v9904_v56, %v1285_v35  ;;  %v1342_v8 = vadd.f32 %v14076_v28, %v1317_v55  ;;  %14077 = vst [vmem:[#allocation20_spill] sm:$0xff] %v10739_v61  ;;  %v10744_v58 = vsel %vm621_vm3, %v2583_v10, %v13474_v2  ;;  %v10748_v41 = vmul.f32 %v10694_v46, %v13749_v44  ;;  %v14078_v56 = vld [vmem:[#allocation114_spill] sm:$0xff]  ;;  %v14079_v35 = vld [vmem:[#allocation164_spill] sm:$0xff]  ;;  %v14080_v55 = vld [vmem:[#allocation169_spill] sm:$0xff] }
 0x36a   :  { %v3964_v3 = vsel %vm709_vm4, %v3962_v19, %v3959_v51  ;;  %v10753_v16 = vadd.f32 %v14078_v56, %v10458_v26  ;;  %v1318_v4 = vadd.f32 %v14079_v35, %v1293_v42  ;;  %v1687_v10 = vrot.slane %v1677_v17, 2  ;;  %v14081_v19 = vld [vmem:[#allocation176_spill] sm:$0xff]  ;;  %v14082_v56 = vld [vmem:[#allocation181_spill] sm:$0xff]  ;;  %v14086_v35 = vld [vmem:[#allocation118_spill] sm:$0xff] }
 0x36b   :  { %v1319_v30 = vadd.f32 %v14080_v55, %v1294_v13  ;;  %3971 = vrot.lane.b32.xlu0 %v3964_v3, %s7613_s5  ;;  %3999 = vrot.lane.b32.xlu1 %v3991_v18, %s7612_s21  ;;  %v3992_v24 = vmul.f32 %v3990_v11, %v8805_v62  ;;  %v3993_v27 = vmul.f32 %v3990_v11, %v8824_v57  ;;  %v4015_v28 = vstv %s10697_s18  ;;  %v14085_v17 = vld [vmem:[#allocation117_spill] sm:$0xff]  ;;  %s7298_s18 = sld [smem:[#allocation7 + $0x5]] }
 0x36c   :  { %v1295_v51 = vadd.f32 %v9929_v50, %v1286_v36  ;;  %v1343_v26 = vadd.f32 %v14081_v19, %v1318_v4  ;;  %v1365_v42 = vadd.f32 %v10012_v60, %v1342_v8  ;;  %v10766_v13 = vpop.permute.xlu0 %2742  ;;  %v10768_v3 = vpop.permute.xlu1 %3721  ;;  %v2133_v18 = vadd.f32 %v14085_v17, %v10498_v12  ;;  %v14087_v36 = vld [vmem:[#allocation170_spill] sm:$0xff]  ;;  %v14141_v61 = vld [vmem:[#allocation45_spill] sm:$0xff] }
 0x36d   :  { %v1344_v2 = vadd.f32 %v14082_v56, %v1319_v30  ;;  %14083 = vst [vmem:[#allocation254_spill] sm:$0xff] %v10766_v13  ;;  %14084 = vst [vmem:[#allocation265_spill] sm:$0xff] %v10768_v3  ;;  %v2134_v55 = vadd.f32 %v14086_v35, %v10521_v59  ;;  %v10775_v0 = vsel %vm709_vm4, %v1686_v21, %v1687_v10  ;;  %v13475_v50 = vrot.slane %v10748_v41, 2  ;;  %v14088_v30 = vld [vmem:[#allocation187_spill] sm:$0xff] }
 0x36e   :  { %v1320_v4 = vadd.f32 %v14087_v36, %v1295_v51  ;;  %v1396_v19 = vadd.f32 %v14088_v30, %v1365_v42  ;;  %v1679_v60 = vmul.f32 %v10694_v46, %v8824_v57  ;;  %v4063_v12 = vstv %s10721_s19  ;;  %v14089_v59 = vld [vmem:[#allocation123_spill] sm:$0xff]  ;;  %v14090_v42 = vld [vmem:[#allocation182_spill] sm:$0xff]  ;;  %s7300_s19 = sld [smem:[#allocation7 + $0x7]] }
 0x36f   :  { %4001 = vrot.lane.b32.xlu0 %v3992_v24, %s7612_s21  ;;  %4003 = vrot.lane.b32.xlu1 %v3993_v27, %s7612_s21  ;;  %v2135_v8 = vadd.f32 %v14089_v59, %v10646_v39  ;;  %v10792_v21 = vsel %vm709_vm4, %v1687_v10, %v13475_v50  ;;  %v3994_v51 = vmul.f32 %v3990_v11, %v8839_v43  ;;  %v14091_v24 = vrot.slane %v9948_v53, 1  ;;  %v14092_v36 = vld [vmem:[#allocation199_spill] sm:$0xff]  ;;  %v14094_v59 = vld [vmem:[#allocation124_spill] sm:$0xff]  ;;  %v14095_v53 = vld [vmem:[#allocation129_spill] sm:$0xff] }
 0x370   :  { %v4016_v56 = vmul.f32 %v4015_v28, %v8788_v47  ;;  %v1345_v17 = vadd.f32 %v14090_v42, %v1320_v4  ;;  %v1367_v35 = vadd.f32 %v10088_v1, %v1344_v2  ;;  %v1427_v30 = vadd.f32 %v14092_v36, %v1396_v19  ;;  %v10801_v33 = vpop.permute.xlu0 %3723  ;;  %v10803_v39 = vpop.permute.xlu1 %1763  ;;  %v14096_v1 = vld [vmem:[#allocation188_spill] sm:$0xff]  ;;  %v14097_v19 = vld [vmem:[#allocation193_spill] sm:$0xff] }
 0x371   :  { %v1366_v27 = vadd.f32 %v14091_v24, %v1343_v26  ;;  %14093 = vst [vmem:[#allocation106_spill] sm:$0xff] %v10801_v33  ;;  %v2136_v10 = vadd.f32 %v14094_v59, %v2105_v40  ;;  %v10808_v11 = vmul.f32 %v10694_v46, %v8839_v43  ;;  %v4064_v50 = vmul.f32 %v4063_v12, %v8788_v47  ;;  %v14102_v33 = vld [vmem:[#allocation130_spill] sm:$0xff] }
 0x372   :  { %v10812_v4 = vmul.f32 %v4063_v12, %v8805_v62  ;;  %v2164_v26 = vadd.f32 %v14095_v53, %v2133_v18  ;;  %v1398_v42 = vadd.f32 %v14097_v19, %v1367_v35  ;;  %v1691_v24 = vrot.slane %v1679_v60, 2  ;;  %v14099_v60 = vld [vmem:[#allocation202_spill] sm:$0xff] }
 0x373   :  { %v1397_v2 = vadd.f32 %v14096_v1, %v1366_v27  ;;  %4005 = vrot.lane.b32.xlu0 %v3994_v51, %s7612_s21  ;;  %4024 = vrot.lane.b32.xlu1 %v4016_v56, %s7613_s5  ;;  %v4017_v40 = vmul.f32 %v4015_v28, %v8805_v62  ;;  %v4018_v46 = vmul.f32 %v4015_v28, %v8824_v57  ;;  %v14098_v18 = vrot.slane %v10015_v15, 1  ;;  %v14100_v51 = vld [vmem:[#allocation212_spill] sm:$0xff]  ;;  %v14103_v15 = vld [vmem:[#allocation34_spill] sm:$0xff] }
 0x374   :  { %v4066_v36 = vmul.f32 %v4063_v12, %v8824_v57  ;;  %v10823_v59 = vmul.f32 %v4063_v12, %v8839_v43  ;;  %v1429_v53 = vadd.f32 %v14100_v51, %v1398_v42  ;;  %v1455_v56 = vadd.f32 %v10170_v31, %v1427_v30  ;;  %v10832_v1 = vpop.permute.xlu0 %1765  ;;  %v10834_v19 = vpop.permute.xlu1 %2744 }
 0x375   :  { %v1368_v27 = vadd.f32 %v14098_v18, %v1345_v17  ;;  %v1428_v35 = vadd.f32 %v14099_v60, %v1397_v2  ;;  %14101 = vst [vmem:[#allocation257_spill] sm:$0xff] %v10834_v19  ;;  %v2165_v3 = vadd.f32 %v14102_v33, %v2134_v55  ;;  %v13476_v12 = vrot.slane %v10808_v11, 2  ;;  %v14104_v17 = vld [vmem:[#allocation194_spill] sm:$0xff]  ;;  %v14105_v2 = vld [vmem:[#allocation232_spill] sm:$0xff] }
 0x376   :  { %v4072_v9 = vrot.slane %v4064_v50, 1  ;;  %v4073_v45 = vrot.slane %v10812_v4, 1  ;;  %v2192_v13 = vadd.f32 %v14103_v15, %v2164_v26  ;;  %v1491_v60 = vadd.f32 %v14105_v2, %v1455_v56  ;;  %v14106_v4 = vld [vmem:[#allocation216_spill] sm:$0xff]  ;;  %v14114_v2 = vld [vmem:[#allocation243_spill] sm:$0xff] }
 0x377   :  { %v1399_v18 = vadd.f32 %v14104_v17, %v1368_v27  ;;  %4026 = vrot.lane.b32.xlu0 %v4017_v40, %s7613_s5  ;;  %4028 = vrot.lane.b32.xlu1 %v4018_v46, %s7613_s5  ;;  %v4094_v31 = vstv %s10785_s20  ;;  %v10848_v33 = vsel %vm709_vm4, %v1691_v24, %v13476_v12  ;;  %v4019_v55 = vmul.f32 %v4015_v28, %v8839_v43  ;;  %v14107_v27 = vld [vmem:[#allocation240_spill] sm:$0xff]  ;;  %v14111_v24 = vld [vmem:[#allocation274_spill] sm:$0xff]  ;;  %s7301_s20 = sld [smem:[#allocation7 + $0x8]] }
 0x378   :  { %v4075_v50 = vrot.slane %v4066_v36, 1  ;;  %v4076_v30 = vrot.slane %v10823_v59, 1  ;;  %v1456_v42 = vadd.f32 %v10206_v20, %v1428_v35  ;;  %v1457_v51 = vadd.f32 %v14107_v27, %v1429_v53  ;;  %v14108_v40 = vld [vmem:[#allocation264_spill] sm:$0xff]  ;;  %v10856_v46 = vpop.permute.xlu0 %2746  ;;  %v10858_v15 = vpop.permute.xlu1 %3725  ;;  %v14113_v35 = vld [vmem:[#allocation233_spill] sm:$0xff] }
 0x379   :  { %v1430_v26 = vadd.f32 %v14106_v4, %v1399_v18  ;;  %v1527_v56 = vadd.f32 %v14108_v40, %v1491_v60  ;;  %14109 = vst [vmem:[#allocation107_spill] sm:$0xff] %v10856_v46  ;;  %14110 = vst [vmem:[#allocation108_spill] sm:$0xff] %v10858_v15  ;;  %v2193_v17 = vadd.f32 %v14111_v24, %v2165_v3  ;;  %v14112_v18 = vld [vmem:[#allocation135_spill] sm:$0xff]  ;;  %v14115_v3 = vld [vmem:[#allocation136_spill] sm:$0xff]  ;;  %v4153_v40 = vstv %s10825_s22  ;;  %s7303_s22 = sld [smem:[#allocation7 + $0xa]] }
 0x37a   :  { %v4074_v28 = vsel %vm621_vm3, %v4072_v9, %v4073_v45  ;;  %v4095_v36 = vmul.f32 %v4094_v31, %v8788_v47  ;;  %v10864_v59 = vmul.f32 %v4094_v31, %v8805_v62  ;;  %v2166_v20 = vadd.f32 %v14112_v18, %v2135_v8  ;;  %v14116_v24 = vld [vmem:[#allocation72_spill] sm:$0xff]  ;;  %v14117_v8 = vld [vmem:[#allocation266_spill] sm:$0xff]  ;;  %v14122_v46 = vld [vmem:[#allocation223_spill] sm:$0xff] }
 0x37b   :  { %v1492_v53 = vadd.f32 %v14113_v35, %v1456_v42  ;;  %v1493_v60 = vadd.f32 %v14114_v2, %v1457_v51  ;;  %4030 = vrot.lane.b32.xlu0 %v4019_v55, %s7613_s5  ;;  %4078 = vrot.lane.b32.xlu1 %v4074_v28, %s7612_s21  ;;  %v2167_v4 = vadd.f32 %v14115_v3, %v2136_v10  ;;  %v14118_v42 = vld [vmem:[#allocation272_spill] sm:$0xff]  ;;  %v14119_v51 = vld [vmem:[#allocation81_spill] sm:$0xff] }
 0x37c   :  { %v4077_v9 = vsel %vm621_vm3, %v4075_v50, %v4076_v30  ;;  %v4097_v27 = vmul.f32 %v4094_v31, %v8824_v57  ;;  %v1458_v12 = vadd.f32 %v14116_v24, %v1430_v26  ;;  %v1536_v2 = vadd.f32 %v14119_v51, %v1527_v56  ;;  %v10883_v28 = vpop.permute.xlu1 %2774  ;;  %v14123_v24 = vld [vmem:[#allocation252_spill] sm:$0xff]  ;;  %v14125_v56 = vld [vmem:[#allocation141_spill] sm:$0xff] }
 0x37d   :  { %v1528_v18 = vadd.f32 %v14117_v8, %v1492_v53  ;;  %v1529_v35 = vadd.f32 %v14118_v42, %v1493_v60  ;;  %v10881_v55 = vpop.permute.xlu0 %3727  ;;  %14121 = vst [vmem:[#allocation262_spill] sm:$0xff] %v10883_v28  ;;  %v4103_v15 = vrot.slane %v4095_v36, 1  ;;  %v4104_v10 = vrot.slane %v10864_v59, 1  ;;  %v14124_v8 = vld [vmem:[#allocation31_spill] sm:$0xff]  ;;  %v14126_v36 = vld [vmem:[#allocation224_spill] sm:$0xff] }
 0x37e   :  { %14120 = vst [vmem:[#allocation210_spill] sm:$0xff] %v10881_v55  ;;  %v10887_v50 = vmul.f32 %v4094_v31, %v8839_v43  ;;  %v4154_v3 = vmul.f32 %v4153_v40, %v8788_v47  ;;  %v2194_v26 = vadd.f32 %v14122_v46, %v2166_v20  ;;  %v1494_v53 = vadd.f32 %v14123_v24, %v1458_v12  ;;  %v14127_v55 = vld [vmem:[#allocation24_spill] sm:$0xff]  ;;  %v14128_v46 = vld [vmem:[#allocation82_spill] sm:$0xff] }
 0x37f   :  { %v1561_v60 = vadd.f32 %v14124_v8, %v1536_v2  ;;  %4080 = vrot.lane.b32.xlu0 %v4073_v45, %s7612_s21  ;;  %4082 = vrot.lane.b32.xlu1 %v4077_v9, %s7612_s21  ;;  %v2228_v42 = vadd.f32 %v14125_v56, %v2192_v13  ;;  %v10897_v51 = vadd.f32 %v14126_v36, %v2167_v4  ;;  %v4106_v59 = vrot.slane %v4097_v27, 1  ;;  %v14129_v12 = vld [vmem:[#allocation246_spill] sm:$0xff]  ;;  %v14130_v2 = vld [vmem:[#allocation225_spill] sm:$0xff] }
 0x380   :  { %v4155_v31 = vmul.f32 %v4153_v40, %v8805_v62  ;;  %v1530_v19 = vadd.f32 %v14127_v55, %v1494_v53  ;;  %v1537_v20 = vadd.f32 %v14128_v46, %v1528_v18  ;;  %v1538_v24 = vadd.f32 %v14129_v12, %v1529_v35  ;;  %v10906_v9 = vpop.permute.xlu1 %3755  ;;  %v14133_v36 = vld [vmem:[#allocation142_spill] sm:$0xff]  ;;  %v14134_v53 = vld [vmem:[#allocation229_spill] sm:$0xff] }
 0x381   :  { %v1586_v8 = vadd.f32 %v14130_v2, %v1561_v60  ;;  %v10904_v45 = vpop.permute.xlu0 %2776  ;;  %14132 = vst [vmem:[#allocation109_spill] sm:$0xff] %v10906_v9  ;;  %v4105_v13 = vsel %vm621_vm3, %v4103_v15, %v4104_v10  ;;  %v4107_v4 = vrot.slane %v10887_v50, 1  ;;  %v4164_v27 = vrot.slane %v4154_v3, 2  ;;  %v14135_v46 = vld [vmem:[#allocation46_spill] sm:$0xff]  ;;  %v14136_v2 = vld [vmem:[#allocation247_spill] sm:$0xff] }
 0x382   :  { %14131 = vst [vmem:[#allocation21_spill] sm:$0xff] %v10904_v45  ;;  %v10911_v56 = vmul.f32 %v4153_v40, %v13749_v44  ;;  %v2229_v55 = vadd.f32 %v14133_v36, %v2193_v17  ;;  %v1562_v18 = vadd.f32 %v14134_v53, %v1537_v20  ;;  %v1563_v35 = vadd.f32 %v14135_v46, %v1538_v24  ;;  %v14137_v45 = vld [vmem:[#allocation53_spill] sm:$0xff]  ;;  %v14138_v36 = vld [vmem:[#allocation32_spill] sm:$0xff] }
 0x383   :  { %4084 = vrot.lane.b32.xlu0 %v4076_v30, %s7612_s21  ;;  %4109 = vrot.lane.b32.xlu1 %v4105_v13, %s7613_s5  ;;  %v4189_v60 = vstv %s10871_s23  ;;  %v4165_v12 = vrot.slane %v4155_v31, 2  ;;  %v4157_v15 = vmul.f32 %v4153_v40, %v8824_v57  ;;  %v4158_v50 = vmul.f32 %v4153_v40, %v8839_v43  ;;  %v14140_v13 = vld [vmem:[#allocation153_spill] sm:$0xff]  ;;  %s7321_s23 = sld [smem:[#allocation7 + $0x1c]] }
 0x384   :  { %v4190_v3 = vmul.f32 %v4189_v60, %v8788_v47  ;;  %v1539_v9 = vadd.f32 %v14136_v2, %v1530_v19  ;;  %v1587_v17 = vadd.f32 %v14137_v45, %v1562_v18  ;;  %v1588_v20 = vadd.f32 %v14138_v36, %v1563_v35  ;;  %v10928_v30 = vpop.permute.xlu1 %2778  ;;  %v14142_v2 = vld [vmem:[#allocation59_spill] sm:$0xff]  ;;  %v14143_v35 = vld [vmem:[#allocation33_spill] sm:$0xff] }
 0x385   :  { %v1609_v24 = vadd.f32 %v10573_v23, %v1586_v8  ;;  %v10926_v53 = vpop.permute.xlu0 %3757  ;;  %v2264_v31 = vadd.f32 %v14140_v13, %v2228_v42  ;;  %v4108_v46 = vsel %vm621_vm3, %v4106_v59, %v4107_v4  ;;  %v4166_v40 = vsel %vm709_vm4, %v4164_v27, %v4165_v12 }
 0x386   :  { %14139 = vst [vmem:[#allocation115_spill] sm:$0xff] %v10926_v53  ;;  %v4167_v28 = vrot.slane %v10911_v56, 2  ;;  %v1564_v19 = vadd.f32 %v14141_v61, %v1539_v9  ;;  %v10940_v23 = vmul.f32 %v4189_v60, %v8805_v62  ;;  %v4169_v59 = vrot.slane %v4157_v15, 2  ;;  %v14148_v53 = vld [vmem:[#allocation154_spill] sm:$0xff]  ;;  %v14149_v15 = vld [vmem:[#allocation55_spill] sm:$0xff] }
 0x387   :  { %v1640_v45 = vadd.f32 %v14142_v2, %v1609_v24  ;;  %4111 = vrot.lane.b32.xlu0 %v4104_v10, %s7613_s5  ;;  %4113 = vrot.lane.b32.xlu1 %v4108_v46, %s7613_s5  ;;  %v4170_v8 = vrot.slane %v4158_v50, 2  ;;  %v4200_v27 = vrot.slane %v4190_v3, 2  ;;  %v14144_v61 = vrot.slane %v10506_v6, 1  ;;  %v14145_v24 = vld [vmem:[#allocation73_spill] sm:$0xff]  ;;  %v14147_v2 = vld [vmem:[#allocation147_spill] sm:$0xff] }
 0x388   :  { %v4168_v42 = vsel %vm709_vm4, %v4165_v12, %v4167_v28  ;;  %v1589_v56 = vadd.f32 %v14143_v35, %v1564_v19  ;;  %v1611_v36 = vadd.f32 %v10663_v22, %v1588_v20  ;;  %v10950_v46 = vpop.permute.xlu1 %3759  ;;  %v2230_v18 = vadd.f32 %v14147_v2, %v2194_v26  ;;  %v14150_v6 = vld [vmem:[#allocation49_spill] sm:$0xff]  ;;  %v14151_v22 = vld [vmem:[#allocation66_spill] sm:$0xff]  ;;  %v14156_v2 = vld [vmem:[#allocation87_spill] sm:$0xff] }
 0x389   :  { %v1610_v9 = vadd.f32 %v14144_v61, %v1587_v17  ;;  %v1671_v13 = vadd.f32 %v14145_v24, %v1640_v45  ;;  %v10948_v10 = vpop.permute.xlu0 %2780  ;;  %14146 = vst [vmem:[#allocation110_spill] sm:$0xff] %v10950_v46  ;;  %v2265_v12 = vadd.f32 %v14148_v53, %v2229_v55  ;;  %v2273_v50 = vadd.f32 %v14149_v15, %v2264_v31  ;;  %v14152_v53 = vld [vmem:[#allocation159_spill] sm:$0xff]  ;;  %v14153_v19 = vld [vmem:[#allocation165_spill] sm:$0xff]  ;;  %v14300_v46 = vld [vmem:[#allocation90_spill] sm:$0xff] }
 0x38a   :  { %v10958_v3 = vmul.f32 %v4189_v60, %v13749_v44  ;;  %v1642_v20 = vadd.f32 %v14151_v22, %v1611_v36  ;;  %v4201_v26 = vrot.slane %v10940_v23, 2  ;;  %v4193_v55 = vmul.f32 %v4189_v60, %v8824_v57  ;;  %v14155_v24 = vld [vmem:[#allocation77_spill] sm:$0xff] }
 0x38b   :  { %v1641_v17 = vadd.f32 %v14150_v6, %v1610_v9  ;;  %4115 = vrot.lane.b32.xlu0 %v4107_v4, %s7613_s5  ;;  %4173 = vrot.lane.b32.xlu1 %v4166_v40, %s7612_s21  ;;  %v2266_v31 = vadd.f32 %v14152_v53, %v2230_v18  ;;  %v2298_v45 = vadd.f32 %v14153_v19, %v2273_v50  ;;  %v14154_v9 = vrot.slane %v10601_v34, 1  ;;  %v14158_v18 = vld [vmem:[#allocation54_spill] sm:$0xff]  ;;  %v14159_v22 = vld [vmem:[#allocation177_spill] sm:$0xff]  ;;  %v14160_v34 = vld [vmem:[#allocation68_spill] sm:$0xff] }
 0x38c   :  { %v4171_v35 = vsel %vm709_vm4, %v4169_v59, %v4170_v8  ;;  %v10972_v61 = vmul.f32 %v4189_v60, %v8839_v43  ;;  %v1673_v40 = vadd.f32 %v14156_v2, %v1642_v20  ;;  %v1699_v23 = vadd.f32 %v10775_v0, %v1671_v13  ;;  %v10981_v6 = vpop.permute.xlu1 %2799  ;;  %v14161_v19 = vld [vmem:[#allocation249_spill] sm:$0xff] }
 0x38d   :  { %v1612_v36 = vadd.f32 %v14154_v9, %v1589_v56  ;;  %v1672_v4 = vadd.f32 %v14155_v24, %v1641_v17  ;;  %v10979_v15 = vpop.permute.xlu0 %3761  ;;  %v2274_v50 = vadd.f32 %v14158_v18, %v2265_v12  ;;  %v2323_v59 = vadd.f32 %v14159_v22, %v2298_v45  ;;  %v14162_v12 = vld [vmem:[#allocation148_spill] sm:$0xff]  ;;  %v14163_v45 = vld [vmem:[#allocation166_spill] sm:$0xff]  ;;  %v14169_v22 = vld [vmem:[#allocation213_spill] sm:$0xff] }
 0x38e   :  { %14157 = vst [vmem:[#allocation127_spill] sm:$0xff] %v10979_v15  ;;  %v4172_v60 = vsel %vm709_vm4, %v4170_v8, %v4167_v28  ;;  %v4202_v53 = vsel %vm709_vm4, %v4200_v27, %v4201_v26  ;;  %v1735_v17 = vadd.f32 %v14161_v19, %v1699_v23  ;;  %v4203_v0 = vrot.slane %v10958_v3, 2  ;;  %v14164_v8 = vld [vmem:[#allocation22_spill] sm:$0xff]  ;;  %v14167_v23 = vld [vmem:[#allocation160_spill] sm:$0xff] }
 0x38f   :  { %v1643_v56 = vadd.f32 %v14160_v34, %v1612_v36  ;;  %4175 = vrot.lane.b32.xlu0 %v4168_v42, %s7612_s21  ;;  %4177 = vrot.lane.b32.xlu1 %v4171_v35, %s7612_s21  ;;  %v4205_v13 = vrot.slane %v4193_v55, 2  ;;  %v2231_v20 = vadd.f32 %v14162_v12, %v10897_v51  ;;  %v2299_v28 = vadd.f32 %v14163_v45, %v2274_v50  ;;  %v14165_v36 = vld [vmem:[#allocation251_spill] sm:$0xff]  ;;  %v14168_v18 = vld [vmem:[#allocation178_spill] sm:$0xff] }
 0x390   :  { %v2275_v27 = vadd.f32 %v14164_v8, %v2266_v31  ;;  %v4206_v9 = vrot.slane %v10972_v61, 2  ;;  %v1700_v42 = vadd.f32 %v10792_v21, %v1672_v4  ;;  %v1701_v35 = vadd.f32 %v10848_v33, %v1673_v40  ;;  %v11003_v55 = vpop.permute.xlu1 %3780  ;;  %v14172_v40 = vld [vmem:[#allocation171_spill] sm:$0xff] }
 0x391   :  { %v1674_v24 = vadd.f32 %v14165_v36, %v1643_v56  ;;  %v1771_v2 = vadd.f32 %v10705_v48, %v1735_v17  ;;  %v11001_v3 = vpop.permute.xlu0 %2801  ;;  %14166 = vst [vmem:[#allocation116_spill] sm:$0xff] %v11003_v55  ;;  %v2267_v51 = vadd.f32 %v14167_v23, %v2231_v20  ;;  %v2324_v50 = vadd.f32 %v14168_v18, %v2299_v28  ;;  %v14177_v8 = vld [vmem:[#allocation183_spill] sm:$0xff]  ;;  %v14306_v55 = vld [vmem:[#allocation262_spill] sm:$0xff] }
 0x392   :  { %v2346_v31 = vadd.f32 %v14169_v22, %v2323_v59  ;;  %v1775_v34 = vstv %s10955_s24  ;;  %v1736_v61 = vadd.f32 %v10555_v32, %v1700_v42  ;;  %v11011_v56 = vstv %s10962_s1  ;;  %v14173_v59 = vld [vmem:[#allocation189_spill] sm:$0xff]  ;;  %v14178_v36 = vld [vmem:[#allocation23_spill] sm:$0xff]  ;;  %s7304_s24 = sld [smem:[#allocation7 + $0xb]] }
 0x393   :  { %v1737_v21 = vadd.f32 %v10623_v37, %v1701_v35  ;;  %v14170_v33 = vrot.slane %v10748_v41, 2  ;;  %v14171_v48 = vrot.slane %v10808_v11, 2  ;;  %4179 = vrot.lane.b32.xlu0 %v4172_v60, %s7612_s21  ;;  %4209 = vrot.lane.b32.xlu1 %v4202_v53, %s7613_s5  ;;  %v2300_v19 = vadd.f32 %v14172_v40, %v2275_v27  ;;  %v14176_v53 = vld [vmem:[#allocation220_spill] sm:$0xff]  ;;  %v14180_v35 = vld [vmem:[#allocation203_spill] sm:$0xff]  ;;  %s7322_s1 = sld [smem:[#allocation7 + $0x1d]] }
 0x394   :  { %v2377_v17 = vadd.f32 %v14173_v59, %v2346_v31  ;;  %v4204_v32 = vsel %vm709_vm4, %v4201_v26, %v4203_v0  ;;  %v4207_v12 = vsel %vm709_vm4, %v4205_v13, %v4206_v9  ;;  %v11025_v37 = vadd.f32 %v1775_v34, %v1771_v2  ;;  %v11031_v60 = vpop.permute.xlu1 %2803  ;;  %v14185_v31 = vld [vmem:[#allocation190_spill] sm:$0xff] }
 0x395   :  { %v1694_v4 = vsel %vm709_vm4, %v14171_v48, %v14170_v33  ;;  %v1772_v41 = vadd.f32 %v10737_v29, %v1736_v61  ;;  %v1773_v11 = vadd.f32 %v10803_v39, %v1737_v21  ;;  %v11029_v45 = vpop.permute.xlu0 %3782  ;;  %v2276_v28 = vadd.f32 %v14176_v53, %v2267_v51  ;;  %v14183_v39 = vld [vmem:[#allocation101_spill] sm:$0xff]  ;;  %v14186_v21 = vld [vmem:[#allocation104_spill] sm:$0xff] }
 0x396   :  { %v1702_v20 = vadd.f32 %v1694_v4, %v1674_v24  ;;  %14174 = vst [vmem:[#allocation121_spill] sm:$0xff] %v11025_v37  ;;  %14175 = vst [vmem:[#allocation19_spill] sm:$0xff] %v11029_v45  ;;  %v2325_v27 = vadd.f32 %v14177_v8, %v2300_v19  ;;  %v14179_v42 = vrot.slane %v14178_v36, 1  ;;  %v2408_v13 = vadd.f32 %v14180_v35, %v2377_v17  ;;  %v14181_v24 = vld [vmem:[#allocation268_spill] sm:$0xff]  ;;  %v14193_v8 = vld [vmem:[#allocation67_spill] sm:$0xff] }
 0x397   :  { %v14182_v2 = vrot.slane %v14181_v24, 1  ;;  %v13480_v29 = vrot.slane %v10728_v54, 1  ;;  %v2657_v18 = vmul.f32 %v11011_v56, %v14183_v39  ;;  %4211 = vrot.lane.b32.xlu0 %v4204_v32, %s7613_s5  ;;  %4213 = vrot.lane.b32.xlu1 %v4207_v12, %s7613_s5  ;;  %v4208_v33 = vsel %vm709_vm4, %v4206_v9, %v4203_v0  ;;  %v14190_v17 = vld [vmem:[#allocation184_spill] sm:$0xff]  ;;  %v14194_v9 = vld [vmem:[#allocation95_spill] sm:$0xff] }
 0x398   :  { %v2347_v26 = vadd.f32 %v14179_v42, %v2324_v50  ;;  %v1738_v51 = vadd.f32 %v10651_v49, %v1702_v20  ;;  %v14184_v50 = vld [vmem:[#allocation172_spill] sm:$0xff]  ;;  %v13479_v48 = vmax.f32 %v11025_v37, 0.0  ;;  %v11055_v4 = vadd.f32 %v1775_v34, %v1772_v41  ;;  %v11062_v59 = vpop.permute.xlu1 %3784  ;;  %v14195_v36 = vld [vmem:[#allocation119_spill] sm:$0xff] }
 0x399   :  { %v3086_v23 = vadd.f32 %v14182_v2, %v10753_v16  ;;  %v2301_v22 = vadd.f32 %v14184_v50, %v2276_v28  ;;  %v2658_v16 = vmul.f32 %v11011_v56, %v14186_v21  ;;  %v11057_v40 = vadd.f32 %v1775_v34, %v1773_v11  ;;  %v11060_v19 = vpop.permute.xlu0 %2805  ;;  %14189 = vst [vmem:[#allocation133_spill] sm:$0xff] %v11062_v59  ;;  %v14191_v12 = vld [vmem:[#allocation60_spill] sm:$0xff]  ;;  %v14200_v2 = vld [vmem:[#allocation234_spill] sm:$0xff]  ;;  %v14237_v37 = vld [vmem:[#allocation219_spill] sm:$0xff] }
 0x39a   :  { %v2378_v61 = vadd.f32 %v14185_v31, %v2347_v26  ;;  %14187 = vst [vmem:[#allocation201_spill] sm:$0xff] %v11055_v4  ;;  %v1774_v49 = vadd.f32 %v10832_v1, %v1738_v51  ;;  %v2348_v20 = vadd.f32 %v14191_v12, %v2325_v27  ;;  %v14192_v53 = vld [vmem:[#allocation204_spill] sm:$0xff]  ;;  %v2436_v0 = vadd.f32 %v14193_v8, %v2408_v13  ;;  %v14199_v27 = vld [vmem:[#allocation195_spill] sm:$0xff]  ;;  %v14254_v59 = vld [vmem:[#allocation61_spill] sm:$0xff] }
 0x39b   :  { %14188 = vst [vmem:[#allocation128_spill] sm:$0xff] %v11057_v40  ;;  %v2326_v32 = vadd.f32 %v14190_v17, %v2301_v22  ;;  %v3114_v41 = vadd.f32 %v14195_v36, %v14194_v9  ;;  %v14196_v42 = vld [vmem:[#allocation96_spill] sm:$0xff]  ;;  %v14198_v1 = vrot.slane %v10709_v5, 1  ;;  %v2667_v24 = vrot.slane %v2657_v18, 2  ;;  %4215 = vrot.lane.b32.xlu0 %v4208_v33, %s7613_s5  ;;  %4238 = vrot.lane.b32.xlu1 %v13479_v48, %s7612_s21  ;;  %v14201_v5 = vld [vmem:[#allocation131_spill] sm:$0xff]  ;;  %v14207_v9 = vld [vmem:[#allocation70_spill] sm:$0xff] }
 0x39c   :  { %v2409_v28 = vadd.f32 %v14192_v53, %v2378_v61  ;;  %v14197_v11 = vld [vmem:[#allocation120_spill] sm:$0xff]  ;;  %v2379_v13 = vadd.f32 %v14199_v27, %v2348_v20  ;;  %v2472_v51 = vadd.f32 %v14200_v2, %v2436_v0  ;;  %v2668_v50 = vrot.slane %v2658_v16, 2  ;;  %v11096_v12 = vpop.permute.xlu1 %2853  ;;  %v14206_v16 = vld [vmem:[#allocation217_spill] sm:$0xff]  ;;  %v14221_v48 = vld [vmem:[#allocation83_spill] sm:$0xff] }
 0x39d   :  { %v3115_v26 = vadd.f32 %v14197_v11, %v14196_v42  ;;  %v11077_v35 = vsel %vm621_vm3, %v14198_v1, %v13480_v29  ;;  %v11087_v22 = vmul.f32 %v11011_v56, %v13749_v44  ;;  %v3145_v31 = vadd.f32 %v14201_v5, %v3114_v41  ;;  %v11094_v17 = vpop.permute.xlu0 %3786  ;;  %v14204_v20 = vld [vmem:[#allocation36_spill] sm:$0xff]  ;;  %v14208_v42 = vld [vmem:[#allocation267_spill] sm:$0xff]  ;;  %v14209_v41 = vld [vmem:[#allocation125_spill] sm:$0xff] }
 0x39e   :  { %v13478_v18 = vmax.f32 %v11055_v4, 0.0  ;;  %v13477_v61 = vmax.f32 %v11057_v40, 0.0  ;;  %v11092_v33 = vadd.f32 %v1775_v34, %v1774_v49  ;;  %14203 = vst [vmem:[#allocation122_spill] sm:$0xff] %v11094_v17  ;;  %v14205_v53 = vrot.slane %v14204_v20, 1  ;;  %v14210_v27 = vld [vmem:[#allocation132_spill] sm:$0xff]  ;;  %v14214_v5 = vld [vmem:[#allocation137_spill] sm:$0xff] }
 0x39f   :  { %v2410_v0 = vadd.f32 %v14206_v16, %v2379_v13  ;;  %v2437_v36 = vadd.f32 %v14207_v9, %v2409_v28  ;;  %v2508_v11 = vadd.f32 %v14208_v42, %v2472_v51  ;;  %v3116_v1 = vadd.f32 %v14209_v41, %v10724_v52  ;;  %v14212_v13 = vld [vmem:[#allocation235_spill] sm:$0xff]  ;;  %v14216_v9 = vld [vmem:[#allocation30_spill] sm:$0xff]  ;;  %v14238_v17 = vld [vmem:[#allocation149_spill] sm:$0xff] }
 0x3a0   :  { %14202 = vst [vmem:[#allocation207_spill] sm:$0xff] %v11092_v33  ;;  %v2349_v8 = vadd.f32 %v14205_v53, %v2326_v32  ;;  %v3146_v2 = vadd.f32 %v14210_v27, %v3115_v26  ;;  %v11107_v34 = vsel %vm709_vm4, %v2667_v24, %v2668_v50  ;;  %v11110_v49 = vstv %s11044_s3  ;;  %4240 = vrot.lane.b32.xlu0 %v13478_v18, %s7612_s21  ;;  %v14211_v32 = vld [vmem:[#allocation196_spill] sm:$0xff]  ;;  %v14213_v26 = vld [vmem:[#allocation27_spill] sm:$0xff]  ;;  %v14220_v18 = vld [vmem:[#allocation269_spill] sm:$0xff]  ;;  %s7306_s3 = sld [smem:[#allocation7 + $0xd]] }
 0x3a1   :  { %4242 = vrot.lane.b32.xlu1 %v13477_v61, %s7612_s21  ;;  %v2473_v51 = vadd.f32 %v14212_v13, %v2437_v36  ;;  %v3638_v24 = vmul.f32 %v11110_v49, %v14213_v26  ;;  %v3147_v20 = vadd.f32 %v14214_v5, %v3116_v1  ;;  %v14215_v53 = vld [vmem:[#allocation35_spill] sm:$0xff]  ;;  %v11127_v42 = vmul.f32 %v11110_v49, %v14216_v9  ;;  %v11130_v27 = vpop.permute.xlu0 %2855  ;;  %v14218_v36 = vld [vmem:[#allocation221_spill] sm:$0xff]  ;;  %v14219_v13 = vld [vmem:[#allocation74_spill] sm:$0xff] }
 0x3a2   :  { %v2380_v28 = vadd.f32 %v14211_v32, %v2349_v8  ;;  %v3173_v16 = vadd.f32 %v14215_v53, %v3145_v31  ;;  %v11132_v8 = vpop.permute.xlu1 %3834  ;;  %v2438_v61 = vadd.f32 %v14219_v13, %v2410_v0  ;;  %v2517_v1 = vadd.f32 %v14221_v48, %v2508_v11  ;;  %v14222_v5 = vld [vmem:[#allocation126_spill] sm:$0xff]  ;;  %v14223_v53 = vld [vmem:[#allocation143_spill] sm:$0xff]  ;;  %v14224_v9 = vld [vmem:[#allocation41_spill] sm:$0xff] }
 0x3a3   :  { %14217 = vst [vmem:[#allocation139_spill] sm:$0xff] %v11132_v8  ;;  %v2509_v26 = vadd.f32 %v14220_v18, %v2473_v51  ;;  %v3117_v31 = vadd.f32 %v14222_v5, %v3086_v23  ;;  %v3174_v52 = vadd.f32 %v14224_v9, %v3146_v2  ;;  %v14225_v41 = vrot.slane %v11087_v22, 2  ;;  %v14227_v0 = vld [vmem:[#allocation253_spill] sm:$0xff]  ;;  %v14228_v18 = vld [vmem:[#allocation40_spill] sm:$0xff]  ;;  %v14229_v11 = vld [vmem:[#allocation138_spill] sm:$0xff] }
 0x3a4   :  { %v2411_v32 = vadd.f32 %v14218_v36, %v2380_v28  ;;  %v3209_v29 = vadd.f32 %v14223_v53, %v3173_v16  ;;  %v14226_v28 = vmax.f32 %v11092_v33, 0.0  ;;  %v2474_v36 = vadd.f32 %v14227_v0, %v2438_v61  ;;  %v14230_v16 = vld [vmem:[#allocation144_spill] sm:$0xff]  ;;  %v14232_v5 = vld [vmem:[#allocation155_spill] sm:$0xff]  ;;  %v14235_v0 = vld [vmem:[#allocation273_spill] sm:$0xff] }
 0x3a5   :  { %v11144_v40 = vsel %vm709_vm4, %v2668_v50, %v14225_v41  ;;  %v2542_v51 = vadd.f32 %v14228_v18, %v2517_v1  ;;  %v2660_v23 = vmul.f32 %v11011_v56, %v8474_v14  ;;  %v2661_v48 = vmul.f32 %v11011_v56, %v8489_v63  ;;  %v14231_v50 = vld [vmem:[#allocation50_spill] sm:$0xff]  ;;  %v11159_v9 = vpop.permute.xlu0 %3836  ;;  %v14234_v61 = vld [vmem:[#allocation75_spill] sm:$0xff]  ;;  %v14236_v33 = vld [vmem:[#allocation84_spill] sm:$0xff] }
 0x3a6   :  { %4244 = vrot.lane.b32.xlu0 %v14226_v28, %s7612_s21  ;;  %v3148_v2 = vadd.f32 %v14229_v11, %v3117_v31  ;;  %v3210_v13 = vadd.f32 %v14230_v16, %v3174_v52  ;;  %v3175_v41 = vadd.f32 %v14231_v50, %v3147_v20  ;;  %v3245_v53 = vadd.f32 %v14232_v5, %v3209_v29  ;;  %v11161_v28 = vpop.permute.xlu1 %2857  ;;  %v14239_v11 = vld [vmem:[#allocation156_spill] sm:$0xff]  ;;  %v14241_v5 = vld [vmem:[#allocation42_spill] sm:$0xff]  ;;  %v14253_v8 = vld [vmem:[#allocation47_spill] sm:$0xff] }
 0x3a7   :  { %14233 = vst [vmem:[#allocation134_spill] sm:$0xff] %v11159_v9  ;;  %v2439_v1 = vadd.f32 %v14234_v61, %v2411_v32  ;;  %v2510_v18 = vadd.f32 %v14235_v0, %v2474_v36  ;;  %v2518_v4 = vadd.f32 %v14236_v33, %v2509_v26  ;;  %v2567_v56 = vadd.f32 %v14237_v37, %v2542_v51  ;;  %v14240_v20 = vld [vmem:[#allocation260_spill] sm:$0xff]  ;;  %v14242_v33 = vld [vmem:[#allocation51_spill] sm:$0xff]  ;;  %v14243_v26 = vld [vmem:[#allocation161_spill] sm:$0xff] }
 0x3a8   :  { %v3211_v31 = vadd.f32 %v14238_v17, %v3175_v41  ;;  %v3246_v52 = vadd.f32 %v14239_v11, %v3210_v13  ;;  %v3648_v16 = vrot.slane %v3638_v24, 2  ;;  %v11171_v29 = vmul.f32 %v11110_v49, %v13749_v44  ;;  %v14244_v51 = vld [vmem:[#allocation57_spill] sm:$0xff]  ;;  %v14247_v0 = vld [vmem:[#allocation250_spill] sm:$0xff] }
 0x3a9   :  { %v2475_v50 = vadd.f32 %v14240_v20, %v2439_v1  ;;  %v2543_v9 = vadd.f32 %v14241_v5, %v2518_v4  ;;  %v2672_v36 = vrot.slane %v2660_v23, 2  ;;  %v3176_v37 = vadd.f32 %v14242_v33, %v3148_v2  ;;  %v11183_v41 = vpop.permute.xlu0 %2859  ;;  %v14246_v1 = vld [vmem:[#allocation25_spill] sm:$0xff]  ;;  %v14248_v23 = vld [vmem:[#allocation214_spill] sm:$0xff] }
 0x3aa   :  { %v3247_v17 = vadd.f32 %v14243_v26, %v3211_v31  ;;  %v3254_v13 = vadd.f32 %v14244_v51, %v3245_v53  ;;  %v2673_v24 = vrot.slane %v2661_v48, 2  ;;  %v11185_v61 = vpop.permute.xlu1 %3838  ;;  %v2519_v11 = vadd.f32 %v14247_v0, %v2510_v18  ;;  %v14249_v5 = vld [vmem:[#allocation97_spill] sm:$0xff]  ;;  %v14250_v2 = vld [vmem:[#allocation150_spill] sm:$0xff]  ;;  %v14251_v31 = vld [vmem:[#allocation167_spill] sm:$0xff] }
 0x3ab   :  { %14245 = vst [vmem:[#allocation29_spill] sm:$0xff] %v11185_v61  ;;  %v2511_v4 = vadd.f32 %v14246_v1, %v2475_v50  ;;  %v2568_v20 = vadd.f32 %v14248_v23, %v2543_v9  ;;  %v2590_v32 = vadd.f32 %v14249_v5, %v2567_v56  ;;  %v3212_v33 = vadd.f32 %v14250_v2, %v3176_v37  ;;  %v14252_v53 = vld [vmem:[#allocation38_spill] sm:$0xff]  ;;  %v14257_v1 = vld [vmem:[#allocation168_spill] sm:$0xff]  ;;  %v14259_v23 = vld [vmem:[#allocation179_spill] sm:$0xff] }
 0x3ac   :  { %v3279_v26 = vadd.f32 %v14251_v31, %v3254_v13  ;;  %v3255_v48 = vadd.f32 %v14252_v53, %v3246_v52  ;;  %v2544_v15 = vadd.f32 %v14253_v8, %v2519_v11  ;;  %v14255_v50 = vrot.slane %v11127_v42, 2  ;;  %v14256_v56 = vld [vmem:[#allocation162_spill] sm:$0xff]  ;;  %v14258_v0 = vld [vmem:[#allocation228_spill] sm:$0xff]  ;;  %v14262_v11 = vld [vmem:[#allocation227_spill] sm:$0xff] }
 0x3ad   :  { %v2621_v61 = vadd.f32 %v14254_v59, %v2590_v32  ;;  %v11203_v9 = vsel %vm709_vm4, %v2672_v36, %v2673_v24  ;;  %v3248_v37 = vadd.f32 %v14256_v56, %v3212_v33  ;;  %v3256_v52 = vadd.f32 %v14258_v0, %v3247_v17  ;;  %v11209_v8 = vpop.permute.xlu0 %3840  ;;  %v14261_v32 = vld [vmem:[#allocation88_spill] sm:$0xff]  ;;  %v14281_v51 = vld [vmem:[#allocation69_spill] sm:$0xff] }
 0x3ae   :  { %v11200_v18 = vsel %vm709_vm4, %v3648_v16, %v14255_v50  ;;  %v3280_v13 = vadd.f32 %v14257_v1, %v3255_v48  ;;  %v3304_v5 = vadd.f32 %v14259_v23, %v3279_v26  ;;  %14260 = vst [vmem:[#allocation151_spill] sm:$0xff] %v11209_v8  ;;  %v11211_v59 = vpop.permute.xlu1 %2884  ;;  %v2520_v16 = vadd.f32 %v14261_v32, %v2511_v4  ;;  %v14263_v36 = vld [vmem:[#allocation248_spill] sm:$0xff]  ;;  %v14266_v48 = vld [vmem:[#allocation173_spill] sm:$0xff]  ;;  %v14269_v4 = vld [vmem:[#allocation218_spill] sm:$0xff] }
 0x3af   :  { %v2569_v2 = vadd.f32 %v14262_v11, %v2544_v15  ;;  %v14264_v31 = vrot.slane %v14263_v36, 1  ;;  %v14265_v33 = vld [vmem:[#allocation80_spill] sm:$0xff]  ;;  %v3281_v56 = vadd.f32 %v14266_v48, %v3256_v52  ;;  %v14268_v26 = vrot.slane %v11087_v22, 2  ;;  %v14270_v32 = vld [vmem:[#allocation63_spill] sm:$0xff]  ;;  %v14272_v36 = vld [vmem:[#allocation185_spill] sm:$0xff] }
 0x3b0   :  { %v2652_v50 = vadd.f32 %v14265_v33, %v2621_v61  ;;  %v14267_v1 = vld [vmem:[#allocation180_spill] sm:$0xff]  ;;  %v11227_v23 = vmul.f32 %v11110_v49, %v8124_v7  ;;  %v2545_v15 = vadd.f32 %v14269_v4, %v2520_v16  ;;  %v11233_v61 = vmul.f32 %v11110_v49, %v8139_v25  ;;  %v14271_v52 = vld [vmem:[#allocation39_spill] sm:$0xff]  ;;  %v14277_v49 = vld [vmem:[#allocation174_spill] sm:$0xff] }
 0x3b1   :  { %v2591_v53 = vadd.f32 %v14264_v31, %v2568_v20  ;;  %v3305_v17 = vadd.f32 %v14267_v1, %v3280_v13  ;;  %v11223_v0 = vsel %vm709_vm4, %v2673_v24, %v14268_v26  ;;  %v2756_v20 = vstv %s11176_s25  ;;  %v14273_v31 = vld [vmem:[#allocation215_spill] sm:$0xff]  ;;  %v11240_v48 = vpop.permute.xlu0 %2886  ;;  %v14275_v1 = vld [vmem:[#allocation56_spill] sm:$0xff]  ;;  %s7324_s25 = sld [smem:[#allocation7 + $0x1f]] }
 0x3b2   :  { %v3257_v13 = vadd.f32 %v14271_v52, %v3248_v37  ;;  %v3306_v22 = vadd.f32 %v14272_v36, %v3281_v56  ;;  %v3327_v24 = vadd.f32 %v14273_v31, %v3304_v5  ;;  %v2815_v33 = vstv %s11181_s26  ;;  %v11242_v7 = vpop.permute.xlu1 %3865  ;;  %v14276_v26 = vld [vmem:[#allocation79_spill] sm:$0xff]  ;;  %v14279_v56 = vld [vmem:[#allocation28_spill] sm:$0xff]  ;;  %s7307_s26 = sld [smem:[#allocation7 + $0xe]] }
 0x3b3   :  { %v2622_v11 = vadd.f32 %v14270_v32, %v2591_v53  ;;  %14274 = vst [vmem:[#allocation112_spill] sm:$0xff] %v11242_v7  ;;  %v2570_v16 = vadd.f32 %v14275_v1, %v2545_v15  ;;  %v2592_v53 = vadd.f32 %v10744_v58, %v2569_v2  ;;  %v2680_v25 = vadd.f32 %v11107_v34, %v2652_v50  ;;  %v14278_v37 = vld [vmem:[#allocation191_spill] sm:$0xff]  ;;  %v14282_v7 = vld [vmem:[#allocation94_spill] sm:$0xff]  ;;  %v14284_v50 = vld [vmem:[#allocation192_spill] sm:$0xff] }
 0x3b4   :  { %v3282_v32 = vadd.f32 %v14277_v49, %v3257_v13  ;;  %v3358_v52 = vadd.f32 %v14278_v37, %v3327_v24  ;;  %v14280_v36 = vrot.slane %v14279_v56, 1  ;;  %v2757_v31 = vmul.f32 %v2756_v20, %v8788_v47  ;;  %v14283_v2 = vld [vmem:[#allocation186_spill] sm:$0xff]  ;;  %v14286_v1 = vld [vmem:[#allocation205_spill] sm:$0xff]  ;;  %v14290_v56 = vld [vmem:[#allocation20_spill] sm:$0xff] }
 0x3b5   :  { %v2653_v4 = vadd.f32 %v14276_v26, %v2622_v11  ;;  %v2623_v8 = vadd.f32 %v14281_v51, %v2592_v53  ;;  %v2716_v45 = vadd.f32 %v14282_v7, %v2680_v25  ;;  %v2816_v15 = vmul.f32 %v2815_v33, %v8788_v47  ;;  %v14285_v13 = vld [vmem:[#allocation62_spill] sm:$0xff]  ;;  %v14289_v53 = vld [vmem:[#allocation255_spill] sm:$0xff] }
 0x3b6   :  { %v3328_v5 = vadd.f32 %v14280_v36, %v3305_v17  ;;  %v11257_v58 = vmul.f32 %v2815_v33, %v8805_v62  ;;  %v3307_v34 = vadd.f32 %v14283_v2, %v3282_v32  ;;  %v3329_v24 = vadd.f32 %v14285_v13, %v3306_v22  ;;  %v11263_v17 = vpop.permute.xlu0 %3867  ;;  %v11265_v49 = vpop.permute.xlu1 %2888  ;;  %v14291_v32 = vld [vmem:[#allocation197_spill] sm:$0xff]  ;;  %v14293_v13 = vld [vmem:[#allocation238_spill] sm:$0xff] }
 0x3b7   :  { %v3389_v26 = vadd.f32 %v14286_v1, %v3358_v52  ;;  %14287 = vst [vmem:[#allocation113_spill] sm:$0xff] %v11263_v17  ;;  %v14288_v51 = vrot.slane %v10669_v38, 1  ;;  %v2654_v25 = vadd.f32 %v14289_v53, %v2623_v8  ;;  %v2681_v37 = vadd.f32 %v11144_v40, %v2653_v4  ;;  %v14294_v38 = vld [vmem:[#allocation258_spill] sm:$0xff]  ;;  %v14295_v40 = vld [vmem:[#allocation37_spill] sm:$0xff] }
 0x3b8   :  { %v3359_v11 = vadd.f32 %v14284_v50, %v3328_v5  ;;  %v2752_v36 = vadd.f32 %v14290_v56, %v2716_v45  ;;  %v3360_v2 = vadd.f32 %v14291_v32, %v3329_v24  ;;  %v14292_v5 = vld [vmem:[#allocation211_spill] sm:$0xff]  ;;  %v2758_v22 = vmul.f32 %v2756_v20, %v8805_v62  ;;  %v14297_v53 = vld [vmem:[#allocation222_spill] sm:$0xff]  ;;  %v14298_v56 = vld [vmem:[#allocation237_spill] sm:$0xff] }
 0x3b9   :  { %v2593_v7 = vadd.f32 %v14288_v51, %v2570_v16  ;;  %v2759_v52 = vmul.f32 %v2756_v20, %v8824_v57  ;;  %v2717_v16 = vadd.f32 %v14294_v38, %v2681_v37  ;;  %v2824_v51 = vrot.slane %v2816_v15, 1  ;;  %v14301_v15 = vld [vmem:[#allocation254_spill] sm:$0xff] }
 0x3ba   :  { %v3390_v50 = vadd.f32 %v14292_v5, %v3359_v11  ;;  %v14296_v4 = vrot.slane %v14295_v40, 1  ;;  %v3391_v24 = vadd.f32 %v14297_v53, %v3360_v2  ;;  %v3417_v11 = vadd.f32 %v14298_v56, %v3389_v26  ;;  %v11286_v5 = vpop.permute.xlu0 %2890  ;;  %v11288_v17 = vpop.permute.xlu1 %3869  ;;  %v14302_v8 = vld [vmem:[#allocation198_spill] sm:$0xff]  ;;  %v14304_v2 = vld [vmem:[#allocation71_spill] sm:$0xff] }
 0x3bb   :  { %v2624_v1 = vadd.f32 %v14293_v13, %v2593_v7  ;;  %v2760_v32 = vmul.f32 %v2756_v20, %v8839_v43  ;;  %14299 = vst [vmem:[#allocation140_spill] sm:$0xff] %v11288_v17  ;;  %v2682_v37 = vadd.f32 %v11203_v9, %v2654_v25  ;;  %v2753_v13 = vadd.f32 %v14301_v15, %v2717_v16  ;;  %v14305_v20 = vld [vmem:[#allocation103_spill] sm:$0xff]  ;;  %v14310_v16 = vld [vmem:[#allocation76_spill] sm:$0xff]  ;;  %v14312_v15 = vld [vmem:[#allocation257_spill] sm:$0xff] }
 0x3bc   :  { %v3330_v45 = vadd.f32 %v14296_v4, %v3307_v34  ;;  %v2761_v38 = vadd.f32 %v2757_v31, %v2752_v36  ;;  %v14303_v34 = vld [vmem:[#allocation236_spill] sm:$0xff]  ;;  %v3418_v53 = vadd.f32 %v14304_v2, %v3390_v50  ;;  %v2818_v26 = vmul.f32 %v2815_v33, %v8824_v57  ;;  %v14308_v31 = vld [vmem:[#allocation231_spill] sm:$0xff]  ;;  %v14309_v36 = vld [vmem:[#allocation242_spill] sm:$0xff] }
 0x3bd   :  { %v2655_v7 = vadd.f32 %v14300_v46, %v2624_v1  ;;  %v3453_v4 = vadd.f32 %v14303_v34, %v3417_v11  ;;  %v2718_v56 = vadd.f32 %v14305_v20, %v2682_v37  ;;  %v14307_v17 = vrot.slane %v11257_v58, 1 }
 0x3be   :  { %v3361_v40 = vadd.f32 %v14302_v8, %v3330_v45  ;;  %v2786_v63 = vadd.f32 %v14306_v55, %v2761_v38  ;;  %v11303_v9 = vmul.f32 %v2815_v33, %v8839_v43  ;;  %v3454_v1 = vadd.f32 %v14309_v36, %v3418_v53  ;;  %v14311_v8 = vld [vmem:[#allocation270_spill] sm:$0xff]  ;;  %v11309_v11 = vpop.permute.xlu0 %3871  ;;  %v11311_v37 = vpop.permute.xlu1 %2948 }
 0x3bf   :  { %v2826_v46 = vsel %vm621_vm3, %v2824_v51, %v14307_v17  ;;  %v3419_v50 = vadd.f32 %v14310_v16, %v3391_v24  ;;  %v3489_v45 = vadd.f32 %v14311_v8, %v3453_v4  ;;  %v2683_v55 = vadd.f32 %v11223_v0, %v2655_v7  ;;  %v14313_v51 = vld [vmem:[#allocation261_spill] sm:$0xff]  ;;  %v14315_v24 = vld [vmem:[#allocation259_spill] sm:$0xff]  ;;  %v14317_v0 = vld [vmem:[#allocation78_spill] sm:$0xff] }
 0x3c0   :  { %v3392_v25 = vadd.f32 %v14308_v31, %v3361_v40  ;;  %v2754_v38 = vadd.f32 %v14312_v15, %v2718_v56  ;;  %v2762_v17 = vadd.f32 %v2758_v22, %v2753_v13  ;;  %v2811_v33 = vadd.f32 %v10981_v6, %v2786_v63  ;;  %v14314_v40 = vld [vmem:[#allocation271_spill] sm:$0xff]  ;;  %v14316_v4 = vld [vmem:[#allocation21_spill] sm:$0xff]  ;;  %v14318_v56 = vld [vmem:[#allocation208_spill] sm:$0xff] }
 0x3c1   :  { %v3455_v34 = vadd.f32 %v14313_v51, %v3419_v50  ;;  %v3490_v2 = vadd.f32 %v14314_v40, %v3454_v1  ;;  %v2827_v53 = vrot.slane %v2818_v26, 1  ;;  %v2900_v20 = vstv %s11276_s27  ;;  %v14319_v13 = vld [vmem:[#allocation85_spill] sm:$0xff]  ;;  %v14320_v1 = vld [vmem:[#allocation107_spill] sm:$0xff]  ;;  %s7325_s27 = sld [smem:[#allocation7 + $0x20]] }
 0x3c2   :  { %v2719_v31 = vadd.f32 %v14315_v24, %v2683_v55  ;;  %v2787_v36 = vadd.f32 %v14316_v4, %v2762_v17  ;;  %v2828_v16 = vrot.slane %v11303_v9, 1  ;;  %v2901_v8 = vmul.f32 %v2900_v20, %v8788_v47  ;;  %v11327_v50 = vpop.permute.xlu0 %2950  ;;  %v11329_v26 = vpop.permute.xlu1 %3929  ;;  %v14321_v40 = vld [vmem:[#allocation263_spill] sm:$0xff]  ;;  %v14322_v4 = vld [vmem:[#allocation44_spill] sm:$0xff] }
 0x3c3   :  { %v3420_v7 = vadd.f32 %v14317_v0, %v3392_v25  ;;  %v3491_v22 = vadd.f32 %v14318_v56, %v3455_v34  ;;  %v3498_v63 = vadd.f32 %v14319_v13, %v3489_v45  ;;  %v2902_v6 = vmul.f32 %v2900_v20, %v8805_v62  ;;  %v14323_v0 = vld [vmem:[#allocation86_spill] sm:$0xff] }
 0x3c4   :  { %v2755_v55 = vadd.f32 %v14320_v1, %v2719_v31  ;;  %v2763_v15 = vadd.f32 %v2759_v52, %v2754_v38  ;;  %v2812_v17 = vadd.f32 %v11001_v3, %v2787_v36  ;;  %v2834_v51 = vadd.f32 %v2826_v46, %v2811_v33  ;;  %v14324_v3 = vld [vmem:[#allocation209_spill] sm:$0xff]  ;;  %v14325_v33 = vld [vmem:[#allocation43_spill] sm:$0xff] }
 0x3c5   :  { %v3456_v24 = vadd.f32 %v14321_v40, %v3420_v7  ;;  %v3523_v25 = vadd.f32 %v14322_v4, %v3498_v63  ;;  %v3499_v34 = vadd.f32 %v14323_v0, %v3490_v2  ;;  %v11337_v45 = vmul.f32 %v2900_v20, %v13749_v44  ;;  %v14326_v36 = vld [vmem:[#allocation89_spill] sm:$0xff]  ;;  %v14327_v63 = vld [vmem:[#allocation226_spill] sm:$0xff] }
 0x3c6   :  { %v2788_v56 = vadd.f32 %v10928_v30, %v2763_v15  ;;  %v2865_v13 = vadd.f32 %v11096_v12, %v2834_v51  ;;  %v2829_v52 = vsel %vm621_vm3, %v2827_v53, %v2828_v16  ;;  %v2911_v38 = vrot.slane %v2901_v8, 2  ;;  %v11348_v1 = vpop.permute.xlu0 %3931  ;;  %v11350_v40 = vpop.permute.xlu1 %2952  ;;  %v14329_v51 = vld [vmem:[#allocation48_spill] sm:$0xff]  ;;  %v14330_v0 = vld [vmem:[#allocation26_spill] sm:$0xff] }
 0x3c7   :  { %v3492_v46 = vadd.f32 %v14324_v3, %v3456_v24  ;;  %v3524_v31 = vadd.f32 %v14325_v33, %v3499_v34  ;;  %v3500_v7 = vadd.f32 %v14326_v36, %v3491_v22  ;;  %v3548_v2 = vadd.f32 %v14327_v63, %v3523_v25 }
 0x3c8   :  { %v2764_v30 = vadd.f32 %v2760_v32, %v2755_v55  ;;  %v2813_v12 = vadd.f32 %v11031_v60, %v2788_v56  ;;  %v14328_v53 = vrot.slane %v11257_v58, 1  ;;  %v2896_v15 = vadd.f32 %v11211_v59, %v2865_v13  ;;  %v14331_v58 = vld [vmem:[#allocation256_spill] sm:$0xff] }
 0x3c9   :  { %v3525_v24 = vadd.f32 %v14329_v51, %v3500_v7  ;;  %v2912_v4 = vrot.slane %v2902_v6, 2  ;;  %v2914_v22 = vrot.slane %v11337_v45, 2  ;;  %v2904_v25 = vmul.f32 %v2900_v20, %v8824_v57  ;;  %v14333_v56 = vld [vmem:[#allocation100_spill] sm:$0xff] }
 0x3ca   :  { %v2835_v8 = vadd.f32 %v14328_v53, %v2812_v17  ;;  %v3549_v34 = vadd.f32 %v14330_v0, %v3524_v31  ;;  %v2789_v3 = vadd.f32 %v10948_v10, %v2764_v30  ;;  %v11365_v60 = vmul.f32 %v2900_v20, %v8839_v43  ;;  %v14332_v17 = vld [vmem:[#allocation230_spill] sm:$0xff]  ;;  %v11371_v33 = vpop.permute.xlu0 %2954  ;;  %v11373_v36 = vpop.permute.xlu1 %3933  ;;  %v14334_v7 = vld [vmem:[#allocation52_spill] sm:$0xff]  ;;  %v14336_v53 = vld [vmem:[#allocation93_spill] sm:$0xff] }
 0x3cb   :  { %v3501_v55 = vadd.f32 %v14331_v58, %v3492_v46  ;;  %v3550_v59 = vadd.f32 %v14332_v17, %v3525_v24  ;;  %v3571_v13 = vadd.f32 %v14333_v56, %v3548_v2  ;;  %v2913_v6 = vsel %vm709_vm4, %v2911_v38, %v2912_v4  ;;  %v14335_v46 = vld [vmem:[#allocation64_spill] sm:$0xff]  ;;  %v14341_v17 = vld [vmem:[#allocation239_spill] sm:$0xff] }
 0x3cc   :  { %v2866_v32 = vadd.f32 %v11130_v27, %v2835_v8  ;;  %v2814_v31 = vadd.f32 %v11060_v19, %v2789_v3  ;;  %v2836_v10 = vadd.f32 %v2829_v52, %v2813_v12  ;;  %v2924_v20 = vadd.f32 %v2913_v6, %v2896_v15  ;;  %v14338_v12 = vld [vmem:[#allocation58_spill] sm:$0xff]  ;;  %v14339_v0 = vld [vmem:[#allocation244_spill] sm:$0xff] }
 0x3cd   :  { %v3526_v63 = vadd.f32 %v14334_v7, %v3501_v55  ;;  %v3602_v30 = vadd.f32 %v14335_v46, %v3571_v13  ;;  %v2915_v38 = vsel %vm709_vm4, %v2912_v4, %v2914_v22  ;;  %v2916_v2 = vrot.slane %v2904_v25, 2  ;;  %v14340_v55 = vld [vmem:[#allocation65_spill] sm:$0xff] }
 0x3ce   :  { %v2897_v27 = vadd.f32 %v11240_v48, %v2866_v32  ;;  %v14337_v8 = vrot.slane %v14336_v53, 1  ;;  %v2867_v19 = vadd.f32 %v11161_v28, %v2836_v10  ;;  %v2960_v48 = vadd.f32 %v11311_v37, %v2924_v20  ;;  %v11394_v32 = vpop.permute.xlu0 %3935  ;;  %v2985_v25 = vpop.permute.xlu1 %2984  ;;  %v14343_v10 = vld [vmem:[#allocation245_spill] sm:$0xff]  ;;  %v14344_v20 = vld [vmem:[#allocation91_spill] sm:$0xff] }
 0x3cf   :  { %v2917_v52 = vrot.slane %v11365_v60, 2  ;;  %v3551_v15 = vadd.f32 %v14338_v12, %v3526_v63  ;;  %v3573_v24 = vadd.f32 %v11077_v35, %v3550_v59  ;;  %v3633_v3 = vadd.f32 %v14339_v0, %v3602_v30 }
 0x3d0   :  { %v3572_v51 = vadd.f32 %v14337_v8, %v3549_v34  ;;  %v11397_v4 = vstv %s11352_s28  ;;  %v2837_v34 = vadd.f32 %v2828_v16, %v2814_v31  ;;  %v2898_v28 = vadd.f32 %v11265_v49, %v2867_v19  ;;  %v14348_v19 = vld [vmem:[#allocation98_spill] sm:$0xff]  ;;  %s7309_s28 = sld [smem:[#allocation7 + $0x10]] }
 0x3d1   :  { %v2925_v58 = vadd.f32 %v2915_v38, %v2897_v27  ;;  %v2996_v37 = vadd.f32 %v2985_v25, %v2960_v48  ;;  %v3604_v56 = vadd.f32 %v14341_v17, %v3573_v24  ;;  %v3653_v35 = vrot.slane %v11227_v23, 2  ;;  %v14345_v38 = vld [vmem:[#allocation241_spill] sm:$0xff]  ;;  %v14349_v24 = vld [vmem:[#allocation92_spill] sm:$0xff]  ;;  %v14351_v17 = vld [vmem:[#allocation102_spill] sm:$0xff] }
 0x3d2   :  { %v3603_v60 = vadd.f32 %v14340_v55, %v3572_v51  ;;  %v3654_v59 = vrot.slane %v11233_v61, 2  ;;  %v2868_v13 = vadd.f32 %v11183_v41, %v2837_v34  ;;  %v2918_v9 = vsel %vm709_vm4, %v2916_v2, %v2917_v52  ;;  %v2987_v7 = vpop.permute.xlu0 %2986  ;;  %v11417_v41 = vpop.permute.xlu1 %3965 }
 0x3d3   :  { %v2961_v6 = vadd.f32 %v11327_v50, %v2925_v58  ;;  %v11410_v16 = vadd.f32 %v11397_v4, %v2996_v37  ;;  %v14342_v49 = vrot.slane %v10728_v54, 1  ;;  %v3635_v23 = vadd.f32 %v14344_v20, %v3604_v56  ;;  %v14350_v58 = vld [vmem:[#allocation265_spill] sm:$0xff] }
 0x3d4   :  { %v3634_v27 = vadd.f32 %v14343_v10, %v3603_v60  ;;  %v3661_v61 = vadd.f32 %v11200_v18, %v3633_v3  ;;  %v2899_v50 = vadd.f32 %v11286_v5, %v2868_v13  ;;  %v2926_v63 = vadd.f32 %v2918_v9, %v2898_v28 }
 0x3d5   :  { %v3574_v31 = vadd.f32 %v14342_v49, %v3551_v15  ;;  %v3005_v46 = vmax.f32 %v11410_v16, 0.0  ;;  %v2997_v30 = vadd.f32 %v2987_v7, %v2961_v6  ;;  %v14346_v54 = vrot.slane %v11171_v29, 2  ;;  %v14353_v6 = vld [vmem:[#allocation99_spill] sm:$0xff] }
 0x3d6   :  { %v14347_v53 = vrot.slane %v11127_v42, 2  ;;  %v3655_v51 = vsel %vm709_vm4, %v3653_v35, %v3654_v59  ;;  %v3737_v18 = vstv %s11379_s29  ;;  %v3697_v48 = vadd.f32 %v14348_v19, %v3661_v61  ;;  %v11442_v34 = vpop.permute.xlu0 %3967  ;;  %v2989_v28 = vpop.permute.xlu1 %2988  ;;  %s7327_s29 = sld [smem:[#allocation7 + $0x22]] }
 0x3d7   :  { %v3605_v2 = vadd.f32 %v14345_v38, %v3574_v31  ;;  %v3796_v12 = vstv %s11386_s30  ;;  %v2962_v5 = vadd.f32 %v11350_v40, %v2926_v63  ;;  %v11433_v15 = vadd.f32 %v11397_v4, %v2997_v30  ;;  %4276 = vrot.lane.b32.xlu1 %v3005_v46, %s7612_s21  ;;  %v14354_v31 = vld [vmem:[#allocation106_spill] sm:$0xff]  ;;  %v14356_v38 = vld [vmem:[#allocation105_spill] sm:$0xff]  ;;  %s7310_s30 = sld [smem:[#allocation7 + $0x11]] }
 0x3d8   :  { %v3652_v8 = vsel %vm709_vm4, %v14347_v53, %v14346_v54  ;;  %v3663_v3 = vadd.f32 %v3655_v51, %v3635_v23  ;;  %v2919_v25 = vsel %vm709_vm4, %v2917_v52, %v2914_v22  ;;  %v3733_v40 = vadd.f32 %v14350_v58, %v3697_v48  ;;  %v14355_v23 = vld [vmem:[#allocation108_spill] sm:$0xff] }
 0x3d9   :  { %v3636_v0 = vadd.f32 %v14349_v24, %v3605_v2  ;;  %v3662_v42 = vadd.f32 %v3652_v8, %v3634_v27  ;;  %v2927_v37 = vadd.f32 %v2919_v25, %v2899_v50  ;;  %v3006_v55 = vmax.f32 %v11433_v15, 0.0  ;;  %v14358_v24 = vld [vmem:[#allocation111_spill] sm:$0xff]  ;;  %v14359_v25 = vld [vmem:[#allocation210_spill] sm:$0xff] }
 0x3da   :  { %v2998_v60 = vadd.f32 %v2989_v28, %v2962_v5  ;;  %v14352_v35 = vmov %v14346_v54  ;;  %v3699_v9 = vadd.f32 %v14353_v6, %v3663_v3  ;;  %v3738_v45 = vmul.f32 %v3737_v18, %v14183_v39  ;;  %v2991_v27 = vpop.permute.xlu0 %2990  ;;  %v11464_v20 = vpop.permute.xlu1 %3969  ;;  %v14357_v54 = vld [vmem:[#allocation109_spill] sm:$0xff] }
 0x3db   :  { %v3698_v56 = vadd.f32 %v14351_v17, %v3662_v42  ;;  %v3656_v13 = vsel %vm709_vm4, %v3654_v59, %v14352_v35  ;;  %v2963_v22 = vadd.f32 %v11371_v33, %v2927_v37  ;;  %4278 = vrot.lane.b32.xlu0 %v3006_v55, %s7612_s21  ;;  %v3797_v59 = vmul.f32 %v3796_v12, %v14183_v39 }
 0x3dc   :  { %v11456_v52 = vadd.f32 %v11397_v4, %v2998_v60  ;;  %v3664_v49 = vadd.f32 %v3656_v13, %v3636_v0  ;;  %v3798_v10 = vmul.f32 %v3796_v12, %v14186_v21  ;;  %v3735_v61 = vadd.f32 %v14355_v23, %v3699_v9  ;;  %v14361_v60 = vld [vmem:[#allocation115_spill] sm:$0xff] }
 0x3dd   :  { %v3734_v29 = vadd.f32 %v14354_v31, %v3698_v56  ;;  %v3742_v33 = vadd.f32 %v3738_v45, %v3733_v40  ;;  %v2999_v50 = vadd.f32 %v2991_v27, %v2963_v22  ;;  %v3739_v63 = vmul.f32 %v3737_v18, %v14186_v21  ;;  %v14360_v40 = vld [vmem:[#allocation116_spill] sm:$0xff]  ;;  %v14362_v56 = vld [vmem:[#allocation110_spill] sm:$0xff]  ;;  %v14364_v27 = vld [vmem:[#allocation133_spill] sm:$0xff] }
 0x3de   :  { %v3007_v7 = vmax.f32 %v11456_v52, 0.0  ;;  %v3740_v30 = vmul.f32 %v3737_v18, %v8474_v14  ;;  %v3700_v2 = vadd.f32 %v14356_v38, %v3664_v49  ;;  %v3799_v8 = vmul.f32 %v3796_v12, %v8474_v14  ;;  %v11480_v42 = vpop.permute.xlu0 %3971  ;;  %v11482_v3 = vpop.permute.xlu1 %3999 }
 0x3df   :  { %v3767_v53 = vadd.f32 %v14357_v54, %v3742_v33  ;;  %v11474_v51 = vadd.f32 %v11397_v4, %v2999_v50  ;;  %v3743_v19 = vadd.f32 %v3739_v63, %v3734_v29  ;;  %v3805_v48 = vrot.slane %v3797_v59, 1  ;;  %v14363_v59 = vld [vmem:[#allocation19_spill] sm:$0xff] }
 0x3e0   :  { %4280 = vrot.lane.b32.xlu1 %v3007_v7, %s7612_s21  ;;  %v3806_v5 = vrot.slane %v3798_v10, 1  ;;  %v3800_v0 = vmul.f32 %v3796_v12, %v14358_v24  ;;  %v3736_v28 = vadd.f32 %v14359_v25, %v3700_v2  ;;  %v3744_v58 = vadd.f32 %v3740_v30, %v3735_v61  ;;  %v14365_v33 = vld [vmem:[#allocation127_spill] sm:$0xff]  ;;  %v14368_v25 = vld [vmem:[#allocation112_spill] sm:$0xff] }
 0x3e1   :  { %v3792_v37 = vadd.f32 %v14360_v40, %v3767_v53  ;;  %v3008_v4 = vmax.f32 %v11474_v51, 0.0  ;;  %v3768_v17 = vadd.f32 %v14361_v60, %v3743_v19  ;;  %v3741_v13 = vmul.f32 %v3737_v18, %v14358_v24  ;;  %v14366_v63 = vld [vmem:[#allocation139_spill] sm:$0xff] }
 0x3e2   :  { %v3769_v35 = vadd.f32 %v14362_v56, %v3744_v58  ;;  %v3881_v6 = vstv %s11452_s0  ;;  %v3807_v12 = vsel %vm621_vm3, %v3805_v48, %v3806_v5  ;;  %v3808_v9 = vrot.slane %v3799_v8, 1  ;;  %v11496_v49 = vpop.permute.xlu0 %4001  ;;  %v11498_v31 = vpop.permute.xlu1 %4003  ;;  %v14367_v8 = vld [vmem:[#allocation122_spill] sm:$0xff]  ;;  %s7328_s0 = sld [smem:[#allocation7 + $0x23]] }
 0x3e3   :  { %4282 = vrot.lane.b32.xlu0 %v3008_v4, %s7612_s21  ;;  %v3809_v45 = vrot.slane %v3800_v0, 1  ;;  %v3882_v22 = vmul.f32 %v3881_v6, %v14183_v39  ;;  %v3745_v29 = vadd.f32 %v3741_v13, %v3736_v28  ;;  %v3793_v10 = vadd.f32 %v14363_v59, %v3768_v17  ;;  %v14370_v17 = vld [vmem:[#allocation29_spill] sm:$0xff] }
 0x3e4   :  { %v3794_v18 = vadd.f32 %v14364_v27, %v3769_v35  ;;  %v3815_v23 = vadd.f32 %v3807_v12, %v3792_v37  ;;  %v3883_v61 = vmul.f32 %v3881_v6, %v14186_v21  ;;  %v3885_v2 = vmul.f32 %v3881_v6, %v8474_v14  ;;  %v14369_v37 = vld [vmem:[#allocation134_spill] sm:$0xff] }
 0x3e5   :  { %v3770_v50 = vadd.f32 %v14365_v33, %v3745_v29  ;;  %v3810_v38 = vsel %vm621_vm3, %v3808_v9, %v3809_v45  ;;  %v3892_v39 = vrot.slane %v3882_v22, 2  ;;  %v3816_v48 = vadd.f32 %v3806_v5, %v3793_v10  ;;  %v14371_v22 = vld [vmem:[#allocation113_spill] sm:$0xff]  ;;  %v14372_v29 = vld [vmem:[#allocation140_spill] sm:$0xff] }
 0x3e6   :  { %v3846_v30 = vadd.f32 %v14366_v63, %v3815_v23  ;;  %v11507_v54 = vpop.permute.xlu0 %4005  ;;  %v4025_v53 = vpop.permute.xlu1 %4024  ;;  %v3817_v0 = vadd.f32 %v3810_v38, %v3794_v18  ;;  %v3893_v28 = vrot.slane %v3883_v61, 2  ;;  %v3884_v58 = vmul.f32 %v3881_v6, %v13749_v44  ;;  %v14373_v23 = vld [vmem:[#allocation151_spill] sm:$0xff] }
 0x3e7   :  { %v3795_v19 = vadd.f32 %v14367_v8, %v3770_v50  ;;  %v3886_v40 = vmul.f32 %v3881_v6, %v14358_v24  ;;  %v3847_v60 = vadd.f32 %v14369_v37, %v3816_v48  ;;  %v3897_v35 = vrot.slane %v3885_v2, 2 }
 0x3e8   :  { %v3877_v21 = vadd.f32 %v14368_v25, %v3846_v30  ;;  %v3848_v56 = vadd.f32 %v14370_v17, %v3817_v0  ;;  %v3894_v14 = vsel %vm709_vm4, %v3892_v39, %v3893_v28  ;;  %v3895_v27 = vrot.slane %v3884_v58, 2 }
 0x3e9   :  { %v3818_v9 = vadd.f32 %v3809_v45, %v3795_v19  ;;  %v3878_v5 = vadd.f32 %v14371_v22, %v3847_v60  ;;  %v3898_v18 = vrot.slane %v3886_v40, 2  ;;  %v3981_v50 = vstv %s7283_s14  ;;  %s7312_s14 = sld [smem:[#allocation7 + $0x13]] }
 0x3ea   :  { %v4027_v13 = vpop.permute.xlu0 %4026  ;;  %v4029_v12 = vpop.permute.xlu1 %4028  ;;  %v3879_v59 = vadd.f32 %v14372_v29, %v3848_v56  ;;  %v3905_v10 = vadd.f32 %v3894_v14, %v3877_v21  ;;  %v3896_v6 = vsel %vm709_vm4, %v3893_v28, %v3895_v27  ;;  %v4040_v30 = vstv %s7286_s15  ;;  %s7330_s15 = sld [smem:[#allocation7 + $0x25]] }
 0x3eb   :  { %v3849_v61 = vadd.f32 %v14373_v23, %v3818_v9  ;;  %v3899_v33 = vsel %vm709_vm4, %v3897_v35, %v3898_v18  ;;  %v3906_v39 = vadd.f32 %v3896_v6, %v3878_v5  ;;  %v3900_v0 = vsel %vm709_vm4, %v3898_v18, %v3895_v27 }
 0x3ec   :  { %v3941_v24 = vadd.f32 %v11329_v26, %v3905_v10  ;;  %v3907_v2 = vadd.f32 %v3899_v33, %v3879_v59  ;;  %v3982_v26 = vmul.f32 %v3981_v50, %v8788_v47  ;;  %v4041_v25 = vmul.f32 %v4040_v30, %v8788_v47 }
 0x3ed   :  { %v3880_v45 = vadd.f32 %v11309_v11, %v3849_v61  ;;  %v3942_v19 = vadd.f32 %v11348_v1, %v3906_v39  ;;  %v4042_v21 = vmul.f32 %v4040_v30, %v8805_v62  ;;  %v3983_v60 = vmul.f32 %v3981_v50, %v8805_v62 }
 0x3ee   :  { %v4031_v63 = vpop.permute.xlu0 %4030  ;;  %v4079_v38 = vpop.permute.xlu1 %4078  ;;  %v3977_v8 = vadd.f32 %v11417_v41, %v3941_v24  ;;  %v3943_v48 = vadd.f32 %v11373_v36, %v3907_v2  ;;  %v3984_v17 = vmul.f32 %v3981_v50, %v8824_v57  ;;  %v4049_v56 = vrot.slane %v4041_v25, 1 }
 0x3ef   :  { %v3908_v11 = vadd.f32 %v3900_v0, %v3880_v45  ;;  %v3978_v40 = vadd.f32 %v11442_v34, %v3942_v19  ;;  %v4050_v14 = vrot.slane %v4042_v21, 1  ;;  %v4043_v35 = vmul.f32 %v4040_v30, %v8824_v57 }
 0x3f0   :  { %v3979_v41 = vadd.f32 %v11464_v20, %v3943_v48  ;;  %v3986_v37 = vadd.f32 %v3982_v26, %v3977_v8  ;;  %v4044_v9 = vmul.f32 %v4040_v30, %v8839_v43  ;;  %v3985_v10 = vmul.f32 %v3981_v50, %v8839_v43 }
 0x3f1   :  { %v3944_v1 = vadd.f32 %v11394_v32, %v3908_v11  ;;  %v3987_v20 = vadd.f32 %v3983_v60, %v3978_v40  ;;  %v4125_v27 = vstv %s7289_s6  ;;  %v4051_v18 = vsel %vm621_vm3, %v4049_v56, %v4050_v14  ;;  %s7313_s6 = sld [smem:[#allocation7 + $0x14]] }
 0x3f2   :  { %v4081_v28 = vpop.permute.xlu0 %4080  ;;  %v4083_v58 = vpop.permute.xlu1 %4082  ;;  %v4011_v36 = vadd.f32 %v11482_v3, %v3986_v37  ;;  %v3988_v29 = vadd.f32 %v3984_v17, %v3979_v41  ;;  %v4052_v23 = vrot.slane %v4043_v35, 1  ;;  %v4053_v61 = vrot.slane %v4044_v9, 1 }
 0x3f3   :  { %v3980_v34 = vadd.f32 %v11480_v42, %v3944_v1  ;;  %v4012_v32 = vadd.f32 %v11496_v49, %v3987_v20  ;;  %v4126_v33 = vmul.f32 %v4125_v27, %v8788_v47  ;;  %v4129_v48 = vmul.f32 %v4125_v27, %v8824_v57 }
 0x3f4   :  { %v4036_v59 = vadd.f32 %v4025_v53, %v4011_v36  ;;  %v4013_v3 = vadd.f32 %v11498_v31, %v3988_v29  ;;  %v4127_v53 = vmul.f32 %v4125_v27, %v8805_v62  ;;  %v4054_v50 = vsel %vm621_vm3, %v4052_v23, %v4053_v61 }
 0x3f5   :  { %v3989_v30 = vadd.f32 %v3985_v10, %v3980_v34  ;;  %v4037_v42 = vadd.f32 %v4027_v13, %v4012_v32  ;;  %v4136_v8 = vrot.slane %v4126_v33, 2  ;;  %v4130_v62 = vmul.f32 %v4125_v27, %v8839_v43 }
 0x3f6   :  { %v4085_v22 = vpop.permute.xlu0 %4084  ;;  %v4110_v5 = vpop.permute.xlu1 %4109  ;;  %v4038_v45 = vadd.f32 %v4029_v12, %v4013_v3  ;;  %v4059_v39 = vadd.f32 %v4051_v18, %v4036_v59  ;;  %v4137_v13 = vrot.slane %v4127_v53, 2  ;;  %v4128_v12 = vmul.f32 %v4125_v27, %v13749_v44 }
 0x3f7   :  { %v4014_v49 = vadd.f32 %v11507_v54, %v3989_v30  ;;  %v4060_v0 = vadd.f32 %v4050_v14, %v4037_v42  ;;  %v4141_v40 = vrot.slane %v4129_v48, 2  ;;  %v4142_v60 = vrot.slane %v4130_v62, 2  ;;  %v14376_v48 = vld [vmem:[#allocation201_spill] sm:$0xff] }
 0x3f8   :  { %v4090_v31 = vadd.f32 %v4079_v38, %v4059_v39  ;;  %v4061_v47 = vadd.f32 %v4054_v50, %v4038_v45  ;;  %v4138_v38 = vsel %vm709_vm4, %v4136_v8, %v4137_v13  ;;  %v5045_v15 = vstv %s7321_s23  ;;  %s7337_s23 = sld [smem:[#allocation7 + $0x2c]] }
 0x3f9   :  { %v4039_v26 = vadd.f32 %v4031_v63, %v4014_v49  ;;  %v4091_v21 = vadd.f32 %v4081_v28, %v4060_v0  ;;  %v4139_v63 = vrot.slane %v4128_v12, 2  ;;  %v4143_v44 = vsel %vm709_vm4, %v4141_v40, %v4142_v60  ;;  %v14374_v49 = vld [vmem:[#allocation121_spill] sm:$0xff]  ;;  %v14380_v40 = vld [vmem:[#allocation207_spill] sm:$0xff] }
 0x3fa   :  { %v4112_v24 = vpop.permute.xlu0 %4111  ;;  %v4114_v6 = vpop.permute.xlu1 %4113  ;;  %v4121_v25 = vadd.f32 %v4110_v5, %v4090_v31  ;;  %v4092_v54 = vadd.f32 %v4083_v58, %v4061_v47  ;;  %v4225_v28 = vstv %s7293_s16  ;;  %v14375_v31 = vmax.f32 %v14374_v49, 0.0  ;;  %s7331_s16 = sld [smem:[#allocation7 + $0x26]] }
 0x3fb   :  { %v4062_v37 = vadd.f32 %v4053_v61, %v4039_v26  ;;  %v4122_v1 = vadd.f32 %v4112_v24, %v4091_v21  ;;  %v4140_v14 = vsel %vm709_vm4, %v4137_v13, %v4139_v63  ;;  %v4144_v32 = vsel %vm709_vm4, %v4142_v60, %v4139_v63  ;;  %v14378_v13 = vld [vmem:[#allocation128_spill] sm:$0xff] }
 0x3fc   :  { %v4123_v57 = vadd.f32 %v4114_v6, %v4092_v54  ;;  %v4149_v36 = vadd.f32 %v4138_v38, %v4121_v25  ;;  %v14377_v26 = vmax.f32 %v14376_v48, 0.0  ;;  %v14379_v12 = vmax.f32 %v14378_v13, 0.0 }
 0x3fd   :  { %v4093_v17 = vadd.f32 %v4085_v22, %v4062_v37  ;;  %v4150_v9 = vadd.f32 %v4140_v14, %v4122_v1  ;;  %v4353_v54 = vstv %s7294_s2  ;;  %s7315_s2 = sld [smem:[#allocation7 + $0x16]] }
 0x3fe   :  { %v4116_v2 = vpop.permute.xlu0 %4115  ;;  %v4174_v19 = vpop.permute.xlu1 %4173  ;;  %v4151_v5 = vadd.f32 %v4143_v44, %v4123_v57 }
 0x3ff   :  { %v4185_v56 = vadd.f32 %v4174_v19, %v4149_v36  ;;  %v4124_v35 = vadd.f32 %v4116_v2, %v4093_v17 }
 0x401   :  { %v4152_v10 = vadd.f32 %v4144_v32, %v4124_v35  ;;  %v4457_v32 = vstv %s7298_s18  ;;  %s7334_s18 = sld [smem:[#allocation7 + $0x29]] }
 0x402   :  { %v4176_v11 = vpop.permute.xlu0 %4175  ;;  %v4178_v41 = vpop.permute.xlu1 %4177 }
 0x403   :  { %v4186_v20 = vadd.f32 %v4176_v11, %v4150_v9  ;;  %v4187_v29 = vadd.f32 %v4178_v41, %v4151_v5  ;;  %v14381_v41 = vmax.f32 %v14380_v40, 0.0 }
 0x406   :  { %v4180_v43 = vpop.permute.xlu0 %4179  ;;  %v4210_v58 = vpop.permute.xlu1 %4209 }
 0x407   :  { %v4221_v34 = vadd.f32 %v4210_v58, %v4185_v56  ;;  %v4188_v61 = vadd.f32 %v4180_v43, %v4152_v10  ;;  %v4426_v58 = vstv %s7297_s17  ;;  %s7316_s17 = sld [smem:[#allocation7 + $0x17]] }
 0x409   :  { %v11553_v59 = vadd.f32 %v4225_v28, %v4221_v34 }
 0x40a   :  { %v4212_v3 = vpop.permute.xlu0 %4211  ;;  %v4214_v22 = vpop.permute.xlu1 %4213 }
 0x40b   :  { %v4230_v27 = vmax.f32 %v11553_v59, 0.0  ;;  %v4222_v18 = vadd.f32 %v4212_v3, %v4186_v20  ;;  %v4223_v23 = vadd.f32 %v4214_v22, %v4187_v29 }
 0x40d   :  { %v11557_v24 = vadd.f32 %v4225_v28, %v4222_v18  ;;  %v11559_v6 = vadd.f32 %v4225_v28, %v4223_v23  ;;  %4314 = vrot.lane.b32.xlu1 %v4230_v27, %s7612_s21 }
 0x40e   :  { %v4216_v33 = vpop.permute.xlu0 %4215  ;;  %v4239_v30 = vpop.permute.xlu1 %4238 }
 0x40f   :  { %v4231_v42 = vmax.f32 %v11557_v24, 0.0  ;;  %v4232_v45 = vmax.f32 %v11559_v6, 0.0  ;;  %v4224_v39 = vadd.f32 %v4216_v33, %v4188_v61  ;;  %v4250_v50 = vmax.f32 %v14375_v31, %v4239_v30 }
 0x410   :  { %v4511_v31 = vstv %s7300_s19  ;;  %s7318_s19 = sld [smem:[#allocation7 + $0x19]] }
 0x411   :  { %v11566_v53 = vadd.f32 %v4225_v28, %v4224_v39  ;;  %4316 = vrot.lane.b32.xlu0 %v4231_v42, %s7612_s21  ;;  %4318 = vrot.lane.b32.xlu1 %v4232_v45, %s7612_s21  ;;  %v4258_v47 = vrot.slane %v4250_v50, 1  ;;  %v4378_v28 = vstv %s7295_s4  ;;  %s7333_s4 = sld [smem:[#allocation7 + $0x28]] }
 0x412   :  { %v4241_v2 = vpop.permute.xlu0 %4240 }
 0x413   :  { %v4243_v8 = vpop.permute.xlu1 %4242  ;;  %v4233_v19 = vmax.f32 %v11566_v53, 0.0  ;;  %v4251_v0 = vmax.f32 %v14377_v26, %v4241_v2 }
 0x414   :  { %v4252_v62 = vmax.f32 %v14379_v12, %v4243_v8 }
 0x415   :  { %v4259_v25 = vrot.slane %v4251_v0, 1  ;;  %4320 = vrot.lane.b32.xlu0 %v4233_v19, %s7612_s21 }
 0x416   :  { %v4261_v57 = vrot.slane %v4252_v62, 1 }
 0x417   :  { %v4260_v38 = vsel %vm621_vm3, %v4258_v47, %v4259_v25  ;;  %v11585_v11 = vmax.f32 %v4251_v0, %v4259_v25 }
 0x418   :  { %v4245_v21 = vpop.permute.xlu0 %4244  ;;  %v11589_v1 = vmax.f32 %v4250_v50, %v4260_v38 }
 0x419   :  { %v4253_v37 = vmax.f32 %v14381_v41, %v4245_v21  ;;  %v4355_v63 = vmul.f32 %v4353_v54, %v11585_v11  ;;  %v4380_v35 = vmul.f32 %v4378_v28, %v11585_v11  ;;  %v4428_v5 = vmul.f32 %v4426_v58, %v11585_v11 }
 0x41a   :  { %v4354_v60 = vmul.f32 %v4353_v54, %v11589_v1  ;;  %v4379_v9 = vmul.f32 %v4378_v28, %v11589_v1  ;;  %v4427_v34 = vmul.f32 %v4426_v58, %v11589_v1  ;;  %v4459_v23 = vmul.f32 %v4457_v32, %v11585_v11 }
 0x41b   :  { %v4262_v36 = vrot.slane %v4253_v37, 1  ;;  %4364 = vrot.lane.b32.xlu0 %v4355_v63, %s7612_s21  ;;  %v4436_v3 = vrot.slane %v4428_v5, 1  ;;  %v4458_v39 = vmul.f32 %v4457_v32, %v11589_v1  ;;  %v4513_v26 = vmul.f32 %v4511_v31, %v11585_v11 }
 0x41c   :  { %4362 = vrot.lane.b32.xlu1 %v4354_v60, %s7612_s21  ;;  %v4435_v22 = vrot.slane %v4427_v34, 1  ;;  %v4467_v49 = vrot.slane %v4459_v23, 1  ;;  %v4512_v13 = vmul.f32 %v4511_v31, %v11589_v1  ;;  %v5046_v52 = vmul.f32 %v5045_v15, %v11589_v1 }
 0x41d   :  { %v4263_v17 = vsel %vm621_vm3, %v4261_v57, %v4262_v36  ;;  %v11594_v56 = vmax.f32 %v4253_v37, %v4262_v36  ;;  %v4466_v2 = vrot.slane %v4458_v39, 1  ;;  %v4521_v12 = vrot.slane %v4513_v26, 2 }
 0x41e   :  { %v11597_v14 = vmax.f32 %v4252_v62, %v4263_v17  ;;  %v4437_v61 = vsel %vm621_vm3, %v4435_v22, %v4436_v3  ;;  %v4542_v62 = vstv %s7301_s20  ;;  %s7336_s20 = sld [smem:[#allocation7 + $0x2b]] }
 0x41f   :  { %v4357_v44 = vmul.f32 %v4353_v54, %v11594_v56  ;;  %v4382_v20 = vmul.f32 %v4378_v28, %v11594_v56  ;;  %v4430_v10 = vmul.f32 %v4426_v58, %v11594_v56  ;;  %v4461_v8 = vmul.f32 %v4457_v32, %v11594_v56 }
 0x420   :  { %v4356_v43 = vmul.f32 %v4353_v54, %v11597_v14  ;;  %v4381_v29 = vmul.f32 %v4378_v28, %v11597_v14  ;;  %v4429_v18 = vmul.f32 %v4426_v58, %v11597_v14  ;;  %v4460_v48 = vmul.f32 %v4457_v32, %v11597_v14 }
 0x421   :  { %4368 = vrot.lane.b32.xlu0 %v4357_v44, %s7612_s21  ;;  %v4439_v33 = vrot.slane %v4430_v10, 1  ;;  %v4468_v0 = vsel %vm621_vm3, %v4466_v2, %v4467_v49  ;;  %v4470_v47 = vrot.slane %v4461_v8, 1  ;;  %v4520_v54 = vrot.slane %v4512_v13, 2 }
 0x422   :  { %4366 = vrot.lane.b32.xlu1 %v4356_v43, %s7612_s21  ;;  %v4438_v30 = vrot.slane %v4429_v18, 1  ;;  %v4469_v25 = vrot.slane %v4460_v48, 1  ;;  %v4515_v38 = vmul.f32 %v4511_v31, %v11594_v56  ;;  %v4514_v40 = vmul.f32 %v4511_v31, %v11597_v14 }
 0x423   :  { %v4544_v41 = vmul.f32 %v4542_v62, %v11585_v11  ;;  %v4522_v37 = vsel %vm709_vm4, %v4520_v54, %v4521_v12  ;;  %v4543_v63 = vmul.f32 %v4542_v62, %v11589_v1  ;;  %v4546_v43 = vmul.f32 %v4542_v62, %v11594_v56 }
 0x424   :  { %v4440_v50 = vsel %vm621_vm3, %v4438_v30, %v4439_v33  ;;  %v4471_v21 = vsel %vm621_vm3, %v4469_v25, %v4470_v47  ;;  %v4524_v57 = vrot.slane %v4515_v38, 2  ;;  %v4523_v36 = vrot.slane %v4514_v40, 2 }
 0x425   :  { %4389 = vrot.lane.b32.xlu0 %v4380_v35, %s7613_s5  ;;  %v4552_v60 = vrot.slane %v4544_v41, 2  ;;  %v4551_v44 = vrot.slane %v4543_v63, 2  ;;  %v4545_v28 = vmul.f32 %v4542_v62, %v11597_v14  ;;  %v4555_v35 = vrot.slane %v4546_v43, 2 }
 0x426   :  { %4387 = vrot.lane.b32.xlu1 %v4379_v9, %s7613_s5  ;;  %v4525_v17 = vsel %vm709_vm4, %v4523_v36, %v4524_v57  ;;  %v4582_v18 = vstv %s7303_s22  ;;  %v5049_v48 = vmul.f32 %v5045_v15, %v11594_v56  ;;  %v5048_v26 = vmul.f32 %v5045_v15, %v11597_v14  ;;  %s7319_s22 = sld [smem:[#allocation7 + $0x1a]] }
 0x427   :  { %v4553_v58 = vsel %vm709_vm4, %v4551_v44, %v4552_v60  ;;  %v4554_v9 = vrot.slane %v4545_v28, 2  ;;  %v5070_v13 = vstv %s7322_s1  ;;  %s7340_s1 = sld [smem:[#allocation7 + $0x2f]] }
 0x428   :  { %v5071_v62 = vmul.f32 %v5070_v13, %v11589_v1  ;;  %v5073_v36 = vmul.f32 %v5070_v13, %v11597_v14 }
 0x429   :  { %4393 = vrot.lane.b32.xlu0 %v4382_v20, %s7613_s5  ;;  %v4556_v34 = vsel %vm709_vm4, %v4554_v9, %v4555_v35 }
 0x42a   :  { %4391 = vrot.lane.b32.xlu1 %v4381_v29, %s7613_s5 }
 0x42d   :  { %4443 = vrot.lane.b32.xlu0 %v4436_v3, %s7612_s21 }
 0x42e   :  { %4441 = vrot.lane.b32.xlu1 %v4437_v61, %s7612_s21 }
 0x431   :  { %4447 = vrot.lane.b32.xlu0 %v4439_v33, %s7612_s21 }
 0x432   :  { %4445 = vrot.lane.b32.xlu1 %v4440_v50, %s7612_s21  ;;  %v5047_v50 = vmul.f32 %v5045_v15, %v11585_v11 }
 0x435   :  { %4474 = vrot.lane.b32.xlu0 %v4467_v49, %s7613_s5 }
 0x436   :  { %4472 = vrot.lane.b32.xlu1 %v4468_v0, %s7613_s5  ;;  %v4607_v0 = vstv %s7304_s24  ;;  %s7339_s24 = sld [smem:[#allocation7 + $0x2e]] }
 0x439   :  { %4478 = vrot.lane.b32.xlu0 %v4470_v47, %s7613_s5 }
 0x43a   :  { %4476 = vrot.lane.b32.xlu1 %v4471_v21, %s7613_s5  ;;  %v4655_v21 = vstv %s7306_s3  ;;  %s7342_s3 = sld [smem:[#allocation7 + $0x31]] }
 0x43d   :  { %4528 = vrot.lane.b32.xlu0 %v4521_v12, %s7612_s21  ;;  %v5072_v12 = vmul.f32 %v5070_v13, %v11585_v11 }
 0x43e   :  { %4526 = vrot.lane.b32.xlu1 %v4522_v37, %s7612_s21  ;;  %v5118_v37 = vstv %s7324_s25  ;;  %s7343_s25 = sld [smem:[#allocation7 + $0x32]] }
 0x43f   :  { %v5120_v63 = vmul.f32 %v5118_v37, %v11585_v11  ;;  %v5119_v44 = vmul.f32 %v5118_v37, %v11589_v1 }
 0x441   :  { %4532 = vrot.lane.b32.xlu0 %v4524_v57, %s7612_s21  ;;  %v5074_v57 = vmul.f32 %v5070_v13, %v11594_v56  ;;  %v5128_v43 = vrot.slane %v5120_v63, 1 }
 0x442   :  { %4530 = vrot.lane.b32.xlu1 %v4525_v17, %s7612_s21 }
 0x445   :  { %4559 = vrot.lane.b32.xlu0 %v4552_v60, %s7613_s5 }
 0x446   :  { %4557 = vrot.lane.b32.xlu1 %v4553_v58, %s7613_s5  ;;  %v5127_v58 = vrot.slane %v5119_v44, 1 }
 0x449   :  { %4563 = vrot.lane.b32.xlu0 %v4555_v35, %s7613_s5  ;;  %v4277_v5 = vpop.permute.xlu1 %4276 }
 0x44a   :  { %4561 = vrot.lane.b32.xlu1 %v4556_v34, %s7613_s5  ;;  %v4288_v20 = vmax.f32 %v3005_v46, %v4277_v5  ;;  %v5122_v5 = vmul.f32 %v5118_v37, %v11594_v56  ;;  %v5129_v34 = vsel %vm621_vm3, %v5127_v58, %v5128_v43 }
 0x44c   :  { %v4296_v3 = vrot.slane %v4288_v20, 1 }
 0x44d   :  { %v4279_v29 = vpop.permute.xlu0 %4278 }
 0x44e   :  { %v4289_v32 = vmax.f32 %v3006_v55, %v4279_v29 }
 0x450   :  { %v4297_v22 = vrot.slane %v4289_v32, 1 }
 0x452   :  { %v4281_v10 = vpop.permute.xlu1 %4280  ;;  %v4298_v23 = vsel %vm621_vm3, %v4296_v3, %v4297_v22  ;;  %v11657_v61 = vmax.f32 %v4289_v32, %v4297_v22  ;;  %v5121_v32 = vmul.f32 %v5118_v37, %v11597_v14  ;;  %v4686_v3 = vstv %s7307_s26  ;;  %s7345_s26 = sld [smem:[#allocation7 + $0x34]] }
 0x453   :  { %v11659_v33 = vmax.f32 %v4288_v20, %v4298_v23  ;;  %v4290_v30 = vmax.f32 %v3007_v7, %v4281_v10  ;;  %v5131_v22 = vrot.slane %v5122_v5, 1  ;;  %v5149_v10 = vstv %s7325_s27  ;;  %s7296_s27 = sld [smem:[#allocation7 + $0x3]] }
 0x454   :  { %v4584_v16 = vmul.f32 %v4582_v18, %v11657_v61  ;;  %v4609_v47 = vmul.f32 %v4607_v0, %v11657_v61  ;;  %v4657_v40 = vmul.f32 %v4655_v21, %v11657_v61  ;;  %v5130_v23 = vrot.slane %v5121_v32, 1 }
 0x455   :  { %v4283_v46 = vpop.permute.xlu0 %4282  ;;  %v4583_v39 = vmul.f32 %v4582_v18, %v11659_v33  ;;  %v4299_v49 = vrot.slane %v4290_v30, 1  ;;  %v4608_v25 = vmul.f32 %v4607_v0, %v11659_v33  ;;  %v4656_v41 = vmul.f32 %v4655_v21, %v11659_v33 }
 0x456   :  { %v4291_v55 = vmax.f32 %v3008_v4, %v4283_v46  ;;  %4593 = vrot.lane.b32.xlu0 %v4584_v16, %s7612_s21  ;;  %v4665_v60 = vrot.slane %v4657_v40, 1  ;;  %v4687_v16 = vmul.f32 %v4686_v3, %v11659_v33  ;;  %v5151_v46 = vmul.f32 %v5149_v10, %v11585_v11 }
 0x457   :  { %4591 = vrot.lane.b32.xlu1 %v4583_v39, %s7612_s21  ;;  %v4664_v17 = vrot.slane %v4656_v41, 1  ;;  %v5132_v39 = vsel %vm621_vm3, %v5130_v23, %v5131_v22  ;;  %v5152_v13 = vmul.f32 %v5149_v10, %v11597_v14 }
 0x458   :  { %v4300_v31 = vrot.slane %v4291_v55, 1 }
 0x459   :  { %v4666_v28 = vsel %vm621_vm3, %v4664_v17, %v4665_v60  ;;  %v5161_v41 = vrot.slane %v5152_v13, 1 }
 0x45a   :  { %v4301_v7 = vsel %vm621_vm3, %v4299_v49, %v4300_v31  ;;  %v11672_v2 = vmax.f32 %v4291_v55, %v4300_v31  ;;  %5056 = vrot.lane.b32.xlu0 %v5047_v50, %s7612_s21  ;;  %v4695_v55 = vrot.slane %v4687_v16, 1  ;;  %v5150_v49 = vmul.f32 %v5149_v10, %v11589_v1 }
 0x45b   :  { %v11675_v8 = vmax.f32 %v4290_v30, %v4301_v7  ;;  %5054 = vrot.lane.b32.xlu1 %v5046_v52, %s7612_s21  ;;  %v4688_v30 = vmul.f32 %v4686_v3, %v11657_v61  ;;  %v5159_v50 = vrot.slane %v5151_v46, 1  ;;  %v4771_v46 = vstv %s7310_s30  ;;  %s12113_s30 = sld [smem:[#allocation7 + $0x6]] }
 0x45c   :  { %v4586_v51 = vmul.f32 %v4582_v18, %v11672_v2  ;;  %v4611_v54 = vmul.f32 %v4607_v0, %v11672_v2  ;;  %v4659_v35 = vmul.f32 %v4655_v21, %v11672_v2 }
 0x45d   :  { %v4585_v4 = vmul.f32 %v4582_v18, %v11675_v8  ;;  %v4610_v38 = vmul.f32 %v4607_v0, %v11675_v8  ;;  %v4658_v9 = vmul.f32 %v4655_v21, %v11675_v8  ;;  %v4696_v15 = vrot.slane %v4688_v30, 1 }
 0x45e   :  { %4597 = vrot.lane.b32.xlu0 %v4586_v51, %s7612_s21  ;;  %v4668_v20 = vrot.slane %v4659_v35, 1  ;;  %v5158_v51 = vrot.slane %v5150_v49, 1 }
 0x45f   :  { %4595 = vrot.lane.b32.xlu1 %v4585_v4, %s7612_s21  ;;  %v4667_v29 = vrot.slane %v4658_v9, 1  ;;  %v4697_v7 = vsel %vm621_vm3, %v4695_v55, %v4696_v15  ;;  %v4690_v4 = vmul.f32 %v4686_v3, %v11672_v2 }
 0x460   :  { %v5160_v0 = vsel %vm621_vm3, %v5158_v51, %v5159_v50  ;;  %v5234_v51 = vstv %s7328_s0  ;;  %s7302_s0 = sld [smem:[#allocation7 + $0x9]] }
 0x461   :  { %v4669_v18 = vsel %vm621_vm3, %v4667_v29, %v4668_v20  ;;  %v5238_v24 = vmul.f32 %v5234_v51, %v11594_v56 }
 0x462   :  { %5060 = vrot.lane.b32.xlu0 %v5049_v48, %s7612_s21  ;;  %v4689_v48 = vmul.f32 %v4686_v3, %v11675_v8 }
 0x463   :  { %5058 = vrot.lane.b32.xlu1 %v5048_v26, %s7612_s21  ;;  %v5153_v26 = vmul.f32 %v5149_v10, %v11594_v56 }
 0x466   :  { %4618 = vrot.lane.b32.xlu0 %v4609_v47, %s7613_s5  ;;  %v4699_v47 = vrot.slane %v4690_v4, 1 }
 0x467   :  { %4616 = vrot.lane.b32.xlu1 %v4608_v25, %s7613_s5  ;;  %v4698_v25 = vrot.slane %v4689_v48, 1 }
 0x469   :  { %v4700_v40 = vsel %vm621_vm3, %v4698_v25, %v4699_v47 }
 0x46a   :  { %5081 = vrot.lane.b32.xlu0 %v5072_v12, %s7613_s5 }
 0x46b   :  { %5079 = vrot.lane.b32.xlu1 %v5071_v62, %s7613_s5  ;;  %v4740_v62 = vstv %s7309_s28  ;;  %s254_s28 = sld [smem:[#allocation7]] }
 0x46c   :  { %v4742_v37 = vmul.f32 %v4740_v62, %v11657_v61  ;;  %v4743_v29 = vmul.f32 %v4740_v62, %v11675_v8 }
 0x46e   :  { %4622 = vrot.lane.b32.xlu0 %v4611_v54, %s7613_s5  ;;  %v5162_v54 = vrot.slane %v5153_v26, 1  ;;  %v4750_v44 = vrot.slane %v4742_v37, 2  ;;  %v4752_v30 = vrot.slane %v4743_v29, 2  ;;  %v5236_v26 = vmul.f32 %v5234_v51, %v11585_v11 }
 0x46f   :  { %4620 = vrot.lane.b32.xlu1 %v4610_v38, %s7613_s5  ;;  %v5203_v38 = vstv %s7327_s29  ;;  %s7346_s29 = sld [smem:[#allocation7 + $0x35]] }
 0x470   :  { %v5163_v17 = vsel %vm621_vm3, %v5161_v41, %v5162_v54  ;;  %v5206_v10 = vmul.f32 %v5203_v38, %v11597_v14 }
 0x472   :  { %5085 = vrot.lane.b32.xlu0 %v5074_v57, %s7613_s5  ;;  %v4741_v57 = vmul.f32 %v4740_v62, %v11659_v33  ;;  %v5215_v55 = vrot.slane %v5206_v10, 2 }
 0x473   :  { %5083 = vrot.lane.b32.xlu1 %v5073_v36, %s7613_s5 }
 0x476   :  { %4672 = vrot.lane.b32.xlu0 %v4665_v60, %s7612_s21  ;;  %v5205_v60 = vmul.f32 %v5203_v38, %v11585_v11 }
 0x477   :  { %4670 = vrot.lane.b32.xlu1 %v4666_v28, %s7612_s21  ;;  %v5204_v28 = vmul.f32 %v5203_v38, %v11589_v1 }
 0x478   :  { %v5213_v9 = vrot.slane %v5205_v60, 2  ;;  %v4774_v60 = vmul.f32 %v4771_v46, %v11675_v8 }
 0x47a   :  { %5135 = vrot.lane.b32.xlu0 %v5128_v43, %s7612_s21  ;;  %v4749_v43 = vrot.slane %v4741_v57, 2  ;;  %v4775_v57 = vmul.f32 %v4771_v46, %v11672_v2 }
 0x47b   :  { %5133 = vrot.lane.b32.xlu1 %v5129_v34, %s7612_s21  ;;  %v5212_v34 = vrot.slane %v5204_v28, 2 }
 0x47c   :  { %v4751_v5 = vsel %vm709_vm4, %v4749_v43, %v4750_v44 }
 0x47e   :  { %4676 = vrot.lane.b32.xlu0 %v4668_v20, %s7612_s21  ;;  %v4744_v20 = vmul.f32 %v4740_v62, %v11672_v2 }
 0x47f   :  { %4674 = vrot.lane.b32.xlu1 %v4669_v18, %s7612_s21  ;;  %v11728_v52 = vpop.permute.xlu1 %4314  ;;  %v5214_v18 = vsel %vm709_vm4, %v5212_v34, %v5213_v9 }
 0x480   :  { %v4753_v23 = vrot.slane %v4744_v20, 2 }
 0x482   :  { %5139 = vrot.lane.b32.xlu0 %v5131_v22, %s7612_s21  ;;  %v5207_v22 = vmul.f32 %v5203_v38, %v11594_v56  ;;  %v4754_v49 = vsel %vm709_vm4, %v4752_v30, %v4753_v23  ;;  %v5244_v38 = vrot.slane %v5236_v26, 2 }
 0x483   :  { %5137 = vrot.lane.b32.xlu1 %v5132_v39, %s7612_s21  ;;  %v11726_v31 = vpop.permute.xlu0 %4316  ;;  %v11742_v21 = vpop.permute.xlu1 %4318 }
 0x484   :  { %v4327_v41 = vmax.f32 %v4231_v42, %v11726_v31  ;;  %v5237_v42 = vmul.f32 %v5234_v51, %v11597_v14 }
 0x486   :  { %4703 = vrot.lane.b32.xlu0 %v4696_v15, %s7613_s5  ;;  %v5216_v15 = vrot.slane %v5207_v22, 2  ;;  %v4335_v31 = vrot.slane %v4327_v41, 1  ;;  %v5246_v10 = vrot.slane %v5237_v42, 2 }
 0x487   :  { %4701 = vrot.lane.b32.xlu1 %v4697_v7, %s7613_s5  ;;  %v11739_v12 = vpop.permute.xlu0 %4320  ;;  %v4772_v7 = vmul.f32 %v4771_v46, %v11659_v33 }
 0x488   :  { %v4329_v29 = vmax.f32 %v4233_v19, %v11739_v12 }
 0x489   :  { %v4780_v13 = vrot.slane %v4772_v7, 2 }
 0x48a   :  { %5166 = vrot.lane.b32.xlu0 %v5159_v50, %s7613_s5  ;;  %v4773_v50 = vmul.f32 %v4771_v46, %v11657_v61  ;;  %v4811_v46 = vstv %s7312_s14  ;;  %s7305_s14 = sld [smem:[#allocation7 + $0xc]] }
 0x48b   :  { %5164 = vrot.lane.b32.xlu1 %v5160_v0, %s7613_s5  ;;  %v5235_v0 = vmul.f32 %v5234_v51, %v11589_v1 }
 0x48c   :  { %v4781_v25 = vrot.slane %v4773_v50, 2 }
 0x48d   :  { %v11748_v36 = vpop.permute.xlu0 %4364 }
 0x48e   :  { %4707 = vrot.lane.b32.xlu0 %v4699_v47, %s7613_s5  ;;  %v11751_v63 = vpop.permute.xlu1 %4362  ;;  %v5217_v47 = vsel %vm709_vm4, %v5215_v55, %v5216_v15  ;;  %v4782_v37 = vsel %vm709_vm4, %v4780_v13, %v4781_v25 }
 0x48f   :  { %4705 = vrot.lane.b32.xlu1 %v4700_v40, %s7613_s5  ;;  %v5243_v40 = vrot.slane %v5235_v0, 2 }
 0x491   :  { %v5245_v28 = vsel %vm709_vm4, %v5243_v40, %v5244_v38 }
 0x492   :  { %5170 = vrot.lane.b32.xlu0 %v5162_v54, %s7613_s5 }
 0x493   :  { %v11757_v58 = vpop.permute.xlu0 %4368  ;;  %5168 = vrot.lane.b32.xlu1 %v5163_v17, %s7613_s5 }
 0x494   :  { %v11760_v35 = vpop.permute.xlu1 %4366 }
 0x496   :  { %4757 = vrot.lane.b32.xlu0 %v4750_v44, %s7612_s21  ;;  %v4326_v44 = vmax.f32 %v4230_v27, %v11728_v52  ;;  %v5247_v27 = vrot.slane %v5238_v24, 2 }
 0x497   :  { %v11766_v32 = vpop.permute.xlu0 %4389  ;;  %4755 = vrot.lane.b32.xlu1 %v4751_v5, %s7612_s21  ;;  %v4783_v5 = vrot.slane %v4774_v60, 2 }
 0x498   :  { %v11769_v3 = vpop.permute.xlu1 %4387  ;;  %v4334_v34 = vrot.slane %v4326_v44, 1  ;;  %v5248_v53 = vsel %vm709_vm4, %v5246_v10, %v5247_v27 }
 0x49a   :  { %5220 = vrot.lane.b32.xlu0 %v5213_v9, %s7612_s21  ;;  %v4784_v9 = vrot.slane %v4775_v57, 2  ;;  %v4336_v52 = vsel %vm621_vm3, %v4334_v34, %v4335_v31  ;;  %v4836_v57 = vstv %s7313_s6  ;;  %s7323_s6 = sld [smem:[#allocation7 + $0x1e]] }
 0x49b   :  { %v11775_v16 = vpop.permute.xlu0 %4393  ;;  %5218 = vrot.lane.b32.xlu1 %v5214_v18, %s7612_s21  ;;  %v11829_v18 = vmax.f32 %v4327_v41, %v4335_v31  ;;  %v11834_v30 = vmax.f32 %v4326_v44, %v4336_v52  ;;  %v5299_v31 = vstv %s7331_s16  ;;  %s7320_s16 = sld [smem:[#allocation7 + $0x1b]] }
 0x49c   :  { %v11778_v39 = vpop.permute.xlu1 %4391  ;;  %v4785_v22 = vsel %vm709_vm4, %v4783_v5, %v4784_v9  ;;  %v5300_v34 = vmul.f32 %v5299_v31, %v11659_v33 }
 0x49d   :  { %14382 = vst [vmem:[#allocation145_spill] sm:$0xff] %v11829_v18  ;;  %14383 = vst [vmem:[#allocation152_spill] sm:$0xff] %v11834_v30  ;;  %v4812_v6 = vmul.f32 %v4811_v46, %v11834_v30  ;;  %v4838_v44 = vmul.f32 %v4836_v57, %v11829_v18  ;;  %v4837_v42 = vmul.f32 %v4836_v57, %v11834_v30 }
 0x49e   :  { %4761 = vrot.lane.b32.xlu0 %v4753_v23, %s7612_s21  ;;  %v4328_v23 = vmax.f32 %v4232_v45, %v11742_v21  ;;  %v5274_v45 = vstv %s7330_s15  ;;  %s7308_s15 = sld [smem:[#allocation7 + $0xf]] }
 0x49f   :  { %v11784_v4 = vpop.permute.xlu0 %4443  ;;  %4759 = vrot.lane.b32.xlu1 %v4754_v49, %s7612_s21  ;;  %v4813_v49 = vmul.f32 %v4811_v46, %v11829_v18  ;;  %v5276_v51 = vmul.f32 %v5274_v45, %v11657_v61  ;;  %v5278_v41 = vmul.f32 %v5274_v45, %v11672_v2 }
 0x4a0   :  { %v11787_v48 = vpop.permute.xlu1 %4441  ;;  %v4337_v12 = vrot.slane %v4328_v23, 1 }
 0x4a2   :  { %5224 = vrot.lane.b32.xlu0 %v5216_v15, %s7612_s21  ;;  %v4338_v15 = vrot.slane %v4329_v29, 1 }
 0x4a3   :  { %v11793_v62 = vpop.permute.xlu0 %4447  ;;  %5222 = vrot.lane.b32.xlu1 %v5217_v47, %s7612_s21  ;;  %v5275_v47 = vmul.f32 %v5274_v45, %v11659_v33 }
 0x4a4   :  { %v11796_v54 = vpop.permute.xlu1 %4445  ;;  %v4339_v21 = vsel %vm621_vm3, %v4337_v12, %v4338_v15  ;;  %v11848_v50 = vmax.f32 %v4329_v29, %v4338_v15  ;;  %v5347_v15 = vstv %s7333_s4  ;;  %v5303_v12 = vmul.f32 %v5299_v31, %v11672_v2  ;;  %s7314_s4 = sld [smem:[#allocation7 + $0x15]] }
 0x4a5   :  { %v11853_v26 = vmax.f32 %v4328_v23, %v4339_v21 }
 0x4a6   :  { %4788 = vrot.lane.b32.xlu0 %v4781_v25, %s7613_s5  ;;  %v4815_v25 = vmul.f32 %v4811_v46, %v11848_v50  ;;  %v4840_v29 = vmul.f32 %v4836_v57, %v11848_v50 }
 0x4a7   :  { %v11805_v17 = vpop.permute.xlu0 %4474  ;;  %4786 = vrot.lane.b32.xlu1 %v4782_v37, %s7613_s5  ;;  %14384 = vst [vmem:[#allocation157_spill] sm:$0xff] %v11853_v26  ;;  %v4814_v13 = vmul.f32 %v4811_v46, %v11853_v26  ;;  %v5277_v37 = vmul.f32 %v5274_v45, %v11675_v8  ;;  %v4839_v10 = vmul.f32 %v4836_v57, %v11853_v26 }
 0x4a8   :  { %v11811_v43 = vpop.permute.xlu1 %4472  ;;  %v5349_v45 = vmul.f32 %v5347_v15, %v11657_v61 }
 0x4aa   :  { %5251 = vrot.lane.b32.xlu0 %v5244_v38, %s7613_s5 }
 0x4ab   :  { %5249 = vrot.lane.b32.xlu1 %v5245_v28, %s7613_s5  ;;  %v11818_v20 = vpop.permute.xlu0 %4478 }
 0x4ac   :  { %v11820_v59 = vpop.permute.xlu1 %4476 }
 0x4ae   :  { %4792 = vrot.lane.b32.xlu0 %v4784_v9, %s7613_s5  ;;  %v5301_v9 = vmul.f32 %v5299_v31, %v11657_v61 }
 0x4af   :  { %4790 = vrot.lane.b32.xlu1 %v4785_v22, %s7613_s5  ;;  %v11836_v55 = vpop.permute.xlu0 %4528 }
 0x4b0   :  { %v11840_v19 = vpop.permute.xlu1 %4526 }
 0x4b2   :  { %5255 = vrot.lane.b32.xlu0 %v5247_v27, %s7613_s5  ;;  %v4884_v27 = vstv %s7315_s2  ;;  %s7311_s2 = sld [smem:[#allocation7 + $0x12]] }
 0x4b3   :  { %5253 = vrot.lane.b32.xlu1 %v5248_v53, %s7613_s5  ;;  %v11850_v7 = vpop.permute.xlu0 %4532  ;;  %v4886_v23 = vmul.f32 %v4884_v27, %v11829_v18  ;;  %v4885_v46 = vmul.f32 %v4884_v27, %v11834_v30 }
 0x4b4   :  { %v11855_v0 = vpop.permute.xlu1 %4530 }
 0x4b5   :  { %v4894_v21 = vrot.slane %v4886_v23, 1 }
 0x4b6   :  { %4822 = vrot.lane.b32.xlu0 %v4813_v49, %s7612_s21 }
 0x4b7   :  { %4820 = vrot.lane.b32.xlu1 %v4812_v6, %s7612_s21  ;;  %v11862_v38 = vpop.permute.xlu0 %4559  ;;  %v5302_v6 = vmul.f32 %v5299_v31, %v11675_v8 }
 0x4b8   :  { %v11865_v40 = vpop.permute.xlu1 %4557 }
 0x4ba   :  { %5285 = vrot.lane.b32.xlu0 %v5276_v51, %s7612_s21  ;;  %v4893_v51 = vrot.slane %v4885_v46, 1 }
 0x4bb   :  { %5283 = vrot.lane.b32.xlu1 %v5275_v47, %s7612_s21  ;;  %v11872_v60 = vpop.permute.xlu0 %4563  ;;  %v5348_v47 = vmul.f32 %v5347_v15, %v11659_v33 }
 0x4bc   :  { %v11875_v24 = vpop.permute.xlu1 %4561 }
 0x4bd   :  { %v5356_v57 = vrot.slane %v5348_v47, 1 }
 0x4be   :  { %4826 = vrot.lane.b32.xlu0 %v4815_v25, %s7612_s21 }
 0x4bf   :  { %4824 = vrot.lane.b32.xlu1 %v4814_v13, %s7612_s21 }
 0x4c2   :  { %5289 = vrot.lane.b32.xlu0 %v5278_v41, %s7612_s21  ;;  %v5357_v41 = vrot.slane %v5349_v45, 1 }
 0x4c3   :  { %5287 = vrot.lane.b32.xlu1 %v5277_v37, %s7612_s21  ;;  %v4895_v37 = vsel %vm621_vm3, %v4893_v51, %v4894_v21 }
 0x4c6   :  { %4847 = vrot.lane.b32.xlu0 %v4838_v44, %s7613_s5  ;;  %v4888_v44 = vmul.f32 %v4884_v27, %v11848_v50 }
 0x4c7   :  { %4845 = vrot.lane.b32.xlu1 %v4837_v42, %s7613_s5  ;;  %v4887_v42 = vmul.f32 %v4884_v27, %v11853_v26  ;;  %v4915_v27 = vstv %s7316_s17  ;;  %s12243_s17 = sld [smem:[#allocation7 + $0x21]] }
 0x4c8   :  { %v11880_v28 = vpop.permute.xlu0 %4593  ;;  %v4897_v23 = vrot.slane %v4888_v44, 1  ;;  %v4916_v47 = vmul.f32 %v4915_v27, %v11834_v30 }
 0x4c9   :  { %v11883_v5 = vpop.permute.xlu1 %4591  ;;  %v4896_v46 = vrot.slane %v4887_v42, 1 }
 0x4ca   :  { %5310 = vrot.lane.b32.xlu0 %v5301_v9, %s7613_s5 }
 0x4cb   :  { %5308 = vrot.lane.b32.xlu1 %v5300_v34, %s7613_s5  ;;  %v5351_v34 = vmul.f32 %v5347_v15, %v11672_v2  ;;  %v4898_v51 = vsel %vm621_vm3, %v4896_v46, %v4897_v23 }
 0x4cc   :  { %v11888_v52 = vpop.permute.xlu0 %5056 }
 0x4cd   :  { %14385 = vst [vmem:[#allocation200_spill] sm:$0xff] %v11888_v52  ;;  %v11891_v22 = vpop.permute.xlu1 %5054  ;;  %v5360_v45 = vrot.slane %v5351_v34, 1 }
 0x4ce   :  { %14386 = vst [vmem:[#allocation146_spill] sm:$0xff] %v11891_v22  ;;  %4851 = vrot.lane.b32.xlu0 %v4840_v29, %s7613_s5  ;;  %v5350_v29 = vmul.f32 %v5347_v15, %v11675_v8  ;;  %v4917_v15 = vmul.f32 %v4915_v27, %v11829_v18 }
 0x4cf   :  { %4849 = vrot.lane.b32.xlu1 %v4839_v10, %s7613_s5  ;;  %v5358_v10 = vsel %vm621_vm3, %v5356_v57, %v5357_v41 }
 0x4d0   :  { %v11898_v53 = vpop.permute.xlu0 %4597  ;;  %v4925_v34 = vrot.slane %v4917_v15, 1 }
 0x4d1   :  { %v11901_v49 = vpop.permute.xlu1 %4595 }
 0x4d2   :  { %14387 = vst [vmem:[#allocation163_spill] sm:$0xff] %v11901_v49  ;;  %5314 = vrot.lane.b32.xlu0 %v5303_v12, %s7613_s5 }
 0x4d3   :  { %5312 = vrot.lane.b32.xlu1 %v5302_v6, %s7613_s5 }
 0x4d4   :  { %v11908_v25 = vpop.permute.xlu0 %5060 }
 0x4d5   :  { %14388 = vst [vmem:[#allocation206_spill] sm:$0xff] %v11908_v25  ;;  %v11910_v13 = vpop.permute.xlu1 %5058 }
 0x4d6   :  { %14389 = vst [vmem:[#allocation158_spill] sm:$0xff] %v11910_v13  ;;  %4901 = vrot.lane.b32.xlu0 %v4894_v21, %s7612_s21  ;;  %v5359_v21 = vrot.slane %v5350_v29, 1  ;;  %v4924_v29 = vrot.slane %v4916_v47, 1 }
 0x4d7   :  { %4899 = vrot.lane.b32.xlu1 %v4895_v37, %s7612_s21 }
 0x4d8   :  { %v11917_v31 = vpop.permute.xlu0 %4618  ;;  %v5361_v42 = vsel %vm621_vm3, %v5359_v21, %v5360_v45  ;;  %v4926_v13 = vsel %vm621_vm3, %v4924_v29, %v4925_v34 }
 0x4d9   :  { %v11919_v9 = vpop.permute.xlu1 %4616 }
 0x4da   :  { %5364 = vrot.lane.b32.xlu0 %v5357_v41, %s7612_s21  ;;  %v5378_v41 = vstv %s7334_s18  ;;  %s12271_s18 = sld [smem:[#allocation7 + $0x18]] }
 0x4db   :  { %5362 = vrot.lane.b32.xlu1 %v5358_v10, %s7612_s21  ;;  %v5380_v44 = vmul.f32 %v5378_v41, %v11657_v61  ;;  %v5379_v10 = vmul.f32 %v5378_v41, %v11659_v33  ;;  %v5382_v47 = vmul.f32 %v5378_v41, %v11672_v2 }
 0x4dc   :  { %v11926_v12 = vpop.permute.xlu0 %5081 }
 0x4dd   :  { %14390 = vst [vmem:[#allocation175_spill] sm:$0xff] %v11926_v12  ;;  %v11928_v6 = vpop.permute.xlu1 %5079  ;;  %v5387_v25 = vrot.slane %v5379_v10, 1 }
 0x4de   :  { %14391 = vst [vmem:[#allocation114_spill] sm:$0xff] %v11928_v6  ;;  %4905 = vrot.lane.b32.xlu0 %v4897_v23, %s7612_s21  ;;  %v4919_v6 = vmul.f32 %v4915_v27, %v11848_v50 }
 0x4df   :  { %4903 = vrot.lane.b32.xlu1 %v4898_v51, %s7612_s21  ;;  %v5388_v51 = vrot.slane %v5380_v44, 1  ;;  %v5381_v44 = vmul.f32 %v5378_v41, %v11675_v8 }
 0x4e0   :  { %v11935_v37 = vpop.permute.xlu0 %4622 }
 0x4e1   :  { %14392 = vst [vmem:[#allocation164_spill] sm:$0xff] %v11935_v37  ;;  %v11937_v57 = vpop.permute.xlu1 %4620 }
 0x4e2   :  { %14393 = vst [vmem:[#allocation169_spill] sm:$0xff] %v11937_v57  ;;  %5368 = vrot.lane.b32.xlu0 %v5360_v45, %s7612_s21  ;;  %v4918_v45 = vmul.f32 %v4915_v27, %v11853_v26  ;;  %v4969_v27 = vstv %s7318_s19  ;;  %s12343_s19 = sld [smem:[#allocation8]] }
 0x4e3   :  { %5366 = vrot.lane.b32.xlu1 %v5361_v42, %s7612_s21  ;;  %v5389_v42 = vsel %vm621_vm3, %v5387_v25, %v5388_v51  ;;  %v4971_v41 = vmul.f32 %v4969_v27, %v11829_v18  ;;  %v4970_v22 = vmul.f32 %v4969_v27, %v11834_v30  ;;  %v5432_v25 = vstv %s7336_s20  ;;  %s12376_s20 = sld [smem:[#allocation7 + $0x24]] }
 0x4e4   :  { %v11944_v23 = vpop.permute.xlu0 %5085  ;;  %v4927_v29 = vrot.slane %v4918_v45, 1  ;;  %v5434_v45 = vmul.f32 %v5432_v25, %v11657_v61 }
 0x4e5   :  { %14394 = vst [vmem:[#allocation176_spill] sm:$0xff] %v11944_v23  ;;  %v11946_v46 = vpop.permute.xlu1 %5083  ;;  %v5390_v23 = vrot.slane %v5381_v44, 1  ;;  %v4979_v44 = vrot.slane %v4971_v41, 2  ;;  %v5436_v41 = vmul.f32 %v5432_v25, %v11672_v2 }
 0x4e6   :  { %14395 = vst [vmem:[#allocation181_spill] sm:$0xff] %v11946_v46  ;;  %4932 = vrot.lane.b32.xlu0 %v4925_v34, %s7613_s5  ;;  %v4928_v34 = vrot.slane %v4919_v6, 1  ;;  %v5391_v46 = vrot.slane %v5382_v47, 1 }
 0x4e7   :  { %4930 = vrot.lane.b32.xlu1 %v4926_v13, %s7613_s5 }
 0x4e8   :  { %v11953_v21 = vpop.permute.xlu0 %4672  ;;  %v4929_v12 = vsel %vm621_vm3, %v4927_v29, %v4928_v34  ;;  %v5392_v47 = vsel %vm621_vm3, %v5390_v23, %v5391_v46  ;;  %v4972_v23 = vmul.f32 %v4969_v27, %v11853_v26 }
 0x4e9   :  { %v11955_v15 = vpop.permute.xlu1 %4670 }
 0x4ea   :  { %14396 = vst [vmem:[#allocation117_spill] sm:$0xff] %v11955_v15  ;;  %5395 = vrot.lane.b32.xlu0 %v5388_v51, %s7613_s5 }
 0x4eb   :  { %5393 = vrot.lane.b32.xlu1 %v5389_v42, %s7613_s5  ;;  %v4978_v42 = vrot.slane %v4970_v22, 2 }
 0x4ec   :  { %v11962_v10 = vpop.permute.xlu0 %5135 }
 0x4ed   :  { %14397 = vst [vmem:[#allocation118_spill] sm:$0xff] %v11962_v10  ;;  %v11964_v13 = vpop.permute.xlu1 %5133  ;;  %v4980_v10 = vsel %vm709_vm4, %v4978_v42, %v4979_v44  ;;  %v4981_v42 = vrot.slane %v4972_v23, 2 }
 0x4ee   :  { %14398 = vst [vmem:[#allocation170_spill] sm:$0xff] %v11964_v13  ;;  %4936 = vrot.lane.b32.xlu0 %v4928_v34, %s7613_s5  ;;  %v5433_v34 = vmul.f32 %v5432_v25, %v11659_v33  ;;  %v5442_v13 = vrot.slane %v5434_v45, 2  ;;  %v5435_v45 = vmul.f32 %v5432_v25, %v11675_v8 }
 0x4ef   :  { %4934 = vrot.lane.b32.xlu1 %v4929_v12, %s7613_s5 }
 0x4f0   :  { %v11971_v6 = vpop.permute.xlu0 %4676  ;;  %v5441_v52 = vrot.slane %v5433_v34, 2 }
 0x4f1   :  { %14399 = vst [vmem:[#allocation187_spill] sm:$0xff] %v11971_v6  ;;  %v11973_v51 = vpop.permute.xlu1 %4674 }
 0x4f2   :  { %14400 = vst [vmem:[#allocation123_spill] sm:$0xff] %v11973_v51  ;;  %5399 = vrot.lane.b32.xlu0 %v5391_v46, %s7613_s5  ;;  %v4973_v51 = vmul.f32 %v4969_v27, %v11848_v50  ;;  %v5000_v27 = vstv %s7319_s22  ;;  %s12384_s22 = sld [smem:[#allocation7 + $0x27]] }
 0x4f3   :  { %5397 = vrot.lane.b32.xlu1 %v5392_v47, %s7613_s5  ;;  %v5443_v47 = vsel %vm709_vm4, %v5441_v52, %v5442_v13  ;;  %v5002_v25 = vmul.f32 %v5000_v27, %v11829_v18  ;;  %v5463_v52 = vstv %s7337_s23  ;;  %s12425_s23 = sld [smem:[#allocation7 + $0x2a]] }
 0x4f4   :  { %v11980_v29 = vpop.permute.xlu0 %5139 }
 0x4f5   :  { %14401 = vst [vmem:[#allocation182_spill] sm:$0xff] %v11980_v29  ;;  %v11982_v12 = vpop.permute.xlu1 %5137  ;;  %v5444_v29 = vrot.slane %v5435_v45, 2 }
 0x4f6   :  { %14402 = vst [vmem:[#allocation199_spill] sm:$0xff] %v11982_v12  ;;  %4986 = vrot.lane.b32.xlu0 %v4979_v44, %s7612_s21  ;;  %v4982_v44 = vrot.slane %v4973_v51, 2  ;;  %v5445_v12 = vrot.slane %v5436_v41, 2  ;;  %v5010_v41 = vrot.slane %v5002_v25, 2 }
 0x4f7   :  { %4984 = vrot.lane.b32.xlu1 %v4980_v10, %s7612_s21 }
 0x4f8   :  { %v11989_v22 = vpop.permute.xlu0 %4703  ;;  %v4983_v6 = vsel %vm709_vm4, %v4981_v42, %v4982_v44  ;;  %v5446_v23 = vsel %vm709_vm4, %v5444_v29, %v5445_v12 }
 0x4f9   :  { %14403 = vst [vmem:[#allocation124_spill] sm:$0xff] %v11989_v22  ;;  %v11991_v46 = vpop.permute.xlu1 %4701 }
 0x4fa   :  { %14404 = vst [vmem:[#allocation129_spill] sm:$0xff] %v11991_v46  ;;  %5449 = vrot.lane.b32.xlu0 %v5442_v13, %s7612_s21  ;;  %v5001_v46 = vmul.f32 %v5000_v27, %v11834_v30 }
 0x4fb   :  { %5447 = vrot.lane.b32.xlu1 %v5443_v47, %s7612_s21  ;;  %v5465_v47 = vmul.f32 %v5463_v52, %v11657_v61 }
 0x4fc   :  { %v11998_v34 = vpop.permute.xlu0 %5166  ;;  %v5009_v45 = vrot.slane %v5001_v46, 2  ;;  %v5003_v46 = vmul.f32 %v5000_v27, %v11853_v26 }
 0x4fd   :  { %14405 = vst [vmem:[#allocation188_spill] sm:$0xff] %v11998_v34  ;;  %v12000_v10 = vpop.permute.xlu1 %5164  ;;  %v5473_v34 = vrot.slane %v5465_v47, 2 }
 0x4fe   :  { %14406 = vst [vmem:[#allocation193_spill] sm:$0xff] %v12000_v10  ;;  %4990 = vrot.lane.b32.xlu0 %v4982_v44, %s7612_s21  ;;  %v5464_v44 = vmul.f32 %v5463_v52, %v11659_v33  ;;  %v5004_v10 = vmul.f32 %v5000_v27, %v11848_v50  ;;  %v5011_v29 = vsel %vm709_vm4, %v5009_v45, %v5010_v41 }
 0x4ff   :  { %4988 = vrot.lane.b32.xlu1 %v4983_v6, %s7612_s21 }
 0x500   :  { %v12007_v13 = vpop.permute.xlu0 %4707 }
 0x501   :  { %14407 = vst [vmem:[#allocation202_spill] sm:$0xff] %v12007_v13  ;;  %v12009_v51 = vpop.permute.xlu1 %4705  ;;  %v5467_v13 = vmul.f32 %v5463_v52, %v11672_v2 }
 0x502   :  { %14408 = vst [vmem:[#allocation212_spill] sm:$0xff] %v12009_v51  ;;  %5453 = vrot.lane.b32.xlu0 %v5445_v12, %s7612_s21  ;;  %v5472_v12 = vrot.slane %v5464_v44, 2 }
 0x503   :  { %5451 = vrot.lane.b32.xlu1 %v5446_v23, %s7612_s21  ;;  %v5013_v23 = vrot.slane %v5004_v10, 2  ;;  %v5476_v47 = vrot.slane %v5467_v13, 2 }
 0x504   :  { %v12016_v42 = vpop.permute.xlu0 %5170 }
 0x505   :  { %14409 = vst [vmem:[#allocation130_spill] sm:$0xff] %v12016_v42  ;;  %v12018_v6 = vpop.permute.xlu1 %5168  ;;  %v5012_v42 = vrot.slane %v5003_v46, 2 }
 0x506   :  { %14410 = vst [vmem:[#allocation34_spill] sm:$0xff] %v12018_v6  ;;  %5017 = vrot.lane.b32.xlu0 %v5010_v41, %s7613_s5  ;;  %v5474_v6 = vsel %vm709_vm4, %v5472_v12, %v5473_v34  ;;  %v5466_v41 = vmul.f32 %v5463_v52, %v11675_v8  ;;  %v5503_v12 = vstv %s7339_s24  ;;  %s7338_s24 = sld [smem:[#allocation7 + $0x2d]] }
 0x507   :  { %5015 = vrot.lane.b32.xlu1 %v5011_v29, %s7613_s5  ;;  %v5014_v10 = vsel %vm709_vm4, %v5012_v42, %v5013_v23  ;;  %v5505_v13 = vmul.f32 %v5503_v12, %v11829_v18  ;;  %v5504_v46 = vmul.f32 %v5503_v12, %v11834_v30 }
 0x508   :  { %v12025_v25 = vpop.permute.xlu0 %4757  ;;  %v5475_v44 = vrot.slane %v5466_v41, 2  ;;  %v5507_v41 = vmul.f32 %v5503_v12, %v11848_v50 }
 0x509   :  { %14411 = vst [vmem:[#allocation194_spill] sm:$0xff] %v12025_v25  ;;  %v12027_v51 = vpop.permute.xlu1 %4755 }
 0x50a   :  { %14412 = vst [vmem:[#allocation232_spill] sm:$0xff] %v12027_v51  ;;  %5480 = vrot.lane.b32.xlu0 %v5473_v34, %s7613_s5  ;;  %v5477_v52 = vsel %vm709_vm4, %v5475_v44, %v5476_v47  ;;  %v5528_v44 = vstv %s7340_s1  ;;  %s7341_s1 = sld [smem:[#allocation7 + $0x30]] }
 0x50b   :  { %5478 = vrot.lane.b32.xlu1 %v5474_v6, %s7613_s5 }
 0x50c   :  { %v12034_v27 = vpop.permute.xlu0 %5220 }
 0x50d   :  { %14413 = vst [vmem:[#allocation216_spill] sm:$0xff] %v12034_v27  ;;  %v12036_v45 = vpop.permute.xlu1 %5218 }
 0x50e   :  { %14414 = vst [vmem:[#allocation240_spill] sm:$0xff] %v12036_v45  ;;  %5021 = vrot.lane.b32.xlu0 %v5013_v23, %s7613_s5 }
 0x50f   :  { %5019 = vrot.lane.b32.xlu1 %v5014_v10, %s7613_s5 }
 0x510   :  { %v12041_v34 = vpop.permute.xlu0 %4761 }
 0x511   :  { %14415 = vst [vmem:[#allocation264_spill] sm:$0xff] %v12041_v34  ;;  %v12043_v29 = vpop.permute.xlu1 %4759 }
 0x512   :  { %14416 = vst [vmem:[#allocation274_spill] sm:$0xff] %v12043_v29  ;;  %5484 = vrot.lane.b32.xlu0 %v5476_v47, %s7613_s5  ;;  %v5506_v47 = vmul.f32 %v5503_v12, %v11853_v26 }
 0x513   :  { %5482 = vrot.lane.b32.xlu1 %v5477_v52, %s7613_s5  ;;  %v5576_v52 = vstv %s7342_s3  ;;  %s7344_s3 = sld [smem:[#allocation7 + $0x33]] }
 0x514   :  { %v12048_v6 = vpop.permute.xlu0 %5224  ;;  %v5578_v45 = vmul.f32 %v5576_v52, %v11829_v18  ;;  %v5577_v12 = vmul.f32 %v5576_v52, %v11834_v30  ;;  %v5579_v34 = vmul.f32 %v5576_v52, %v11853_v26 }
 0x515   :  { %14417 = vst [vmem:[#allocation135_spill] sm:$0xff] %v12048_v6  ;;  %v12051_v42 = vpop.permute.xlu1 %5222  ;;  %v5529_v6 = vmul.f32 %v5528_v44, %v11834_v30 }
 0x516   :  { %14418 = vst [vmem:[#allocation233_spill] sm:$0xff] %v12051_v42  ;;  %5514 = vrot.lane.b32.xlu0 %v5505_v13, %s7612_s21  ;;  %v5530_v13 = vmul.f32 %v5528_v44, %v11829_v18  ;;  %v5586_v29 = vrot.slane %v5578_v45, 1 }
 0x517   :  { %5512 = vrot.lane.b32.xlu1 %v5504_v46, %s7612_s21 }
 0x518   :  { %v12056_v23 = vpop.permute.xlu0 %4788 }
 0x519   :  { %14419 = vst [vmem:[#allocation243_spill] sm:$0xff] %v12056_v23  ;;  %v12059_v10 = vpop.permute.xlu1 %4786 }
 0x51a   :  { %14420 = vst [vmem:[#allocation136_spill] sm:$0xff] %v12059_v10  ;;  %5518 = vrot.lane.b32.xlu0 %v5507_v41, %s7612_s21  ;;  %v5607_v10 = vstv %s7343_s25  ;;  %s7347_s25 = sld [smem:[#allocation8 + $0x1]] }
 0x51b   :  { %5516 = vrot.lane.b32.xlu1 %v5506_v47, %s7612_s21  ;;  %v5532_v47 = vmul.f32 %v5528_v44, %v11848_v50  ;;  %v5608_v45 = vmul.f32 %v5607_v10, %v11834_v30 }
 0x51c   :  { %v12064_v42 = vpop.permute.xlu0 %5251 }
 0x51d   :  { %14421 = vst [vmem:[#allocation72_spill] sm:$0xff] %v12064_v42  ;;  %v12067_v46 = vpop.permute.xlu1 %5249  ;;  %v5531_v42 = vmul.f32 %v5528_v44, %v11853_v26 }
 0x51e   :  { %14422 = vst [vmem:[#allocation266_spill] sm:$0xff] %v12067_v46  ;;  %5539 = vrot.lane.b32.xlu0 %v5530_v13, %s7613_s5  ;;  %v5580_v46 = vmul.f32 %v5576_v52, %v11848_v50  ;;  %v5585_v13 = vrot.slane %v5577_v12, 1  ;;  %v5611_v12 = vmul.f32 %v5607_v10, %v11848_v50 }
 0x51f   :  { %5537 = vrot.lane.b32.xlu1 %v5529_v6, %s7613_s5 }
 0x520   :  { %v12074_v41 = vpop.permute.xlu0 %4792  ;;  %v5589_v23 = vrot.slane %v5580_v46, 1  ;;  %v5587_v44 = vsel %vm621_vm3, %v5585_v13, %v5586_v29  ;;  %v5610_v13 = vmul.f32 %v5607_v10, %v11853_v26 }
 0x521   :  { %14423 = vst [vmem:[#allocation272_spill] sm:$0xff] %v12074_v41  ;;  %v12077_v27 = vpop.permute.xlu1 %4790 }
 0x522   :  { %14424 = vst [vmem:[#allocation81_spill] sm:$0xff] %v12077_v27  ;;  %5543 = vrot.lane.b32.xlu0 %v5532_v47, %s7613_s5  ;;  %v5588_v27 = vrot.slane %v5579_v34, 1  ;;  %v5609_v47 = vmul.f32 %v5607_v10, %v11829_v18  ;;  %v5616_v34 = vrot.slane %v5608_v45, 1  ;;  %v5619_v51 = vrot.slane %v5610_v13, 1 }
 0x523   :  { %5541 = vrot.lane.b32.xlu1 %v5531_v42, %s7613_s5 }
 0x524   :  { %v12084_v6 = vpop.permute.xlu0 %5255  ;;  %v5590_v46 = vsel %vm621_vm3, %v5588_v27, %v5589_v23 }
 0x525   :  { %14425 = vst [vmem:[#allocation223_spill] sm:$0xff] %v12084_v6  ;;  %v12086_v41 = vpop.permute.xlu1 %5253 }
 0x526   :  { %14426 = vst [vmem:[#allocation252_spill] sm:$0xff] %v12086_v41  ;;  %5593 = vrot.lane.b32.xlu0 %v5586_v29, %s7612_s21  ;;  %v5617_v29 = vrot.slane %v5609_v47, 1  ;;  %v5661_v41 = vstv %s7345_s26  ;;  %v4403_v47 = vstv %s7296_s27  ;;  %s7366_s26 = sld [smem:[#allocation10 + $0x13]] }
 0x527   :  { %5591 = vrot.lane.b32.xlu1 %v5587_v44, %s7612_s21  ;;  %v5663_v27 = vmul.f32 %v5661_v41, %v11829_v18  ;;  %s7367_s27 = sld [smem:[#allocation10 + $0x14]] }
 0x528   :  { %v12093_v52 = vpop.permute.xlu0 %4822 }
 0x529   :  { %14427 = vst [vmem:[#allocation31_spill] sm:$0xff] %v12093_v52  ;;  %v12095_v42 = vpop.permute.xlu1 %4820  ;;  %v5618_v52 = vsel %vm621_vm3, %v5616_v34, %v5617_v29  ;;  %v5671_v34 = vrot.slane %v5663_v27, 2 }
 0x52a   :  { %14428 = vst [vmem:[#allocation141_spill] sm:$0xff] %v12095_v42  ;;  %5597 = vrot.lane.b32.xlu0 %v5589_v23, %s7612_s21  ;;  %v5620_v42 = vrot.slane %v5611_v12, 1  ;;  %v5662_v23 = vmul.f32 %v5661_v41, %v11834_v30  ;;  %v5665_v12 = vmul.f32 %v5661_v41, %v11848_v50 }
 0x52b   :  { %5595 = vrot.lane.b32.xlu1 %v5590_v46, %s7612_s21  ;;  %v5664_v46 = vmul.f32 %v5661_v41, %v11853_v26 }
 0x52c   :  { %v12102_v44 = vpop.permute.xlu0 %5285  ;;  %v5670_v13 = vrot.slane %v5662_v23, 2  ;;  %v5674_v22 = vrot.slane %v5665_v12, 2 }
 0x52d   :  { %14429 = vst [vmem:[#allocation224_spill] sm:$0xff] %v12102_v44  ;;  %v12104_v6 = vpop.permute.xlu1 %5283  ;;  %v4405_v44 = vmul.f32 %v4403_v47, %v11585_v11 }
 0x52e   :  { %14430 = vst [vmem:[#allocation24_spill] sm:$0xff] %v12104_v6  ;;  %5624 = vrot.lane.b32.xlu0 %v5617_v29, %s7613_s5  ;;  %v4348_v6 = vstv %s254_s28  ;;  %v5621_v29 = vsel %vm621_vm3, %v5619_v51, %v5620_v42  ;;  %v5673_v51 = vrot.slane %v5664_v46, 2  ;;  %s7369_s28 = sld [smem:[#allocation10 + $0x16]] }
 0x52f   :  { %5622 = vrot.lane.b32.xlu1 %v5618_v52, %s7613_s5  ;;  %v5692_v52 = vstv %s7346_s29  ;;  %v4349_v41 = vmul.f32 %v4348_v6, %v11589_v1  ;;  %v4413_v37 = vrot.slane %v4405_v44, 1  ;;  %s7370_s29 = sld [smem:[#allocation10 + $0x17]] }
 0x530   :  { %v12111_v10 = vpop.permute.xlu0 %4826  ;;  %v5694_v27 = vmul.f32 %v5692_v52, %v11829_v18  ;;  %v5693_v23 = vmul.f32 %v5692_v52, %v11834_v30  ;;  %v5695_v44 = vmul.f32 %v5692_v52, %v11853_v26 }
 0x531   :  { %14431 = vst [vmem:[#allocation82_spill] sm:$0xff] %v12111_v10  ;;  %v12115_v45 = vpop.permute.xlu1 %4824  ;;  %v4404_v10 = vmul.f32 %v4403_v47, %v11589_v1 }
 0x532   :  { %14432 = vst [vmem:[#allocation246_spill] sm:$0xff] %v12115_v45  ;;  %5628 = vrot.lane.b32.xlu0 %v5620_v42, %s7613_s5  ;;  %v4350_v45 = vmul.f32 %v4348_v6, %v11585_v11  ;;  %v5672_v42 = vsel %vm709_vm4, %v5670_v13, %v5671_v34  ;;  %v5675_v13 = vsel %vm709_vm4, %v5673_v51, %v5674_v22 }
 0x533   :  { %5626 = vrot.lane.b32.xlu1 %v5621_v29, %s7613_s5  ;;  %v4412_v15 = vrot.slane %v4404_v10, 1  ;;  %v4352_v10 = vmul.f32 %v4348_v6, %v11594_v56 }
 0x534   :  { %v12124_v25 = vpop.permute.xlu0 %5289  ;;  %v4375_v29 = vadd.f32 %v11748_v36, %v4350_v45  ;;  %v5702_v36 = vrot.slane %v5694_v27, 2  ;;  %v5701_v45 = vrot.slane %v5693_v23, 2 }
 0x535   :  { %14433 = vst [vmem:[#allocation225_spill] sm:$0xff] %v12124_v25  ;;  %v12128_v57 = vpop.permute.xlu1 %5287  ;;  %v4374_v25 = vadd.f32 %v11751_v63, %v4349_v41  ;;  %v5696_v63 = vmul.f32 %v5692_v52, %v11848_v50 }
 0x536   :  { %14434 = vst [vmem:[#allocation142_spill] sm:$0xff] %v12128_v57  ;;  %5678 = vrot.lane.b32.xlu0 %v5671_v34, %s7612_s21  ;;  %v4400_v12 = vadd.f32 %v11766_v32, %v4375_v29  ;;  %v4488_v57 = vstv %s12113_s30  ;;  %v4351_v32 = vmul.f32 %v4348_v6, %v11597_v14  ;;  %v5703_v6 = vsel %vm709_vm4, %v5701_v45, %v5702_v36  ;;  %s7372_s30 = sld [smem:[#allocation10 + $0x19]] }
 0x537   :  { %5676 = vrot.lane.b32.xlu1 %v5672_v42, %s7612_s21  ;;  %v4399_v46 = vadd.f32 %v11769_v3, %v4374_v25  ;;  %v4407_v3 = vmul.f32 %v4403_v47, %v11594_v56  ;;  %v4406_v25 = vmul.f32 %v4403_v47, %v11597_v14  ;;  %v4490_v42 = vmul.f32 %v4488_v57, %v11585_v11 }
 0x538   :  { %v12137_v49 = vpop.permute.xlu0 %4847  ;;  %v4423_v51 = vadd.f32 %v4413_v37, %v4400_v12  ;;  %v4489_v27 = vmul.f32 %v4488_v57, %v11589_v1  ;;  %v5705_v29 = vrot.slane %v5696_v63, 2  ;;  %v4377_v47 = vadd.f32 %v11757_v58, %v4352_v10 }
 0x539   :  { %v12142_v34 = vpop.permute.xlu1 %4845  ;;  %v4416_v12 = vrot.slane %v4407_v3, 1  ;;  %v4415_v26 = vrot.slane %v4406_v25, 1  ;;  %v4498_v45 = vrot.slane %v4490_v42, 2 }
 0x53a   :  { %5682 = vrot.lane.b32.xlu0 %v5674_v22, %s7612_s21  ;;  %v4414_v22 = vsel %vm621_vm3, %v4412_v15, %v4413_v37  ;;  %v4376_v37 = vadd.f32 %v11760_v35, %v4351_v32  ;;  %v4497_v63 = vrot.slane %v4489_v27, 2 }
 0x53b   :  { %5680 = vrot.lane.b32.xlu1 %v5675_v13, %s7612_s21  ;;  %v4422_v23 = vadd.f32 %v4414_v22, %v4399_v46  ;;  %v5704_v13 = vrot.slane %v5695_v44, 2  ;;  %v4402_v22 = vadd.f32 %v11775_v16, %v4377_v47  ;;  %v4417_v44 = vsel %vm621_vm3, %v4415_v26, %v4416_v12 }
 0x53c   :  { %v12153_v41 = vpop.permute.xlu0 %5310  ;;  %v4492_v16 = vmul.f32 %v4488_v57, %v11594_v56  ;;  %v4499_v3 = vsel %vm709_vm4, %v4497_v63, %v4498_v45 }
 0x53d   :  { %14435 = vst [vmem:[#allocation229_spill] sm:$0xff] %v12153_v41  ;;  %v12158_v52 = vpop.permute.xlu1 %5308  ;;  %v4454_v41 = vadd.f32 %v11784_v4, %v4423_v51  ;;  %v4453_v15 = vadd.f32 %v11787_v48, %v4422_v23  ;;  %v4401_v4 = vadd.f32 %v11778_v39, %v4376_v37  ;;  %v5706_v48 = vsel %vm709_vm4, %v5704_v13, %v5705_v29 }
 0x53e   :  { %5709 = vrot.lane.b32.xlu0 %v5702_v36, %s7613_s5  ;;  %v4425_v10 = vadd.f32 %v4416_v12, %v4402_v22  ;;  %v4491_v39 = vmul.f32 %v4488_v57, %v11597_v14  ;;  %v4501_v23 = vrot.slane %v4492_v16, 2  ;;  %v4632_v37 = vstv %s7305_s14  ;;  %s7375_s14 = sld [smem:[#allocation10 + $0x1c]] }
 0x53f   :  { %5707 = vrot.lane.b32.xlu1 %v5703_v6, %s7613_s5  ;;  %v4485_v36 = vadd.f32 %v11805_v17, %v4454_v41  ;;  %v4484_v35 = vadd.f32 %v11811_v43, %v4453_v15  ;;  %v4424_v43 = vadd.f32 %v4417_v44, %v4401_v4  ;;  %v4573_v6 = vstv %s7302_s0  ;;  %s7373_s0 = sld [smem:[#allocation10 + $0x1a]] }
 0x540   :  { %v12167_v46 = vpop.permute.xlu0 %4851  ;;  %v4456_v51 = vadd.f32 %v11793_v62, %v4425_v10  ;;  %v4500_v47 = vrot.slane %v4491_v39, 2  ;;  %v4634_v12 = vmul.f32 %v4632_v37, %v11657_v61  ;;  %v4633_v22 = vmul.f32 %v4632_v37, %v11659_v33 }
 0x541   :  { %v12171_v58 = vpop.permute.xlu1 %4849  ;;  %v4508_v32 = vadd.f32 %v4498_v45, %v4485_v36  ;;  %v4507_v41 = vadd.f32 %v4499_v3, %v4484_v35  ;;  %v4455_v26 = vadd.f32 %v11796_v54, %v4424_v43  ;;  %v4575_v54 = vmul.f32 %v4573_v6, %v11657_v61 }
 0x542   :  { %5713 = vrot.lane.b32.xlu0 %v5705_v29, %s7613_s5  ;;  %v4487_v13 = vadd.f32 %v11818_v20, %v4456_v51  ;;  %v4642_v16 = vrot.slane %v4634_v12, 1  ;;  %v4641_v10 = vrot.slane %v4633_v22, 1  ;;  %v4717_v51 = vstv %s7308_s15  ;;  %s7376_s15 = sld [smem:[#allocation10 + $0x1d]] }
 0x543   :  { %5711 = vrot.lane.b32.xlu1 %v5706_v48, %s7613_s5  ;;  %v4539_v42 = vadd.f32 %v11836_v55, %v4508_v32  ;;  %v4538_v27 = vadd.f32 %v11840_v19, %v4507_v41  ;;  %v4486_v62 = vadd.f32 %v11820_v59, %v4455_v26  ;;  %v4574_v19 = vmul.f32 %v4573_v6, %v11659_v33 }
 0x544   :  { %v12180_v17 = vpop.permute.xlu0 %5314  ;;  %v4510_v36 = vadd.f32 %v4501_v23, %v4487_v13 }
 0x545   :  { %v12184_v25 = vpop.permute.xlu1 %5312  ;;  %v4570_v57 = vadd.f32 %v11862_v38, %v4539_v42  ;;  %v4569_v55 = vadd.f32 %v11865_v40, %v4538_v27  ;;  %v4502_v38 = vsel %vm709_vm4, %v4500_v47, %v4501_v23  ;;  %v4636_v42 = vmul.f32 %v4632_v37, %v11672_v2 }
 0x546   :  { %v4509_v59 = vadd.f32 %v4502_v38, %v4486_v62  ;;  %v4541_v40 = vadd.f32 %v11850_v7, %v4510_v36  ;;  %v14440_v62 = vld [vmem:[#allocation163_spill] sm:$0xff]  ;;  %v14442_v36 = vld [vmem:[#allocation164_spill] sm:$0xff] }
 0x547   :  { %v4579_v45 = vadd.f32 %v4575_v54, %v4570_v57  ;;  %v4578_v4 = vadd.f32 %v4574_v19, %v4569_v55  ;;  %v4645_v19 = vrot.slane %v4636_v42, 1 }
 0x548   :  { %v12190_v29 = vpop.permute.xlu0 %4901  ;;  %v4540_v48 = vadd.f32 %v11855_v0, %v4509_v59  ;;  %v4572_v3 = vadd.f32 %v11872_v60, %v4541_v40  ;;  %v4576_v0 = vmul.f32 %v4573_v6, %v11675_v8  ;;  %v4635_v60 = vmul.f32 %v4632_v37, %v11675_v8  ;;  %v14441_v37 = vld [vmem:[#allocation117_spill] sm:$0xff] }
 0x549   :  { %v12194_v15 = vpop.permute.xlu1 %4899  ;;  %v4604_v35 = vadd.f32 %v11880_v28, %v4579_v45  ;;  %v4603_v44 = vadd.f32 %v11883_v5, %v4578_v4  ;;  %v4577_v28 = vmul.f32 %v4573_v6, %v11672_v2  ;;  %v4643_v5 = vsel %vm621_vm3, %v4641_v10, %v4642_v16  ;;  %v14443_v45 = vld [vmem:[#allocation124_spill] sm:$0xff] }
 0x54a   :  { %v4571_v41 = vadd.f32 %v11875_v24, %v4540_v48  ;;  %v4719_v24 = vmul.f32 %v4717_v51, %v11657_v61  ;;  %v4644_v12 = vrot.slane %v4635_v60, 1  ;;  %v14445_v48 = vld [vmem:[#allocation129_spill] sm:$0xff] }
 0x54b   :  { %v4629_v39 = vadd.f32 %v11917_v31, %v4604_v35  ;;  %v4628_v7 = vadd.f32 %v11919_v9, %v4603_v44  ;;  %v4581_v31 = vadd.f32 %v4577_v28, %v4572_v3  ;;  %v4718_v9 = vmul.f32 %v4717_v51, %v11659_v33 }
 0x54c   :  { %v12202_v20 = vpop.permute.xlu0 %5364  ;;  %v4580_v13 = vadd.f32 %v4576_v0, %v4571_v41  ;;  %v4727_v4 = vrot.slane %v4719_v24, 2  ;;  %v4646_v10 = vsel %vm621_vm3, %v4644_v12, %v4645_v19  ;;  %v4721_v3 = vmul.f32 %v4717_v51, %v11672_v2  ;;  %v14448_v24 = vld [vmem:[#allocation187_spill] sm:$0xff] }
 0x54d   :  { %14436 = vst [vmem:[#allocation46_spill] sm:$0xff] %v12202_v20  ;;  %v12205_v63 = vpop.permute.xlu1 %5362  ;;  %v4652_v27 = vadd.f32 %v4642_v16, %v4629_v39  ;;  %v4651_v47 = vadd.f32 %v4643_v5, %v4628_v7  ;;  %v4606_v6 = vadd.f32 %v11898_v53, %v4581_v31  ;;  %v4726_v40 = vrot.slane %v4718_v9, 2  ;;  %v14444_v53 = vld [vmem:[#allocation169_spill] sm:$0xff] }
 0x54e   :  { %14437 = vst [vmem:[#allocation247_spill] sm:$0xff] %v12205_v63  ;;  %v4605_v55 = vadd.f32 %v14440_v62, %v4580_v13  ;;  %v5095_v16 = vstv %s7323_s6  ;;  %v4720_v0 = vmul.f32 %v4717_v51, %v11675_v8  ;;  %v5040_v31 = vstv %s7320_s16  ;;  %v14449_v13 = vld [vmem:[#allocation194_spill] sm:$0xff]  ;;  %v14451_v62 = vld [vmem:[#allocation232_spill] sm:$0xff]  ;;  %s7378_s6 = sld [smem:[#allocation10 + $0x1f]] }
 0x54f   :  { %v4683_v57 = vadd.f32 %v11953_v21, %v4652_v27  ;;  %v4682_v54 = vadd.f32 %v14441_v37, %v4651_v47  ;;  %v4631_v38 = vadd.f32 %v14442_v36, %v4606_v6  ;;  %v4728_v28 = vsel %vm709_vm4, %v4726_v40, %v4727_v4  ;;  %v14450_v6 = vld [vmem:[#allocation123_spill] sm:$0xff]  ;;  %s7379_s16 = sld [smem:[#allocation10 + $0x20]] }
 0x550   :  { %v12211_v32 = vpop.permute.xlu0 %4905  ;;  %v4630_v21 = vadd.f32 %v14444_v53, %v4605_v55  ;;  %v12253_v27 = vmul.f32 %v5095_v16, %v11585_v11  ;;  %v4730_v37 = vrot.slane %v4721_v3, 2  ;;  %v4729_v36 = vrot.slane %v4720_v0, 2 }
 0x551   :  { %v12215_v43 = vpop.permute.xlu1 %4903  ;;  %v4714_v59 = vadd.f32 %v14443_v45, %v4683_v57  ;;  %v4713_v44 = vadd.f32 %v14445_v48, %v4682_v54  ;;  %v4654_v41 = vadd.f32 %v4645_v19, %v4631_v38  ;;  %v4802_v54 = vstv %s7311_s2  ;;  %v14452_v19 = vld [vmem:[#allocation202_spill] sm:$0xff]  ;;  %v14453_v38 = vld [vmem:[#allocation243_spill] sm:$0xff]  ;;  %s7381_s2 = sld [smem:[#allocation10 + $0x22]] }
 0x552   :  { %v4653_v42 = vadd.f32 %v4646_v10, %v4630_v21  ;;  %v5096_v40 = vmul.f32 %v5095_v16, %v11589_v1  ;;  %v12267_v53 = vmul.f32 %v5095_v16, %v11594_v56  ;;  %v14454_v21 = vld [vmem:[#allocation212_spill] sm:$0xff]  ;;  %v5042_v3 = vmul.f32 %v5040_v31, %v11585_v11 }
 0x553   :  { %v4737_v7 = vadd.f32 %v4727_v4, %v4714_v59  ;;  %v4736_v60 = vadd.f32 %v4728_v28, %v4713_v44  ;;  %v4685_v9 = vadd.f32 %v14448_v24, %v4654_v41  ;;  %v4861_v59 = vstv %s7314_s4  ;;  %v14455_v44 = vld [vmem:[#allocation136_spill] sm:$0xff]  ;;  %s7382_s4 = sld [smem:[#allocation10 + $0x23]] }
 0x554   :  { %v12224_v26 = vpop.permute.xlu0 %5368  ;;  %v4684_v57 = vadd.f32 %v14450_v6, %v4653_v42  ;;  %v5041_v41 = vmul.f32 %v5040_v31, %v11589_v1  ;;  %v4804_v28 = vmul.f32 %v4802_v54, %v11829_v18  ;;  %v12278_v0 = vstv %s12243_s17  ;;  %s7348_s17 = sld [smem:[#allocation10 + $0x1]] }
 0x555   :  { %14438 = vst [vmem:[#allocation53_spill] sm:$0xff] %v12224_v26  ;;  %v12228_v23 = vpop.permute.xlu1 %5366  ;;  %v4768_v47 = vadd.f32 %v14449_v13, %v4737_v7  ;;  %v4767_v55 = vadd.f32 %v14451_v62, %v4736_v60  ;;  %v4716_v12 = vadd.f32 %v14452_v19, %v4685_v9  ;;  %v5098_v7 = vmul.f32 %v5095_v16, %v11597_v14  ;;  %v14459_v13 = vld [vmem:[#allocation31_spill] sm:$0xff]  ;;  %v14460_v26 = vld [vmem:[#allocation274_spill] sm:$0xff] }
 0x556   :  { %14439 = vst [vmem:[#allocation32_spill] sm:$0xff] %v12228_v23  ;;  %v4715_v48 = vadd.f32 %v14454_v21, %v4684_v57  ;;  %v4803_v42 = vmul.f32 %v4802_v54, %v11834_v30  ;;  %v4863_v60 = vmul.f32 %v4861_v59, %v11829_v18  ;;  %v4862_v24 = vmul.f32 %v4861_v59, %v11834_v30  ;;  %v14458_v23 = vld [vmem:[#allocation264_spill] sm:$0xff] }
 0x557   :  { %v4799_v45 = vadd.f32 %v14453_v38, %v4768_v47  ;;  %v4798_v10 = vadd.f32 %v14455_v44, %v4767_v55  ;;  %v4739_v47 = vadd.f32 %v4730_v37, %v4716_v12  ;;  %v4731_v6 = vsel %vm709_vm4, %v4729_v36, %v4730_v37  ;;  %v14461_v36 = vld [vmem:[#allocation141_spill] sm:$0xff] }
 0x558   :  { %v12234_v22 = vpop.permute.xlu0 %4932  ;;  %v5104_v16 = vrot.slane %v5096_v40, 1  ;;  %v13489_v55 = vrot.slane %v12267_v53, 1  ;;  %v4738_v19 = vadd.f32 %v4731_v6, %v4715_v48  ;;  %v5107_v21 = vrot.slane %v5098_v7, 1  ;;  %v14462_v7 = vld [vmem:[#allocation272_spill] sm:$0xff] }
 0x559   :  { %v12238_v35 = vpop.permute.xlu1 %4930  ;;  %v4808_v57 = vadd.f32 %v4804_v28, %v4799_v45  ;;  %v4807_v38 = vadd.f32 %v4803_v42, %v4798_v10  ;;  %v12292_v44 = vmul.f32 %v12278_v0, %v11585_v11  ;;  %v4871_v28 = vrot.slane %v4863_v60, 1 }
 0x55a   :  { %v4769_v37 = vadd.f32 %v14460_v26, %v4738_v19  ;;  %v4870_v40 = vrot.slane %v4862_v24, 1  ;;  %v5044_v48 = vmul.f32 %v5040_v31, %v11594_v56  ;;  %v5043_v10 = vmul.f32 %v5040_v31, %v11597_v14 }
 0x55b   :  { %v4833_v12 = vadd.f32 %v14459_v13, %v4808_v57  ;;  %v4832_v45 = vadd.f32 %v14461_v36, %v4807_v38  ;;  %v14464_v13 = vld [vmem:[#allocation81_spill] sm:$0xff]  ;;  %v4946_v24 = vstv %s12271_s18  ;;  %v12315_v57 = vsel %vm621_vm3, %v5107_v21, %v13489_v55  ;;  %v14469_v38 = vld [vmem:[#allocation146_spill] sm:$0xff]  ;;  %s7349_s18 = sld [smem:[#allocation10 + $0x2]] }
 0x55c   :  { %v12246_v39 = vpop.permute.xlu0 %5395  ;;  %v4806_v31 = vmul.f32 %v4802_v54, %v11848_v50  ;;  %v5066_v55 = vadd.f32 %v14469_v38, %v5041_v41  ;;  %v4950_v38 = vmul.f32 %v4946_v24, %v11848_v50 }
 0x55d   :  { %14446 = vst [vmem:[#allocation153_spill] sm:$0xff] %v12246_v39  ;;  %v12250_v5 = vpop.permute.xlu1 %5393  ;;  %v4858_v42 = vadd.f32 %v12137_v49, %v4833_v12  ;;  %v4857_v60 = vadd.f32 %v12142_v34, %v4832_v45  ;;  %v4865_v49 = vmul.f32 %v4861_v59, %v11848_v50  ;;  %v4872_v12 = vsel %vm621_vm3, %v4870_v40, %v4871_v28  ;;  %v14470_v39 = vld [vmem:[#allocation82_spill] sm:$0xff] }
 0x55e   :  { %14447 = vst [vmem:[#allocation45_spill] sm:$0xff] %v12250_v5  ;;  %v4948_v45 = vmul.f32 %v4946_v24, %v11829_v18  ;;  %v14473_v18 = vld [vmem:[#allocation246_spill] sm:$0xff] }
 0x55f   :  { %v4881_v36 = vadd.f32 %v4871_v28, %v4858_v42  ;;  %v4880_v5 = vadd.f32 %v4872_v12, %v4857_v60  ;;  %v4874_v63 = vrot.slane %v4865_v49, 1  ;;  %v14472_v42 = vld [vmem:[#allocation114_spill] sm:$0xff] }
 0x560   :  { %v12259_v51 = vpop.permute.xlu0 %4936  ;;  %v4956_v41 = vrot.slane %v4948_v45, 2 }
 0x561   :  { %v12263_v4 = vpop.permute.xlu1 %4934  ;;  %v4912_v40 = vadd.f32 %v12190_v29, %v4881_v36 }
 0x564   :  { %v12283_v9 = vpop.permute.xlu0 %5399 }
 0x565   :  { %14456 = vst [vmem:[#allocation59_spill] sm:$0xff] %v12283_v9  ;;  %v12287_v62 = vpop.permute.xlu1 %5397  ;;  %v4770_v9 = vadd.f32 %v14458_v23, %v4739_v47  ;;  %v14463_v23 = vrot.slane %v12253_v27, 1  ;;  %v4800_v47 = vadd.f32 %v14464_v13, %v4769_v37 }
 0x566   :  { %14457 = vst [vmem:[#allocation33_spill] sm:$0xff] %v12287_v62 }
 0x567   :  { %v4801_v11 = vadd.f32 %v14462_v7, %v4770_v9  ;;  %v5106_v26 = vsel %vm621_vm3, %v5104_v16, %v14463_v23  ;;  %v14465_v9 = vld [vmem:[#allocation157_spill] sm:$0xff]  ;;  %v12323_v16 = vmul.f32 %v12278_v0, %v11589_v1  ;;  %v4947_v7 = vmul.f32 %v4946_v24, %v11834_v30 }
 0x568   :  { %v12298_v62 = vpop.permute.xlu0 %4986  ;;  %v4864_v19 = vmul.f32 %v4861_v59, %v14465_v9  ;;  %v4805_v34 = vmul.f32 %v4802_v54, %v14465_v9  ;;  %v14468_v59 = vld [vmem:[#allocation200_spill] sm:$0xff] }
 0x569   :  { %v12304_v6 = vpop.permute.xlu1 %4984  ;;  %v4810_v21 = vadd.f32 %v4806_v31, %v4801_v11  ;;  %v5067_v13 = vadd.f32 %v14468_v59, %v5042_v3  ;;  %v14471_v11 = vld [vmem:[#allocation175_spill] sm:$0xff]  ;;  %v5091_v31 = vadd.f32 %v14472_v42, %v5066_v55  ;;  %v4955_v29 = vrot.slane %v4947_v7, 2 }
 0x56a   :  { %v4809_v1 = vadd.f32 %v4805_v34, %v4800_v47  ;;  %v5189_v60 = vrot.slane %v12323_v16, 2  ;;  %v12352_v55 = vmul.f32 %v12278_v0, %v11594_v56  ;;  %v14476_v34 = vrot.slane %v12253_v27, 1  ;;  %v14479_v27 = vld [vmem:[#allocation118_spill] sm:$0xff] }
 0x56b   :  { %v4835_v54 = vadd.f32 %v14470_v39, %v4810_v21  ;;  %v5092_v28 = vadd.f32 %v14471_v11, %v5067_v13  ;;  %v4943_v39 = vadd.f32 %v12234_v22, %v4912_v40  ;;  %v5183_v22 = vmul.f32 %v12278_v0, %v11597_v14  ;;  %v14478_v0 = vld [vmem:[#allocation181_spill] sm:$0xff] }
 0x56c   :  { %v12327_v37 = vpop.permute.xlu0 %5449  ;;  %v4834_v30 = vadd.f32 %v14473_v18, %v4809_v1  ;;  %v5114_v12 = vadd.f32 %v5106_v26, %v5091_v31  ;;  %v4949_v21 = vmul.f32 %v4946_v24, %v14465_v9  ;;  %v4957_v36 = vsel %vm709_vm4, %v4955_v29, %v4956_v41 }
 0x56d   :  { %14466 = vst [vmem:[#allocation73_spill] sm:$0xff] %v12327_v37  ;;  %v12331_v23 = vpop.permute.xlu1 %5447  ;;  %v4873_v37 = vrot.slane %v4864_v19, 1  ;;  %v4860_v3 = vadd.f32 %v12167_v46, %v4835_v54  ;;  %v14475_v19 = vld [vmem:[#allocation158_spill] sm:$0xff]  ;;  %v5115_v16 = vadd.f32 %v14476_v34, %v5092_v28  ;;  %v4959_v1 = vrot.slane %v4950_v38, 2 }
 0x56e   :  { %14467 = vst [vmem:[#allocation147_spill] sm:$0xff] %v12331_v23  ;;  %v4911_v23 = vadd.f32 %v12194_v15, %v4880_v5  ;;  %v4859_v18 = vadd.f32 %v12171_v58, %v4834_v30  ;;  %v14474_v5 = vld [vmem:[#allocation206_spill] sm:$0xff]  ;;  %v5068_v46 = vadd.f32 %v14475_v19, %v5043_v10  ;;  %v14477_v58 = vld [vmem:[#allocation176_spill] sm:$0xff]  ;;  %v4966_v10 = vadd.f32 %v4956_v41, %v4943_v39 }
 0x56f   :  { %v5069_v49 = vadd.f32 %v14474_v5, %v5044_v48  ;;  %v4875_v56 = vsel %vm621_vm3, %v4873_v37, %v4874_v63  ;;  %v4883_v48 = vadd.f32 %v4874_v63, %v4860_v3  ;;  %v5146_v7 = vadd.f32 %v14479_v27, %v5115_v16  ;;  %v14480_v37 = vld [vmem:[#allocation170_spill] sm:$0xff]  ;;  %v14482_v3 = vld [vmem:[#allocation188_spill] sm:$0xff] }
 0x570   :  { %v12341_v20 = vpop.permute.xlu0 %4990  ;;  %v4942_v15 = vadd.f32 %v12238_v35, %v4911_v23  ;;  %v5093_v45 = vadd.f32 %v14478_v0, %v5068_v46  ;;  %v4882_v26 = vadd.f32 %v4875_v56, %v4859_v18  ;;  %v5145_v59 = vadd.f32 %v14480_v37, %v5114_v12  ;;  %v14483_v18 = vld [vmem:[#allocation193_spill] sm:$0xff]  ;;  %v14484_v5 = vld [vmem:[#allocation182_spill] sm:$0xff]  ;;  %v14490_v27 = vld [vmem:[#allocation216_spill] sm:$0xff] }
 0x571   :  { %v12347_v47 = vpop.permute.xlu1 %4988  ;;  %v5094_v35 = vadd.f32 %v14477_v58, %v5069_v49  ;;  %v4914_v24 = vadd.f32 %v12211_v32, %v4883_v48  ;;  %v4997_v13 = vadd.f32 %v12298_v62, %v4966_v10  ;;  %v4958_v40 = vrot.slane %v4949_v21, 2  ;;  %v14487_v56 = vld [vmem:[#allocation130_spill] sm:$0xff] }
 0x572   :  { %v4965_v23 = vadd.f32 %v4957_v36, %v4942_v15  ;;  %v4913_v63 = vadd.f32 %v12215_v43, %v4882_v26  ;;  %v5031_v11 = vstv %s12343_s19  ;;  %v14481_v42 = vrot.slane %v12267_v53, 1  ;;  %v14489_v10 = vld [vmem:[#allocation34_spill] sm:$0xff]  ;;  %s7351_s19 = sld [smem:[#allocation10 + $0x4]] }
 0x573   :  { %v5177_v39 = vadd.f32 %v14482_v3, %v5146_v7  ;;  %v4945_v32 = vadd.f32 %v12259_v51, %v4914_v24  ;;  %v5116_v29 = vadd.f32 %v12315_v57, %v5093_v45  ;;  %v5176_v43 = vadd.f32 %v14483_v18, %v5145_v59  ;;  %v14486_v51 = vld [vmem:[#allocation199_spill] sm:$0xff] }
 0x574   :  { %v12365_v30 = vpop.permute.xlu0 %5453  ;;  %v4996_v54 = vadd.f32 %v12304_v6, %v4965_v23  ;;  %v5117_v31 = vadd.f32 %v14481_v42, %v5094_v35  ;;  %v4944_v6 = vadd.f32 %v12263_v4, %v4913_v63  ;;  %v14485_v53 = vrot.slane %v12292_v44, 2  ;;  %v14491_v44 = vld [vmem:[#allocation240_spill] sm:$0xff] }
 0x575   :  { %v12369_v14 = vpop.permute.xlu1 %5451  ;;  %v5193_v46 = vrot.slane %v12352_v55, 2  ;;  %v5147_v34 = vadd.f32 %v14486_v51, %v5116_v29  ;;  %v5192_v16 = vrot.slane %v5183_v22, 2  ;;  %v4960_v57 = vsel %vm709_vm4, %v4958_v40, %v4959_v1  ;;  %v14492_v63 = vld [vmem:[#allocation72_spill] sm:$0xff]  ;;  %v14495_v29 = vld [vmem:[#allocation233_spill] sm:$0xff] }
 0x576   :  { %v5148_v49 = vadd.f32 %v14484_v5, %v5117_v31  ;;  %v5191_v19 = vsel %vm709_vm4, %v5189_v60, %v14485_v53  ;;  %v14488_v58 = vmov %v14485_v53  ;;  %v4968_v60 = vadd.f32 %v4959_v1, %v4945_v32  ;;  %v14493_v31 = vld [vmem:[#allocation266_spill] sm:$0xff]  ;;  %v14494_v32 = vld [vmem:[#allocation135_spill] sm:$0xff] }
 0x577   :  { %v5200_v35 = vadd.f32 %v14488_v58, %v5177_v39  ;;  %v5178_v22 = vadd.f32 %v14489_v10, %v5147_v34  ;;  %v5199_v36 = vadd.f32 %v5191_v19, %v5176_v43  ;;  %v4967_v0 = vadd.f32 %v4960_v57, %v4944_v6  ;;  %v14498_v58 = vld [vmem:[#allocation224_spill] sm:$0xff] }
 0x578   :  { %v5018_v28 = vpop.permute.xlu0 %5017  ;;  %v5179_v21 = vadd.f32 %v14487_v56, %v5148_v49  ;;  %v4999_v26 = vadd.f32 %v12341_v20, %v4968_v60  ;;  %v5194_v37 = vsel %vm709_vm4, %v5192_v16, %v5193_v46  ;;  %v5265_v59 = vstv %s12376_s20  ;;  %v14496_v49 = vld [vmem:[#allocation223_spill] sm:$0xff]  ;;  %v14497_v16 = vld [vmem:[#allocation252_spill] sm:$0xff]  ;;  %s7352_s20 = sld [smem:[#allocation10 + $0x5]] }
 0x579   :  { %v5028_v62 = vadd.f32 %v5018_v28, %v4997_v13  ;;  %v5016_v41 = vpop.permute.xlu1 %5015  ;;  %v5231_v7 = vadd.f32 %v14490_v27, %v5200_v35  ;;  %v5230_v23 = vadd.f32 %v14491_v44, %v5199_v36  ;;  %v4998_v24 = vadd.f32 %v12347_v47, %v4967_v0  ;;  %v14499_v10 = vld [vmem:[#allocation24_spill] sm:$0xff]  ;;  %v14500_v44 = vld [vmem:[#allocation229_spill] sm:$0xff] }
 0x57a   :  { %v5027_v15 = vadd.f32 %v5016_v41, %v4996_v54  ;;  %v5202_v1 = vadd.f32 %v5193_v46, %v5179_v21  ;;  %v5324_v20 = vstv %s12384_s22  ;;  %v5201_v42 = vadd.f32 %v5194_v37, %v5178_v22  ;;  %s7354_s22 = sld [smem:[#allocation10 + $0x7]] }
 0x57b   :  { %v12395_v38 = vadd.f32 %v5031_v11, %v5028_v62  ;;  %v5262_v54 = vadd.f32 %v14492_v63, %v5231_v7  ;;  %v5261_v3 = vadd.f32 %v14493_v31, %v5230_v23  ;;  %v5267_v47 = vmul.f32 %v5265_v59, %v11657_v61  ;;  %v14501_v63 = vld [vmem:[#allocation225_spill] sm:$0xff] }
 0x57c   :  { %v12399_v12 = vadd.f32 %v5031_v11, %v5027_v15  ;;  %v12401_v4 = vpop.permute.xlu0 %5480  ;;  %v5233_v62 = vadd.f32 %v14494_v32, %v5202_v1  ;;  %v5232_v18 = vadd.f32 %v14495_v29, %v5201_v42  ;;  %v5266_v43 = vmul.f32 %v5265_v59, %v11659_v33 }
 0x57d   :  { %v5037_v55 = vmax.f32 %v12395_v38, 0.0  ;;  %v12407_v48 = vpop.permute.xlu1 %5478  ;;  %v5326_v6 = vmul.f32 %v5324_v20, %v11657_v61  ;;  %v5271_v19 = vadd.f32 %v5267_v47, %v5262_v54  ;;  %v5325_v46 = vmul.f32 %v5324_v20, %v11659_v33 }
 0x57e   :  { %v5036_v45 = vmax.f32 %v12399_v12, 0.0  ;;  %v5264_v53 = vadd.f32 %v14496_v49, %v5233_v62  ;;  %v5263_v57 = vadd.f32 %v14497_v16, %v5232_v18  ;;  %v5270_v56 = vadd.f32 %v5266_v43, %v5261_v3  ;;  %v14503_v43 = vld [vmem:[#allocation46_spill] sm:$0xff]  ;;  %v14504_v49 = vld [vmem:[#allocation247_spill] sm:$0xff] }
 0x57f   :  { %5738 = vrot.lane.b32.xlu0 %v5037_v55, %s7612_s21  ;;  %v5269_v35 = vmul.f32 %v5265_v59, %v11672_v2  ;;  %v5268_v60 = vmul.f32 %v5265_v59, %v11675_v8  ;;  %v5334_v36 = vrot.slane %v5326_v6, 1  ;;  %v5328_v0 = vmul.f32 %v5324_v20, %v11672_v2 }
 0x580   :  { %v5022_v13 = vpop.permute.xlu0 %5021  ;;  %5736 = vrot.lane.b32.xlu1 %v5036_v45, %s7612_s21  ;;  %v5295_v22 = vadd.f32 %v14499_v10, %v5270_v56  ;;  %v5327_v27 = vmul.f32 %v5324_v20, %v11675_v8  ;;  %v5333_v37 = vrot.slane %v5325_v46, 1  ;;  %v5409_v59 = vstv %s12425_s23  ;;  %v14507_v10 = vld [vmem:[#allocation53_spill] sm:$0xff]  ;;  %s7355_s23 = sld [smem:[#allocation10 + $0x8]] }
 0x581   :  { %v5030_v40 = vadd.f32 %v5022_v13, %v4999_v26  ;;  %v5020_v28 = vpop.permute.xlu1 %5019  ;;  %v5273_v26 = vadd.f32 %v5269_v35, %v5264_v53  ;;  %v5272_v13 = vadd.f32 %v5268_v60, %v5263_v57  ;;  %v5411_v31 = vmul.f32 %v5409_v59, %v11657_v61  ;;  %v14505_v57 = vld [vmem:[#allocation153_spill] sm:$0xff] }
 0x582   :  { %v5029_v39 = vadd.f32 %v5020_v28, %v4998_v24  ;;  %v5320_v1 = vadd.f32 %v12158_v52, %v5295_v22  ;;  %v5337_v28 = vrot.slane %v5328_v0, 1  ;;  %v5336_v42 = vrot.slane %v5327_v27, 1  ;;  %v14506_v35 = vld [vmem:[#allocation45_spill] sm:$0xff] }
 0x583   :  { %v12430_v41 = vadd.f32 %v5031_v11, %v5030_v40  ;;  %v5298_v54 = vadd.f32 %v14501_v63, %v5273_v26  ;;  %v14502_v40 = vld [vmem:[#allocation142_spill] sm:$0xff]  ;;  %v5335_v62 = vsel %vm621_vm3, %v5333_v37, %v5334_v36  ;;  %v5410_v47 = vmul.f32 %v5409_v59, %v11659_v33  ;;  %v14510_v63 = vld [vmem:[#allocation33_spill] sm:$0xff] }
 0x584   :  { %v12435_v15 = vadd.f32 %v5031_v11, %v5029_v39  ;;  %v12437_v5 = vpop.permute.xlu0 %5484  ;;  %v5296_v11 = vadd.f32 %v14498_v58, %v5271_v19  ;;  %v5297_v20 = vadd.f32 %v14502_v40, %v5272_v13  ;;  %v5343_v18 = vadd.f32 %v5335_v62, %v5320_v1 }
 0x585   :  { %v5039_v51 = vmax.f32 %v12430_v41, 0.0  ;;  %v12442_v34 = vpop.permute.xlu1 %5482  ;;  %v5323_v39 = vadd.f32 %v12180_v17, %v5298_v54  ;;  %v5338_v61 = vsel %vm621_vm3, %v5336_v42, %v5337_v28  ;;  %v5419_v19 = vrot.slane %v5411_v31, 2  ;;  %v14511_v54 = vld [vmem:[#allocation73_spill] sm:$0xff] }
 0x586   :  { %v5038_v21 = vmax.f32 %v12435_v15, 0.0  ;;  %v5321_v23 = vadd.f32 %v14500_v44, %v5296_v11  ;;  %v5322_v52 = vadd.f32 %v12184_v25, %v5297_v20  ;;  %v5374_v53 = vadd.f32 %v14504_v49, %v5343_v18  ;;  %v14512_v20 = vld [vmem:[#allocation147_spill] sm:$0xff]  ;;  %v14513_v49 = vld [vmem:[#allocation145_spill] sm:$0xff] }
 0x587   :  { %5742 = vrot.lane.b32.xlu0 %v5039_v51, %s7612_s21  ;;  %v5413_v46 = vmul.f32 %v5409_v59, %v11672_v2  ;;  %v5346_v16 = vadd.f32 %v5337_v28, %v5323_v39  ;;  %v5418_v33 = vrot.slane %v5410_v47, 2  ;;  %v5412_v58 = vmul.f32 %v5409_v59, %v11675_v8  ;;  %v14509_v2 = vld [vmem:[#allocation59_spill] sm:$0xff] }
 0x588   :  { %v12455_v7 = vpop.permute.xlu0 %5514  ;;  %5740 = vrot.lane.b32.xlu1 %v5038_v21, %s7612_s21  ;;  %v5344_v32 = vadd.f32 %v5334_v36, %v5321_v23  ;;  %v5345_v25 = vadd.f32 %v5338_v61, %v5322_v52  ;;  %v5405_v60 = vadd.f32 %v14506_v35, %v5374_v53  ;;  %v14508_v36 = vld [vmem:[#allocation32_spill] sm:$0xff]  ;;  %v5494_v42 = vstv %s7338_s24  ;;  %s7357_s24 = sld [smem:[#allocation10 + $0xa]] }
 0x589   :  { %v12462_v24 = vpop.permute.xlu1 %5512  ;;  %v5377_v22 = vadd.f32 %v14507_v10, %v5346_v16  ;;  %v5422_v27 = vrot.slane %v5413_v46, 2  ;;  %v5420_v37 = vsel %vm709_vm4, %v5418_v33, %v5419_v19  ;;  %v5421_v13 = vrot.slane %v5412_v58, 2 }
 0x58a   :  { %v5375_v6 = vadd.f32 %v14503_v43, %v5344_v32  ;;  %v5376_v0 = vadd.f32 %v14508_v36, %v5345_v25  ;;  %v5428_v59 = vadd.f32 %v5420_v37, %v5405_v60  ;;  %v5553_v47 = vstv %s7341_s1  ;;  %s7358_s1 = sld [smem:[#allocation10 + $0xb]] }
 0x58b   :  { %v5408_v44 = vadd.f32 %v14509_v2, %v5377_v22  ;;  %v5423_v32 = vsel %vm709_vm4, %v5421_v13, %v5422_v27  ;;  %v5496_v53 = vmul.f32 %v5494_v42, %v14513_v49  ;;  %v5555_v16 = vmul.f32 %v5553_v47, %v14513_v49 }
 0x58c   :  { %v12468_v3 = vpop.permute.xlu0 %5518  ;;  %v5406_v56 = vadd.f32 %v14505_v57, %v5375_v6  ;;  %v5407_v8 = vadd.f32 %v14510_v63, %v5376_v0  ;;  %v5459_v28 = vadd.f32 %v14512_v20, %v5428_v59  ;;  %v5498_v35 = vmul.f32 %v5494_v42, %v11848_v50 }
 0x58d   :  { %v12473_v29 = vpop.permute.xlu1 %5516  ;;  %v5431_v39 = vadd.f32 %v5422_v27, %v5408_v44  ;;  %v5557_v60 = vmul.f32 %v5553_v47, %v11848_v50  ;;  %v5563_v22 = vrot.slane %v5555_v16, 1  ;;  %v5556_v0 = vmul.f32 %v5553_v47, %v14465_v9 }
 0x58e   :  { %v5429_v23 = vadd.f32 %v5419_v19, %v5406_v56  ;;  %v5430_v18 = vadd.f32 %v5423_v32, %v5407_v8  ;;  %v5490_v43 = vadd.f32 %v12407_v48, %v5459_v28  ;;  %v14514_v19 = vld [vmem:[#allocation152_spill] sm:$0xff]  ;;  %v5638_v37 = vstv %s7344_s3  ;;  %s7360_s3 = sld [smem:[#allocation10 + $0xd]] }
 0x58f   :  { %v5462_v6 = vadd.f32 %v12365_v30, %v5431_v39  ;;  %v5495_v46 = vmul.f32 %v5494_v42, %v14514_v19  ;;  %v5554_v57 = vmul.f32 %v5553_v47, %v14514_v19  ;;  %v5566_v8 = vrot.slane %v5557_v60, 1 }
 0x590   :  { %v5540_v17 = vpop.permute.xlu0 %5539  ;;  %v5460_v40 = vadd.f32 %v14511_v54, %v5429_v23  ;;  %v5461_v61 = vadd.f32 %v12369_v14, %v5430_v18  ;;  %v5497_v14 = vmul.f32 %v5494_v42, %v14465_v9  ;;  %v5565_v59 = vrot.slane %v5556_v0, 1 }
 0x591   :  { %v5538_v11 = vpop.permute.xlu1 %5537  ;;  %v5499_v25 = vadd.f32 %v5495_v46, %v5490_v43  ;;  %v5562_v36 = vrot.slane %v5554_v57, 1  ;;  %v5640_v28 = vmul.f32 %v5638_v37, %v14513_v49  ;;  %v5641_v47 = vmul.f32 %v5638_v37, %v14465_v9 }
 0x592   :  { %v5491_v62 = vadd.f32 %v12401_v4, %v5460_v40  ;;  %v5493_v4 = vadd.f32 %v12437_v5, %v5462_v6  ;;  %v5492_v48 = vadd.f32 %v12442_v34, %v5461_v61 }
 0x593   :  { %v5524_v10 = vadd.f32 %v12462_v24, %v5499_v25  ;;  %v5564_v63 = vsel %vm621_vm3, %v5562_v36, %v5563_v22  ;;  %v5648_v43 = vrot.slane %v5640_v28, 2 }
 0x594   :  { %v5544_v26 = vpop.permute.xlu0 %5543  ;;  %v5500_v33 = vadd.f32 %v5496_v53, %v5491_v62  ;;  %v5502_v27 = vadd.f32 %v5498_v35, %v5493_v4  ;;  %v5501_v34 = vadd.f32 %v5497_v14, %v5492_v48  ;;  %v5650_v4 = vrot.slane %v5641_v47, 2 }
 0x595   :  { %v5542_v1 = vpop.permute.xlu1 %5541  ;;  %v5549_v23 = vadd.f32 %v5538_v11, %v5524_v10 }
 0x596   :  { %v5525_v30 = vadd.f32 %v12455_v7, %v5500_v33  ;;  %v5527_v7 = vadd.f32 %v12468_v3, %v5502_v27  ;;  %v5526_v13 = vadd.f32 %v12473_v29, %v5501_v34  ;;  %v5567_v3 = vsel %vm621_vm3, %v5565_v59, %v5566_v8 }
 0x597   :  { %v5572_v39 = vadd.f32 %v5564_v63, %v5549_v23  ;;  %v5642_v29 = vmul.f32 %v5638_v37, %v11848_v50 }
 0x598   :  { %v5594_v31 = vpop.permute.xlu0 %5593  ;;  %v5550_v2 = vadd.f32 %v5540_v17, %v5525_v30  ;;  %v5552_v54 = vadd.f32 %v5544_v26, %v5527_v7  ;;  %v5639_v17 = vmul.f32 %v5638_v37, %v14514_v19  ;;  %v5551_v42 = vadd.f32 %v5542_v1, %v5526_v13 }
 0x599   :  { %v5592_v52 = vpop.permute.xlu1 %5591  ;;  %v5651_v46 = vrot.slane %v5642_v29, 2  ;;  %v5723_v30 = vstv %s7347_s25  ;;  %v6301_v29 = vstv %s7367_s27  ;;  %s7368_s25 = sld [smem:[#allocation10 + $0x15]] }
 0x59a   :  { %v5573_v40 = vadd.f32 %v5563_v22, %v5550_v2  ;;  %v5603_v32 = vadd.f32 %v5592_v52, %v5572_v39  ;;  %v5575_v18 = vadd.f32 %v5566_v8, %v5552_v54  ;;  %v5647_v6 = vrot.slane %v5639_v17, 2  ;;  %s7361_s27 = sld [smem:[#allocation10 + $0xe]] }
 0x59b   :  { %v5574_v49 = vadd.f32 %v5567_v3, %v5551_v42  ;;  %v5652_v60 = vsel %vm709_vm4, %v5650_v4, %v5651_v46 }
 0x59c   :  { %v5598_v56 = vpop.permute.xlu0 %5597  ;;  %v5604_v11 = vadd.f32 %v5594_v31, %v5573_v40  ;;  %v5649_v57 = vsel %vm709_vm4, %v5647_v6, %v5648_v43 }
 0x59d   :  { %v5596_v58 = vpop.permute.xlu1 %5595  ;;  %v5606_v19 = vadd.f32 %v5598_v56, %v5575_v18 }
 0x59e   :  { %v5605_v1 = vadd.f32 %v5596_v58, %v5574_v49 }
 0x5a0   :  { %v5625_v5 = vpop.permute.xlu0 %5624 }
 0x5a1   :  { %v5623_v44 = vpop.permute.xlu1 %5622  ;;  %v5635_v26 = vadd.f32 %v5625_v5, %v5604_v11 }
 0x5a2   :  { %v5634_v61 = vadd.f32 %v5623_v44, %v5603_v32  ;;  %v6276_v32 = vstv %s7366_s26  ;;  %s7365_s26 = sld [smem:[#allocation10 + $0x12]] }
 0x5a3   :  { %v5658_v16 = vadd.f32 %v5648_v43, %v5635_v26  ;;  %v6349_v43 = vstv %s7369_s28  ;;  %s12804_s28 = sld [smem:[#allocation10 + $0x18]] }
 0x5a4   :  { %v5629_v24 = vpop.permute.xlu0 %5628  ;;  %v5657_v9 = vadd.f32 %v5649_v57, %v5634_v61  ;;  %v6380_v57 = vstv %s7370_s29  ;;  %s12816_s29 = sld [smem:[#allocation10 + $0x10]] }
 0x5a5   :  { %v5627_v20 = vpop.permute.xlu1 %5626  ;;  %v5637_v52 = vadd.f32 %v5629_v24, %v5606_v19 }
 0x5a6   :  { %v5636_v33 = vadd.f32 %v5627_v20, %v5605_v1 }
 0x5a7   :  { %v5660_v14 = vadd.f32 %v5651_v46, %v5637_v52 }
 0x5a8   :  { %v5679_v62 = vpop.permute.xlu0 %5678  ;;  %v5659_v58 = vadd.f32 %v5652_v60, %v5636_v33 }
 0x5a9   :  { %v5677_v53 = vpop.permute.xlu1 %5676  ;;  %v5689_v48 = vadd.f32 %v5679_v62, %v5658_v16 }
 0x5aa   :  { %v5688_v25 = vadd.f32 %v5677_v53, %v5657_v9 }
 0x5ac   :  { %v5683_v31 = vpop.permute.xlu0 %5682 }
 0x5ad   :  { %v5681_v50 = vpop.permute.xlu1 %5680  ;;  %v5691_v36 = vadd.f32 %v5683_v31, %v5660_v14 }
 0x5ae   :  { %v5690_v5 = vadd.f32 %v5681_v50, %v5659_v58 }
 0x5b0   :  { %v5710_v35 = vpop.permute.xlu0 %5709 }
 0x5b1   :  { %v5720_v10 = vadd.f32 %v5710_v35, %v5689_v48  ;;  %v5708_v56 = vpop.permute.xlu1 %5707 }
 0x5b2   :  { %v5719_v22 = vadd.f32 %v5708_v56, %v5688_v25 }
 0x5b3   :  { %v12517_v0 = vadd.f32 %v5723_v30, %v5720_v10  ;;  %v6434_v10 = vstv %s7372_s30  ;;  %s12876_s30 = sld [smem:[#allocation10 + $0x11]] }
 0x5b4   :  { %v12519_v27 = vadd.f32 %v5723_v30, %v5719_v22  ;;  %v5714_v2 = vpop.permute.xlu0 %5713 }
 0x5b5   :  { %v5729_v44 = vmax.f32 %v12517_v0, 0.0  ;;  %v5722_v34 = vadd.f32 %v5714_v2, %v5691_v36  ;;  %v5712_v23 = vpop.permute.xlu1 %5711 }
 0x5b6   :  { %v5728_v37 = vmax.f32 %v12519_v27, 0.0  ;;  %v5721_v7 = vadd.f32 %v5712_v23, %v5690_v5 }
 0x5b7   :  { %v12523_v13 = vadd.f32 %v5723_v30, %v5722_v34  ;;  %5776 = vrot.lane.b32.xlu0 %v5729_v44, %s7612_s21 }
 0x5b8   :  { %v12528_v63 = vadd.f32 %v5723_v30, %v5721_v7  ;;  %5774 = vrot.lane.b32.xlu1 %v5728_v37, %s7612_s21 }
 0x5b9   :  { %v5731_v8 = vmax.f32 %v12523_v13, 0.0 }
 0x5ba   :  { %v5730_v59 = vmax.f32 %v12528_v63, 0.0 }
 0x5bb   :  { %5780 = vrot.lane.b32.xlu0 %v5731_v8, %s7612_s21 }
 0x5bc   :  { %5778 = vrot.lane.b32.xlu1 %v5730_v59, %s7612_s21 }
 0x5f1   :  { %v5739_v24 = vpop.permute.xlu0 %5738 }
 0x5f2   :  { %v5749_v54 = vmax.f32 %v5037_v55, %v5739_v24  ;;  %v5737_v40 = vpop.permute.xlu1 %5736 }
 0x5f3   :  { %v5748_v20 = vmax.f32 %v5036_v45, %v5737_v40 }
 0x5f4   :  { %v5757_v28 = vrot.slane %v5749_v54, 1 }
 0x5f5   :  { %v5756_v17 = vrot.slane %v5748_v20, 1 }
 0x5f7   :  { %v5758_v42 = vsel %vm621_vm3, %v5756_v17, %v5757_v28 }
 0x5f8   :  { %v12546_v39 = vmax.f32 %v5748_v20, %v5758_v42  ;;  %v6465_v20 = vstv %s7373_s0  ;;  %s12896_s0 = sld [smem:[#allocation10 + $0x1b]] }
 0x5f9   :  { %v5743_v11 = vpop.permute.xlu0 %5742 }
 0x5fa   :  { %v5751_v3 = vmax.f32 %v5039_v51, %v5743_v11  ;;  %v5741_v62 = vpop.permute.xlu1 %5740  ;;  %v6277_v38 = vmul.f32 %v6276_v32, %v12546_v39  ;;  %v6302_v18 = vmul.f32 %v6301_v29, %v12546_v39  ;;  %v12561_v51 = vmax.f32 %v5749_v54, %v5757_v28 }
 0x5fb   :  { %v5750_v12 = vmax.f32 %v5038_v21, %v5741_v62  ;;  %v6350_v53 = vmul.f32 %v6349_v43, %v12546_v39  ;;  %v6381_v33 = vmul.f32 %v6380_v57, %v12546_v39  ;;  %v6435_v36 = vmul.f32 %v6434_v10, %v12546_v39 }
 0x5fc   :  { %v5760_v55 = vrot.slane %v5751_v3, 1  ;;  %6285 = vrot.lane.b32.xlu1 %v6277_v38, %s7612_s21  ;;  %v6351_v61 = vmul.f32 %v6349_v43, %v12561_v51  ;;  %v6278_v19 = vmul.f32 %v6276_v32, %v12561_v51  ;;  %v6382_v9 = vmul.f32 %v6380_v57, %v12561_v51 }
 0x5fd   :  { %v5759_v45 = vrot.slane %v5750_v12, 1  ;;  %v6358_v31 = vrot.slane %v6350_v53, 1  ;;  %v6303_v48 = vmul.f32 %v6301_v29, %v12561_v51  ;;  %v6389_v30 = vrot.slane %v6381_v33, 1 }
 0x5fe   :  { %v12554_v47 = vmax.f32 %v5751_v3, %v5760_v55  ;;  %v6359_v16 = vrot.slane %v6351_v61, 1  ;;  %v6390_v14 = vrot.slane %v6382_v9, 1  ;;  %v6436_v34 = vmul.f32 %v6434_v10, %v12561_v51 }
 0x5ff   :  { %v5761_v26 = vsel %vm621_vm3, %v5759_v45, %v5760_v55  ;;  %v6443_v24 = vrot.slane %v6435_v36, 2  ;;  %v6466_v42 = vmul.f32 %v6465_v20, %v12546_v39  ;;  %v6467_v11 = vmul.f32 %v6465_v20, %v12561_v51 }
 0x600   :  { %v12558_v41 = vmax.f32 %v5750_v12, %v5761_v26  ;;  %6310 = vrot.lane.b32.xlu1 %v6302_v18, %s7613_s5  ;;  %v6280_v15 = vmul.f32 %v6276_v32, %v12554_v47  ;;  %v6353_v49 = vmul.f32 %v6349_v43, %v12554_v47  ;;  %v6360_v50 = vsel %vm621_vm3, %v6358_v31, %v6359_v16 }
 0x601   :  { %v6305_v25 = vmul.f32 %v6301_v29, %v12554_v47  ;;  %v6384_v60 = vmul.f32 %v6380_v57, %v12554_v47  ;;  %v6391_v56 = vsel %vm621_vm3, %v6389_v30, %v6390_v14  ;;  %v6438_v2 = vmul.f32 %v6434_v10, %v12554_v47 }
 0x602   :  { %v6279_v21 = vmul.f32 %v6276_v32, %v12558_v41  ;;  %v6352_v6 = vmul.f32 %v6349_v43, %v12558_v41  ;;  %v6304_v1 = vmul.f32 %v6301_v29, %v12558_v41  ;;  %v6362_v52 = vrot.slane %v6353_v49, 1 }
 0x603   :  { %v6383_v35 = vmul.f32 %v6380_v57, %v12558_v41  ;;  %v6437_v22 = vmul.f32 %v6434_v10, %v12558_v41  ;;  %v6393_v5 = vrot.slane %v6384_v60, 1  ;;  %v6447_v54 = vrot.slane %v6438_v2, 2 }
 0x604   :  { %6291 = vrot.lane.b32.xlu1 %v6280_v15, %s7612_s21  ;;  %6289 = vrot.lane.b32.xlu0 %v6279_v21, %s7612_s21  ;;  %v6361_v46 = vrot.slane %v6352_v6, 1  ;;  %v6444_v40 = vrot.slane %v6436_v34, 2  ;;  %v6474_v32 = vrot.slane %v6466_v42, 2  ;;  %v6468_v3 = vmul.f32 %v6465_v20, %v12558_v41 }
 0x605   :  { %v6392_v58 = vrot.slane %v6383_v35, 1  ;;  %v6446_v7 = vrot.slane %v6437_v22, 2  ;;  %v6475_v62 = vrot.slane %v6467_v11, 2  ;;  %v6469_v38 = vmul.f32 %v6465_v20, %v12554_v47 }
 0x606   :  { %v6363_v4 = vsel %vm621_vm3, %v6361_v46, %v6362_v52  ;;  %v6445_v17 = vsel %vm709_vm4, %v6443_v24, %v6444_v40  ;;  %v6477_v55 = vrot.slane %v6468_v3, 2  ;;  %v6505_v31 = vstv %s7375_s14  ;;  %s12910_s14 = sld [smem:[#allocation10 + $0x1e]] }
 0x607   :  { %v6394_v23 = vsel %vm621_vm3, %v6392_v58, %v6393_v5  ;;  %v6448_v28 = vsel %vm709_vm4, %v6446_v7, %v6447_v54  ;;  %v6476_v12 = vsel %vm709_vm4, %v6474_v32, %v6475_v62  ;;  %v6478_v45 = vrot.slane %v6469_v38, 2 }
 0x608   :  { %6287 = vrot.lane.b32.xlu1 %v6278_v19, %s7612_s21  ;;  %6314 = vrot.lane.b32.xlu0 %v6304_v1, %s7613_s5  ;;  %v6578_v57 = vstv %s7378_s6  ;;  %v6609_v60 = vstv %s7379_s16  ;;  %s7383_s6 = sld [smem:[#allocation11 + $0x1]] }
 0x609   :  { %v6479_v29 = vsel %vm709_vm4, %v6477_v55, %v6478_v45  ;;  %v6694_v55 = vstv %s7382_s4 }
 0x60c   :  { %6368 = vrot.lane.b32.xlu1 %v6363_v4, %s7612_s21  ;;  %6364 = vrot.lane.b32.xlu0 %v6360_v50, %s7612_s21 }
 0x610   :  { %6312 = vrot.lane.b32.xlu1 %v6303_v48, %s7613_s5  ;;  %6316 = vrot.lane.b32.xlu0 %v6305_v25, %s7613_s5 }
 0x614   :  { %6370 = vrot.lane.b32.xlu1 %v6362_v52, %s7612_s21  ;;  %6395 = vrot.lane.b32.xlu0 %v6391_v56, %s7613_s5 }
 0x618   :  { %6366 = vrot.lane.b32.xlu1 %v6359_v16, %s7612_s21  ;;  %6399 = vrot.lane.b32.xlu0 %v6394_v23, %s7613_s5 }
 0x61c   :  { %6453 = vrot.lane.b32.xlu1 %v6448_v28, %s7612_s21  ;;  %6449 = vrot.lane.b32.xlu0 %v6445_v17, %s7612_s21 }
 0x620   :  { %6397 = vrot.lane.b32.xlu1 %v6390_v14, %s7613_s5  ;;  %6401 = vrot.lane.b32.xlu0 %v6393_v5, %s7613_s5 }
 0x624   :  { %6455 = vrot.lane.b32.xlu1 %v6447_v54, %s7612_s21  ;;  %6480 = vrot.lane.b32.xlu0 %v6476_v12, %s7613_s5 }
 0x628   :  { %6451 = vrot.lane.b32.xlu1 %v6444_v40, %s7612_s21  ;;  %6484 = vrot.lane.b32.xlu0 %v6479_v29, %s7613_s5  ;;  %v6663_v40 = vstv %s7381_s2  ;;  %s7615_s2 = smov 18  }
 0x629   :  { %v5777_v18 = vpop.permute.xlu0 %5776 }
 0x62a   :  { %v5787_v26 = vmax.f32 %v5729_v44, %v5777_v18  ;;  %v5775_v15 = vpop.permute.xlu1 %5774 }
 0x62b   :  { %v5786_v21 = vmax.f32 %v5728_v37, %v5775_v15 }
 0x62c   :  { %v5795_v43 = vrot.slane %v5787_v26, 1 }
 0x62d   :  { %v5794_v6 = vrot.slane %v5786_v21, 1  ;;  %v5781_v53 = vpop.permute.xlu0 %5780 }
 0x62e   :  { %v5789_v49 = vmax.f32 %v5731_v8, %v5781_v53  ;;  %v5779_v61 = vpop.permute.xlu1 %5778  ;;  %v12632_v63 = vmax.f32 %v5787_v26, %v5795_v43  ;;  %v6530_v8 = vstv %s7376_s15  ;;  %s12963_s15 = sld [smem:[#allocation10 + $0x21]] }
 0x62f   :  { %v5796_v19 = vsel %vm621_vm3, %v5794_v6, %v5795_v43  ;;  %v5788_v1 = vmax.f32 %v5730_v59, %v5779_v61 }
 0x630   :  { %v12622_v46 = vmax.f32 %v5786_v21, %v5796_v19  ;;  %v5798_v0 = vrot.slane %v5789_v49, 1  ;;  %v6580_v50 = vmul.f32 %v6578_v57, %v12632_v63  ;;  %v6507_v14 = vmul.f32 %v6505_v31, %v12632_v63 }
 0x631   :  { %v5797_v44 = vrot.slane %v5788_v1, 1  ;;  %v6611_v36 = vmul.f32 %v6609_v60, %v12632_v63  ;;  %v6532_v54 = vmul.f32 %v6530_v8, %v12632_v63  ;;  %v6665_v11 = vmul.f32 %v6663_v40, %v12632_v63 }
 0x632   :  { %v6506_v27 = vmul.f32 %v6505_v31, %v12622_v46  ;;  %v12634_v59 = vmax.f32 %v5789_v49, %v5798_v0  ;;  %v6531_v16 = vmul.f32 %v6530_v8, %v12622_v46  ;;  %v6579_v4 = vmul.f32 %v6578_v57, %v12622_v46 }
 0x633   :  { %v5799_v37 = vsel %vm621_vm3, %v5797_v44, %v5798_v0  ;;  %v6588_v30 = vrot.slane %v6580_v50, 1  ;;  %v6610_v58 = vmul.f32 %v6609_v60, %v12622_v46  ;;  %v6619_v7 = vrot.slane %v6611_v36, 1 }
 0x634   :  { %v12626_v52 = vmax.f32 %v5788_v1, %v5799_v37  ;;  %6514 = vrot.lane.b32.xlu0 %v6506_v27, %s7612_s21  ;;  %v6509_v9 = vmul.f32 %v6505_v31, %v12634_v59  ;;  %v6587_v48 = vrot.slane %v6579_v4, 1  ;;  %v6582_v35 = vmul.f32 %v6578_v57, %v12634_v59 }
 0x635   :  { %v6534_v5 = vmul.f32 %v6530_v8, %v12634_v59  ;;  %v6618_v34 = vrot.slane %v6610_v58, 1  ;;  %v6613_v24 = vmul.f32 %v6609_v60, %v12634_v59  ;;  %v6664_v17 = vmul.f32 %v6663_v40, %v12622_v46 }
 0x636   :  { %v6508_v13 = vmul.f32 %v6505_v31, %v12626_v52  ;;  %v6533_v33 = vmul.f32 %v6530_v8, %v12626_v52  ;;  %v6581_v25 = vmul.f32 %v6578_v57, %v12626_v52  ;;  %v6589_v10 = vsel %vm621_vm3, %v6587_v48, %v6588_v30 }
 0x637   :  { %v6591_v22 = vrot.slane %v6582_v35, 1  ;;  %v6612_v23 = vmul.f32 %v6609_v60, %v12626_v52  ;;  %v6620_v20 = vsel %vm621_vm3, %v6618_v34, %v6619_v7  ;;  %v6622_v42 = vrot.slane %v6613_v24, 1 }
 0x638   :  { %6486 = vrot.lane.b32.xlu0 %v6478_v45, %s7613_s5  ;;  %6518 = vrot.lane.b32.xlu1 %v6508_v13, %s7612_s21  ;;  %v6590_v56 = vrot.slane %v6581_v25, 1  ;;  %v6672_v3 = vrot.slane %v6664_v17, 2  ;;  %v6673_v38 = vrot.slane %v6665_v11, 2  ;;  %v6667_v12 = vmul.f32 %v6663_v40, %v12634_v59 }
 0x639   :  { %v6621_v28 = vrot.slane %v6612_v23, 1  ;;  %v6695_v18 = vmul.f32 %v6694_v55, %v12622_v46  ;;  %v6696_v15 = vmul.f32 %v6694_v55, %v12632_v63  ;;  %v6697_v6 = vmul.f32 %v6694_v55, %v12626_v52 }
 0x63a   :  { %v6592_v2 = vsel %vm621_vm3, %v6590_v56, %v6591_v22  ;;  %v6674_v45 = vsel %vm709_vm4, %v6672_v3, %v6673_v38  ;;  %v6676_v26 = vrot.slane %v6667_v12, 2  ;;  %v6698_v49 = vmul.f32 %v6694_v55, %v12634_v59 }
 0x63b   :  { %v6623_v32 = vsel %vm621_vm3, %v6621_v28, %v6622_v42  ;;  %v6703_v43 = vrot.slane %v6695_v18, 2  ;;  %v6704_v53 = vrot.slane %v6696_v15, 2  ;;  %v6706_v19 = vrot.slane %v6697_v6, 2 }
 0x63c   :  { %6539 = vrot.lane.b32.xlu0 %v6531_v16, %s7613_s5  ;;  %6482 = vrot.lane.b32.xlu1 %v6475_v62, %s7613_s5  ;;  %v6666_v62 = vmul.f32 %v6663_v40, %v12626_v52  ;;  %v6707_v1 = vrot.slane %v6698_v49, 2  ;;  %v5813_v44 = vstv %s7348_s17  ;;  %v5838_v27 = vstv %s7349_s18  ;;  %s7350_s17 = sld [smem:[#allocation10 + $0x3]] }
 0x63d   :  { %v6705_v61 = vsel %vm709_vm4, %v6703_v43, %v6704_v53  ;;  %v5814_v31 = vmul.f32 %v5813_v44, %v12546_v39  ;;  %v5816_v37 = vmul.f32 %v5813_v44, %v12558_v41  ;;  %v5839_v13 = vmul.f32 %v5838_v27, %v12546_v39  ;;  %s310_s18 = sld [smem:[#allocation10]] }
 0x63e   :  { %v6675_v29 = vrot.slane %v6666_v62, 2  ;;  %v6708_v0 = vsel %vm709_vm4, %v6706_v19, %v6707_v1  ;;  %v5886_v8 = vstv %s7351_s19  ;;  %v5841_v50 = vmul.f32 %v5838_v27, %v12558_v41  ;;  %s7353_s19 = sld [smem:[#allocation10 + $0x6]] }
 0x63f   :  { %v5887_v16 = vmul.f32 %v5886_v8, %v12546_v39  ;;  %v5888_v57 = vmul.f32 %v5886_v8, %v12561_v51  ;;  %v5889_v48 = vmul.f32 %v5886_v8, %v12558_v41  ;;  %v5917_v60 = vstv %s7352_s20  ;;  %s7356_s20 = sld [smem:[#allocation10 + $0x9]] }
 0x640   :  { %6543 = vrot.lane.b32.xlu0 %v6533_v33, %s7613_s5  ;;  %6520 = vrot.lane.b32.xlu1 %v6509_v9, %s7612_s21  ;;  %v6677_v21 = vsel %vm709_vm4, %v6675_v29, %v6676_v26  ;;  %v5817_v33 = vmul.f32 %v5813_v44, %v12554_v47  ;;  %v5918_v58 = vmul.f32 %v5917_v60, %v12546_v39  ;;  %v6002_v6 = vstv %s7355_s23  ;;  %s7362_s23 = sld [smem:[#allocation10 + $0xf]] }
 0x641   :  { %v5895_v9 = vrot.slane %v5887_v16, 1  ;;  %v5896_v25 = vrot.slane %v5888_v57, 1  ;;  %v5898_v56 = vrot.slane %v5889_v48, 1  ;;  %v5919_v36 = vmul.f32 %v5917_v60, %v12561_v51 }
 0x642   :  { %v5842_v34 = vmul.f32 %v5838_v27, %v12554_v47  ;;  %v5920_v24 = vmul.f32 %v5917_v60, %v12558_v41  ;;  %v5921_v40 = vmul.f32 %v5917_v60, %v12554_v47  ;;  %v5840_v17 = vmul.f32 %v5838_v27, %v12561_v51 }
 0x643   :  { %v6005_v27 = vmul.f32 %v6002_v6, %v12558_v41 }
 0x644   :  { %6593 = vrot.lane.b32.xlu0 %v6589_v10, %s7612_s21  ;;  %6516 = vrot.lane.b32.xlu1 %v6507_v14, %s7612_s21  ;;  %v5815_v14 = vmul.f32 %v5813_v44, %v12561_v51  ;;  %v5897_v10 = vsel %vm621_vm3, %v5895_v9, %v5896_v25  ;;  %v5930_v62 = vrot.slane %v5921_v40, 1 }
 0x648   :  { %6545 = vrot.lane.b32.xlu0 %v6534_v5, %s7613_s5  ;;  %6597 = vrot.lane.b32.xlu1 %v6592_v2, %s7612_s21 }
 0x64c   :  { %6624 = vrot.lane.b32.xlu0 %v6620_v20, %s7613_s5  ;;  %6541 = vrot.lane.b32.xlu1 %v6532_v54, %s7613_s5  ;;  %v5927_v54 = vrot.slane %v5919_v36, 1 }
 0x650   :  { %6628 = vrot.lane.b32.xlu0 %v6623_v32, %s7613_s5  ;;  %6599 = vrot.lane.b32.xlu1 %v6591_v22, %s7612_s21  ;;  %v5929_v32 = vrot.slane %v5920_v24, 1 }
 0x654   :  { %6678 = vrot.lane.b32.xlu0 %v6674_v45, %s7612_s21  ;;  %6595 = vrot.lane.b32.xlu1 %v6588_v30, %s7612_s21  ;;  %v5890_v30 = vmul.f32 %v5886_v8, %v12554_v47  ;;  %v5931_v45 = vsel %vm621_vm3, %v5929_v32, %v5930_v62  ;;  %v6006_v8 = vmul.f32 %v6002_v6, %v12554_v47  ;;  %v12800_v32 = vstv %s7365_s26 }
 0x656   :  { %v5899_v22 = vrot.slane %v5890_v30, 1  ;;  %v6042_v30 = vstv %s7357_s24  ;;  %s346_s24 = sld [smem:[#allocation11]] }
 0x657   :  { %v6046_v40 = vmul.f32 %v6042_v30, %v12634_v59 }
 0x658   :  { %6630 = vrot.lane.b32.xlu0 %v6622_v42, %s7613_s5  ;;  %6682 = vrot.lane.b32.xlu1 %v6677_v21, %s7612_s21  ;;  %v5900_v23 = vsel %vm621_vm3, %v5898_v56, %v5899_v22  ;;  %v5971_v42 = vstv %s7354_s22  ;;  %v6045_v56 = vmul.f32 %v6042_v30, %v12626_v52  ;;  %s7359_s22 = sld [smem:[#allocation10 + $0xc]] }
 0x659   :  { %v5972_v3 = vmul.f32 %v5971_v42, %v12546_v39  ;;  %v5974_v18 = vmul.f32 %v5971_v42, %v12558_v41  ;;  %v5975_v15 = vmul.f32 %v5971_v42, %v12554_v47 }
 0x65b   :  { %v5980_v29 = vrot.slane %v5972_v3, 2  ;;  %v5983_v49 = vrot.slane %v5974_v18, 2  ;;  %v5984_v19 = vrot.slane %v5975_v15, 2 }
 0x65c   :  { %6709 = vrot.lane.b32.xlu0 %v6705_v61, %s7613_s5  ;;  %6626 = vrot.lane.b32.xlu1 %v6619_v7, %s7613_s5  ;;  %v5926_v7 = vrot.slane %v5918_v58, 1  ;;  %v6003_v61 = vmul.f32 %v6002_v6, %v12546_v39  ;;  %v12782_v58 = vstv %s7358_s1 }
 0x65d   :  { %v5985_v44 = vsel %vm709_vm4, %v5983_v49, %v5984_v19  ;;  %v6068_v36 = vmul.f32 %v12782_v58, %v12622_v46  ;;  %v6146_v49 = vstv %s7361_s27  ;;  %s7619_s27 = smov 90  }
 0x65e   :  { %v5928_v11 = vsel %vm621_vm3, %v5926_v7, %v5927_v54 }
 0x660   :  { %6713 = vrot.lane.b32.xlu0 %v6708_v0, %s7613_s5  ;;  %6684 = vrot.lane.b32.xlu1 %v6676_v26, %s7612_s21 }
 0x664   :  { %6680 = vrot.lane.b32.xlu0 %v6673_v38, %s7612_s21  ;;  %6715 = vrot.lane.b32.xlu1 %v6707_v1, %s7613_s5  ;;  %v5973_v38 = vmul.f32 %v5971_v42, %v12561_v51  ;;  %v6004_v1 = vmul.f32 %v6002_v6, %v12561_v51 }
 0x666   :  { %v5981_v26 = vrot.slane %v5973_v38, 2 }
 0x668   :  { %6711 = vrot.lane.b32.xlu0 %v6704_v53, %s7613_s5  ;;  %5822 = vrot.lane.b32.xlu1 %v5814_v31, %s7612_s21  ;;  %v5982_v53 = vsel %vm709_vm4, %v5980_v29, %v5981_v26  ;;  %v6011_v31 = vrot.slane %v6003_v61, 2  ;;  %v6274_v61 = vmul.f32 %v12800_v32, %v12558_v41 }
 0x66c   :  { %5826 = vrot.lane.b32.xlu0 %v5816_v37, %s7612_s21  ;;  %5847 = vrot.lane.b32.xlu1 %v5839_v13, %s7613_s5  ;;  %v6012_v13 = vrot.slane %v6004_v1, 2 }
 0x66e   :  { %v12697_v4 = vpop.permute.xlu1 %6285  ;;  %v6013_v57 = vsel %vm709_vm4, %v6011_v31, %v6012_v13  ;;  %v6275_v31 = vmul.f32 %v12800_v32, %v12554_v47 }
 0x670   :  { %5851 = vrot.lane.b32.xlu0 %v5841_v50, %s7613_s5  ;;  %5828 = vrot.lane.b32.xlu1 %v5817_v33, %s7612_s21  ;;  %v6014_v50 = vrot.slane %v6005_v27, 2  ;;  %v6015_v33 = vrot.slane %v6006_v8, 2 }
 0x672   :  { %v12705_v35 = vpop.permute.xlu1 %6310  ;;  %v6016_v48 = vsel %vm709_vm4, %v6014_v50, %v6015_v33 }
 0x674   :  { %5901 = vrot.lane.b32.xlu0 %v5897_v10, %s7612_s21  ;;  %5824 = vrot.lane.b32.xlu1 %v5815_v14, %s7612_s21  ;;  %v6043_v14 = vmul.f32 %v6042_v30, %v12622_v46 }
 0x676   :  { %v12713_v5 = vpop.permute.xlu0 %6289  ;;  %v12715_v2 = vpop.permute.xlu1 %6291 }
 0x678   :  { %5853 = vrot.lane.b32.xlu0 %v5842_v34, %s7613_s5  ;;  %5905 = vrot.lane.b32.xlu1 %v5900_v23, %s7612_s21  ;;  %v6115_v34 = vstv %s7360_s3  ;;  %s7618_s3 = smov 72  }
 0x679   :  { %v6116_v23 = vmul.f32 %v6115_v34, %v12622_v46  ;;  %v12794_v24 = vmul.f32 %v6115_v34, %v12632_v63  ;;  %v12814_v18 = vmul.f32 %v6115_v34, %v12634_v59 }
 0x67a   :  { %v12723_v20 = vpop.permute.xlu0 %6314  ;;  %v12725_v28 = vpop.permute.xlu1 %6287 }
 0x67b   :  { %v6124_v42 = vrot.slane %v6116_v23, 1  ;;  %v6125_v29 = vrot.slane %v12794_v24, 1  ;;  %v6128_v50 = vrot.slane %v12814_v18, 1 }
 0x67c   :  { %5932 = vrot.lane.b32.xlu0 %v5928_v11, %s7613_s5  ;;  %5849 = vrot.lane.b32.xlu1 %v5840_v17, %s7613_s5  ;;  %v6326_v17 = vstv %s7368_s25  ;;  %v6118_v11 = vmul.f32 %v6115_v34, %v12626_v52 }
 0x67d   :  { %v6327_v3 = vmul.f32 %v6326_v17, %v12546_v39  ;;  %v12822_v15 = vmul.f32 %v6326_v17, %v12554_v47 }
 0x67e   :  { %v12733_v12 = vpop.permute.xlu0 %6364  ;;  %v12735_v55 = vpop.permute.xlu1 %6368  ;;  %v6127_v1 = vrot.slane %v6118_v11, 1  ;;  %v6300_v11 = vadd.f32 %v12715_v2, %v6275_v31 }
 0x67f   :  { %v6335_v27 = vrot.slane %v6327_v3, 1  ;;  %v6200_v3 = vstv %s12816_s29 }
 0x680   :  { %5936 = vrot.lane.b32.xlu0 %v5931_v45, %s7613_s5  ;;  %5907 = vrot.lane.b32.xlu1 %v5899_v22, %s7612_s21  ;;  %v6272_v45 = vmul.f32 %v12800_v32, %v12546_v39  ;;  %v6129_v23 = vsel %vm621_vm3, %v6127_v1, %v6128_v50 }
 0x682   :  { %v12742_v21 = vpop.permute.xlu0 %6316  ;;  %v12744_v43 = vpop.permute.xlu1 %6312  ;;  %v6297_v8 = vadd.f32 %v12697_v4, %v6272_v45  ;;  %v6071_v4 = vmul.f32 %v12782_v58, %v12634_v59 }
 0x684   :  { %5986 = vrot.lane.b32.xlu0 %v5982_v53, %s7612_s21  ;;  %5903 = vrot.lane.b32.xlu1 %v5896_v25, %s7612_s21  ;;  %v6044_v53 = vmul.f32 %v6042_v30, %v12632_v63  ;;  %v6339_v30 = vrot.slane %v12822_v15, 1  ;;  %v6069_v15 = vmul.f32 %v12782_v58, %v12632_v63 }
 0x686   :  { %v12751_v0 = vpop.permute.xlu0 %6395  ;;  %v12755_v37 = vpop.permute.xlu1 %6370 }
 0x688   :  { %5938 = vrot.lane.b32.xlu0 %v5930_v62, %s7613_s5  ;;  %5990 = vrot.lane.b32.xlu1 %v5985_v44, %s7612_s21  ;;  %v6329_v62 = vmul.f32 %v6326_v17, %v12558_v41  ;;  %v6147_v44 = vmul.f32 %v6146_v49, %v12622_v46 }
 0x68a   :  { %v12760_v16 = vpop.permute.xlu0 %6399  ;;  %v12765_v9 = vpop.permute.xlu1 %6366 }
 0x68c   :  { %6017 = vrot.lane.b32.xlu0 %v6013_v57, %s7613_s5  ;;  %5934 = vrot.lane.b32.xlu1 %v5927_v54, %s7613_s5  ;;  %v6070_v54 = vmul.f32 %v12782_v58, %v12626_v52  ;;  %v6299_v57 = vadd.f32 %v12713_v5, %v6274_v61  ;;  %v6322_v5 = vadd.f32 %v12705_v35, %v6297_v8 }
 0x68d   :  { %v6201_v61 = vmul.f32 %v6200_v3, %v12622_v46  ;;  %v12889_v58 = vmul.f32 %v6200_v3, %v12632_v63  ;;  %v6273_v8 = vmul.f32 %v12800_v32, %v12561_v51 }
 0x68e   :  { %v12768_v25 = vpop.permute.xlu0 %6449  ;;  %v12773_v60 = vpop.permute.xlu1 %6453  ;;  %v6324_v34 = vadd.f32 %v12723_v20, %v6299_v57  ;;  %v12865_v20 = vmul.f32 %v6146_v49, %v12634_v59 }
 0x690   :  { %6021 = vrot.lane.b32.xlu0 %v6016_v48, %s7613_s5  ;;  %5992 = vrot.lane.b32.xlu1 %v5984_v19, %s7612_s21  ;;  %v6126_v19 = vsel %vm621_vm3, %v6124_v42, %v6125_v29  ;;  %v6411_v42 = vstv %s12804_s28 }
 0x691   :  { %v6414_v31 = vmul.f32 %v6411_v42, %v12558_v41 }
 0x692   :  { %v12777_v10 = vpop.permute.xlu0 %6401  ;;  %v12784_v22 = vpop.permute.xlu1 %6397 }
 0x694   :  { %6051 = vrot.lane.b32.xlu0 %v6043_v14, %s7612_s21  ;;  %5988 = vrot.lane.b32.xlu1 %v5981_v26, %s7612_s21  ;;  %v12819_v26 = vmul.f32 %v6326_v17, %v12561_v51 }
 0x696   :  { %v12789_v7 = vpop.permute.xlu0 %6480  ;;  %v12806_v38 = vpop.permute.xlu1 %6455  ;;  %v6336_v48 = vrot.slane %v12819_v26, 1 }
 0x698   :  { %6023 = vrot.lane.b32.xlu0 %v6015_v33, %s7613_s5  ;;  %6055 = vrot.lane.b32.xlu1 %v6045_v56, %s7612_s21  ;;  %v12841_v33 = vmul.f32 %v6146_v49, %v12632_v63 }
 0x69a   :  { %v12824_v6 = vpop.permute.xlu0 %6484  ;;  %v12845_v14 = vpop.permute.xlu1 %6451  ;;  %v6156_v35 = vrot.slane %v12841_v33, 1 }
 0x69c   :  { %6076 = vrot.lane.b32.xlu0 %v6068_v36, %s7613_s5  ;;  %6019 = vrot.lane.b32.xlu1 %v6012_v13, %s7613_s5  ;;  %v6338_v13 = vrot.slane %v6329_v62, 1  ;;  %v6149_v36 = vmul.f32 %v6146_v49, %v12626_v52  ;;  %v6412_v62 = vmul.f32 %v6411_v42, %v12546_v39  ;;  %v6325_v49 = vadd.f32 %v12742_v21, %v6300_v11 }
 0x69d   :  { %v6415_v21 = vmul.f32 %v6411_v42, %v12554_v47  ;;  %v12913_v11 = vmul.f32 %v6200_v3, %v12634_v59 }
 0x69e   :  { %v6340_v17 = vsel %vm621_vm3, %v6338_v13, %v6339_v30  ;;  %v6159_v13 = vrot.slane %v12865_v20, 1  ;;  %v6420_v57 = vrot.slane %v6412_v62, 2 }
 0x6a0   :  { %6080 = vrot.lane.b32.xlu0 %v6070_v54, %s7613_s5  ;;  %6057 = vrot.lane.b32.xlu1 %v6046_v40, %s7612_s21  ;;  %v6155_v54 = vrot.slane %v6147_v44, 1  ;;  %v6337_v40 = vsel %vm621_vm3, %v6335_v27, %v6336_v48  ;;  %v12883_v44 = vmul.f32 %v6411_v42, %v12561_v51  ;;  %v6210_v42 = vrot.slane %v12889_v58, 2 }
 0x6a1   :  { %v6345_v2 = vadd.f32 %v6337_v40, %v6322_v5  ;;  %v6209_v5 = vrot.slane %v6201_v61, 2 }
 0x6a2   :  { %v6157_v1 = vsel %vm621_vm3, %v6155_v54, %v6156_v35  ;;  %v6348_v54 = vadd.f32 %v6339_v30, %v6325_v49  ;;  %v6421_v32 = vrot.slane %v12883_v44, 2  ;;  %v6424_v30 = vrot.slane %v6415_v21, 2 }
 0x6a3   :  { %v6376_v27 = vadd.f32 %v12733_v12, %v6345_v2  ;;  %v6213_v49 = vrot.slane %v12913_v11, 2 }
 0x6a4   :  { %6130 = vrot.lane.b32.xlu0 %v6126_v19, %s7612_s21  ;;  %6053 = vrot.lane.b32.xlu1 %v6044_v53, %s7612_s21  ;;  %v6158_v53 = vrot.slane %v6149_v36, 1  ;;  %v6347_v19 = vadd.f32 %v6340_v17, %v6324_v34  ;;  %v6203_v34 = vmul.f32 %v6200_v3, %v12626_v52  ;;  %v6423_v17 = vrot.slane %v6414_v31, 2 }
 0x6a5   :  { %v6407_v12 = vadd.f32 %v12751_v0, %v6376_v27  ;;  %v6422_v20 = vsel %vm709_vm4, %v6420_v57, %v6421_v32  ;;  %v12943_v27 = vstv %s12896_s0 }
 0x6a6   :  { %v12847_v56 = vpop.permute.xlu0 %6514  ;;  %v6160_v40 = vsel %vm621_vm3, %v6158_v53, %v6159_v13  ;;  %v6212_v3 = vrot.slane %v6203_v34, 2  ;;  %v6231_v53 = vstv %s12876_s30  ;;  %v6555_v34 = vstv %s12910_s14  ;;  %s7620_s30 = smov 108  }
 0x6a7   :  { %v6430_v61 = vadd.f32 %v6422_v20, %v6407_v12  ;;  %v6232_v2 = vmul.f32 %v6231_v53, %v12622_v46  ;;  %v6234_v24 = vmul.f32 %v6231_v53, %v12626_v52  ;;  %v6500_v44 = vmul.f32 %v12943_v27, %v12634_v59 }
 0x6a8   :  { %6082 = vrot.lane.b32.xlu0 %v6071_v4, %s7613_s5  ;;  %6134 = vrot.lane.b32.xlu1 %v6129_v23, %s7612_s21  ;;  %v6378_v23 = vadd.f32 %v12735_v55, %v6347_v19  ;;  %v6298_v55 = vadd.f32 %v12725_v28, %v6273_v8  ;;  %v6425_v19 = vsel %vm709_vm4, %v6423_v17, %v6424_v30 }
 0x6a9   :  { %v6243_v11 = vrot.slane %v6234_v24, 2 }
 0x6aa   :  { %v12869_v45 = vpop.permute.xlu0 %6486  ;;  %v12871_v18 = vpop.permute.xlu1 %6518  ;;  %v6409_v0 = vadd.f32 %v12760_v16, %v6378_v23  ;;  %v6323_v28 = vadd.f32 %v12744_v43, %v6298_v55  ;;  %v6379_v16 = vadd.f32 %v12755_v37, %v6348_v54  ;;  %v12940_v37 = vmul.f32 %v6231_v53, %v12632_v63 }
 0x6ab   :  { %v6235_v23 = vmul.f32 %v6231_v53, %v12634_v59  ;;  %v6556_v54 = vmul.f32 %v6555_v34, %v12622_v46 }
 0x6ac   :  { %6161 = vrot.lane.b32.xlu0 %v6157_v1, %s7613_s5  ;;  %6078 = vrot.lane.b32.xlu1 %v6069_v15, %s7613_s5  ;;  %v6461_v1 = vadd.f32 %v12768_v25, %v6430_v61  ;;  %v6432_v31 = vadd.f32 %v6425_v19, %v6409_v0  ;;  %v6410_v43 = vadd.f32 %v12777_v10, %v6379_v16 }
 0x6ad   :  { %v6214_v25 = vsel %vm709_vm4, %v6212_v3, %v6213_v49  ;;  %v6497_v10 = vmul.f32 %v12943_v27, %v12622_v46  ;;  %v6558_v3 = vmul.f32 %v6555_v34, %v12626_v52 }
 0x6ae   :  { %v12898_v4 = vpop.permute.xlu0 %6539  ;;  %v12900_v36 = vpop.permute.xlu1 %6482  ;;  %v6492_v57 = vadd.f32 %v12789_v7, %v6461_v1  ;;  %v6463_v26 = vadd.f32 %v12773_v60, %v6432_v31  ;;  %v6241_v7 = vrot.slane %v12940_v37, 2  ;;  %v6244_v60 = vrot.slane %v6235_v23, 2 }
 0x6af   :  { %v6567_v31 = vrot.slane %v6558_v3, 1 }
 0x6b0   :  { %6165 = vrot.lane.b32.xlu0 %v6160_v40, %s7613_s5  ;;  %6136 = vrot.lane.b32.xlu1 %v6128_v50, %s7612_s21  ;;  %v6211_v50 = vsel %vm709_vm4, %v6209_v5, %v6210_v42  ;;  %v6240_v5 = vrot.slane %v6232_v2, 2  ;;  %v6494_v55 = vadd.f32 %v12824_v6, %v6463_v26  ;;  %v6501_v0 = vadd.f32 %v6497_v10, %v6492_v57 }
 0x6b1   :  { %v6564_v6 = vrot.slane %v6556_v54, 1  ;;  %v6245_v16 = vsel %vm709_vm4, %v6243_v11, %v6244_v60  ;;  %v6559_v2 = vmul.f32 %v6555_v34, %v12634_v59 }
 0x6b2   :  { %v12920_v62 = vpop.permute.xlu0 %6543  ;;  %v12922_v15 = vpop.permute.xlu1 %6520  ;;  %v6242_v20 = vsel %vm709_vm4, %v6240_v5, %v6241_v7 }
 0x6b4   :  { %6215 = vrot.lane.b32.xlu0 %v6211_v50, %s7612_s21  ;;  %6132 = vrot.lane.b32.xlu1 %v6125_v29, %s7612_s21  ;;  %v6346_v29 = vadd.f32 %v6336_v48, %v6323_v28  ;;  %v6433_v48 = vadd.f32 %v6424_v30, %v6410_v43  ;;  %v6526_v50 = vadd.f32 %v12847_v56, %v6501_v0 }
 0x6b6   :  { %v12945_v21 = vpop.permute.xlu0 %6593  ;;  %v12947_v8 = vpop.permute.xlu1 %6516  ;;  %v6377_v12 = vadd.f32 %v12765_v9, %v6346_v29  ;;  %v12970_v9 = vmul.f32 %v6555_v34, %v12632_v63  ;;  %v6464_v30 = vadd.f32 %v12806_v38, %v6433_v48  ;;  %v6551_v38 = vadd.f32 %v12898_v4, %v6526_v50 }
 0x6b8   :  { %6167 = vrot.lane.b32.xlu0 %v6159_v13, %s7613_s5  ;;  %6219 = vrot.lane.b32.xlu1 %v6214_v25, %s7612_s21  ;;  %v6408_v13 = vadd.f32 %v12784_v22, %v6377_v12  ;;  %v6499_v22 = vmul.f32 %v12943_v27, %v12626_v52  ;;  %v6565_v56 = vrot.slane %v12970_v9, 1 }
 0x6ba   :  { %v6546_v40 = vpop.permute.xlu0 %6545  ;;  %v6598_v17 = vpop.permute.xlu1 %6597  ;;  %v6431_v33 = vadd.f32 %v6421_v32, %v6408_v13  ;;  %v6503_v61 = vadd.f32 %v6499_v22, %v6494_v55  ;;  %v6640_v32 = vstv %s12963_s15 }
 0x6bb   :  { %v6641_v37 = vmul.f32 %v6640_v32, %v12622_v46  ;;  %v6643_v12 = vmul.f32 %v6640_v32, %v12626_v52 }
 0x6bc   :  { %6246 = vrot.lane.b32.xlu0 %v6242_v20, %s7613_s5  ;;  %6163 = vrot.lane.b32.xlu1 %v6156_v35, %s7613_s5  ;;  %v6495_v35 = vadd.f32 %v12869_v45, %v6464_v30  ;;  %v6462_v19 = vadd.f32 %v12845_v14, %v6431_v33  ;;  %v6528_v1 = vadd.f32 %v12871_v18, %v6503_v61  ;;  %v6568_v14 = vrot.slane %v6559_v2, 1 }
 0x6bd   :  { %v6566_v45 = vsel %vm621_vm3, %v6564_v6, %v6565_v56  ;;  %v6642_v18 = vmul.f32 %v6640_v32, %v12632_v63  ;;  %v6649_v10 = vrot.slane %v6641_v37, 2  ;;  %v6652_v55 = vrot.slane %v6643_v12, 2  ;;  %v6837_v12 = vld [vmem:[%s13426_s7 + $0x68] sm:$0xff] }
 0x6be   :  { %v6625_v53 = vpop.permute.xlu0 %6624  ;;  %v6542_v28 = vpop.permute.xlu1 %6541  ;;  %v6493_v24 = vadd.f32 %v12900_v36, %v6462_v19  ;;  %v6553_v29 = vadd.f32 %v12920_v62, %v6528_v1  ;;  %v6574_v57 = vadd.f32 %v6566_v45, %v6551_v38  ;;  %v6498_v36 = vmul.f32 %v12943_v27, %v12632_v63 }
 0x6bf   :  { %v6569_v62 = vsel %vm621_vm3, %v6567_v31, %v6568_v14  ;;  %v6650_v54 = vrot.slane %v6642_v18, 2 }
 0x6c0   :  { %6250 = vrot.lane.b32.xlu0 %v6245_v16, %s7613_s5  ;;  %6221 = vrot.lane.b32.xlu1 %v6213_v49, %s7612_s21  ;;  %v6504_v49 = vadd.f32 %v6500_v44, %v6495_v35  ;;  %v6605_v5 = vadd.f32 %v12945_v21, %v6574_v57  ;;  %v6502_v58 = vadd.f32 %v6498_v36, %v6493_v24  ;;  %v6838_v36 = vld [vmem:[%s13426_s7 + $0x70] sm:$0xff] }
 0x6c1   :  { %v6576_v26 = vadd.f32 %v6569_v62, %v6553_v29  ;;  %v6651_v11 = vsel %vm709_vm4, %v6649_v10, %v6650_v54 }
 0x6c2   :  { %v6629_v4 = vpop.permute.xlu0 %6628  ;;  %v6600_v43 = vpop.permute.xlu1 %6599  ;;  %v6529_v25 = vadd.f32 %v12922_v15, %v6504_v49  ;;  %v6636_v48 = vadd.f32 %v6625_v53, %v6605_v5  ;;  %v6644_v15 = vmul.f32 %v6640_v32, %v12634_v59  ;;  %v6527_v21 = vadd.f32 %v12947_v8, %v6502_v58  ;;  %v6839_v5 = vld [vmem:[%s13426_s7 + $0x78] sm:$0xff] }
 0x6c3   :  { %v6607_v27 = vadd.f32 %v6598_v17, %v6576_v26  ;;  %6861 = vmatpush1.msra.mxu0 %v6839_v5 }
 0x6c4   :  { %6217 = vrot.lane.b32.xlu0 %v6210_v42, %s7612_s21  ;;  %6252 = vrot.lane.b32.xlu1 %v6244_v60, %s7613_s5  ;;  %v6554_v42 = vadd.f32 %v6546_v40, %v6529_v25  ;;  %v6552_v20 = vadd.f32 %v6542_v28, %v6527_v21  ;;  %v6659_v30 = vadd.f32 %v6651_v11, %v6636_v48  ;;  %v6653_v40 = vrot.slane %v6644_v15, 2  ;;  %s7614_s21 = smov 9   ;;  %v6834_v15 = vld [vmem:[%s13426_s7 + $0x50] sm:$0xff]  ;;  %v6833_v11 = vld [vmem:[%s13426_s7 + $0x48] sm:$0xff] }
 0x6c5   :  { %v6638_v9 = vadd.f32 %v6629_v4, %v6607_v27 }
 0x6c6   :  { %v6679_v34 = vpop.permute.xlu0 %6678  ;;  %v6596_v23 = vpop.permute.xlu1 %6595  ;;  %v6577_v60 = vadd.f32 %v6568_v14, %v6554_v42  ;;  %v6654_v6 = vsel %vm709_vm4, %v6652_v55, %v6653_v40  ;;  %v6575_v16 = vadd.f32 %v6565_v56, %v6552_v20  ;;  %v6836_v42 = vld [vmem:[%s13426_s7 + $0x60] sm:$0xff]  ;;  %v6831_v20 = vld [vmem:[%s13426_s7 + $0x38] sm:$0xff] }
 0x6c7   :  { %v6690_v22 = vadd.f32 %v6679_v34, %v6659_v30  ;;  %v6661_v17 = vadd.f32 %v6654_v6, %v6638_v9  ;;  %v6830_v9 = vld [vmem:[%s13426_s7 + $0x30] sm:$0xff] }
 0x6c8   :  { %6248 = vrot.lane.b32.xlu1 %v6241_v7, %s7613_s5  ;;  %v6608_v50 = vadd.f32 %v6600_v43, %v6577_v60  ;;  %v6725_v7 = vstv %s7383_s6  ;;  %v6606_v35 = vadd.f32 %v6596_v23, %v6575_v16  ;;  %v14515_v23 = vmov 0.0  }
 0x6c9   :  { %6862 = vmatprep.subr.mxu0 %v14515_v23  ;;  %7450 = vmatprep.mubr.msk.f32.mxu1 %vm7622_vm0, %v14515_v23 }
 0x6ca   :  { %v6631_v13 = vpop.permute.xlu0 %6630  ;;  %v6683_v0 = vpop.permute.xlu1 %6682  ;;  %6863 = vmatpush1.msra.mxu0 %v6838_v36 }
 0x6cb   :  { %v6639_v8 = vadd.f32 %v6631_v13, %v6608_v50  ;;  %v6692_v61 = vadd.f32 %v6683_v0, %v6661_v17  ;;  %6864 = vmatprep.subr.mxu0 %v14515_v23  ;;  %v6832_v13 = vld [vmem:[%s13426_s7 + $0x40] sm:$0xff] }
 0x6cc   :  { %6865 = vmatpush1.msra.mxu0 %v6837_v12  ;;  %v6828_v50 = vld [vmem:[%s13426_s7 + $0x20] sm:$0xff] }
 0x6cd   :  { %v6662_v32 = vadd.f32 %v6653_v40, %v6639_v8  ;;  %6866 = vmatprep.subr.mxu0 %v14515_v23  ;;  %v6829_v40 = vld [vmem:[%s13426_s7 + $0x28] sm:$0xff] }
 0x6ce   :  { %v6710_v3 = vpop.permute.xlu0 %6709  ;;  %v6627_v53 = vpop.permute.xlu1 %6626  ;;  %6867 = vmatpush1.msra.mxu0 %v6836_v42 }
 0x6cf   :  { %v6721_v33 = vadd.f32 %v6710_v3, %v6690_v22  ;;  %v6637_v1 = vadd.f32 %v6627_v53, %v6606_v35  ;;  %6868 = vmatprep.subr.mxu0 %v14515_v23 }
 0x6d1   :  { %v6726_v38 = vadd.f32 %v6725_v7, %v6721_v33  ;;  %v6660_v56 = vadd.f32 %v6650_v54, %v6637_v1  ;;  %v6835_v54 = vld [vmem:[%s13426_s7 + $0x58] sm:$0xff] }
 0x6d2   :  { %v6714_v2 = vpop.permute.xlu0 %6713  ;;  %v6685_v28 = vpop.permute.xlu1 %6684  ;;  %6869 = vmatpush1.msra.mxu0 %v6835_v54 }
 0x6d3   :  { %v6730_v19 = vmax.f32 %v6726_v38, 0.0  ;;  %v6723_v44 = vadd.f32 %v6714_v2, %v6692_v61  ;;  %v6693_v31 = vadd.f32 %v6685_v28, %v6662_v32  ;;  %6870 = vmatprep.subr.mxu0 %v14515_v23  ;;  %v5863_v32 = vstv %s7350_s17 }
 0x6d4   :  { %6871 = vmatpush1.msra.mxu0 %v6834_v15 }
 0x6d5   :  { %v6728_v45 = vadd.f32 %v6725_v7, %v6723_v44  ;;  %6738 = vrot.lane.b32.xlu0 %v6730_v19, %s7614_s21  ;;  %6872 = vmatprep.subr.mxu0 %v14515_v23 }
 0x6d6   :  { %v6681_v4 = vpop.permute.xlu0 %6680  ;;  %v6716_v43 = vpop.permute.xlu1 %6715  ;;  %6873 = vmatpush1.msra.mxu0 %v6833_v11 }
 0x6d7   :  { %v6732_v37 = vmax.f32 %v6728_v45, 0.0  ;;  %v6724_v24 = vadd.f32 %v6716_v43, %v6693_v31  ;;  %v6691_v29 = vadd.f32 %v6681_v4, %v6660_v56  ;;  %6874 = vmatprep.subr.mxu0 %v14515_v23  ;;  %v5808_v45 = vstv %s310_s18  ;;  %s7616_s18 = smov 36  }
 0x6d8   :  { %6875 = vmatpush1.msra.mxu0 %v6832_v13  ;;  %v5864_v31 = vmul.f32 %v5863_v32, %v12546_v39  ;;  %v5809_v4 = vmul.f32 %v5808_v45, %v12546_v39  ;;  %v5865_v56 = vmul.f32 %v5863_v32, %v12561_v51 }
 0x6d9   :  { %v6729_v49 = vadd.f32 %v6725_v7, %v6724_v24  ;;  %6742 = vrot.lane.b32.xlu0 %v6732_v37, %s7614_s21  ;;  %6876 = vmatprep.subr.mxu0 %v14515_v23 }
 0x6da   :  { %v6712_v57 = vpop.permute.xlu0 %6711  ;;  %v13015_v14 = vpop.permute.xlu1 %5822  ;;  %6877 = vmatpush1.msra.mxu0 %v6831_v20  ;;  %v5873_v36 = vrot.slane %v5865_v56, 1  ;;  %v5812_v56 = vmul.f32 %v5808_v45, %v12554_v47 }
 0x6db   :  { %v6733_v18 = vmax.f32 %v6729_v49, 0.0  ;;  %v6722_v25 = vadd.f32 %v6712_v57, %v6691_v29  ;;  %6878 = vmatprep.subr.mxu0 %v14515_v23  ;;  %v5834_v24 = vadd.f32 %v13015_v14, %v5809_v4  ;;  %v5872_v29 = vrot.slane %v5864_v31, 1 }
 0x6dc   :  { %6879 = vmatpush1.msra.mxu0 %v6830_v9  ;;  %v5866_v49 = vmul.f32 %v5863_v32, %v12558_v41  ;;  %v5811_v57 = vmul.f32 %v5808_v45, %v12558_v41 }
 0x6dd   :  { %v6727_v62 = vadd.f32 %v6725_v7, %v6722_v25  ;;  %6744 = vrot.lane.b32.xlu1 %v6733_v18, %s7614_s21  ;;  %6880 = vmatprep.subr.mxu0 %v14515_v23  ;;  %v6827_v7 = vld [vmem:[%s13426_s7 + $0x18] sm:$0xff]  ;;  %v5874_v42 = vsel %vm621_vm3, %v5872_v29, %v5873_v36 }
 0x6de   :  { %v13023_v10 = vpop.permute.xlu0 %5826  ;;  %v13025_v34 = vpop.permute.xlu1 %5847  ;;  %6881 = vmatpush1.msra.mxu0 %v6829_v40  ;;  %v5875_v14 = vrot.slane %v5866_v49, 1 }
 0x6df   :  { %v6731_v58 = vmax.f32 %v6727_v62, 0.0  ;;  %6882 = vmatprep.subr.mxu0 %v14515_v23  ;;  %v5859_v18 = vadd.f32 %v13025_v34, %v5834_v24  ;;  %v5867_v62 = vmul.f32 %v5863_v32, %v12554_v47  ;;  %v5836_v12 = vadd.f32 %v13023_v10, %v5811_v57 }
 0x6e0   :  { %6883 = vmatpush1.msra.mxu0 %v6828_v50 }
 0x6e1   :  { %6740 = vrot.lane.b32.xlu0 %v6731_v58, %s7614_s21  ;;  %6884 = vmatprep.subr.mxu0 %v14515_v23  ;;  %v5948_v58 = vstv %s7353_s19  ;;  %v5882_v11 = vadd.f32 %v5874_v42, %v5859_v18  ;;  %v5876_v34 = vrot.slane %v5867_v62, 1  ;;  %s7621_s21 = smov 16  }
 0x6e2   :  { %v13035_v26 = vpop.permute.xlu0 %5851  ;;  %v13037_v48 = vpop.permute.xlu1 %5828  ;;  %6885 = vmatpush1.msra.mxu0 %v6827_v7  ;;  %v5949_v54 = vmul.f32 %v5948_v58, %v12546_v39  ;;  %v13144_v20 = vmul.f32 %v5948_v58, %v12561_v51  ;;  %v5951_v7 = vmul.f32 %v5948_v58, %v12558_v41  ;;  %v5952_v31 = vmul.f32 %v5948_v58, %v12554_v47 }
 0x6e3   :  { %6886 = vmatprep.subr.mxu0 %v14515_v23  ;;  %v5861_v15 = vadd.f32 %v13035_v26, %v5836_v12  ;;  %v5877_v10 = vsel %vm621_vm3, %v5875_v14, %v5876_v34  ;;  %v5837_v41 = vadd.f32 %v13037_v48, %v5812_v56 }
 0x6e4   :  { %v5957_v50 = vrot.slane %v5949_v54, 2  ;;  %v5958_v26 = vrot.slane %v13144_v20, 2  ;;  %v5960_v29 = vrot.slane %v5951_v7, 2  ;;  %v5961_v62 = vrot.slane %v5952_v31, 2 }
 0x6e5   :  { %v5884_v32 = vadd.f32 %v5877_v10, %v5861_v15 }
 0x6e6   :  { %v13047_v21 = vpop.permute.xlu0 %5901  ;;  %v13049_v27 = vpop.permute.xlu1 %5824  ;;  %v5962_v58 = vsel %vm709_vm4, %v5960_v29, %v5961_v62 }
 0x6e7   :  { %v5913_v40 = vadd.f32 %v13047_v21, %v5882_v11  ;;  %v5959_v21 = vsel %vm709_vm4, %v5957_v50, %v5958_v26 }
 0x6ea   :  { %v13059_v55 = vpop.permute.xlu0 %5853  ;;  %v13061_v0 = vpop.permute.xlu1 %5905 }
 0x6eb   :  { %v5915_v24 = vadd.f32 %v13061_v0, %v5884_v32  ;;  %v5862_v47 = vadd.f32 %v13059_v55, %v5837_v41  ;;  %v6092_v55 = vstv %s7359_s22 }
 0x6ee   :  { %v13071_v60 = vpop.permute.xlu0 %5932  ;;  %v13073_v30 = vpop.permute.xlu1 %5849 }
 0x6ef   :  { %v5944_v39 = vadd.f32 %v13071_v60, %v5913_v40  ;;  %v5810_v60 = vmul.f32 %v5808_v45, %v12561_v51  ;;  %v6033_v51 = vstv %s7356_s20 }
 0x6f0   :  { %v6036_v7 = vmul.f32 %v6033_v51, %v12626_v52 }
 0x6f1   :  { %v5967_v18 = vadd.f32 %v5959_v21, %v5944_v39  ;;  %v5835_v12 = vadd.f32 %v13049_v27, %v5810_v60  ;;  %v6034_v27 = vmul.f32 %v6033_v51, %v12622_v46  ;;  %v6095_v39 = vmul.f32 %v6092_v55, %v12626_v52 }
 0x6f2   :  { %v13083_v22 = vpop.permute.xlu0 %5936  ;;  %v13085_v6 = vpop.permute.xlu1 %5907 }
 0x6f3   :  { %v5946_v57 = vadd.f32 %v13083_v22, %v5915_v24  ;;  %v5860_v14 = vadd.f32 %v13073_v30, %v5835_v12  ;;  %v5885_v22 = vadd.f32 %v5876_v34, %v5862_v47  ;;  %v6104_v29 = vrot.slane %v6095_v39, 1 }
 0x6f5   :  { %v5969_v54 = vadd.f32 %v5962_v58, %v5946_v57  ;;  %v5916_v11 = vadd.f32 %v13085_v6, %v5885_v22  ;;  %v5883_v20 = vadd.f32 %v5873_v36, %v5860_v14 }
 0x6f6   :  { %v13092_v3 = vpop.permute.xlu0 %5986  ;;  %v13094_v53 = vpop.permute.xlu1 %5903 }
 0x6f7   :  { %v5998_v0 = vadd.f32 %v13092_v3, %v5967_v18  ;;  %v6093_v3 = vmul.f32 %v6092_v55, %v12622_v46  ;;  %v5914_v34 = vadd.f32 %v13094_v53, %v5883_v20  ;;  %v6096_v53 = vmul.f32 %v6092_v55, %v12634_v59 }
 0x6f9   :  { %v6101_v32 = vrot.slane %v6093_v3, 1  ;;  %v6105_v12 = vrot.slane %v6096_v53, 1 }
 0x6fa   :  { %v13097_v16 = vpop.permute.xlu0 %5938  ;;  %v13099_v8 = vpop.permute.xlu1 %5990 }
 0x6fb   :  { %v6000_v15 = vadd.f32 %v13099_v8, %v5969_v54  ;;  %v5947_v8 = vadd.f32 %v13097_v16, %v5916_v11 }
 0x6fd   :  { %v5970_v24 = vadd.f32 %v5961_v62, %v5947_v8 }
 0x6fe   :  { %v13101_v17 = vpop.permute.xlu0 %6017  ;;  %v13103_v33 = vpop.permute.xlu1 %5934 }
 0x6ff   :  { %v6029_v48 = vadd.f32 %v13101_v17, %v5998_v0  ;;  %v13180_v17 = vmul.f32 %v6092_v55, %v12632_v63 }
 0x701   :  { %v6038_v40 = vadd.f32 %v6034_v27, %v6029_v48  ;;  %v6102_v56 = vrot.slane %v13180_v17, 1 }
 0x702   :  { %v13105_v35 = vpop.permute.xlu0 %6021  ;;  %v13107_v61 = vpop.permute.xlu1 %5992 }
 0x703   :  { %v6031_v30 = vadd.f32 %v13105_v35, %v6000_v15  ;;  %v5945_v35 = vadd.f32 %v13103_v33, %v5914_v34  ;;  %v6103_v21 = vsel %vm621_vm3, %v6101_v32, %v6102_v56  ;;  %v6001_v57 = vadd.f32 %v13107_v61, %v5970_v24 }
 0x705   :  { %v6040_v36 = vadd.f32 %v6036_v7, %v6031_v30  ;;  %v5968_v33 = vadd.f32 %v5958_v26, %v5945_v35 }
 0x706   :  { %v13109_v38 = vpop.permute.xlu0 %6051  ;;  %v13111_v2 = vpop.permute.xlu1 %5988 }
 0x707   :  { %v6063_v50 = vadd.f32 %v13109_v38, %v6038_v40  ;;  %v6177_v38 = vstv %s7362_s23  ;;  %s7617_s23 = smov 54  }
 0x708   :  { %v6178_v41 = vmul.f32 %v6177_v38, %v12622_v46  ;;  %v13199_v47 = vmul.f32 %v6177_v38, %v12632_v63  ;;  %v6106_v46 = vsel %vm621_vm3, %v6104_v29, %v6105_v12  ;;  %v6180_v61 = vmul.f32 %v6177_v38, %v12626_v52 }
 0x709   :  { %vm7054_vm3 = vcmask 1043456  }
 0x70a   :  { %v13113_v28 = vpop.permute.xlu0 %6023  ;;  %v13115_v19 = vpop.permute.xlu1 %6055  ;;  %v6186_v14 = vrot.slane %v6178_v41, 2  ;;  %v6187_v22 = vrot.slane %v13199_v47, 2  ;;  %v6189_v55 = vrot.slane %v6180_v61, 2  ;;  %v6843_v41 = vld [vmem:[%s13426_s7 + $0x98] sm:$0xff]  ;;  %v6842_v47 = vld [vmem:[%s13426_s7 + $0x90] sm:$0xff] }
 0x70b   :  { %v6065_v16 = vadd.f32 %v13115_v19, %v6040_v36  ;;  %v5999_v19 = vadd.f32 %v13111_v2, %v5968_v33  ;;  %v6032_v0 = vadd.f32 %v13113_v28, %v6001_v57  ;;  %v6181_v2 = vmul.f32 %v6177_v38, %v12634_v59 }
 0x70c   :  { %v6188_v52 = vsel %vm709_vm4, %v6186_v14, %v6187_v22 }
 0x70d   :  { %v6190_v30 = vrot.slane %v6181_v2, 2 }
 0x70e   :  { %v13117_v1 = vpop.permute.xlu0 %6076  ;;  %v13119_v44 = vpop.permute.xlu1 %6019 }
 0x70f   :  { %v6088_v31 = vadd.f32 %v13117_v1, %v6063_v50  ;;  %v6030_v26 = vadd.f32 %v13119_v44, %v5999_v19  ;;  %v13220_v50 = vstv %s346_s24 }
 0x711   :  { %v6111_v1 = vadd.f32 %v6103_v21, %v6088_v31 }
 0x712   :  { %v13123_v43 = vpop.permute.xlu0 %6080  ;;  %v13125_v37 = vpop.permute.xlu1 %6057 }
 0x713   :  { %v6090_v18 = vadd.f32 %v13123_v43, %v6065_v16  ;;  %v6037_v43 = vmul.f32 %v6033_v51, %v12634_v59 }
 0x715   :  { %v6113_v54 = vadd.f32 %v6106_v46, %v6090_v18  ;;  %v6041_v15 = vadd.f32 %v6037_v43, %v6032_v0 }
 0x716   :  { %v13132_v25 = vpop.permute.xlu0 %6130  ;;  %v13134_v5 = vpop.permute.xlu1 %6053 }
 0x717   :  { %v6142_v58 = vadd.f32 %v13132_v25, %v6111_v1  ;;  %v6035_v25 = vmul.f32 %v6033_v51, %v12632_v63  ;;  %v6066_v3 = vadd.f32 %v13125_v37, %v6041_v15  ;;  %v6191_v63 = vsel %vm709_vm4, %v6189_v55, %v6190_v30 }
 0x719   :  { %v6039_v11 = vadd.f32 %v6035_v25, %v6030_v26 }
 0x71a   :  { %v13141_v13 = vpop.permute.xlu0 %6082  ;;  %v13146_v9 = vpop.permute.xlu1 %6134 }
 0x71b   :  { %v6144_v27 = vadd.f32 %v13146_v9, %v6113_v54  ;;  %v6064_v59 = vadd.f32 %v13134_v5, %v6039_v11  ;;  %v6091_v40 = vadd.f32 %v13141_v13, %v6066_v3  ;;  %v6946_v3 = vld [vmem:[%s13428_s9 + $0x68] sm:$0xff] }
 0x71d   :  { %v6114_v7 = vadd.f32 %v6105_v12, %v6091_v40  ;;  %v6945_v40 = vld [vmem:[%s13428_s9 + $0x60] sm:$0xff] }
 0x71e   :  { %v13154_v4 = vpop.permute.xlu0 %6161  ;;  %v13159_v49 = vpop.permute.xlu1 %6078 }
 0x71f   :  { %v6173_v48 = vadd.f32 %v13154_v4, %v6142_v58  ;;  %v6089_v9 = vadd.f32 %v13159_v49, %v6064_v59  ;;  %v6825_v49 = vld [vmem:[%s13426_s7 + $0x8] sm:$0xff] }
 0x720   :  { %v6841_v58 = vld [vmem:[%s13426_s7 + $0x88] sm:$0xff] }
 0x721   :  { %v6196_v20 = vadd.f32 %v6188_v52, %v6173_v48  ;;  %v6112_v13 = vadd.f32 %v6102_v56, %v6089_v9  ;;  %v6840_v48 = vld [vmem:[%s13426_s7 + $0x80] sm:$0xff] }
 0x722   :  { %v13168_v42 = vpop.permute.xlu0 %6165  ;;  %v13172_v45 = vpop.permute.xlu1 %6136 }
 0x723   :  { %v6175_v4 = vadd.f32 %v13168_v42, %v6144_v27  ;;  %v6826_v42 = vld [vmem:[%s13426_s7 + $0x10] sm:$0xff]  ;;  %v6145_v5 = vadd.f32 %v13172_v45, %v6114_v7  ;;  %v6824_v45 = vld [vmem:[%s13426_s7] sm:$0xff] }
 0x724   :  { %6887 = vmatpush1.msra.mxu0 %v6826_v42  ;;  %v6943_v42 = vld [vmem:[%s13428_s9 + $0x50] sm:$0xff] }
 0x725   :  { %v6198_v34 = vadd.f32 %v6191_v63, %v6175_v4  ;;  %6888 = vmatprep.subr.mxu0 %v14515_v23 }
 0x726   :  { %v6216_v10 = vpop.permute.xlu0 %6215  ;;  %v13187_v6 = vpop.permute.xlu1 %6132  ;;  %6889 = vmatpush1.msra.mxu0 %v6825_v49  ;;  %v6941_v49 = vld [vmem:[%s13428_s9 + $0x40] sm:$0xff] }
 0x727   :  { %v6227_v17 = vadd.f32 %v6216_v10, %v6196_v20  ;;  %v6143_v36 = vadd.f32 %v13187_v6, %v6112_v13  ;;  %6890 = vmatprep.subr.mxu0 %v14515_v23  ;;  %v6844_v6 = vld [vmem:[%s13426_s7 + $0xa0] sm:$0x3] }
 0x728   :  { %6891 = vmatpush1.msra.mxu0 %v6824_v45  ;;  %v6937_v45 = vld [vmem:[%s13428_s9 + $0x20] sm:$0xff] }
 0x729   :  { %6914 = vmatprep.subr.mxu0 %v14515_v23 }
 0x72a   :  { %v6168_v60 = vpop.permute.xlu0 %6167  ;;  %v6220_v62 = vpop.permute.xlu1 %6219  ;;  %7385 = vmatpush2.msk.msra.mxu0 %vm6856_vm6, %v6844_v6 }
 0x72b   :  { %v6229_v32 = vadd.f32 %v6220_v62, %v6198_v34  ;;  %v6176_v31 = vadd.f32 %v6168_v60, %v6145_v5  ;;  %6916 = vmatprep.subr.mxu0 %v14515_v23 }
 0x72c   :  { %6917 = vmatpush2.msra.mxu0 %v6843_v41 }
 0x72d   :  { %v6199_v21 = vadd.f32 %v6190_v30, %v6176_v31  ;;  %6918 = vmatprep.subr.mxu0 %v14515_v23  ;;  %v6939_v31 = vld [vmem:[%s13428_s9 + $0x30] sm:$0xff] }
 0x72e   :  { %v6247_v28 = vpop.permute.xlu0 %6246  ;;  %v6164_v44 = vpop.permute.xlu1 %6163  ;;  %6919 = vmatpush2.msra.mxu0 %v6842_v47 }
 0x72f   :  { %v6258_v8 = vadd.f32 %v6247_v28, %v6227_v17  ;;  %v6174_v24 = vadd.f32 %v6164_v44, %v6143_v36  ;;  %6920 = vmatprep.subr.mxu0 %v14515_v23  ;;  %v6947_v44 = vld [vmem:[%s13428_s9 + $0x70] sm:$0xff]  ;;  %v6940_v36 = vld [vmem:[%s13428_s9 + $0x38] sm:$0xff] }
 0x730   :  { %6921 = vmatpush2.msra.mxu0 %v6841_v58  ;;  %7421 = vmatpush3.msra.mxu1 %v6947_v44  ;;  %v6934_v58 = vld [vmem:[%s13428_s9 + $0x8] sm:$0xff]  ;;  %v7034_v44 = vld [vmem:[%s13430_s11 + $0x10] sm:$0xff] }
 0x731   :  { %v6263_v10 = vadd.f32 %v13220_v50, %v6258_v8  ;;  %v6197_v33 = vadd.f32 %v6187_v22, %v6174_v24  ;;  %6922 = vmatprep.subr.mxu0 %v14515_v23  ;;  %7422 = vmatprep.subr.mxu1 %v14515_v23  ;;  %v6944_v8 = vld [vmem:[%s13428_s9 + $0x58] sm:$0xff] }
 0x732   :  { %v6251_v51 = vpop.permute.xlu0 %6250  ;;  %v6222_v37 = vpop.permute.xlu1 %6221  ;;  %6923 = vmatpush2.msra.mxu0 %v6840_v48  ;;  %7423 = vmatpush3.msra.mxu1 %v6946_v3  ;;  %v7042_v48 = vld [vmem:[%s13430_s11 + $0x50] sm:$0xf]  ;;  %v7033_v3 = vld [vmem:[%s13430_s11 + $0x8] sm:$0xff] }
 0x733   :  { %v6260_v39 = vadd.f32 %v6251_v51, %v6229_v32  ;;  %v6267_v56 = vmax.f32 %v6263_v10, 0.0  ;;  %v6230_v57 = vadd.f32 %v6222_v37, %v6199_v21  ;;  %7424 = vmatprep.subr.mxu1 %v14515_v23 }
 0x734   :  { %7425 = vmatpush3.msra.mxu1 %v6945_v40 }
 0x735   :  { %v6265_v16 = vadd.f32 %v13220_v50, %v6260_v39  ;;  %7426 = vmatprep.subr.mxu1 %v14515_v23  ;;  %v6942_v39 = vld [vmem:[%s13428_s9 + $0x48] sm:$0xff] }
 0x736   :  { %v6218_v35 = vpop.permute.xlu0 %6217  ;;  %v6253_v53 = vpop.permute.xlu1 %6252  ;;  %7427 = vmatpush3.msra.mxu1 %v6944_v8 }
 0x737   :  { %v6269_v60 = vmax.f32 %v6265_v16, 0.0  ;;  %v6228_v62 = vadd.f32 %v6218_v35, %v6197_v33  ;;  %v6261_v19 = vadd.f32 %v6253_v53, %v6230_v57  ;;  %7428 = vmatprep.subr.mxu1 %v14515_v23  ;;  %v6938_v53 = vld [vmem:[%s13428_s9 + $0x28] sm:$0xff] }
 0x738   :  { %7429 = vmatpush3.msra.mxu1 %v6943_v42 }
 0x739   :  { %v6266_v15 = vadd.f32 %v13220_v50, %v6261_v19  ;;  %7430 = vmatprep.subr.mxu1 %v14515_v23 }
 0x73a   :  { %v6249_v18 = vpop.permute.xlu1 %6248  ;;  %7431 = vmatpush3.msra.mxu1 %v6942_v39 }
 0x73b   :  { %v6259_v43 = vadd.f32 %v6249_v18, %v6228_v62  ;;  %v6270_v17 = vmax.f32 %v6266_v15, 0.0  ;;  %7432 = vmatprep.subr.mxu1 %v14515_v23  ;;  %v7039_v15 = vld [vmem:[%s13430_s11 + $0x38] sm:$0xff] }
 0x73c   :  { %7433 = vmatpush3.msra.mxu1 %v6941_v49 }
 0x73d   :  { %v6264_v11 = vadd.f32 %v13220_v50, %v6259_v43  ;;  %7434 = vmatprep.subr.mxu1 %v14515_v23 }
 0x73e   :  { %7435 = vmatpush3.msra.mxu1 %v6940_v36 }
 0x73f   :  { %v6268_v50 = vmax.f32 %v6264_v11, 0.0  ;;  %7436 = vmatprep.subr.mxu1 %v14515_v23  ;;  %v7032_v11 = vld [vmem:[%s13430_s11] sm:$0xff] }
 0x740   :  { %7437 = vmatpush3.msra.mxu1 %v6939_v31 }
 0x741   :  { %7438 = vmatprep.subr.mxu1 %v14515_v23 }
 0x742   :  { %7439 = vmatpush3.msra.mxu1 %v6938_v53 }
 0x743   :  { %7440 = vmatprep.subr.mxu1 %v14515_v23 }
 0x744   :  { %7441 = vmatpush3.msra.mxu1 %v6937_v45 }
 0x745   :  { %7442 = vmatprep.subr.mxu1 %v14515_v23 }
 0x747   :  { %v6739_v38 = vpop.permute.xlu0 %6738 }
 0x748   :  { %v13242_v29 = vsel %vm6750_vm5, %v6267_v56, %v6739_v38  ;;  %v6936_v56 = vld [vmem:[%s13428_s9 + $0x18] sm:$0xff] }
 0x749   :  { %v6761_v12 = vrot.slane %v13242_v29, 1  ;;  %v6766_v14 = vrot.slane %v13242_v29, 2  ;;  %v6772_v2 = vrot.slane %v13242_v29, 3  ;;  %v6778_v27 = vrot.slane %v13242_v29, 4  ;;  %7443 = vmatpush3.msra.mxu1 %v6936_v56 }
 0x74a   :  { %v6784_v30 = vrot.slane %v13242_v29, 5  ;;  %v6790_v9 = vrot.slane %v13242_v29, 6  ;;  %v6796_v32 = vrot.slane %v13242_v29, 7  ;;  %7444 = vmatprep.subr.mxu1 %v14515_v23 }
 0x74b   :  { %v6743_v1 = vpop.permute.xlu0 %6742 }
 0x74c   :  { %v13255_v0 = vsel %vm6750_vm5, %v6269_v60, %v6743_v1 }
 0x74d   :  { %v6762_v46 = vsel %vm6758_vm7, %v13255_v0, %v6761_v12  ;;  %v6767_v61 = vrot.slane %v13255_v0, 1  ;;  %v6773_v26 = vrot.slane %v13255_v0, 2  ;;  %v6757_v54 = vrot.slane %v13255_v0, 7 }
 0x74e   :  { %6763 = vrot.lane.b32.xlu1 %v6762_v46, %s7615_s2  ;;  %v6779_v28 = vrot.slane %v13255_v0, 3  ;;  %v6785_v52 = vrot.slane %v13255_v0, 4  ;;  %v6791_v59 = vrot.slane %v13255_v0, 5  ;;  %v6797_v34 = vrot.slane %v13255_v0, 6  ;;  %v6935_v0 = vld [vmem:[%s13428_s9 + $0x10] sm:$0xff]  ;;  %v6933_v46 = vld [vmem:[%s13428_s9] sm:$0xff] }
 0x74f   :  { %v6768_v22 = vsel %vm6758_vm7, %v6767_v61, %v6766_v14  ;;  %v6774_v25 = vsel %vm6758_vm7, %v6773_v26, %v6772_v2  ;;  %v13280_v55 = vsel %vm6758_vm7, %v6757_v54, %v13242_v29  ;;  %v6745_v4 = vpop.permute.xlu1 %6744  ;;  %7445 = vmatpush3.msra.mxu1 %v6935_v0  ;;  %v7384_v14 = vld [vmem:[%s13427_s8] ss:$0 sm:$0xff]  ;;  %v7041_v2 = vld [vmem:[%s13430_s11 + $0x48] sm:$0xff] }
 0x750   :  { %6769 = vrot.lane.b32.xlu0 %v6768_v22, %s7616_s18  ;;  %v6780_v20 = vsel %vm6758_vm7, %v6779_v28, %v6778_v27  ;;  %v6786_v51 = vsel %vm6758_vm7, %v6785_v52, %v6784_v30  ;;  %v6754_v37 = vsel %vm6750_vm5, %v6270_v17, %v6745_v4  ;;  %v6792_v7 = vsel %vm6758_vm7, %v6791_v59, %v6790_v9  ;;  %v7040_v28 = vld [vmem:[%s13430_s11 + $0x40] sm:$0xff]  ;;  %v7037_v27 = vld [vmem:[%s13430_s11 + $0x28] sm:$0xff] }
 0x751   :  { %v6804_v13 = vrot.slane %v6754_v37, 7  ;;  %v6798_v10 = vsel %vm6758_vm7, %v6797_v34, %v6796_v32  ;;  %7446 = vmatprep.subr.mxu1 %v14515_v23  ;;  %v7036_v52 = vld [vmem:[%s13430_s11 + $0x20] sm:$0xff] }
 0x752   :  { %6775 = vrot.lane.b32.xlu1 %v6774_v25, %s7617_s23  ;;  %7447 = vmatpush3.msra.mxu1 %v6934_v58  ;;  %v7038_v25 = vld [vmem:[%s13430_s11 + $0x30] sm:$0xff]  ;;  %v7387_v4 = vld [vmem:[%s13429_s10] ss:$0 sm:$0xff]  ;;  %s7623_s10 = smov [#allocation13]  }
 0x753   :  { %v6741_v63 = vpop.permute.xlu0 %6740  ;;  %7448 = vmatprep.subr.mxu1 %v14515_v23 }
 0x754   :  { %6781 = vrot.lane.b32.xlu0 %v6780_v20, %s7618_s3  ;;  %v6752_v5 = vsel %vm6750_vm5, %v6268_v50, %v6741_v63  ;;  %7449 = vmatpush3.msra.mxu1 %v6933_v46  ;;  %vm7050_vm5 = vcmask 687104   ;;  %v7389_v63 = vld [vmem:[%s13431_s12] ss:$0 sm:$0xff] }
 0x755   :  { %v6805_v35 = vsel %vm6758_vm7, %v6804_v13, %v6752_v5  ;;  %7453 = vmatprep.subr.mxu1 %v14515_v23 }
 0x756   :  { %6787 = vrot.lane.b32.xlu1 %v6786_v51, %s7619_s27 }
 0x758   :  { %6793 = vrot.lane.b32.xlu0 %v6792_v7, %s7620_s30 }
 0x75a   :  { %6799 = vrot.lane.b32.xlu1 %v6798_v10, %s7613_s5 }
 0x75c   :  { %6806 = vrot.lane.b32.xlu0 %v6805_v35, %s7621_s21 }
 0x7c0   :  { %v6764_v24 = vpop.permute.xlu1 %6763 }
 0x7c1   :  { %v6810_v16 = vsel %vm6809_vm8, %v13280_v55, %v6764_v24  ;;  %v7035_v55 = vld [vmem:[%s13430_s11 + $0x18] sm:$0xff]  ;;  %s7146_s11 = sshll.u32 %s7623_s10, 4  ;;  %s7147_s11 = int_to_ptr.vmem [resolvable:$true] %s7146_s11 }
 0x7c2   :  { %v6770_v38 = vpop.permute.xlu0 %6769  ;;  %s7574_s12 = scalar_lea.vmem %s7147_s11, 32  ;;  %p7579_p3 = scmp.lt.s32.totalorder %s7147_s11, %s7147_s11 }
 0x7c3   :  { %v6812_v6 = vsel %vm6811_vm9, %v6810_v16, %v6770_v38  ;;  %p7575_p2 = scmp.ne.s32.totalorder %s7147_s11, %s7574_s12  ;;  %p7580_p4 = scmp.lt.s32.totalorder %s7574_s12, %s7574_s12 }
 0x7c4   :  { %v6776_v21 = vpop.permute.xlu1 %6775 }
 0x7c5   :  { %v6814_v29 = vsel %vm6813_vm10, %v6812_v6, %v6776_v21  ;;  %p7581_p5 = por %p7580_p4, %p7579_p3 }
 0x7c6   :  { %v6782_v41 = vpop.permute.xlu0 %6781 }
 0x7c7   :  { %v6816_v60 = vsel %vm6815_vm11, %v6814_v29, %v6782_v41  ;;  %p7582_p6 = pnand %p7581_p5, %p7575_p2 }
 0x7c8   :  { %v6788_v57 = vpop.permute.xlu1 %6787 }
 0x7c9   :  { %v6818_v33 = vsel %vm6817_vm12, %v6816_v60, %v6788_v57 }
 0x7ca   :  { %v6794_v18 = vpop.permute.xlu0 %6793 }
 0x7cb   :  { %v6820_v1 = vsel %vm6819_vm13, %v6818_v33, %v6794_v18 }
 0x7cc   :  { %v6800_v12 = vpop.permute.xlu1 %6799 }
 0x7cd   :  { %v6822_v19 = vsel %vm6821_vm15, %v6820_v1, %v6800_v12 }
 0x7ce   :  { %v6807_v47 = vpop.permute.xlu0 %6806 }
 0x7cf   :  { %v6823_v62 = vsel %vm535_vm2, %v6800_v12, %v6807_v47  ;;  %vm6955_vm2 = vcmask 982016  }
 0x7d0   :  { %7386 = vmatprep.mubr.msk.f32.mxu0 %vm6852_vm14, %v6823_v62 }
 0x7d1   :  { %6925 = vmatmul.mubr.f32.vlgmr.msra.gmra.mxu0 %v6822_v19 }
 0x891   :  { %v6926_v61 = vpop.f32.mrf.mxu0 }
 0x892   :  { %v6927_v26 = vadd.f32 %v7384_v14, %v6926_v61 }
 0x893   :  { %v6928_v43 = vpop.f32.mrf.mxu0 }
 0x894   :  { %vm6930_vm1 = vcmp.gt.f32.partialorder %v6927_v26, 0.0  ;;  %v6931_v54 = vmul.f32 0.2, %v6927_v26 }
 0x896   :  { %v6932_v22 = vsel %vm6930_vm1, %v6927_v26, %v6931_v54 }
 0x897   :  { %7451 = vmatmul.mubr.msk.f32.vlgmr.msra.gmra.mxu1 %vm6955_vm2, %v6932_v22 }
 0x898   :  { %7454 = vmatpush3.msk.msra.mxu1 %vm7054_vm3, %v7042_v48  ;;  %7475 = vmatprep.mubr.msk.f32.mxu1 %vm7622_vm0, %v14515_v23 }
 0x899   :  { %7455 = vmatprep.subr.mxu1 %v14515_v23 }
 0x89a   :  { %7456 = vmatpush3.msra.mxu1 %v7041_v2 }
 0x89b   :  { %7457 = vmatprep.subr.mxu1 %v14515_v23 }
 0x89c   :  { %7458 = vmatpush3.msra.mxu1 %v7040_v28 }
 0x89d   :  { %7459 = vmatprep.subr.mxu1 %v14515_v23 }
 0x89e   :  { %7460 = vmatpush3.msra.mxu1 %v7039_v15 }
 0x89f   :  { %7461 = vmatprep.subr.mxu1 %v14515_v23 }
 0x8a0   :  { %7462 = vmatpush3.msra.mxu1 %v7038_v25 }
 0x8a1   :  { %7463 = vmatprep.subr.mxu1 %v14515_v23 }
 0x8a2   :  { %7464 = vmatpush3.msra.mxu1 %v7037_v27 }
 0x8a3   :  { %7465 = vmatprep.subr.mxu1 %v14515_v23 }
 0x8a4   :  { %7466 = vmatpush3.msra.mxu1 %v7036_v52 }
 0x8a5   :  { %7467 = vmatprep.subr.mxu1 %v14515_v23 }
 0x8a6   :  { %7468 = vmatpush3.msra.mxu1 %v7035_v55 }
 0x8a7   :  { %7469 = vmatprep.subr.mxu1 %v14515_v23 }
 0x8a8   :  { %7470 = vmatpush3.msra.mxu1 %v7034_v44 }
 0x8a9   :  { %7471 = vmatprep.subr.mxu1 %v14515_v23 }
 0x8aa   :  { %7472 = vmatpush3.msra.mxu1 %v7033_v3 }
 0x8ab   :  { %7473 = vmatprep.subr.mxu1 %v14515_v23 }
 0x8ac   :  { %7474 = vmatpush3.msra.mxu1 %v7032_v11 }
 0x957   :  { %v7025_v20 = vpop.f32.mrf.mxu1 }
 0x958   :  { %v7026_v30 = vadd.f32 %v7387_v4, %v7025_v20 }
 0x959   :  { %v7452_v59 = vpop.f32.mrf.mxu1 }
 0x95a   :  { %vm7029_vm4 = vcmp.gt.f32.partialorder %v7026_v30, 0.0  ;;  %v7030_v40 = vmul.f32 0.2, %v7026_v30 }
 0x95c   :  { %v7031_v17 = vsel %vm7029_vm4, %v7026_v30, %v7030_v40 }
 0x95d   :  { %7476 = vmatmul.mubr.msk.f32.vlgmr.msra.gmra.mxu1 %vm7050_vm5, %v7031_v17 }
 0xa1d   :  { %v7124_v51 = vpop.f32.mrf.mxu1 }
 0xa1e   :  { %v7125_v9 = vadd.f32 %v7389_v63, %v7124_v51 }
 0xa1f   :  { %v7477_v23 = vpop.f32.mrf.mxu1 }
 0xa20   :  { %v7128_v34 = vsel %vm6856_vm6, %v7125_v9, -inf }
 0xa21   :  { %7129 = vmax.xlane.f32.xlu1 %v7128_v34 }
 0xaaa   :  { %v7130_v8 = vpop.xlane.xlu1 %7129 }
 0xaab   :  { %v7131_v50 = vsub.f32 %v7125_v9, %v7130_v8 }
 0xaad   :  { %v7132_v37 = vmul.f32 1.442695, %v7131_v50 }
 0xaaf   :  { %7498 = vpow2.f32 %v7132_v37 }
 0xabc   :  { %v7499_v7 = vpop.eup %7498 }
 0xabd   :  { %v7134_v32 = vsel %vm6856_vm6, %v7499_v7, 0.0 }
 0xabe   :  { %7135 = vadd.xlane.f32.xlu0 %v7134_v32 }
 0xb47   :  { %v7136_v42 = vpop.xlane.xlu0 %7135 }
 0xb48   :  { %7500 = vrcp.f32 %v7136_v42 }
 0xb55   :  { %v7501_v5 = vpop.eup %7500 }
 0xb56   :  { %v7138_v13 = vmul.f32 %v7501_v5, %v7499_v7 }
 0xb58   :  { %7139 = vst [vmem:[#allocation13] sm:$0x3] %v7138_v13 }
 0xb59   :  { %7585 = shalt.err (!%p7582_p6)
}
 0xb5a   :  { %7149 = dma.vmem_to_hbm [thread:$0]  %s7147_s11, 32, %s13432_s13, [#allocation3]  }
 0xb5b   :  { %7602 = dma.done.wait [#allocation3], 32  }
 0xb5c   :  { %7603 = vsyncadd [#allocation3], 4294967264 }
 0xb5d   :  { %7153 = vsyncpa [#allocation3], 1 }
 0xb5e   :  { %7154 = vsyncpa [#allocation4], 1 }
 0xb5f   :  { %7155 = vsyncpa [#allocation6], 1 }
 0xb60   :  { %7156 = vsyncpa [#allocation9], 1 }
 0xb61   :  { %7157 = vsyncpa [#allocation12], 1 }

</bundles_post_ra>
